<compile_context>
chip_gen: v7x
topology: tpu7x:2x2x1
jax: 0.10.0
libtpu: 0.0.40
codegen_flags: <defaults>
</compile_context>

<pallas_src>
import functools

import jax
import jax.numpy as jnp
from jax.experimental import pallas as pl
from jax.experimental.pallas import tpu as pltpu


def _round_up(x, m):
    return ((x + m - 1) // m) * m


def highway_mlp_kernel(x_ref, w_ref, b_ref, o_ref, *, num_layer, hidden_p):
    # x_ref: (tm, Hp) f32 activation tile
    # w_ref: (L, Hp, 2Hp) bf16  -- per layer, [Wh | Wt] concatenated on out axis
    # b_ref: (L, 1, 2Hp) f32    -- per layer, [bh | bt]
    x = x_ref[...].astype(jnp.float32)
    for l in range(num_layer):          # L is small & static -> unrolled
        w = w_ref[l]                    # (Hp, 2Hp) bf16, resident in VMEM
        b = b_ref[l]                    # (1, 2Hp) f32
        # One MXU matmul covers both the transform branch and the gate.
        lin = jnp.dot(x.astype(w.dtype), w,
                      preferred_element_type=jnp.float32) + b
        h = jnp.maximum(lin[:, :hidden_p], 0.0)    # relu(x @ Wh + bh)
        t = jax.nn.sigmoid(lin[:, hidden_p:])      # sigmoid(x @ Wt + bt)
        x = t * (h - x) + x                        # == t*h + (1-t)*x
    o_ref[...] = x.astype(o_ref.dtype)


@functools.partial(jax.jit, static_argnames=("hidden", "tm"))
def highway_mlp_forward(x, w_cat, b_cat, *, hidden, tm=128):
    """x: (B, hidden) f32; w_cat: (L, Hp, 2Hp) bf16; b_cat: (L, 1, 2Hp) f32."""
    B, H = x.shape
    assert H == hidden, "wrong feature size input to highway"
    L, Hp, twoHp = w_cat.shape
    assert twoHp == 2 * Hp

    # Pad the feature dim to the lane-aligned padded width used by the weights.
    if Hp != H:
        x = jnp.pad(x, ((0, 0), (0, Hp - H)))
    # Pad batch to a whole number of tiles.
    tm = min(tm, _round_up(B, 8))
    Bp = _round_up(B, tm)
    if Bp != B:
        x = jnp.pad(x, ((0, Bp - B), (0, 0)))
    grid = (Bp // tm,)

    kernel = functools.partial(highway_mlp_kernel, num_layer=L, hidden_p=Hp)
    out = pl.pallas_call(
        kernel,
        out_shape=jax.ShapeDtypeStruct((Bp, Hp), x.dtype),
        grid_spec=pltpu.PrefetchScalarGridSpec(
            num_scalar_prefetch=0,
            grid=grid,
            in_specs=[
                pl.BlockSpec((tm, Hp), lambda i: (i, 0)),             # activations
                pl.BlockSpec((L, Hp, 2 * Hp), lambda i: (0, 0, 0)),   # all weights
                pl.BlockSpec((L, 1, 2 * Hp), lambda i: (0, 0, 0)),    # all biases
            ],
            out_specs=pl.BlockSpec((tm, Hp), lambda i: (i, 0)),
        ),
        compiler_params=pltpu.CompilerParams(
            dimension_semantics=("parallel",),
            vmem_limit_bytes=48 * 1024 * 1024,   # safe on v5e/v6e/v7x
        ),
    )(x, w_cat, b_cat)
    return out[:B, :H]


def init_params(key, num_layer, hidden):
    # nn.Linear-style init: weight (out, in) and bias, both U(-1/sqrt(in), 1/sqrt(in)).
    scale = 1.0 / float(hidden) ** 0.5
    params = []
    for _ in range(num_layer):
        key, k1, k2, k3, k4 = jax.random.split(key, 5)
        wh = jax.random.uniform(k1, (hidden, hidden), jnp.float32, -scale, scale)
        bh = jax.random.uniform(k2, (hidden,), jnp.float32, -scale, scale)
        wt = jax.random.uniform(k3, (hidden, hidden), jnp.float32, -scale, scale)
        bt = jax.random.uniform(k4, (hidden,), jnp.float32, -scale, scale)
        params.append((wh, bh, wt, bt))
    return params


def pack_params(params, hidden):
    """Transpose to (in, out), zero-pad features to a multiple of 128, concat
    [Wh | Wt] per layer and stack layers: -> (L, Hp, 2Hp) bf16, (L, 1, 2Hp) f32."""
    Hp = _round_up(hidden, 128)
    pad = Hp - hidden
    ws, bs = [], []
    for (wh, bh, wt, bt) in params:
        wh_t = jnp.pad(wh.T, ((0, pad), (0, pad)))      # (Hp, Hp)
        wt_t = jnp.pad(wt.T, ((0, pad), (0, pad)))
        bh_p = jnp.pad(bh, (0, pad))
        bt_p = jnp.pad(bt, (0, pad))
        ws.append(jnp.concatenate([wh_t, wt_t], axis=1))        # (Hp, 2Hp)
        bs.append(jnp.concatenate([bh_p, bt_p])[None, :])       # (1, 2Hp)
    w_cat = jnp.stack(ws, axis=0).astype(jnp.bfloat16)          # (L, Hp, 2Hp)
    b_cat = jnp.stack(bs, axis=0).astype(jnp.float32)           # (L, 1, 2Hp)
    return w_cat, b_cat


def highway_mlp_reference(x, params, *, matmul_dtype=jnp.float32):
    # Plain-JAX transcription of the PyTorch forward. With matmul_dtype=bf16 the
    # matmul operands are rounded exactly like the MXU path (tight comparison);
    # with f32 it is the exact module semantics (loose comparison).
    def r(a):
        return a.astype(matmul_dtype).astype(jnp.float32)
    for (wh, bh, wt, bt) in params:
        xm = r(x)
        h = jax.nn.relu(xm @ r(wh).T + bh)
        t = jax.nn.sigmoid(xm @ r(wt).T + bt)
        x = t * h + (1.0 - t) * x
    return x


if __name__ == "__main__":
    NUM_LAYER = 2
    HIDDEN = 650      # module default; not lane aligned -> padded to 768 in-kernel
    BATCH = 256       # two 128-row tiles -> both v7x TensorCores get work

    key = jax.random.PRNGKey(0)
    key, xk = jax.random.split(key)
    x = jax.random.normal(xk, (BATCH, HIDDEN), jnp.float32)

    params = init_params(key, NUM_LAYER, HIDDEN)
    w_cat, b_cat = pack_params(params, HIDDEN)

    out = jax.block_until_ready(highway_mlp_forward(x, w_cat, b_cat, hidden=HIDDEN))
    assert out.shape == (BATCH, HIDDEN)

    # Tight check: same bf16-rounded matmul operands as the kernel's MXU path.
    ref_bf16 = highway_mlp_reference(x, params, matmul_dtype=jnp.bfloat16)
    assert jnp.allclose(out, ref_bf16, atol=2e-3, rtol=2e-3), "mismatch vs bf16 ref"

    # Loose check: exact f32 PyTorch semantics (bf16 weight rounding is the only delta).
    ref_f32 = highway_mlp_reference(x, params, matmul_dtype=jnp.float32)
    assert jnp.allclose(out, ref_f32, atol=2e-2, rtol=2e-2), "mismatch vs f32 ref"

    print("KERNEL_OK")
</pallas_src>

<mosaic_0001>
module attributes {stable_mosaic.version = 11 : i64} {
  func.func @highway_mlp_kernel(%arg0: i32, %arg1: memref<128x768xf32, #tpu.memory_space<vmem>>, %arg2: memref<2x768x1536xbf16, #tpu.memory_space<vmem>>, %arg3: memref<2x1x1536xf32, #tpu.memory_space<vmem>>, %arg4: memref<128x768xf32, #tpu.memory_space<vmem>>) attributes {dimension_semantics = [#tpu.dimension_semantics<parallel>], iteration_bounds = array<i64: 2>, scalar_prefetch = 0 : i64, scratch_operands = 0 : i64, tpu.core_type = #tpu.core_type<tc>, window_params = [{transform_indices = @transform_0, window_bounds = array<i64: 128, 768>}, {pipeline_mode = #tpu.pipeline_mode<synchronous>, transform_indices = @transform_1, window_bounds = array<i64: 2, 768, 1536>}, {pipeline_mode = #tpu.pipeline_mode<synchronous>, transform_indices = @transform_2, window_bounds = array<i64: 2, 1, 1536>}, {transform_indices = @transform_3, window_bounds = array<i64: 128, 768>}]} {
    %c0 = arith.constant 0 : index
    %c0_0 = arith.constant 0 : index
    %0 = vector.load %arg1[%c0, %c0_0] : memref<128x768xf32, #tpu.memory_space<vmem>>, vector<128x768xf32>
    %c0_1 = arith.constant 0 : index
    %c0_2 = arith.constant 0 : index
    %c0_3 = arith.constant 0 : index
    %1 = vector.load %arg2[%c0_1, %c0_2, %c0_3] : memref<2x768x1536xbf16, #tpu.memory_space<vmem>>, vector<1x768x1536xbf16>
    %2 = vector.shape_cast %1 : vector<1x768x1536xbf16> to vector<768x1536xbf16>
    %c0_4 = arith.constant 0 : index
    %c0_5 = arith.constant 0 : index
    %c0_6 = arith.constant 0 : index
    %3 = vector.load %arg3[%c0_4, %c0_5, %c0_6] : memref<2x1x1536xf32, #tpu.memory_space<vmem>>, vector<1x1x1536xf32>
    %4 = vector.shape_cast %3 : vector<1x1x1536xf32> to vector<1x1536xf32>
    %5 = arith.truncf %0 : vector<128x768xf32> to vector<128x768xbf16>
    %cst = arith.constant dense<0.000000e+00> : vector<128x1536xf32>
    %6 = tpu.matmul %5, %2, %cst {dimension_numbers = #tpu.dot_dimension_numbers<[1], [0], [0], [1], [0, 0, 1, 1], [], []>} : vector<128x768xbf16>, vector<768x1536xbf16>, vector<128x1536xf32> -> vector<128x1536xf32>
    %7 = vector.broadcast %4 : vector<1x1536xf32> to vector<128x1536xf32>
    %8 = arith.addf %6, %7 : vector<128x1536xf32>
    %9 = vector.extract_strided_slice %8 {offsets = [0, 0], sizes = [128, 768], strides = [1, 1]} : vector<128x1536xf32> to vector<128x768xf32>
    %cst_7 = arith.constant 0.000000e+00 : f32
    %10 = vector.broadcast %cst_7 : f32 to vector<128x768xf32>
    %11 = arith.maximumf %9, %10 : vector<128x768xf32>
    %12 = vector.extract_strided_slice %8 {offsets = [0, 768], sizes = [128, 768], strides = [1, 1]} : vector<128x1536xf32> to vector<128x768xf32>
    %13 = arith.negf %12 : vector<128x768xf32>
    %14 = math.exp %13 : vector<128x768xf32>
    %cst_8 = arith.constant 1.000000e+00 : f32
    %15 = vector.broadcast %cst_8 : f32 to vector<128x768xf32>
    %16 = arith.addf %15, %14 : vector<128x768xf32>
    %17 = arith.divf %15, %16 : vector<128x768xf32>
    %18 = arith.subf %11, %0 : vector<128x768xf32>
    %19 = arith.mulf %17, %18 : vector<128x768xf32>
    %20 = arith.addf %19, %0 : vector<128x768xf32>
    %c1 = arith.constant 1 : index
    %c0_9 = arith.constant 0 : index
    %c0_10 = arith.constant 0 : index
    %21 = vector.load %arg2[%c1, %c0_9, %c0_10] : memref<2x768x1536xbf16, #tpu.memory_space<vmem>>, vector<1x768x1536xbf16>
    %22 = vector.shape_cast %21 : vector<1x768x1536xbf16> to vector<768x1536xbf16>
    %c1_11 = arith.constant 1 : index
    %c0_12 = arith.constant 0 : index
    %c0_13 = arith.constant 0 : index
    %23 = vector.load %arg3[%c1_11, %c0_12, %c0_13] : memref<2x1x1536xf32, #tpu.memory_space<vmem>>, vector<1x1x1536xf32>
    %24 = vector.shape_cast %23 : vector<1x1x1536xf32> to vector<1x1536xf32>
    %25 = arith.truncf %20 : vector<128x768xf32> to vector<128x768xbf16>
    %cst_14 = arith.constant dense<0.000000e+00> : vector<128x1536xf32>
    %26 = tpu.matmul %25, %22, %cst_14 {dimension_numbers = #tpu.dot_dimension_numbers<[1], [0], [0], [1], [0, 0, 1, 1], [], []>} : vector<128x768xbf16>, vector<768x1536xbf16>, vector<128x1536xf32> -> vector<128x1536xf32>
    %27 = vector.broadcast %24 : vector<1x1536xf32> to vector<128x1536xf32>
    %28 = arith.addf %26, %27 : vector<128x1536xf32>
    %29 = vector.extract_strided_slice %28 {offsets = [0, 0], sizes = [128, 768], strides = [1, 1]} : vector<128x1536xf32> to vector<128x768xf32>
    %cst_15 = arith.constant 0.000000e+00 : f32
    %30 = vector.broadcast %cst_15 : f32 to vector<128x768xf32>
    %31 = arith.maximumf %29, %30 : vector<128x768xf32>
    %32 = vector.extract_strided_slice %28 {offsets = [0, 768], sizes = [128, 768], strides = [1, 1]} : vector<128x1536xf32> to vector<128x768xf32>
    %33 = arith.negf %32 : vector<128x768xf32>
    %34 = math.exp %33 : vector<128x768xf32>
    %cst_16 = arith.constant 1.000000e+00 : f32
    %35 = vector.broadcast %cst_16 : f32 to vector<128x768xf32>
    %36 = arith.addf %35, %34 : vector<128x768xf32>
    %37 = arith.divf %35, %36 : vector<128x768xf32>
    %38 = arith.subf %31, %20 : vector<128x768xf32>
    %39 = arith.mulf %37, %38 : vector<128x768xf32>
    %40 = arith.addf %39, %20 : vector<128x768xf32>
    %c0_17 = arith.constant 0 : index
    %c0_18 = arith.constant 0 : index
    %41 = vector.load %arg4[%c0_17, %c0_18] : memref<128x768xf32, #tpu.memory_space<vmem>>, vector<128x768xf32>
    tpu.vector_store %arg4[%c0_17, %c0_18], %40 {strides = array<i32>} : memref<128x768xf32, #tpu.memory_space<vmem>>, vector<128x768xf32>,
    return
  }
  func.func @transform_0(%arg0: i32) -> (i32, i32) {
    %c0_i32 = arith.constant 0 : i32
    %c0_i32_0 = arith.constant 0 : i32
    return %arg0, %c0_i32 : i32, i32
  }
  func.func @transform_1(%arg0: i32) -> (i32, i32, i32) {
    %c0_i32 = arith.constant 0 : i32
    %c0_i32_0 = arith.constant 0 : i32
    %c0_i32_1 = arith.constant 0 : i32
    %c0_i32_2 = arith.constant 0 : i32
    return %c0_i32, %c0_i32_0, %c0_i32_1 : i32, i32, i32
  }
  func.func @transform_2(%arg0: i32) -> (i32, i32, i32) {
    %c0_i32 = arith.constant 0 : i32
    %c0_i32_0 = arith.constant 0 : i32
    %c0_i32_1 = arith.constant 0 : i32
    %c0_i32_2 = arith.constant 0 : i32
    return %c0_i32, %c0_i32_0, %c0_i32_1 : i32, i32, i32
  }
  func.func @transform_3(%arg0: i32) -> (i32, i32) {
    %c0_i32 = arith.constant 0 : i32
    %c0_i32_0 = arith.constant 0 : i32
    return %arg0, %c0_i32 : i32, i32
  }
}

</mosaic_0001>

<bundles_post_ra>
// kernel: highway_mlp_forward.1
= control target key start
LH: loop header
LB: loop body
LE: loop exit
PB: predicated region body
PF: predicated region fallthrough
CT: control target
= control target key end

     0   :  { %8 = vsyncpa [#allocation3], 0  ;;  %s22861_s0 = inlined_call_operand.vmem [shape: f32[256,768], index: 0, kind: input, shape index: {}]   ;;  %s22862_s1 = inlined_call_operand.hbm [shape: bf16[2,768,1536], index: 1, kind: input, shape index: {}]   ;;  %s22863_s2 = inlined_call_operand.hbm [shape: f32[2,1,1536], index: 2, kind: input, shape index: {}]   ;;  %s22864_s3 = inlined_call_operand.vmem [shape: f32[256,768], index: 3, kind: output, shape index: {}]  }
   0x1   :  { %9 = vsyncpa [#allocation5], 0  ;;  %s18876_s12 = smov 0  }
   0x2 LB: > { %s18850_s13 = smov [#allocation2]   ;;  %s13607_s15 = sadd.s32 4294967295, %s18848_s12   ;;  %s18848_s12 = sphi %s18876_s12, %s15_s12  }
   0x3   : > { %s126_s14 = sshll.u32 %s18850_s13, 4  ;;  %p13609_p0 = scmp.ge.s32.totalorder %s18848_s12, 1  ;;  %s127_s14 = int_to_ptr.vmem [resolvable:$true] %s126_s14 }
   0x4   : > { %p114_p1 = scmp.lt.s32.totalorder %s18848_s12, 3  ;;  %p18890_p3 = scmp.eq.s32.totalorder %s13607_s15, 0 }
   0x5   : > { %s18851_s18 = smov [#allocation4]   ;;  %s18778_s23 = scalar_lea.hbm %s22862_s1, 147456 }
   0x6   : > { %p18884_p2 = pnand %p13609_p0, %p114_p1  ;;  %s139_s19 = sshll.u32 %s18851_s18, 4  ;;  %s18902_s19 = int_to_ptr.vmem [resolvable:$true] %s139_s19 }
   0x7   : > { %s23151_s17 = scalar_select %p18890_p3, 1, 0 }
   0x8   : > { %s23150_s16 = scalar_select %p18884_p2, 1, 0 }
   0x9   : > { %p16127_p4 = pneg %p18884_p2  ;;  %p18779_p6 = scmp.ne.s32.totalorder %s22862_s1, %s18778_s23 }
   0xa   : > { %p18785_p10 = scmp.lt.u32.totalorder %s18778_s23, %s22862_s1 }
   0xb   : > { %p18898_p5 = pnand %p18890_p3, %p16127_p4 }
   0xd   : > { %p18780_p7 = pneg %p18898_p5 }
   0xf   : > { %p18781_p8 = pnand %p18780_p7, %p18779_p6 }
  0x11   : > { %p18782_p9 = pneg %p18781_p8 }
  0x13   : > { %p18787_p11 = pnand %p18785_p10, %p18782_p9 }
  0x15   : > { %18790 = shalt.err (!%p18787_p11)
}
  0x16   : > { %s18791_s28 = scalar_lea.vmem %s127_s14, 147456  ;;  %p18799_p1 = scmp.lt.s32.totalorder %s127_s14, %s127_s14 }
  0x17   : > { %p18792_p12 = scmp.ne.s32.totalorder %s127_s14, %s18791_s28  ;;  %p18800_p4 = scmp.lt.s32.totalorder %s18791_s28, %s18791_s28 }
  0x19   : > { %p18794_p13 = pnand %p18792_p12, %p18780_p7  ;;  %p18801_p3 = por %p18800_p4, %p18799_p1 }
  0x1b   : > { %p18795_p0 = pneg %p18794_p13 }
  0x1d   : > { %p18802_p2 = pnand %p18801_p3, %p18795_p0 }
  0x1f   : > { %18805 = shalt.err (!%p18802_p2)
}
  0x20   : > { %s18852_s29 = smov 768   ;;  %s18853_s30 = smov 48  }
  0x21   : > { %16130 = dma.hbm_to_vmem [thread:$0]  (!%p18898_p5), %s22862_s1, 147456, %s127_s14, [#allocation3], %s18852_s29, %s18852_s29, %s18853_s30  }
  0x22   : > { %s18806_s8 = scalar_lea.hbm %s22863_s2, 384 }
  0x23   : > { %p18807_p6 = scmp.ne.s32.totalorder %s22863_s2, %s18806_s8  ;;  %p18813_p8 = scmp.lt.u32.totalorder %s18806_s8, %s22863_s2 }
  0x25   : > { %p18809_p2 = pnand %p18807_p6, %p18780_p7 }
  0x27   : > { %p18810_p3 = pneg %p18809_p2 }
  0x29   : > { %p18815_p9 = pnand %p18813_p8, %p18810_p3 }
  0x2b   : > { %18818 = shalt.err (!%p18815_p9)
}
  0x2c   : > { %s18819_s14 = scalar_lea.vmem %s18902_s19, 384  ;;  %p18827_p13 = scmp.lt.s32.totalorder %s18902_s19, %s18902_s19 }
  0x2d   : > { %p18820_p10 = scmp.ne.s32.totalorder %s18902_s19, %s18819_s14  ;;  %p18828_p0 = scmp.lt.s32.totalorder %s18819_s14, %s18819_s14 }
  0x2f   : > { %p18822_p11 = pnand %p18820_p10, %p18780_p7  ;;  %p18829_p1 = por %p18828_p0, %p18827_p13 }
  0x31   : > { %p18823_p12 = pneg %p18822_p11 }
  0x33   : > { %p18830_p4 = pnand %p18829_p1, %p18823_p12 }
  0x35   : > { %18833 = shalt.err (!%p18830_p4)
}
  0x36   : > { %s18854_s18 = smov 192   ;;  %s18855_s21 = smov 12  }
  0x37   : > { %16133 = dma.hbm_to_vmem [thread:$0]  (!%p18898_p5), %s22863_s2, 384, %s18902_s19, [#allocation5], %s18854_s18, %s18854_s18, %s18855_s21  }
  0x38   : > { %p23153_p6 = scmp.ne.s32.totalorder %s23150_s16, 0 }
  0x3a   : > { %165 = sbr.rel (%p23153_p6) target bundleno = 1773 (0x6ed), region = 32 }
  0x41   : > { %p23154_p7 = scmp.ne.s32.totalorder %s23151_s17, 0 }
  0x43   : > { %18839 = dma.done.wait (%p23154_p7), [#allocation3], 147456  }
  0x44   : > { %18841 = vsyncadd (%p23154_p7), [#allocation3], 4294819840 }
  0x45   : > { %18843 = dma.done.wait (%p23154_p7), [#allocation5], 384  }
  0x46   : > { %18845 = vsyncadd (%p23154_p7), [#allocation5], 4294966912  ;;  %v16152_v0 = vld [vmem:[#allocation2 + $0x4] ss:$48 sps:$4 sm:$0xff]   ;;  %v16154_v1 = vld [vmem:[#allocation2 + $0xc] ss:$48 sps:$4 sm:$0xff]  }
  0x47   : > { %3873 = vmatprep.subr.bf16.mxu0 %v16152_v0  ;;  %v16156_v2 = vld [vmem:[#allocation2] ss:$48 sps:$4 sm:$0xff]   ;;  %v16157_v3 = vld [vmem:[#allocation2 + $0x8] ss:$48 sps:$4 sm:$0xff]   ;;  %4212 = vmatprep.subr.bf16.mxu1 %v16154_v1  ;;  %v16158_v4 = vld [vmem:[#allocation2 + $0x64] ss:$48 sps:$4 sm:$0xff]  }
  0x48   : > { %3874 = vmatpush1.bf16.msra.mxu0 %v16156_v2  ;;  %4213 = vmatpush1.bf16.msra.mxu1 %v16157_v3  ;;  %v16160_v5 = vld [vmem:[#allocation2 + $0x6c] ss:$48 sps:$4 sm:$0xff]   ;;  %v16162_v6 = vld [vmem:[#allocation2 + $0x60] ss:$48 sps:$4 sm:$0xff]   ;;  %v16163_v7 = vld [vmem:[#allocation2 + $0x68] ss:$48 sps:$4 sm:$0xff]  }
  0x49   : > { %3875 = vmatprep.subr.bf16.mxu0 %v16158_v4  ;;  %4214 = vmatprep.subr.bf16.mxu1 %v16160_v5  ;;  %v16164_v8 = vld [vmem:[#allocation2 + $0xc4] ss:$48 sps:$4 sm:$0xff]   ;;  %v16166_v9 = vld [vmem:[#allocation2 + $0xcc] ss:$48 sps:$4 sm:$0xff]   ;;  %v16168_v10 = vld [vmem:[#allocation2 + $0xc0] ss:$48 sps:$4 sm:$0xff]  }
  0x4a   : > { %v16169_v11 = vld [vmem:[#allocation2 + $0xc8] ss:$48 sps:$4 sm:$0xff]   ;;  %v16170_v12 = vld [vmem:[#allocation2 + $0x124] ss:$48 sps:$4 sm:$0xff]   ;;  %v16172_v13 = vld [vmem:[#allocation2 + $0x12c] ss:$48 sps:$4 sm:$0xff]  }
  0x4b   : > { %v16174_v14 = vld [vmem:[#allocation2 + $0x120] ss:$48 sps:$4 sm:$0xff]   ;;  %v16175_v15 = vld [vmem:[#allocation2 + $0x128] ss:$48 sps:$4 sm:$0xff]   ;;  %v16176_v16 = vld [vmem:[#allocation2 + $0x184] ss:$48 sps:$4 sm:$0xff]  }
  0x4c   : > { %3876 = vmatpush1.bf16.msra.mxu0 %v16162_v6  ;;  %4215 = vmatpush1.bf16.msra.mxu1 %v16163_v7  ;;  %v16178_v17 = vld [vmem:[#allocation2 + $0x18c] ss:$48 sps:$4 sm:$0xff]   ;;  %v16180_v18 = vld [vmem:[#allocation2 + $0x180] ss:$48 sps:$4 sm:$0xff]   ;;  %v16181_v19 = vld [vmem:[#allocation2 + $0x188] ss:$48 sps:$4 sm:$0xff]  }
  0x4d   : > { %3877 = vmatprep.subr.bf16.mxu0 %v16164_v8  ;;  %4216 = vmatprep.subr.bf16.mxu1 %v16166_v9  ;;  %v16182_v20 = vld [vmem:[#allocation2 + $0x1e4] ss:$48 sps:$4 sm:$0xff]   ;;  %v16184_v21 = vld [vmem:[#allocation2 + $0x1ec] ss:$48 sps:$4 sm:$0xff]   ;;  %v16186_v22 = vld [vmem:[#allocation2 + $0x1e0] ss:$48 sps:$4 sm:$0xff]  }
  0x4e   : > { %v16187_v23 = vld [vmem:[#allocation2 + $0x1e8] ss:$48 sps:$4 sm:$0xff]   ;;  %v16188_v24 = vld [vmem:[#allocation2 + $0x244] ss:$48 sps:$4 sm:$0xff]   ;;  %v16190_v25 = vld [vmem:[#allocation2 + $0x24c] ss:$48 sps:$4 sm:$0xff]  }
  0x4f   : > { %v16192_v26 = vld [vmem:[#allocation2 + $0x240] ss:$48 sps:$4 sm:$0xff]   ;;  %v16193_v27 = vld [vmem:[#allocation2 + $0x248] ss:$48 sps:$4 sm:$0xff]   ;;  %v16194_v28 = vld [vmem:[#allocation2 + $0x2a4] ss:$48 sps:$4 sm:$0xff]  }
  0x50   : > { %3878 = vmatpush1.bf16.msra.mxu0 %v16168_v10  ;;  %4217 = vmatpush1.bf16.msra.mxu1 %v16169_v11  ;;  %s13616_s16 = sshll.u32 %s13607_s15, 4  ;;  %v16196_v29 = vld [vmem:[#allocation2 + $0x2ac] ss:$48 sps:$4 sm:$0xff]   ;;  %v16198_v30 = vld [vmem:[#allocation2 + $0x2a0] ss:$48 sps:$4 sm:$0xff]  }
  0x51   : > { %3879 = vmatprep.subr.bf16.mxu0 %v16170_v12  ;;  %4218 = vmatprep.subr.bf16.mxu1 %v16172_v13  ;;  %p196_p5 = scmp.lt.s32.totalorder %s13616_s16, 31  ;;  %v16199_v31 = vld [vmem:[#allocation2 + $0x2a8] ss:$48 sps:$4 sm:$0xff]   ;;  %v16200_v32 = vld [vmem:[#allocation2 + $0x304] ss:$48 sps:$4 sm:$0xff]  }
  0x52   : > { %v16202_v33 = vld [vmem:[#allocation2 + $0x30c] ss:$48 sps:$4 sm:$0xff]   ;;  %v16204_v34 = vld [vmem:[#allocation2 + $0x300] ss:$48 sps:$4 sm:$0xff]   ;;  %v16205_v35 = vld [vmem:[#allocation2 + $0x308] ss:$48 sps:$4 sm:$0xff]  }
  0x53   : > { %s23948_s16 = smov (!%p196_p5, %s13616_s16), 31  ;;  %v16206_v36 = vld [vmem:[#allocation2 + $0x364] ss:$48 sps:$4 sm:$0xff]   ;;  %v16208_v37 = vld [vmem:[#allocation2 + $0x36c] ss:$48 sps:$4 sm:$0xff]  }
  0x54   : > { %3880 = vmatpush1.bf16.msra.mxu0 %v16174_v14  ;;  %4219 = vmatpush1.bf16.msra.mxu1 %v16175_v15  ;;  %v16210_v38 = vld [vmem:[#allocation2 + $0x360] ss:$48 sps:$4 sm:$0xff]   ;;  %s16118_s15 = smul.u32 48, %s23948_s16  ;;  %v16211_v39 = vld [vmem:[#allocation2 + $0x368] ss:$48 sps:$4 sm:$0xff]  }
  0x55   : > { %3881 = vmatprep.subr.bf16.mxu0 %v16176_v16  ;;  %4220 = vmatprep.subr.bf16.mxu1 %v16178_v17  ;;  %v16212_v40 = vld [vmem:[#allocation2 + $0x3c4] ss:$48 sps:$4 sm:$0xff]   ;;  %v16214_v41 = vld [vmem:[#allocation2 + $0x3cc] ss:$48 sps:$4 sm:$0xff]   ;;  %v16216_v42 = vld [vmem:[#allocation2 + $0x3c0] ss:$48 sps:$4 sm:$0xff]  }
  0x56   : > { %v16217_v43 = vld [vmem:[#allocation2 + $0x3c8] ss:$48 sps:$4 sm:$0xff]   ;;  %s18971_s20 = scalar_lea.vmem %s22861_s0, %s16118_s15  ;;  %v16218_v44 = vld [vmem:[#allocation2 + $0x424] ss:$48 sps:$4 sm:$0xff]   ;;  %v16220_v45 = vld [vmem:[#allocation2 + $0x42c] ss:$48 sps:$4 sm:$0xff]   ;;  %s21913_s26 = scalar_lea.vmem %s22864_s3, %s16118_s15 }
  0x57   : > { %v210_v46 = vld [vmem:[%s18971_s20 + $0x8] sm:$0xff]  ;;  %v16222_v47 = vld [vmem:[#allocation2 + $0x420] ss:$48 sps:$4 sm:$0xff]   ;;  %v216_v49 = vld [vmem:[%s18971_s20 + $0x38] sm:$0xff] }
  0x58   : > { %3882 = vmatpush1.bf16.msra.mxu0 %v16180_v18  ;;  %4221 = vmatpush1.bf16.msra.mxu1 %v16181_v19  ;;  %v16223_v48 = vld [vmem:[#allocation2 + $0x428] ss:$48 sps:$4 sm:$0xff]   ;;  %v16224_v50 = vld [vmem:[#allocation2 + $0x484] ss:$48 sps:$4 sm:$0xff]   ;;  %v18975_v51 = vpack.c.bf16 %v216_v49, %v210_v46  ;;  %v16226_v52 = vld [vmem:[#allocation2 + $0x48c] ss:$48 sps:$4 sm:$0xff]  }
  0x59   : > { %3883 = vmatprep.subr.bf16.mxu0 %v16182_v20  ;;  %4222 = vmatprep.subr.bf16.mxu1 %v16184_v21  ;;  %v16228_v53 = vld [vmem:[#allocation2 + $0x480] ss:$48 sps:$4 sm:$0xff]   ;;  %v16229_v54 = vld [vmem:[#allocation2 + $0x488] ss:$48 sps:$4 sm:$0xff]   ;;  %v16230_v55 = vld [vmem:[#allocation2 + $0x4e4] ss:$48 sps:$4 sm:$0xff]  }
  0x5a   : > { %3905 = vmatprep.mubr.bf16.mxu0 %v18975_v51  ;;  %4244 = vmatprep.mubr.bf16.mxu1 %v18975_v51  ;;  %v16232_v56 = vld [vmem:[#allocation2 + $0x4ec] ss:$48 sps:$4 sm:$0xff]   ;;  %v16234_v57 = vld [vmem:[#allocation2 + $0x4e0] ss:$48 sps:$4 sm:$0xff]   ;;  %v16235_v58 = vld [vmem:[#allocation2 + $0x4e8] ss:$48 sps:$4 sm:$0xff]  }
  0x5b   : > { %v16236_v59 = vld [vmem:[#allocation2 + $0x544] ss:$48 sps:$4 sm:$0xff]   ;;  %v16238_v60 = vld [vmem:[#allocation2 + $0x54c] ss:$48 sps:$4 sm:$0xff]   ;;  %v16240_v61 = vld [vmem:[#allocation2 + $0x540] ss:$48 sps:$4 sm:$0xff]  }
  0x5c   : > { %3884 = vmatpush1.bf16.msra.mxu0 %v16186_v22  ;;  %4223 = vmatpush1.bf16.msra.mxu1 %v16187_v23  ;;  %v16241_v62 = vld [vmem:[#allocation2 + $0x548] ss:$48 sps:$4 sm:$0xff]   ;;  %v16242_v63 = vld [vmem:[#allocation2 + $0x5a4] ss:$48 sps:$4 sm:$0xff]   ;;  %v16244_v0 = vld [vmem:[#allocation2 + $0x5ac] ss:$48 sps:$4 sm:$0xff]  }
  0x5d   : > { %3885 = vmatprep.subr.bf16.mxu0 %v16188_v24  ;;  %4224 = vmatprep.subr.bf16.mxu1 %v16190_v25  ;;  %v16246_v1 = vld [vmem:[#allocation2 + $0x5a0] ss:$48 sps:$4 sm:$0xff]   ;;  %v16247_v2 = vld [vmem:[#allocation2 + $0x5a8] ss:$48 sps:$4 sm:$0xff]   ;;  %v16250_v5 = vld [vmem:[#allocation2 + $0x604] ss:$48 sps:$4 sm:$0xff]  }
  0x5e   : > { %v209_v3 = vld [vmem:[%s18971_s20] sm:$0xff]  ;;  %v215_v4 = vld [vmem:[%s18971_s20 + $0x30] sm:$0xff]  ;;  %v16253_v6 = vld [vmem:[#allocation2 + $0x60c] ss:$48 sps:$4 sm:$0xff]  }
  0x5f   : > { %v16248_v7 = vld [vmem:[#allocation2 + $0x600] ss:$48 sps:$4 sm:$0xff]   ;;  %v18981_v8 = vpack.c.bf16 %v215_v4, %v209_v3  ;;  %v16251_v9 = vld [vmem:[#allocation2 + $0x608] ss:$48 sps:$4 sm:$0xff]   ;;  %v16256_v12 = vld [vmem:[#allocation2 + $0x664] ss:$48 sps:$4 sm:$0xff]  }
  0x60   : > { %3886 = vmatpush1.bf16.msra.mxu0 %v16192_v26  ;;  %4225 = vmatpush1.bf16.msra.mxu1 %v16193_v27  ;;  %v222_v10 = vld [vmem:[%s18971_s20 + $0x68] sm:$0xff]  ;;  %v228_v11 = vld [vmem:[%s18971_s20 + $0x98] sm:$0xff]  ;;  %v16254_v14 = vld [vmem:[#allocation2 + $0x660] ss:$48 sps:$4 sm:$0xff]  }
  0x61   : > { %3887 = vmatprep.subr.bf16.mxu0 %v16194_v28  ;;  %4226 = vmatprep.subr.bf16.mxu1 %v16196_v29  ;;  %v16259_v13 = vld [vmem:[#allocation2 + $0x66c] ss:$48 sps:$4 sm:$0xff]   ;;  %v18985_v15 = vpack.c.bf16 %v228_v11, %v222_v10  ;;  %v16257_v16 = vld [vmem:[#allocation2 + $0x668] ss:$48 sps:$4 sm:$0xff]   ;;  %v221_v17 = vld [vmem:[%s18971_s20 + $0x60] sm:$0xff] }
  0x62   : > { %v227_v18 = vld [vmem:[%s18971_s20 + $0x90] sm:$0xff]  ;;  %v16265_v20 = vld [vmem:[#allocation2 + $0x6cc] ss:$48 sps:$4 sm:$0xff]   ;;  %v16263_v22 = vld [vmem:[#allocation2 + $0x6c8] ss:$48 sps:$4 sm:$0xff]  }
  0x63   : > { %v16262_v19 = vld [vmem:[#allocation2 + $0x6c4] ss:$48 sps:$4 sm:$0xff]   ;;  %v16260_v21 = vld [vmem:[#allocation2 + $0x6c0] ss:$48 sps:$4 sm:$0xff]   ;;  %v18993_v23 = vpack.c.bf16 %v227_v18, %v221_v17  ;;  %v234_v24 = vld [vmem:[%s18971_s20 + $0xc8] sm:$0xff] }
  0x64   : > { %3888 = vmatpush1.bf16.msra.mxu0 %v16198_v30  ;;  %4227 = vmatpush1.bf16.msra.mxu1 %v16199_v31  ;;  %v240_v25 = vld [vmem:[%s18971_s20 + $0xf8] sm:$0xff]  ;;  %v16268_v26 = vld [vmem:[#allocation2 + $0x724] ss:$48 sps:$4 sm:$0xff]   ;;  %v16266_v29 = vld [vmem:[#allocation2 + $0x720] ss:$48 sps:$4 sm:$0xff]  }
  0x65   : > { %3889 = vmatprep.subr.bf16.mxu0 %v16200_v32  ;;  %4228 = vmatprep.subr.bf16.mxu1 %v16202_v33  ;;  %v16271_v27 = vld [vmem:[#allocation2 + $0x72c] ss:$48 sps:$4 sm:$0xff]   ;;  %v18997_v28 = vpack.c.bf16 %v240_v25, %v234_v24  ;;  %v16269_v30 = vld [vmem:[#allocation2 + $0x728] ss:$48 sps:$4 sm:$0xff]   ;;  %v233_v31 = vld [vmem:[%s18971_s20 + $0xc0] sm:$0xff] }
  0x66   : > { %v239_v32 = vld [vmem:[%s18971_s20 + $0xf0] sm:$0xff]  ;;  %v16299_v4 = vld [vmem:[#allocation2 + $0x908] ss:$48 sps:$4 sm:$0xff]   ;;  %v269_v11 = vld [vmem:[%s18971_s20 + $0x1e0] sm:$0xff] }
  0x67   : > { %v16274_v33 = vld [vmem:[#allocation2 + $0x784] ss:$48 sps:$4 sm:$0xff]   ;;  %v16284_v49 = vld [vmem:[#allocation2 + $0x840] ss:$48 sps:$4 sm:$0xff]   ;;  %v16311_v18 = vld [vmem:[#allocation2 + $0x9c8] ss:$48 sps:$4 sm:$0xff]  }
  0x68   : > { %3890 = vmatpush1.bf16.msra.mxu0 %v16204_v34  ;;  %4229 = vmatpush1.bf16.msra.mxu1 %v16205_v35  ;;  %v16277_v34 = vld [vmem:[#allocation2 + $0x78c] ss:$48 sps:$4 sm:$0xff]   ;;  %v16272_v35 = vld [vmem:[#allocation2 + $0x780] ss:$48 sps:$4 sm:$0xff]  }
  0x69   : > { %3891 = vmatprep.subr.bf16.mxu0 %v16206_v36  ;;  %4230 = vmatprep.subr.bf16.mxu1 %v16208_v37  ;;  %v16275_v36 = vld [vmem:[#allocation2 + $0x788] ss:$48 sps:$4 sm:$0xff]   ;;  %v19005_v37 = vpack.c.bf16 %v239_v32, %v233_v31  ;;  %v251_v46 = vld [vmem:[%s18971_s20 + $0x150] sm:$0xff]  ;;  %v16325_v31 = vld [vmem:[#allocation2 + $0xa8c] ss:$48 sps:$4 sm:$0xff]  }
  0x6a   : > { %v16296_v3 = vld [vmem:[#allocation2 + $0x900] ss:$48 sps:$4 sm:$0xff]  }
  0x6b   : > { %v16314_v24 = vld [vmem:[#allocation2 + $0xa20] ss:$48 sps:$4 sm:$0xff]  }
  0x6c   : > { %3892 = vmatpush1.bf16.msra.mxu0 %v16210_v38  ;;  %4231 = vmatpush1.bf16.msra.mxu1 %v16211_v39  ;;  %v246_v38 = vld [vmem:[%s18971_s20 + $0x128] sm:$0xff]  ;;  %v252_v39 = vld [vmem:[%s18971_s20 + $0x158] sm:$0xff]  ;;  %v16320_v32 = vld [vmem:[#allocation2 + $0xa80] ss:$48 sps:$4 sm:$0xff]  }
  0x6d   : > { %3893 = vmatprep.subr.bf16.mxu0 %v16212_v40  ;;  %4232 = vmatprep.subr.bf16.mxu1 %v16214_v41  ;;  %v16280_v40 = vld [vmem:[#allocation2 + $0x7e4] ss:$48 sps:$4 sm:$0xff]   ;;  %v16283_v41 = vld [vmem:[#allocation2 + $0x7ec] ss:$48 sps:$4 sm:$0xff]  }
  0x70   : > { %3894 = vmatpush1.bf16.msra.mxu0 %v16216_v42  ;;  %4233 = vmatpush1.bf16.msra.mxu1 %v16217_v43  ;;  %v16278_v42 = vld [vmem:[#allocation2 + $0x7e0] ss:$48 sps:$4 sm:$0xff]   ;;  %v19009_v43 = vpack.c.bf16 %v252_v39, %v246_v38  ;;  %v16328_v38 = vld [vmem:[#allocation2 + $0xae4] ss:$48 sps:$4 sm:$0xff]   ;;  %v16331_v39 = vld [vmem:[#allocation2 + $0xaec] ss:$48 sps:$4 sm:$0xff]  }
  0x71   : > { %3895 = vmatprep.subr.bf16.mxu0 %v16218_v44  ;;  %4234 = vmatprep.subr.bf16.mxu1 %v16220_v45  ;;  %v16281_v44 = vld [vmem:[#allocation2 + $0x7e8] ss:$48 sps:$4 sm:$0xff]   ;;  %v245_v45 = vld [vmem:[%s18971_s20 + $0x120] sm:$0xff] }
  0x74   : > { %3896 = vmatpush1.bf16.msra.mxu0 %v16222_v47  ;;  %4235 = vmatpush1.bf16.msra.mxu1 %v16223_v48  ;;  %v16286_v47 = vld [vmem:[#allocation2 + $0x844] ss:$48 sps:$4 sm:$0xff]   ;;  %v16289_v48 = vld [vmem:[#allocation2 + $0x84c] ss:$48 sps:$4 sm:$0xff]  }
  0x75   : > { %3897 = vmatprep.subr.bf16.mxu0 %v16224_v50  ;;  %4236 = vmatprep.subr.bf16.mxu1 %v16226_v52  ;;  %v19017_v50 = vpack.c.bf16 %v251_v46, %v245_v45  ;;  %v258_v52 = vld [vmem:[%s18971_s20 + $0x188] sm:$0xff]  ;;  %v299_v45 = vld [vmem:[%s18971_s20 + $0x2d0] sm:$0xff] }
  0x76   : > { %v16334_v46 = vld [vmem:[#allocation2 + $0xb44] ss:$48 sps:$4 sm:$0xff]  }
  0x78   : > { %3898 = vmatpush1.bf16.msra.mxu0 %v16228_v53  ;;  %4237 = vmatpush1.bf16.msra.mxu1 %v16229_v54  ;;  %v264_v53 = vld [vmem:[%s18971_s20 + $0x1b8] sm:$0xff] }
  0x79   : > { %3899 = vmatprep.subr.bf16.mxu0 %v16230_v55  ;;  %4238 = vmatprep.subr.bf16.mxu1 %v16232_v56  ;;  %v16287_v54 = vld [vmem:[#allocation2 + $0x848] ss:$48 sps:$4 sm:$0xff]   ;;  %v16292_v55 = vld [vmem:[#allocation2 + $0x8a4] ss:$48 sps:$4 sm:$0xff]   ;;  %v16295_v56 = vld [vmem:[#allocation2 + $0x8ac] ss:$48 sps:$4 sm:$0xff]  }
  0x7c   : > { %3900 = vmatpush1.bf16.msra.mxu0 %v16234_v57  ;;  %4239 = vmatpush1.bf16.msra.mxu1 %v16235_v58  ;;  %v16290_v57 = vld [vmem:[#allocation2 + $0x8a0] ss:$48 sps:$4 sm:$0xff]   ;;  %v16293_v58 = vld [vmem:[#allocation2 + $0x8a8] ss:$48 sps:$4 sm:$0xff]  }
  0x7d   : > { %3901 = vmatprep.subr.bf16.mxu0 %v16236_v59  ;;  %4240 = vmatprep.subr.bf16.mxu1 %v16238_v60  ;;  %v19021_v59 = vpack.c.bf16 %v264_v53, %v258_v52  ;;  %v257_v60 = vld [vmem:[%s18971_s20 + $0x180] sm:$0xff]  ;;  %v212_v53 = vld [vmem:[%s18971_s20 + $0x18] sm:$0xff] }
  0x80   : > { %3902 = vmatpush1.bf16.msra.mxu0 %v16240_v61  ;;  %4241 = vmatpush1.bf16.msra.mxu1 %v16241_v62  ;;  %v263_v61 = vld [vmem:[%s18971_s20 + $0x1b0] sm:$0xff] }
  0x81   : > { %3903 = vmatprep.subr.bf16.mxu0 %v16242_v63  ;;  %4242 = vmatprep.subr.bf16.mxu1 %v16244_v0  ;;  %v16298_v62 = vld [vmem:[#allocation2 + $0x904] ss:$48 sps:$4 sm:$0xff]   ;;  %v16301_v63 = vld [vmem:[#allocation2 + $0x90c] ss:$48 sps:$4 sm:$0xff]   ;;  %v19029_v0 = vpack.c.bf16 %v263_v61, %v257_v60  ;;  %v16341_v60 = vld [vmem:[#allocation2 + $0xba8] ss:$48 sps:$4 sm:$0xff]  }
  0x82   : > { %v211_v61 = vld [vmem:[%s18971_s20 + $0x10] sm:$0xff] }
  0x84   : > { %3904 = vmatpush1.bf16.msra.mxu0 %v16246_v1  ;;  %4243 = vmatpush1.bf16.msra.mxu1 %v16247_v2  ;;  %v270_v1 = vld [vmem:[%s18971_s20 + $0x1e8] sm:$0xff]  ;;  %v276_v2 = vld [vmem:[%s18971_s20 + $0x218] sm:$0xff] }
  0x85   : > { %3986 = vmatprep.subr.bf16.mxu0 %v16250_v5  ;;  %4325 = vmatprep.subr.bf16.mxu1 %v16253_v6  ;;  %v16304_v5 = vld [vmem:[#allocation2 + $0x964] ss:$48 sps:$4 sm:$0xff]   ;;  %v16307_v6 = vld [vmem:[#allocation2 + $0x96c] ss:$48 sps:$4 sm:$0xff]   ;;  %v19033_v10 = vpack.c.bf16 %v276_v2, %v270_v1  ;;  %v16344_v2 = vld [vmem:[#allocation2 + $0xc00] ss:$48 sps:$4 sm:$0xff]  }
  0x86   : > { %v16349_v1 = vld [vmem:[#allocation2 + $0xc0c] ss:$48 sps:$4 sm:$0xff]  }
  0x87   : > { %3906 = vmatmul.mubr.bf16.vlgmr.msra.gmra.mrb[0].mxu0 %v18981_v8  ;;  %4245 = vmatmul.mubr.bf16.vlgmr.msra.gmra.mrb[0].mxu1 %v18981_v8 }
  0x88   : > { %3987 = vmatpush1.bf16.msra.mxu0 %v16248_v7  ;;  %4326 = vmatpush1.bf16.msra.mxu1 %v16251_v9  ;;  %v16302_v7 = vld [vmem:[#allocation2 + $0x960] ss:$48 sps:$4 sm:$0xff]   ;;  %v16305_v9 = vld [vmem:[#allocation2 + $0x968] ss:$48 sps:$4 sm:$0xff]  }
  0x89   : > { %3988 = vmatprep.subr.bf16.mxu0 %v16256_v12  ;;  %4327 = vmatprep.subr.bf16.mxu1 %v16259_v13  ;;  %v275_v12 = vld [vmem:[%s18971_s20 + $0x210] sm:$0xff] }
  0x8a   : > { %3915 = vmatprep.mubr.bf16.mxu0 %v18985_v15  ;;  %4254 = vmatprep.mubr.bf16.mxu1 %v18985_v15  ;;  %v16310_v13 = vld [vmem:[#allocation2 + $0x9c4] ss:$48 sps:$4 sm:$0xff]   ;;  %v19041_v17 = vpack.c.bf16 %v275_v12, %v269_v11  ;;  %v16350_v11 = vld [vmem:[#allocation2 + $0xc60] ss:$48 sps:$4 sm:$0xff]   ;;  %v16353_v12 = vld [vmem:[#allocation2 + $0xc68] ss:$48 sps:$4 sm:$0xff]  }
  0x8c   : > { %3989 = vmatpush1.bf16.msra.mxu0 %v16254_v14  ;;  %4328 = vmatpush1.bf16.msra.mxu1 %v16257_v16  ;;  %v16313_v14 = vld [vmem:[#allocation2 + $0x9cc] ss:$48 sps:$4 sm:$0xff]   ;;  %v16308_v16 = vld [vmem:[#allocation2 + $0x9c0] ss:$48 sps:$4 sm:$0xff]  }
  0x8d   : > { %3990 = vmatprep.subr.bf16.mxu0 %v16262_v19  ;;  %4329 = vmatprep.subr.bf16.mxu1 %v16265_v20  ;;  %v282_v19 = vld [vmem:[%s18971_s20 + $0x248] sm:$0xff]  ;;  %v288_v20 = vld [vmem:[%s18971_s20 + $0x278] sm:$0xff] }
  0x8e   : > { %v19045_v25 = vpack.c.bf16 %v288_v20, %v282_v19  ;;  %v16361_v19 = vld [vmem:[#allocation2 + $0xccc] ss:$48 sps:$4 sm:$0xff]  }
  0x8f   : > { %3916 = vmatmul.mubr.bf16.gmra.mrb[4].mxu0 %v18993_v23  ;;  %4255 = vmatmul.mubr.bf16.gmra.mrb[4].mxu1 %v18993_v23 }
  0x90   : > { %3991 = vmatpush1.bf16.msra.mxu0 %v16260_v21  ;;  %4330 = vmatpush1.bf16.msra.mxu1 %v16263_v22  ;;  %v16316_v21 = vld [vmem:[#allocation2 + $0xa24] ss:$48 sps:$4 sm:$0xff]   ;;  %v16319_v22 = vld [vmem:[#allocation2 + $0xa2c] ss:$48 sps:$4 sm:$0xff]  }
  0x91   : > { %3992 = vmatprep.subr.bf16.mxu0 %v16268_v26  ;;  %4331 = vmatprep.subr.bf16.mxu1 %v16271_v27  ;;  %v16317_v26 = vld [vmem:[#allocation2 + $0xa28] ss:$48 sps:$4 sm:$0xff]   ;;  %v281_v27 = vld [vmem:[%s18971_s20 + $0x240] sm:$0xff] }
  0x92   : > { %3925 = vmatprep.mubr.bf16.mxu0 %v18997_v28  ;;  %4264 = vmatprep.mubr.bf16.mxu1 %v18997_v28 }
  0x94   : > { %3993 = vmatpush1.bf16.msra.mxu0 %v16266_v29  ;;  %4332 = vmatpush1.bf16.msra.mxu1 %v16269_v30  ;;  %v287_v29 = vld [vmem:[%s18971_s20 + $0x270] sm:$0xff] }
  0x95   : > { %3994 = vmatprep.subr.bf16.mxu0 %v16274_v33  ;;  %4333 = vmatprep.subr.bf16.mxu1 %v16277_v34  ;;  %v16322_v30 = vld [vmem:[#allocation2 + $0xa84] ss:$48 sps:$4 sm:$0xff]   ;;  %v16323_v33 = vld [vmem:[#allocation2 + $0xa88] ss:$48 sps:$4 sm:$0xff]   ;;  %v19053_v34 = vpack.c.bf16 %v287_v29, %v281_v27  ;;  %v16367_v29 = vld [vmem:[#allocation2 + $0xd2c] ss:$48 sps:$4 sm:$0xff]  }
  0x96   : > { %v16364_v27 = vld [vmem:[#allocation2 + $0xd24] ss:$48 sps:$4 sm:$0xff]  }
  0x97   : > { %3926 = vmatmul.mubr.bf16.gmra.mrb[8].mxu0 %v19005_v37  ;;  %4265 = vmatmul.mubr.bf16.gmra.mrb[8].mxu1 %v19005_v37 }
  0x98   : > { %3995 = vmatpush1.bf16.msra.mxu0 %v16272_v35  ;;  %4334 = vmatpush1.bf16.msra.mxu1 %v16275_v36  ;;  %v294_v35 = vld [vmem:[%s18971_s20 + $0x2a8] sm:$0xff]  ;;  %v300_v36 = vld [vmem:[%s18971_s20 + $0x2d8] sm:$0xff] }
  0x99   : > { %3996 = vmatprep.subr.bf16.mxu0 %v16280_v40  ;;  %4335 = vmatprep.subr.bf16.mxu1 %v16283_v41  ;;  %v19057_v40 = vpack.c.bf16 %v300_v36, %v294_v35  ;;  %v16326_v41 = vld [vmem:[#allocation2 + $0xae0] ss:$48 sps:$4 sm:$0xff]   ;;  %v16370_v36 = vld [vmem:[#allocation2 + $0xd84] ss:$48 sps:$4 sm:$0xff]  }
  0x9a   : > { %3935 = vmatprep.mubr.bf16.mxu0 %v19009_v43  ;;  %4274 = vmatprep.mubr.bf16.mxu1 %v19009_v43  ;;  %v241_v35 = vld [vmem:[%s18971_s20 + $0x100] sm:$0xff] }
  0x9c   : > { %3997 = vmatpush1.bf16.msra.mxu0 %v16278_v42  ;;  %4336 = vmatpush1.bf16.msra.mxu1 %v16281_v44  ;;  %v16329_v42 = vld [vmem:[#allocation2 + $0xae8] ss:$48 sps:$4 sm:$0xff]   ;;  %v293_v44 = vld [vmem:[%s18971_s20 + $0x2a0] sm:$0xff] }
  0x9d   : > { %3998 = vmatprep.subr.bf16.mxu0 %v16286_v47  ;;  %4337 = vmatprep.subr.bf16.mxu1 %v16289_v48  ;;  %v16337_v47 = vld [vmem:[#allocation2 + $0xb4c] ss:$48 sps:$4 sm:$0xff]   ;;  %v16332_v48 = vld [vmem:[#allocation2 + $0xb40] ss:$48 sps:$4 sm:$0xff]   ;;  %v19065_v52 = vpack.c.bf16 %v299_v45, %v293_v44 }
  0x9e   : > { %v248_v44 = vld [vmem:[%s18971_s20 + $0x138] sm:$0xff]  ;;  %v254_v45 = vld [vmem:[%s18971_s20 + $0x168] sm:$0xff] }
  0x9f   : > { %3936 = vmatmul.mubr.bf16.gmra.mrb[12].mxu0 %v19017_v50  ;;  %4275 = vmatmul.mubr.bf16.gmra.mrb[12].mxu1 %v19017_v50 }
  0xa0   : > { %3999 = vmatpush1.bf16.msra.mxu0 %v16284_v49  ;;  %4338 = vmatpush1.bf16.msra.mxu1 %v16287_v54  ;;  %v16335_v49 = vld [vmem:[#allocation2 + $0xb48] ss:$48 sps:$4 sm:$0xff]  }
  0xa1   : > { %4000 = vmatprep.subr.bf16.mxu0 %v16292_v55  ;;  %4339 = vmatprep.subr.bf16.mxu1 %v16295_v56  ;;  %v218_v54 = vld [vmem:[%s18971_s20 + $0x48] sm:$0xff]  ;;  %v16340_v55 = vld [vmem:[#allocation2 + $0xba4] ss:$48 sps:$4 sm:$0xff]  }
  0xa2   : > { %3945 = vmatprep.mubr.bf16.mxu0 %v19021_v59  ;;  %4284 = vmatprep.mubr.bf16.mxu1 %v19021_v59  ;;  %v16343_v56 = vld [vmem:[#allocation2 + $0xbac] ss:$48 sps:$4 sm:$0xff]  }
  0xa4   : > { %4001 = vmatpush1.bf16.msra.mxu0 %v16290_v57  ;;  %4340 = vmatpush1.bf16.msra.mxu1 %v16293_v58  ;;  %v16338_v57 = vld [vmem:[#allocation2 + $0xba0] ss:$48 sps:$4 sm:$0xff]   ;;  %v19069_v58 = vpack.c.bf16 %v218_v54, %v212_v53  ;;  %v16377_v53 = vld [vmem:[#allocation2 + $0xde8] ss:$48 sps:$4 sm:$0xff]  }
  0xa5   : > { %4002 = vmatprep.subr.bf16.mxu0 %v16298_v62  ;;  %4341 = vmatprep.subr.bf16.mxu1 %v16301_v63  ;;  %v217_v62 = vld [vmem:[%s18971_s20 + $0x40] sm:$0xff]  ;;  %v247_v54 = vld [vmem:[%s18971_s20 + $0x130] sm:$0xff] }
  0xa6   : > { %v16346_v63 = vld [vmem:[#allocation2 + $0xc04] ss:$48 sps:$4 sm:$0xff]  }
  0xa7   : > { %3946 = vmatmul.mubr.bf16.gmra.mrb[16].mxu0 %v19029_v0  ;;  %4285 = vmatmul.mubr.bf16.gmra.mrb[16].mxu1 %v19029_v0 }
  0xa8   : > { %4003 = vmatpush1.bf16.msra.mxu0 %v16296_v3  ;;  %4342 = vmatpush1.bf16.msra.mxu1 %v16299_v4  ;;  %v19077_v3 = vpack.c.bf16 %v217_v62, %v211_v61  ;;  %v224_v4 = vld [vmem:[%s18971_s20 + $0x78] sm:$0xff] }
  0xa9   : > { %4004 = vmatprep.subr.bf16.mxu0 %v16304_v5  ;;  %4343 = vmatprep.subr.bf16.mxu1 %v16307_v6  ;;  %v230_v5 = vld [vmem:[%s18971_s20 + $0xa8] sm:$0xff] }
  0xaa   : > { %3955 = vmatprep.mubr.bf16.mxu0 %v19033_v10  ;;  %4294 = vmatprep.mubr.bf16.mxu1 %v19033_v10  ;;  %v16347_v6 = vld [vmem:[#allocation2 + $0xc08] ss:$48 sps:$4 sm:$0xff]  }
  0xab   : > { %v16383_v61 = vld [vmem:[#allocation2 + $0xe48] ss:$48 sps:$4 sm:$0xff]  }
  0xac   : > { %4005 = vmatpush1.bf16.msra.mxu0 %v16302_v7  ;;  %4344 = vmatpush1.bf16.msra.mxu1 %v16305_v9  ;;  %v16352_v7 = vld [vmem:[#allocation2 + $0xc64] ss:$48 sps:$4 sm:$0xff]   ;;  %v16355_v9 = vld [vmem:[#allocation2 + $0xc6c] ss:$48 sps:$4 sm:$0xff]  }
  0xad   : > { %4006 = vmatprep.subr.bf16.mxu0 %v16310_v13  ;;  %4345 = vmatprep.subr.bf16.mxu1 %v16313_v14  ;;  %v19081_v13 = vpack.c.bf16 %v230_v5, %v224_v4  ;;  %v223_v14 = vld [vmem:[%s18971_s20 + $0x70] sm:$0xff]  ;;  %v16391_v4 = vld [vmem:[#allocation2 + $0xeac] ss:$48 sps:$4 sm:$0xff]  }
  0xaf   : > { %3956 = vmatmul.mubr.bf16.gmra.mrb[20].mxu0 %v19041_v17  ;;  %4295 = vmatmul.mubr.bf16.gmra.mrb[20].mxu1 %v19041_v17 }
  0xb0   : > { %4007 = vmatpush1.bf16.msra.mxu0 %v16308_v16  ;;  %4346 = vmatpush1.bf16.msra.mxu1 %v16311_v18  ;;  %v229_v16 = vld [vmem:[%s18971_s20 + $0xa0] sm:$0xff] }
  0xb1   : > { %4008 = vmatprep.subr.bf16.mxu0 %v16316_v21  ;;  %4347 = vmatprep.subr.bf16.mxu1 %v16319_v22  ;;  %v16358_v18 = vld [vmem:[#allocation2 + $0xcc4] ss:$48 sps:$4 sm:$0xff]   ;;  %v19089_v20 = vpack.c.bf16 %v229_v16, %v223_v14  ;;  %v236_v21 = vld [vmem:[%s18971_s20 + $0xd8] sm:$0xff]  ;;  %v242_v22 = vld [vmem:[%s18971_s20 + $0x108] sm:$0xff] }
  0xb2   : > { %3965 = vmatprep.mubr.bf16.mxu0 %v19045_v25  ;;  %4304 = vmatprep.mubr.bf16.mxu1 %v19045_v25  ;;  %v16397_v14 = vld [vmem:[#allocation2 + $0xf0c] ss:$48 sps:$4 sm:$0xff]   ;;  %v16392_v16 = vld [vmem:[#allocation2 + $0xf00] ss:$48 sps:$4 sm:$0xff]  }
  0xb4   : > { %4009 = vmatpush1.bf16.msra.mxu0 %v16314_v24  ;;  %4348 = vmatpush1.bf16.msra.mxu1 %v16317_v26  ;;  %v16356_v24 = vld [vmem:[#allocation2 + $0xcc0] ss:$48 sps:$4 sm:$0xff]   ;;  %v16359_v26 = vld [vmem:[#allocation2 + $0xcc8] ss:$48 sps:$4 sm:$0xff]  }
  0xb5   : > { %4010 = vmatprep.subr.bf16.mxu0 %v16322_v30  ;;  %4349 = vmatprep.subr.bf16.mxu1 %v16325_v31  ;;  %v16362_v30 = vld [vmem:[#allocation2 + $0xd20] ss:$48 sps:$4 sm:$0xff]   ;;  %v16365_v31 = vld [vmem:[#allocation2 + $0xd28] ss:$48 sps:$4 sm:$0xff]  }
  0xb7   : > { %3966 = vmatmul.mubr.bf16.gmra.mrb[24].mxu0 %v19053_v34  ;;  %4305 = vmatmul.mubr.bf16.gmra.mrb[24].mxu1 %v19053_v34 }
  0xb8   : > { %4011 = vmatpush1.bf16.msra.mxu0 %v16320_v32  ;;  %4350 = vmatpush1.bf16.msra.mxu1 %v16323_v33  ;;  %v19093_v32 = vpack.c.bf16 %v242_v22, %v236_v21  ;;  %v235_v33 = vld [vmem:[%s18971_s20 + $0xd0] sm:$0xff]  ;;  %v272_v21 = vld [vmem:[%s18971_s20 + $0x1f8] sm:$0xff]  ;;  %v278_v22 = vld [vmem:[%s18971_s20 + $0x228] sm:$0xff] }
  0xb9   : > { %4012 = vmatprep.subr.bf16.mxu0 %v16328_v38  ;;  %4351 = vmatprep.subr.bf16.mxu1 %v16331_v39  ;;  %v16373_v38 = vld [vmem:[#allocation2 + $0xd8c] ss:$48 sps:$4 sm:$0xff]   ;;  %v16368_v39 = vld [vmem:[#allocation2 + $0xd80] ss:$48 sps:$4 sm:$0xff]  }
  0xba   : > { %3975 = vmatprep.mubr.bf16.mxu0 %v19057_v40  ;;  %4314 = vmatprep.mubr.bf16.mxu1 %v19057_v40 }
  0xbc   : > { %4013 = vmatpush1.bf16.msra.mxu0 %v16326_v41  ;;  %4352 = vmatpush1.bf16.msra.mxu1 %v16329_v42  ;;  %v19101_v41 = vpack.c.bf16 %v241_v35, %v235_v33  ;;  %v16371_v42 = vld [vmem:[#allocation2 + $0xd88] ss:$48 sps:$4 sm:$0xff]   ;;  %v277_v33 = vld [vmem:[%s18971_s20 + $0x220] sm:$0xff] }
  0xbd   : > { %4014 = vmatprep.subr.bf16.mxu0 %v16334_v46  ;;  %4353 = vmatprep.subr.bf16.mxu1 %v16337_v47  ;;  %v16376_v46 = vld [vmem:[#allocation2 + $0xde4] ss:$48 sps:$4 sm:$0xff]   ;;  %v16379_v47 = vld [vmem:[#allocation2 + $0xdec] ss:$48 sps:$4 sm:$0xff]  }
  0xbe   : > { %v16406_v35 = vld [vmem:[#allocation2 + $0xfc4] ss:$48 sps:$4 sm:$0xff]  }
  0xbf   : > { %3976 = vmatmul.mubr.bf16.gmra.mrb[28].mxu0 %v19065_v52  ;;  %4315 = vmatmul.mubr.bf16.gmra.mrb[28].mxu1 %v19065_v52 }
  0xc0   : > { %4015 = vmatpush1.bf16.msra.mxu0 %v16332_v48  ;;  %4354 = vmatpush1.bf16.msra.mxu1 %v16335_v49  ;;  %v16374_v48 = vld [vmem:[#allocation2 + $0xde0] ss:$48 sps:$4 sm:$0xff]   ;;  %v19105_v49 = vpack.c.bf16 %v254_v45, %v248_v44  ;;  %v290_v44 = vld [vmem:[%s18971_s20 + $0x288] sm:$0xff] }
  0xc1   : > { %4016 = vmatprep.subr.bf16.mxu0 %v16340_v55  ;;  %4355 = vmatprep.subr.bf16.mxu1 %v16343_v56  ;;  %v253_v55 = vld [vmem:[%s18971_s20 + $0x160] sm:$0xff]  ;;  %v16407_v45 = vld [vmem:[#allocation2 + $0xfc8] ss:$48 sps:$4 sm:$0xff]  }
  0xc2   : > { %4018 = vmatprep.mubr.bf16.mxu0 %v19069_v58  ;;  %4357 = vmatprep.mubr.bf16.mxu1 %v19069_v58  ;;  %v16382_v56 = vld [vmem:[#allocation2 + $0xe44] ss:$48 sps:$4 sm:$0xff]   ;;  %v19113_v62 = vpack.c.bf16 %v253_v55, %v247_v54 }
  0xc3   : > { %v283_v55 = vld [vmem:[%s18971_s20 + $0x250] sm:$0xff] }
  0xc4   : > { %4017 = vmatpush1.bf16.msra.mxu0 %v16338_v57  ;;  %4356 = vmatpush1.bf16.msra.mxu1 %v16341_v60  ;;  %v16385_v57 = vld [vmem:[#allocation2 + $0xe4c] ss:$48 sps:$4 sm:$0xff]   ;;  %v16380_v60 = vld [vmem:[#allocation2 + $0xe40] ss:$48 sps:$4 sm:$0xff]  }
  0xc5   : > { %4099 = vmatprep.subr.bf16.mxu0 %v16346_v63  ;;  %4438 = vmatprep.subr.bf16.mxu1 %v16349_v1  ;;  %v260_v63 = vld [vmem:[%s18971_s20 + $0x198] sm:$0xff]  ;;  %v266_v1 = vld [vmem:[%s18971_s20 + $0x1c8] sm:$0xff] }
  0xc6   : > { %v19117_v5 = vpack.c.bf16 %v266_v1, %v260_v63  ;;  %v296_v63 = vld [vmem:[%s18971_s20 + $0x2b8] sm:$0xff]  ;;  %v302_v1 = vld [vmem:[%s18971_s20 + $0x2e8] sm:$0xff] }
  0xc7   : > { %4019 = vmatmul.mubr.bf16.vlgmr.msra.gmra.mrb[0].mxu0 %v19077_v3  ;;  %4358 = vmatmul.mubr.bf16.vlgmr.msra.gmra.mrb[0].mxu1 %v19077_v3 }
  0xc8   : > { %4100 = vmatpush1.bf16.msra.mxu0 %v16344_v2  ;;  %4439 = vmatpush1.bf16.msra.mxu1 %v16347_v6  ;;  %v16388_v2 = vld [vmem:[#allocation2 + $0xea4] ss:$48 sps:$4 sm:$0xff]   ;;  %v16386_v6 = vld [vmem:[#allocation2 + $0xea0] ss:$48 sps:$4 sm:$0xff]  }
  0xc9   : > { %4101 = vmatprep.subr.bf16.mxu0 %v16352_v7  ;;  %4440 = vmatprep.subr.bf16.mxu1 %v16355_v9  ;;  %v16389_v7 = vld [vmem:[#allocation2 + $0xea8] ss:$48 sps:$4 sm:$0xff]   ;;  %v259_v9 = vld [vmem:[%s18971_s20 + $0x190] sm:$0xff] }
  0xca   : > { %4028 = vmatprep.mubr.bf16.mxu0 %v19081_v13  ;;  %4367 = vmatprep.mubr.bf16.mxu1 %v19081_v13 }
  0xcc   : > { %4102 = vmatpush1.bf16.msra.mxu0 %v16350_v11  ;;  %4441 = vmatpush1.bf16.msra.mxu1 %v16353_v12  ;;  %v265_v11 = vld [vmem:[%s18971_s20 + $0x1c0] sm:$0xff] }
  0xcd   : > { %4103 = vmatprep.subr.bf16.mxu0 %v16358_v18  ;;  %4442 = vmatprep.subr.bf16.mxu1 %v16361_v19  ;;  %v16394_v12 = vld [vmem:[#allocation2 + $0xf04] ss:$48 sps:$4 sm:$0xff]   ;;  %v16395_v18 = vld [vmem:[#allocation2 + $0xf08] ss:$48 sps:$4 sm:$0xff]   ;;  %v19125_v19 = vpack.c.bf16 %v265_v11, %v259_v9  ;;  %v16422_v9 = vld [vmem:[#allocation2 + $0x10e0] ss:$48 sps:$4 sm:$0xff]  }
  0xce   : > { %v16425_v11 = vld [vmem:[#allocation2 + $0x10e8] ss:$48 sps:$4 sm:$0xff]  }
  0xcf   : > { %4029 = vmatmul.mubr.bf16.gmra.mrb[4].mxu0 %v19089_v20  ;;  %4368 = vmatmul.mubr.bf16.gmra.mrb[4].mxu1 %v19089_v20 }
  0xd0   : > { %4104 = vmatpush1.bf16.msra.mxu0 %v16356_v24  ;;  %4443 = vmatpush1.bf16.msra.mxu1 %v16359_v26  ;;  %v16400_v24 = vld [vmem:[#allocation2 + $0xf64] ss:$48 sps:$4 sm:$0xff]   ;;  %v16403_v26 = vld [vmem:[#allocation2 + $0xf6c] ss:$48 sps:$4 sm:$0xff]  }
  0xd1   : > { %4105 = vmatprep.subr.bf16.mxu0 %v16364_v27  ;;  %4444 = vmatprep.subr.bf16.mxu1 %v16367_v29  ;;  %v16398_v27 = vld [vmem:[#allocation2 + $0xf60] ss:$48 sps:$4 sm:$0xff]   ;;  %v19129_v29 = vpack.c.bf16 %v278_v22, %v272_v21  ;;  %v16433_v21 = vld [vmem:[#allocation2 + $0x114c] ss:$48 sps:$4 sm:$0xff]  }
  0xd2   : > { %4038 = vmatprep.mubr.bf16.mxu0 %v19093_v32  ;;  %4377 = vmatprep.mubr.bf16.mxu1 %v19093_v32  ;;  %v16428_v22 = vld [vmem:[#allocation2 + $0x1140] ss:$48 sps:$4 sm:$0xff]  }
  0xd4   : > { %4106 = vmatpush1.bf16.msra.mxu0 %v16362_v30  ;;  %4445 = vmatpush1.bf16.msra.mxu1 %v16365_v31  ;;  %v16401_v30 = vld [vmem:[#allocation2 + $0xf68] ss:$48 sps:$4 sm:$0xff]   ;;  %v271_v31 = vld [vmem:[%s18971_s20 + $0x1f0] sm:$0xff] }
  0xd5   : > { %4107 = vmatprep.subr.bf16.mxu0 %v16370_v36  ;;  %4446 = vmatprep.subr.bf16.mxu1 %v16373_v38  ;;  %v16409_v36 = vld [vmem:[#allocation2 + $0xfcc] ss:$48 sps:$4 sm:$0xff]   ;;  %v16404_v38 = vld [vmem:[#allocation2 + $0xfc0] ss:$48 sps:$4 sm:$0xff]  }
  0xd7   : > { %4039 = vmatmul.mubr.bf16.gmra.mrb[8].mxu0 %v19101_v41  ;;  %4378 = vmatmul.mubr.bf16.gmra.mrb[8].mxu1 %v19101_v41 }
  0xd8   : > { %4108 = vmatpush1.bf16.msra.mxu0 %v16368_v39  ;;  %4447 = vmatpush1.bf16.msra.mxu1 %v16371_v42  ;;  %v19137_v39 = vpack.c.bf16 %v277_v33, %v271_v31  ;;  %v284_v42 = vld [vmem:[%s18971_s20 + $0x258] sm:$0xff]  ;;  %v16436_v31 = vld [vmem:[#allocation2 + $0x11a4] ss:$48 sps:$4 sm:$0xff]  }
  0xd9   : > { %4109 = vmatprep.subr.bf16.mxu0 %v16376_v46  ;;  %4448 = vmatprep.subr.bf16.mxu1 %v16379_v47  ;;  %v16412_v46 = vld [vmem:[#allocation2 + $0x1024] ss:$48 sps:$4 sm:$0xff]   ;;  %v16415_v47 = vld [vmem:[#allocation2 + $0x102c] ss:$48 sps:$4 sm:$0xff]   ;;  %v19141_v54 = vpack.c.bf16 %v290_v44, %v284_v42 }
  0xda   : > { %4048 = vmatprep.mubr.bf16.mxu0 %v19105_v49  ;;  %4387 = vmatprep.mubr.bf16.mxu1 %v19105_v49  ;;  %v16439_v33 = vld [vmem:[#allocation2 + $0x11ac] ss:$48 sps:$4 sm:$0xff]   ;;  %v213_v42 = vld [vmem:[%s18971_s20 + $0x20] sm:$0xff]  ;;  %v219_v44 = vld [vmem:[%s18971_s20 + $0x50] sm:$0xff] }
  0xdc   : > { %4110 = vmatpush1.bf16.msra.mxu0 %v16374_v48  ;;  %4449 = vmatpush1.bf16.msra.mxu1 %v16377_v53  ;;  %v16410_v48 = vld [vmem:[#allocation2 + $0x1020] ss:$48 sps:$4 sm:$0xff]   ;;  %v16413_v53 = vld [vmem:[#allocation2 + $0x1028] ss:$48 sps:$4 sm:$0xff]  }
  0xdd   : > { %4111 = vmatprep.subr.bf16.mxu0 %v16382_v56  ;;  %4450 = vmatprep.subr.bf16.mxu1 %v16385_v57  ;;  %v289_v56 = vld [vmem:[%s18971_s20 + $0x280] sm:$0xff] }
  0xde   : > { %v16418_v57 = vld [vmem:[#allocation2 + $0x1084] ss:$48 sps:$4 sm:$0xff]  }
  0xdf   : > { %4049 = vmatmul.mubr.bf16.gmra.mrb[12].mxu0 %v19113_v62  ;;  %4388 = vmatmul.mubr.bf16.gmra.mrb[12].mxu1 %v19113_v62 }
  0xe0   : > { %4112 = vmatpush1.bf16.msra.mxu0 %v16380_v60  ;;  %4451 = vmatpush1.bf16.msra.mxu1 %v16383_v61  ;;  %v16421_v60 = vld [vmem:[#allocation2 + $0x108c] ss:$48 sps:$4 sm:$0xff]   ;;  %v19149_v61 = vpack.c.bf16 %v289_v56, %v283_v55 }
  0xe1   : > { %4113 = vmatprep.subr.bf16.mxu0 %v16388_v2  ;;  %4452 = vmatprep.subr.bf16.mxu1 %v16391_v4  ;;  %v16416_v2 = vld [vmem:[#allocation2 + $0x1080] ss:$48 sps:$4 sm:$0xff]   ;;  %v16419_v4 = vld [vmem:[#allocation2 + $0x1088] ss:$48 sps:$4 sm:$0xff]  }
  0xe2   : > { %4058 = vmatprep.mubr.bf16.mxu0 %v19117_v5  ;;  %4397 = vmatprep.mubr.bf16.mxu1 %v19117_v5  ;;  %v226_v55 = vld [vmem:[%s18971_s20 + $0x88] sm:$0xff]  ;;  %v232_v56 = vld [vmem:[%s18971_s20 + $0xb8] sm:$0xff] }
  0xe4   : > { %4114 = vmatpush1.bf16.msra.mxu0 %v16386_v6  ;;  %4453 = vmatpush1.bf16.msra.mxu1 %v16389_v7  ;;  %v16424_v6 = vld [vmem:[#allocation2 + $0x10e4] ss:$48 sps:$4 sm:$0xff]   ;;  %v16427_v7 = vld [vmem:[#allocation2 + $0x10ec] ss:$48 sps:$4 sm:$0xff]  }
  0xe5   : > { %4115 = vmatprep.subr.bf16.mxu0 %v16394_v12  ;;  %4454 = vmatprep.subr.bf16.mxu1 %v16397_v14  ;;  %v19153_v12 = vpack.c.bf16 %v302_v1, %v296_v63  ;;  %v295_v14 = vld [vmem:[%s18971_s20 + $0x2b0] sm:$0xff]  ;;  %v19177_v63 = vpack.c.bf16 %v232_v56, %v226_v55  ;;  %v16475_v56 = vld [vmem:[#allocation2 + $0x1fc] ss:$48 sps:$4 sm:$0xff]  }
  0xe6   : > { %v16446_v1 = vld [vmem:[#allocation2 + $0x70] ss:$48 sps:$4 sm:$0xff]   ;;  %v16472_v55 = vld [vmem:[#allocation2 + $0x1f4] ss:$48 sps:$4 sm:$0xff]  }
  0xe7   : > { %4059 = vmatmul.mubr.bf16.gmra.mrb[16].mxu0 %v19125_v19  ;;  %4398 = vmatmul.mubr.bf16.gmra.mrb[16].mxu1 %v19125_v19 }
  0xe8   : > { %4116 = vmatpush1.bf16.msra.mxu0 %v16392_v16  ;;  %4455 = vmatpush1.bf16.msra.mxu1 %v16395_v18  ;;  %v301_v16 = vld [vmem:[%s18971_s20 + $0x2e0] sm:$0xff] }
  0xe9   : > { %4117 = vmatprep.subr.bf16.mxu0 %v16400_v24  ;;  %4456 = vmatprep.subr.bf16.mxu1 %v16403_v26  ;;  %v16430_v18 = vld [vmem:[#allocation2 + $0x1144] ss:$48 sps:$4 sm:$0xff]   ;;  %v19161_v24 = vpack.c.bf16 %v301_v16, %v295_v14  ;;  %v16431_v26 = vld [vmem:[#allocation2 + $0x1148] ss:$48 sps:$4 sm:$0xff]  }
  0xea   : > { %4068 = vmatprep.mubr.bf16.mxu0 %v19129_v29  ;;  %4407 = vmatprep.mubr.bf16.mxu1 %v19129_v29  ;;  %v16455_v14 = vld [vmem:[#allocation2 + $0xd8] ss:$48 sps:$4 sm:$0xff]  }
  0xec   : > { %4118 = vmatpush1.bf16.msra.mxu0 %v16398_v27  ;;  %4457 = vmatpush1.bf16.msra.mxu1 %v16401_v30  ;;  %v214_v27 = vld [vmem:[%s18971_s20 + $0x28] sm:$0xff]  ;;  %v220_v30 = vld [vmem:[%s18971_s20 + $0x58] sm:$0xff] }
  0xed   : > { %4119 = vmatprep.subr.bf16.mxu0 %v16406_v35  ;;  %4458 = vmatprep.subr.bf16.mxu1 %v16409_v36  ;;  %v16434_v35 = vld [vmem:[#allocation2 + $0x11a0] ss:$48 sps:$4 sm:$0xff]   ;;  %v19165_v36 = vpack.c.bf16 %v220_v30, %v214_v27  ;;  %v16461_v30 = vld [vmem:[#allocation2 + $0x138] ss:$48 sps:$4 sm:$0xff]  }
  0xee   : > { %v16458_v27 = vld [vmem:[#allocation2 + $0x130] ss:$48 sps:$4 sm:$0xff]  }
  0xef   : > { %4069 = vmatmul.mubr.bf16.gmra.mrb[20].mxu0 %v19137_v39  ;;  %4408 = vmatmul.mubr.bf16.gmra.mrb[20].mxu1 %v19137_v39 }
  0xf0   : > { %4120 = vmatpush1.bf16.msra.mxu0 %v16404_v38  ;;  %4459 = vmatpush1.bf16.msra.mxu1 %v16407_v45  ;;  %v16437_v38 = vld [vmem:[#allocation2 + $0x11a8] ss:$48 sps:$4 sm:$0xff]   ;;  %v16442_v45 = vld [vmem:[#allocation2 + $0x14] ss:$48 sps:$4 sm:$0xff]  }
  0xf1   : > { %4121 = vmatprep.subr.bf16.mxu0 %v16412_v46  ;;  %4460 = vmatprep.subr.bf16.mxu1 %v16415_v47  ;;  %v16445_v46 = vld [vmem:[#allocation2 + $0x1c] ss:$48 sps:$4 sm:$0xff]   ;;  %v16440_v47 = vld [vmem:[#allocation2 + $0x10] ss:$48 sps:$4 sm:$0xff]  }
  0xf2   : > { %4078 = vmatprep.mubr.bf16.mxu0 %v19141_v54  ;;  %4417 = vmatprep.mubr.bf16.mxu1 %v19141_v54 }
  0xf4   : > { %4122 = vmatpush1.bf16.msra.mxu0 %v16410_v48  ;;  %4461 = vmatpush1.bf16.msra.mxu1 %v16413_v53  ;;  %v16443_v48 = vld [vmem:[#allocation2 + $0x18] ss:$48 sps:$4 sm:$0xff]   ;;  %v19173_v53 = vpack.c.bf16 %v219_v44, %v213_v42  ;;  %v16469_v42 = vld [vmem:[#allocation2 + $0x19c] ss:$48 sps:$4 sm:$0xff]   ;;  %v16464_v44 = vld [vmem:[#allocation2 + $0x190] ss:$48 sps:$4 sm:$0xff]  }
  0xf5   : > { %4123 = vmatprep.subr.bf16.mxu0 %v16418_v57  ;;  %4462 = vmatprep.subr.bf16.mxu1 %v16421_v60  ;;  %v16448_v57 = vld [vmem:[#allocation2 + $0x74] ss:$48 sps:$4 sm:$0xff]   ;;  %v16451_v60 = vld [vmem:[#allocation2 + $0x7c] ss:$48 sps:$4 sm:$0xff]  }
  0xf7   : > { %4079 = vmatmul.mubr.bf16.gmra.mrb[24].mxu0 %v19149_v61  ;;  %4418 = vmatmul.mubr.bf16.gmra.mrb[24].mxu1 %v19149_v61 }
  0xf8   : > { %4124 = vmatpush1.bf16.msra.mxu0 %v16416_v2  ;;  %4463 = vmatpush1.bf16.msra.mxu1 %v16419_v4  ;;  %v16449_v2 = vld [vmem:[#allocation2 + $0x78] ss:$48 sps:$4 sm:$0xff]   ;;  %v225_v4 = vld [vmem:[%s18971_s20 + $0x80] sm:$0xff] }
  0xf9   : > { %4125 = vmatprep.subr.bf16.mxu0 %v16424_v6  ;;  %4464 = vmatprep.subr.bf16.mxu1 %v16427_v7  ;;  %v231_v6 = vld [vmem:[%s18971_s20 + $0xb0] sm:$0xff] }
  0xfa   : > { %4088 = vmatprep.mubr.bf16.mxu0 %v19153_v12  ;;  %4427 = vmatprep.mubr.bf16.mxu1 %v19153_v12  ;;  %v16454_v7 = vld [vmem:[#allocation2 + $0xd4] ss:$48 sps:$4 sm:$0xff]   ;;  %v19185_v16 = vpack.c.bf16 %v231_v6, %v225_v4 }
  0xfb   : > { %v255_v4 = vld [vmem:[%s18971_s20 + $0x170] sm:$0xff] }
  0xfc   : > { %4126 = vmatpush1.bf16.msra.mxu0 %v16422_v9  ;;  %4465 = vmatpush1.bf16.msra.mxu1 %v16425_v11  ;;  %v16457_v9 = vld [vmem:[#allocation2 + $0xdc] ss:$48 sps:$4 sm:$0xff]   ;;  %v16452_v11 = vld [vmem:[#allocation2 + $0xd0] ss:$48 sps:$4 sm:$0xff]   ;;  %v16478_v6 = vld [vmem:[#allocation2 + $0x254] ss:$48 sps:$4 sm:$0xff]  }
  0xfd   : > { %4127 = vmatprep.subr.bf16.mxu0 %v16430_v18  ;;  %4466 = vmatprep.subr.bf16.mxu1 %v16433_v21  ;;  %v238_v18 = vld [vmem:[%s18971_s20 + $0xe8] sm:$0xff]  ;;  %v244_v21 = vld [vmem:[%s18971_s20 + $0x118] sm:$0xff] }
  0xff   : > { %4089 = vmatmul.mubr.bf16.gmra.mrb[28].mxu0 %v19161_v24  ;;  %4428 = vmatmul.mubr.bf16.gmra.mrb[28].mxu1 %v19161_v24 }
 0x100   : > { %4128 = vmatpush1.bf16.msra.mxu0 %v16428_v22  ;;  %4467 = vmatpush1.bf16.msra.mxu1 %v16431_v26  ;;  %v16460_v22 = vld [vmem:[#allocation2 + $0x134] ss:$48 sps:$4 sm:$0xff]   ;;  %v16463_v26 = vld [vmem:[#allocation2 + $0x13c] ss:$48 sps:$4 sm:$0xff]  }
 0x101   : > { %4129 = vmatprep.subr.bf16.mxu0 %v16436_v31  ;;  %4468 = vmatprep.subr.bf16.mxu1 %v16439_v33  ;;  %v19189_v31 = vpack.c.bf16 %v244_v21, %v238_v18  ;;  %v237_v33 = vld [vmem:[%s18971_s20 + $0xe0] sm:$0xff]  ;;  %v262_v18 = vld [vmem:[%s18971_s20 + $0x1a8] sm:$0xff]  ;;  %v268_v21 = vld [vmem:[%s18971_s20 + $0x1d8] sm:$0xff] }
 0x102   : > { %4131 = vmatprep.mubr.bf16.mxu0 %v19165_v36  ;;  %4470 = vmatprep.mubr.bf16.mxu1 %v19165_v36 }
 0x104   : > { %4130 = vmatpush1.bf16.msra.mxu0 %v16434_v35  ;;  %4469 = vmatpush1.bf16.msra.mxu1 %v16437_v38  ;;  %v243_v35 = vld [vmem:[%s18971_s20 + $0x110] sm:$0xff] }
 0x105   : > { %4551 = vmatprep.subr.bf16.mxu0 %v16442_v45  ;;  %4890 = vmatprep.subr.bf16.mxu1 %v16445_v46  ;;  %v16466_v38 = vld [vmem:[#allocation2 + $0x194] ss:$48 sps:$4 sm:$0xff]   ;;  %v16467_v45 = vld [vmem:[#allocation2 + $0x198] ss:$48 sps:$4 sm:$0xff]   ;;  %v19197_v46 = vpack.c.bf16 %v243_v35, %v237_v33  ;;  %v19213_v33 = vpack.c.bf16 %v268_v21, %v262_v18  ;;  %v16505_v18 = vld [vmem:[#allocation2 + $0x3dc] ss:$48 sps:$4 sm:$0xff]  }
 0x106   : > { %v261_v35 = vld [vmem:[%s18971_s20 + $0x1a0] sm:$0xff] }
 0x107   : > { %4132 = vmatmul.mubr.bf16.vlgmr.msra.gmra.mrb[0].mxu0 %v19173_v53  ;;  %4471 = vmatmul.mubr.bf16.vlgmr.msra.gmra.mrb[0].mxu1 %v19173_v53  ;;  %v16500_v21 = vld [vmem:[#allocation2 + $0x3d0] ss:$48 sps:$4 sm:$0xff]  }
 0x108   : > { %4552 = vmatpush1.bf16.msra.mxu0 %v16440_v47  ;;  %4891 = vmatpush1.bf16.msra.mxu1 %v16443_v48  ;;  %v250_v47 = vld [vmem:[%s18971_s20 + $0x148] sm:$0xff]  ;;  %v256_v48 = vld [vmem:[%s18971_s20 + $0x178] sm:$0xff] }
 0x109   : > { %4553 = vmatprep.subr.bf16.mxu0 %v16448_v57  ;;  %4892 = vmatprep.subr.bf16.mxu1 %v16451_v60  ;;  %v16470_v57 = vld [vmem:[#allocation2 + $0x1f0] ss:$48 sps:$4 sm:$0xff]   ;;  %v16473_v60 = vld [vmem:[#allocation2 + $0x1f8] ss:$48 sps:$4 sm:$0xff]  }
 0x10a   : > { %4141 = vmatprep.mubr.bf16.mxu0 %v19177_v63  ;;  %4480 = vmatprep.mubr.bf16.mxu1 %v19177_v63 }
 0x10c   : > { %4554 = vmatpush1.bf16.msra.mxu0 %v16446_v1  ;;  %4893 = vmatpush1.bf16.msra.mxu1 %v16449_v2  ;;  %v19201_v1 = vpack.c.bf16 %v256_v48, %v250_v47  ;;  %v249_v2 = vld [vmem:[%s18971_s20 + $0x140] sm:$0xff]  ;;  %v16491_v47 = vld [vmem:[#allocation2 + $0x318] ss:$48 sps:$4 sm:$0xff]  }
 0x10d   : > { %4555 = vmatprep.subr.bf16.mxu0 %v16454_v7  ;;  %4894 = vmatprep.subr.bf16.mxu1 %v16457_v9  ;;  %v16481_v7 = vld [vmem:[#allocation2 + $0x25c] ss:$48 sps:$4 sm:$0xff]   ;;  %v16476_v9 = vld [vmem:[#allocation2 + $0x250] ss:$48 sps:$4 sm:$0xff]  }
 0x10f   : > { %4142 = vmatmul.mubr.bf16.gmra.mrb[4].mxu0 %v19185_v16  ;;  %4481 = vmatmul.mubr.bf16.gmra.mrb[4].mxu1 %v19185_v16 }
 0x110   : > { %4556 = vmatpush1.bf16.msra.mxu0 %v16452_v11  ;;  %4895 = vmatpush1.bf16.msra.mxu1 %v16455_v14  ;;  %v16479_v11 = vld [vmem:[#allocation2 + $0x258] ss:$48 sps:$4 sm:$0xff]   ;;  %v19209_v14 = vpack.c.bf16 %v255_v4, %v249_v2  ;;  %v16494_v2 = vld [vmem:[#allocation2 + $0x370] ss:$48 sps:$4 sm:$0xff]  }
 0x111   : > { %4557 = vmatprep.subr.bf16.mxu0 %v16460_v22  ;;  %4896 = vmatprep.subr.bf16.mxu1 %v16463_v26  ;;  %v16484_v22 = vld [vmem:[#allocation2 + $0x2b4] ss:$48 sps:$4 sm:$0xff]   ;;  %v16487_v26 = vld [vmem:[#allocation2 + $0x2bc] ss:$48 sps:$4 sm:$0xff]   ;;  %v16497_v4 = vld [vmem:[#allocation2 + $0x378] ss:$48 sps:$4 sm:$0xff]  }
 0x112   : > { %4151 = vmatprep.mubr.bf16.mxu0 %v19189_v31  ;;  %4490 = vmatprep.mubr.bf16.mxu1 %v19189_v31 }
 0x114   : > { %4558 = vmatpush1.bf16.msra.mxu0 %v16458_v27  ;;  %4897 = vmatpush1.bf16.msra.mxu1 %v16461_v30  ;;  %v16482_v27 = vld [vmem:[#allocation2 + $0x2b0] ss:$48 sps:$4 sm:$0xff]   ;;  %v16485_v30 = vld [vmem:[#allocation2 + $0x2b8] ss:$48 sps:$4 sm:$0xff]  }
 0x115   : > { %4559 = vmatprep.subr.bf16.mxu0 %v16466_v38  ;;  %4898 = vmatprep.subr.bf16.mxu1 %v16469_v42  ;;  %v267_v38 = vld [vmem:[%s18971_s20 + $0x1d0] sm:$0xff] }
 0x116   : > { %v16490_v42 = vld [vmem:[#allocation2 + $0x314] ss:$48 sps:$4 sm:$0xff]   ;;  %v19221_v48 = vpack.c.bf16 %v267_v38, %v261_v35  ;;  %v16511_v38 = vld [vmem:[#allocation2 + $0x43c] ss:$48 sps:$4 sm:$0xff]  }
 0x117   : > { %4152 = vmatmul.mubr.bf16.gmra.mrb[8].mxu0 %v19197_v46  ;;  %4491 = vmatmul.mubr.bf16.gmra.mrb[8].mxu1 %v19197_v46  ;;  %v16508_v35 = vld [vmem:[#allocation2 + $0x434] ss:$48 sps:$4 sm:$0xff]  }
 0x118   : > { %4560 = vmatpush1.bf16.msra.mxu0 %v16464_v44  ;;  %4899 = vmatpush1.bf16.msra.mxu1 %v16467_v45  ;;  %v16493_v44 = vld [vmem:[#allocation2 + $0x31c] ss:$48 sps:$4 sm:$0xff]   ;;  %v16488_v45 = vld [vmem:[#allocation2 + $0x310] ss:$48 sps:$4 sm:$0xff]  }
 0x119   : > { %4561 = vmatprep.subr.bf16.mxu0 %v16472_v55  ;;  %4900 = vmatprep.subr.bf16.mxu1 %v16475_v56  ;;  %v274_v55 = vld [vmem:[%s18971_s20 + $0x208] sm:$0xff]  ;;  %v280_v56 = vld [vmem:[%s18971_s20 + $0x238] sm:$0xff] }
 0x11a   : > { %4161 = vmatprep.mubr.bf16.mxu0 %v19201_v1  ;;  %4500 = vmatprep.mubr.bf16.mxu1 %v19201_v1 }
 0x11c   : > { %4562 = vmatpush1.bf16.msra.mxu0 %v16470_v57  ;;  %4901 = vmatpush1.bf16.msra.mxu1 %v16473_v60  ;;  %v16496_v57 = vld [vmem:[#allocation2 + $0x374] ss:$48 sps:$4 sm:$0xff]   ;;  %v16499_v60 = vld [vmem:[#allocation2 + $0x37c] ss:$48 sps:$4 sm:$0xff]  }
 0x11d   : > { %4563 = vmatprep.subr.bf16.mxu0 %v16478_v6  ;;  %4902 = vmatprep.subr.bf16.mxu1 %v16481_v7  ;;  %v19225_v6 = vpack.c.bf16 %v280_v56, %v274_v55  ;;  %v273_v7 = vld [vmem:[%s18971_s20 + $0x200] sm:$0xff]  ;;  %v291_v55 = vld [vmem:[%s18971_s20 + $0x290] sm:$0xff] }
 0x11e   : > { %v16514_v56 = vld [vmem:[#allocation2 + $0x494] ss:$48 sps:$4 sm:$0xff]  }
 0x11f   : > { %4162 = vmatmul.mubr.bf16.gmra.mrb[12].mxu0 %v19209_v14  ;;  %4501 = vmatmul.mubr.bf16.gmra.mrb[12].mxu1 %v19209_v14 }
 0x120   : > { %4564 = vmatpush1.bf16.msra.mxu0 %v16476_v9  ;;  %4903 = vmatpush1.bf16.msra.mxu1 %v16479_v11  ;;  %v279_v9 = vld [vmem:[%s18971_s20 + $0x230] sm:$0xff] }
 0x121   : > { %4565 = vmatprep.subr.bf16.mxu0 %v16484_v22  ;;  %4904 = vmatprep.subr.bf16.mxu1 %v16487_v26  ;;  %v16502_v11 = vld [vmem:[#allocation2 + $0x3d4] ss:$48 sps:$4 sm:$0xff]   ;;  %v16503_v22 = vld [vmem:[#allocation2 + $0x3d8] ss:$48 sps:$4 sm:$0xff]   ;;  %v19233_v26 = vpack.c.bf16 %v279_v9, %v273_v7 }
 0x122   : > { %4171 = vmatprep.mubr.bf16.mxu0 %v19213_v33  ;;  %4510 = vmatprep.mubr.bf16.mxu1 %v19213_v33  ;;  %v298_v7 = vld [vmem:[%s18971_s20 + $0x2c8] sm:$0xff]  ;;  %v304_v9 = vld [vmem:[%s18971_s20 + $0x2f8] sm:$0xff] }
 0x123   : > { %23155 = vst [vmem:[#allocation8_spill] sm:$0xff] %v19233_v26 }
 0x124   : > { %4566 = vmatpush1.bf16.msra.mxu0 %v16482_v27  ;;  %4905 = vmatpush1.bf16.msra.mxu1 %v16485_v30  ;;  %v286_v27 = vld [vmem:[%s18971_s20 + $0x268] sm:$0xff]  ;;  %v292_v30 = vld [vmem:[%s18971_s20 + $0x298] sm:$0xff] }
 0x125   : > { %4567 = vmatprep.subr.bf16.mxu0 %v16490_v42  ;;  %4906 = vmatprep.subr.bf16.mxu1 %v16493_v44  ;;  %v16506_v42 = vld [vmem:[#allocation2 + $0x430] ss:$48 sps:$4 sm:$0xff]   ;;  %v16509_v44 = vld [vmem:[#allocation2 + $0x438] ss:$48 sps:$4 sm:$0xff]  }
 0x127   : > { %4172 = vmatmul.mubr.bf16.gmra.mrb[16].mxu0 %v19221_v48  ;;  %4511 = vmatmul.mubr.bf16.gmra.mrb[16].mxu1 %v19221_v48 }
 0x128   : > { %4568 = vmatpush1.bf16.msra.mxu0 %v16488_v45  ;;  %4907 = vmatpush1.bf16.msra.mxu1 %v16491_v47  ;;  %v19237_v45 = vpack.c.bf16 %v292_v30, %v286_v27  ;;  %v285_v47 = vld [vmem:[%s18971_s20 + $0x260] sm:$0xff]  ;;  %v19249_v27 = vpack.c.bf16 %v304_v9, %v298_v7  ;;  %v16541_v9 = vld [vmem:[#allocation2 + $0x61c] ss:$48 sps:$4 sm:$0xff]  }
 0x129   : > { %4569 = vmatprep.subr.bf16.mxu0 %v16496_v57  ;;  %4908 = vmatprep.subr.bf16.mxu1 %v16499_v60  ;;  %v16517_v57 = vld [vmem:[#allocation2 + $0x49c] ss:$48 sps:$4 sm:$0xff]   ;;  %v16512_v60 = vld [vmem:[#allocation2 + $0x490] ss:$48 sps:$4 sm:$0xff]   ;;  %v16538_v7 = vld [vmem:[#allocation2 + $0x614] ss:$48 sps:$4 sm:$0xff]  }
 0x12a   : > { %4181 = vmatprep.mubr.bf16.mxu0 %v19225_v6  ;;  %4520 = vmatprep.mubr.bf16.mxu1 %v19225_v6  ;;  %23156 = vst [vmem:[#allocation9_spill] sm:$0xff] %v19237_v45  ;;  %23158 = vst [vmem:[#allocation11_spill] sm:$0xff] %v19249_v27  ;;  %v297_v30 = vld [vmem:[%s18971_s20 + $0x2c0] sm:$0xff] }
 0x12c   : > { %4570 = vmatpush1.bf16.msra.mxu0 %v16494_v2  ;;  %4909 = vmatpush1.bf16.msra.mxu1 %v16497_v4  ;;  %v16515_v2 = vld [vmem:[#allocation2 + $0x498] ss:$48 sps:$4 sm:$0xff]   ;;  %v19245_v4 = vpack.c.bf16 %v291_v55, %v285_v47  ;;  %v16524_v47 = vld [vmem:[#allocation2 + $0x550] ss:$48 sps:$4 sm:$0xff]  }
 0x12d   : > { %4571 = vmatprep.subr.bf16.mxu0 %v16502_v11  ;;  %4910 = vmatprep.subr.bf16.mxu1 %v16505_v18  ;;  %v16520_v11 = vld [vmem:[#allocation2 + $0x4f4] ss:$48 sps:$4 sm:$0xff]   ;;  %v16523_v18 = vld [vmem:[#allocation2 + $0x4fc] ss:$48 sps:$4 sm:$0xff]   ;;  %v16527_v55 = vld [vmem:[#allocation2 + $0x558] ss:$48 sps:$4 sm:$0xff]  }
 0x12e   : > { %23157 = vst [vmem:[#allocation10_spill] sm:$0xff] %v19245_v4 }
 0x12f   : > { %4182 = vmatmul.mubr.bf16.gmra.mrb[20].mxu0 %v19233_v26  ;;  %4521 = vmatmul.mubr.bf16.gmra.mrb[20].mxu1 %v19233_v26 }
 0x130   : > { %4572 = vmatpush1.bf16.msra.mxu0 %v16500_v21  ;;  %4911 = vmatpush1.bf16.msra.mxu1 %v16503_v22  ;;  %v16518_v21 = vld [vmem:[#allocation2 + $0x4f0] ss:$48 sps:$4 sm:$0xff]   ;;  %v16521_v22 = vld [vmem:[#allocation2 + $0x4f8] ss:$48 sps:$4 sm:$0xff]  }
 0x131   : > { %4573 = vmatprep.subr.bf16.mxu0 %v16508_v35  ;;  %4912 = vmatprep.subr.bf16.mxu1 %v16511_v38  ;;  %v303_v35 = vld [vmem:[%s18971_s20 + $0x2f0] sm:$0xff] }
 0x132   : > { %4191 = vmatprep.mubr.bf16.mxu0 %v19237_v45  ;;  %4530 = vmatprep.mubr.bf16.mxu1 %v19237_v45  ;;  %v16526_v38 = vld [vmem:[#allocation2 + $0x554] ss:$48 sps:$4 sm:$0xff]  }
 0x134   : > { %4574 = vmatpush1.bf16.msra.mxu0 %v16506_v42  ;;  %4913 = vmatpush1.bf16.msra.mxu1 %v16509_v44  ;;  %v16529_v42 = vld [vmem:[#allocation2 + $0x55c] ss:$48 sps:$4 sm:$0xff]   ;;  %v19257_v44 = vpack.c.bf16 %v303_v35, %v297_v30  ;;  %v16542_v30 = vld [vmem:[#allocation2 + $0x670] ss:$48 sps:$4 sm:$0xff]   ;;  %v16545_v35 = vld [vmem:[#allocation2 + $0x678] ss:$48 sps:$4 sm:$0xff]  }
 0x135   : > { %4575 = vmatprep.subr.bf16.mxu0 %v16514_v56  ;;  %4914 = vmatprep.subr.bf16.mxu1 %v16517_v57  ;;  %v16532_v56 = vld [vmem:[#allocation2 + $0x5b4] ss:$48 sps:$4 sm:$0xff]   ;;  %v16535_v57 = vld [vmem:[#allocation2 + $0x5bc] ss:$48 sps:$4 sm:$0xff]  }
 0x136   : > { %23159 = vst [vmem:[#allocation12_spill] sm:$0xff] %v19257_v44 }
 0x137   : > { %4192 = vmatmul.mubr.bf16.gmra.mrb[24].mxu0 %v19245_v4  ;;  %4531 = vmatmul.mubr.bf16.gmra.mrb[24].mxu1 %v19245_v4 }
 0x138   : > { %4576 = vmatpush1.bf16.msra.mxu0 %v16512_v60  ;;  %4915 = vmatpush1.bf16.msra.mxu1 %v16515_v2  ;;  %v16530_v60 = vld [vmem:[#allocation2 + $0x5b0] ss:$48 sps:$4 sm:$0xff]   ;;  %v16533_v2 = vld [vmem:[#allocation2 + $0x5b8] ss:$48 sps:$4 sm:$0xff]  }
 0x139   : > { %4577 = vmatprep.subr.bf16.mxu0 %v16520_v11  ;;  %4916 = vmatprep.subr.bf16.mxu1 %v16523_v18  ;;  %v16536_v11 = vld [vmem:[#allocation2 + $0x610] ss:$48 sps:$4 sm:$0xff]   ;;  %v16539_v18 = vld [vmem:[#allocation2 + $0x618] ss:$48 sps:$4 sm:$0xff]  }
 0x13a   : > { %4201 = vmatprep.mubr.bf16.mxu0 %v19249_v27  ;;  %4540 = vmatprep.mubr.bf16.mxu1 %v19249_v27 }
 0x13c   : > { %4578 = vmatpush1.bf16.msra.mxu0 %v16518_v21  ;;  %4917 = vmatpush1.bf16.msra.mxu1 %v16521_v22  ;;  %v16544_v21 = vld [vmem:[#allocation2 + $0x674] ss:$48 sps:$4 sm:$0xff]   ;;  %v16547_v22 = vld [vmem:[#allocation2 + $0x67c] ss:$48 sps:$4 sm:$0xff]  }
 0x13d   : > { %4579 = vmatprep.subr.bf16.mxu0 %v16526_v38  ;;  %4918 = vmatprep.subr.bf16.mxu1 %v16529_v42  ;;  %v16550_v38 = vld [vmem:[#allocation2 + $0x6d4] ss:$48 sps:$4 sm:$0xff]   ;;  %v16553_v42 = vld [vmem:[#allocation2 + $0x6dc] ss:$48 sps:$4 sm:$0xff]  }
 0x13f   : > { %4202 = vmatmul.mubr.bf16.gmra.mrb[28].mxu0 %v19257_v44  ;;  %4541 = vmatmul.mubr.bf16.gmra.mrb[28].mxu1 %v19257_v44 }
 0x140   : > { %4580 = vmatpush1.bf16.msra.mxu0 %v16524_v47  ;;  %4919 = vmatpush1.bf16.msra.mxu1 %v16527_v55  ;;  %v16548_v47 = vld [vmem:[#allocation2 + $0x6d0] ss:$48 sps:$4 sm:$0xff]   ;;  %v16551_v55 = vld [vmem:[#allocation2 + $0x6d8] ss:$48 sps:$4 sm:$0xff]  }
 0x141   : > { %4581 = vmatprep.subr.bf16.mxu0 %v16532_v56  ;;  %4920 = vmatprep.subr.bf16.mxu1 %v16535_v57  ;;  %v16556_v56 = vld [vmem:[#allocation2 + $0x734] ss:$48 sps:$4 sm:$0xff]   ;;  %v16559_v57 = vld [vmem:[#allocation2 + $0x73c] ss:$48 sps:$4 sm:$0xff]  }
 0x142   : > { %4583 = vmatprep.mubr.bf16.mxu0 %v18975_v51  ;;  %4922 = vmatprep.mubr.bf16.mxu1 %v18975_v51 }
 0x144   : > { %4582 = vmatpush1.bf16.msra.mxu0 %v16530_v60  ;;  %4921 = vmatpush1.bf16.msra.mxu1 %v16533_v2  ;;  %v16554_v60 = vld [vmem:[#allocation2 + $0x730] ss:$48 sps:$4 sm:$0xff]   ;;  %v16557_v2 = vld [vmem:[#allocation2 + $0x738] ss:$48 sps:$4 sm:$0xff]  }
 0x145   : > { %4664 = vmatprep.subr.bf16.mxu0 %v16538_v7  ;;  %5003 = vmatprep.subr.bf16.mxu1 %v16541_v9  ;;  %v16562_v7 = vld [vmem:[#allocation2 + $0x794] ss:$48 sps:$4 sm:$0xff]   ;;  %v16565_v9 = vld [vmem:[#allocation2 + $0x79c] ss:$48 sps:$4 sm:$0xff]  }
 0x147   : > { %4584 = vmatmul.mubr.bf16.vlgmr.msra.gmra.mrb[32].mxu0 %v18981_v8  ;;  %4923 = vmatmul.mubr.bf16.vlgmr.msra.gmra.mrb[32].mxu1 %v18981_v8 }
 0x148   : > { %4665 = vmatpush1.bf16.msra.mxu0 %v16536_v11  ;;  %5004 = vmatpush1.bf16.msra.mxu1 %v16539_v18  ;;  %v16560_v11 = vld [vmem:[#allocation2 + $0x790] ss:$48 sps:$4 sm:$0xff]   ;;  %v16563_v18 = vld [vmem:[#allocation2 + $0x798] ss:$48 sps:$4 sm:$0xff]  }
 0x149   : > { %4666 = vmatprep.subr.bf16.mxu0 %v16544_v21  ;;  %5005 = vmatprep.subr.bf16.mxu1 %v16547_v22  ;;  %v16568_v21 = vld [vmem:[#allocation2 + $0x7f4] ss:$48 sps:$4 sm:$0xff]   ;;  %v16571_v22 = vld [vmem:[#allocation2 + $0x7fc] ss:$48 sps:$4 sm:$0xff]  }
 0x14a   : > { %4593 = vmatprep.mubr.bf16.mxu0 %v18985_v15  ;;  %4932 = vmatprep.mubr.bf16.mxu1 %v18985_v15 }
 0x14c   : > { %4667 = vmatpush1.bf16.msra.mxu0 %v16542_v30  ;;  %5006 = vmatpush1.bf16.msra.mxu1 %v16545_v35  ;;  %v16566_v30 = vld [vmem:[#allocation2 + $0x7f0] ss:$48 sps:$4 sm:$0xff]   ;;  %v16569_v35 = vld [vmem:[#allocation2 + $0x7f8] ss:$48 sps:$4 sm:$0xff]  }
 0x14d   : > { %4668 = vmatprep.subr.bf16.mxu0 %v16550_v38  ;;  %5007 = vmatprep.subr.bf16.mxu1 %v16553_v42  ;;  %v16574_v38 = vld [vmem:[#allocation2 + $0x854] ss:$48 sps:$4 sm:$0xff]   ;;  %v16577_v42 = vld [vmem:[#allocation2 + $0x85c] ss:$48 sps:$4 sm:$0xff]  }
 0x14f   : > { %4594 = vmatmul.mubr.bf16.gmra.mrb[36].mxu0 %v18993_v23  ;;  %4933 = vmatmul.mubr.bf16.gmra.mrb[36].mxu1 %v18993_v23 }
 0x150   : > { %4669 = vmatpush1.bf16.msra.mxu0 %v16548_v47  ;;  %5008 = vmatpush1.bf16.msra.mxu1 %v16551_v55  ;;  %v16572_v47 = vld [vmem:[#allocation2 + $0x850] ss:$48 sps:$4 sm:$0xff]   ;;  %v16575_v55 = vld [vmem:[#allocation2 + $0x858] ss:$48 sps:$4 sm:$0xff]  }
 0x151   : > { %4670 = vmatprep.subr.bf16.mxu0 %v16556_v56  ;;  %5009 = vmatprep.subr.bf16.mxu1 %v16559_v57  ;;  %v16580_v56 = vld [vmem:[#allocation2 + $0x8b4] ss:$48 sps:$4 sm:$0xff]   ;;  %v16583_v57 = vld [vmem:[#allocation2 + $0x8bc] ss:$48 sps:$4 sm:$0xff]  }
 0x152   : > { %4603 = vmatprep.mubr.bf16.mxu0 %v18997_v28  ;;  %4942 = vmatprep.mubr.bf16.mxu1 %v18997_v28 }
 0x154   : > { %4671 = vmatpush1.bf16.msra.mxu0 %v16554_v60  ;;  %5010 = vmatpush1.bf16.msra.mxu1 %v16557_v2  ;;  %v16578_v60 = vld [vmem:[#allocation2 + $0x8b0] ss:$48 sps:$4 sm:$0xff]   ;;  %v16581_v2 = vld [vmem:[#allocation2 + $0x8b8] ss:$48 sps:$4 sm:$0xff]  }
 0x155   : > { %4672 = vmatprep.subr.bf16.mxu0 %v16562_v7  ;;  %5011 = vmatprep.subr.bf16.mxu1 %v16565_v9  ;;  %v16586_v7 = vld [vmem:[#allocation2 + $0x914] ss:$48 sps:$4 sm:$0xff]   ;;  %v16589_v9 = vld [vmem:[#allocation2 + $0x91c] ss:$48 sps:$4 sm:$0xff]  }
 0x157   : > { %4604 = vmatmul.mubr.bf16.gmra.mrb[40].mxu0 %v19005_v37  ;;  %4943 = vmatmul.mubr.bf16.gmra.mrb[40].mxu1 %v19005_v37 }
 0x158   : > { %4673 = vmatpush1.bf16.msra.mxu0 %v16560_v11  ;;  %5012 = vmatpush1.bf16.msra.mxu1 %v16563_v18  ;;  %v16584_v11 = vld [vmem:[#allocation2 + $0x910] ss:$48 sps:$4 sm:$0xff]   ;;  %v16587_v18 = vld [vmem:[#allocation2 + $0x918] ss:$48 sps:$4 sm:$0xff]  }
 0x159   : > { %4674 = vmatprep.subr.bf16.mxu0 %v16568_v21  ;;  %5013 = vmatprep.subr.bf16.mxu1 %v16571_v22  ;;  %v16592_v21 = vld [vmem:[#allocation2 + $0x974] ss:$48 sps:$4 sm:$0xff]   ;;  %v16595_v22 = vld [vmem:[#allocation2 + $0x97c] ss:$48 sps:$4 sm:$0xff]  }
 0x15a   : > { %4613 = vmatprep.mubr.bf16.mxu0 %v19009_v43  ;;  %4952 = vmatprep.mubr.bf16.mxu1 %v19009_v43 }
 0x15c   : > { %4675 = vmatpush1.bf16.msra.mxu0 %v16566_v30  ;;  %5014 = vmatpush1.bf16.msra.mxu1 %v16569_v35  ;;  %v16590_v30 = vld [vmem:[#allocation2 + $0x970] ss:$48 sps:$4 sm:$0xff]   ;;  %v16593_v35 = vld [vmem:[#allocation2 + $0x978] ss:$48 sps:$4 sm:$0xff]  }
 0x15d   : > { %4676 = vmatprep.subr.bf16.mxu0 %v16574_v38  ;;  %5015 = vmatprep.subr.bf16.mxu1 %v16577_v42  ;;  %v16598_v38 = vld [vmem:[#allocation2 + $0x9d4] ss:$48 sps:$4 sm:$0xff]   ;;  %v16601_v42 = vld [vmem:[#allocation2 + $0x9dc] ss:$48 sps:$4 sm:$0xff]  }
 0x15f   : > { %4614 = vmatmul.mubr.bf16.gmra.mrb[44].mxu0 %v19017_v50  ;;  %4953 = vmatmul.mubr.bf16.gmra.mrb[44].mxu1 %v19017_v50 }
 0x160   : > { %4677 = vmatpush1.bf16.msra.mxu0 %v16572_v47  ;;  %5016 = vmatpush1.bf16.msra.mxu1 %v16575_v55  ;;  %v16596_v47 = vld [vmem:[#allocation2 + $0x9d0] ss:$48 sps:$4 sm:$0xff]   ;;  %v16599_v55 = vld [vmem:[#allocation2 + $0x9d8] ss:$48 sps:$4 sm:$0xff]  }
 0x161   : > { %4678 = vmatprep.subr.bf16.mxu0 %v16580_v56  ;;  %5017 = vmatprep.subr.bf16.mxu1 %v16583_v57  ;;  %v16604_v56 = vld [vmem:[#allocation2 + $0xa34] ss:$48 sps:$4 sm:$0xff]   ;;  %v16607_v57 = vld [vmem:[#allocation2 + $0xa3c] ss:$48 sps:$4 sm:$0xff]  }
 0x162   : > { %4623 = vmatprep.mubr.bf16.mxu0 %v19021_v59  ;;  %4962 = vmatprep.mubr.bf16.mxu1 %v19021_v59 }
 0x164   : > { %4679 = vmatpush1.bf16.msra.mxu0 %v16578_v60  ;;  %5018 = vmatpush1.bf16.msra.mxu1 %v16581_v2  ;;  %v16602_v60 = vld [vmem:[#allocation2 + $0xa30] ss:$48 sps:$4 sm:$0xff]   ;;  %v16605_v2 = vld [vmem:[#allocation2 + $0xa38] ss:$48 sps:$4 sm:$0xff]  }
 0x165   : > { %4680 = vmatprep.subr.bf16.mxu0 %v16586_v7  ;;  %5019 = vmatprep.subr.bf16.mxu1 %v16589_v9  ;;  %v16610_v7 = vld [vmem:[#allocation2 + $0xa94] ss:$48 sps:$4 sm:$0xff]   ;;  %v16613_v9 = vld [vmem:[#allocation2 + $0xa9c] ss:$48 sps:$4 sm:$0xff]  }
 0x167   : > { %4624 = vmatmul.mubr.bf16.gmra.mrb[48].mxu0 %v19029_v0  ;;  %4963 = vmatmul.mubr.bf16.gmra.mrb[48].mxu1 %v19029_v0 }
 0x168   : > { %4681 = vmatpush1.bf16.msra.mxu0 %v16584_v11  ;;  %5020 = vmatpush1.bf16.msra.mxu1 %v16587_v18  ;;  %v16608_v11 = vld [vmem:[#allocation2 + $0xa90] ss:$48 sps:$4 sm:$0xff]   ;;  %v16611_v18 = vld [vmem:[#allocation2 + $0xa98] ss:$48 sps:$4 sm:$0xff]  }
 0x169   : > { %4682 = vmatprep.subr.bf16.mxu0 %v16592_v21  ;;  %5021 = vmatprep.subr.bf16.mxu1 %v16595_v22  ;;  %v16616_v21 = vld [vmem:[#allocation2 + $0xaf4] ss:$48 sps:$4 sm:$0xff]   ;;  %v16619_v22 = vld [vmem:[#allocation2 + $0xafc] ss:$48 sps:$4 sm:$0xff]  }
 0x16a   : > { %4633 = vmatprep.mubr.bf16.mxu0 %v19033_v10  ;;  %4972 = vmatprep.mubr.bf16.mxu1 %v19033_v10 }
 0x16c   : > { %4683 = vmatpush1.bf16.msra.mxu0 %v16590_v30  ;;  %5022 = vmatpush1.bf16.msra.mxu1 %v16593_v35  ;;  %v16614_v30 = vld [vmem:[#allocation2 + $0xaf0] ss:$48 sps:$4 sm:$0xff]   ;;  %v16617_v35 = vld [vmem:[#allocation2 + $0xaf8] ss:$48 sps:$4 sm:$0xff]  }
 0x16d   : > { %4684 = vmatprep.subr.bf16.mxu0 %v16598_v38  ;;  %5023 = vmatprep.subr.bf16.mxu1 %v16601_v42  ;;  %v16622_v38 = vld [vmem:[#allocation2 + $0xb54] ss:$48 sps:$4 sm:$0xff]   ;;  %v16625_v42 = vld [vmem:[#allocation2 + $0xb5c] ss:$48 sps:$4 sm:$0xff]  }
 0x16f   : > { %4634 = vmatmul.mubr.bf16.gmra.mrb[52].mxu0 %v19041_v17  ;;  %4973 = vmatmul.mubr.bf16.gmra.mrb[52].mxu1 %v19041_v17 }
 0x170   : > { %4685 = vmatpush1.bf16.msra.mxu0 %v16596_v47  ;;  %5024 = vmatpush1.bf16.msra.mxu1 %v16599_v55  ;;  %v16620_v47 = vld [vmem:[#allocation2 + $0xb50] ss:$48 sps:$4 sm:$0xff]   ;;  %v16623_v55 = vld [vmem:[#allocation2 + $0xb58] ss:$48 sps:$4 sm:$0xff]  }
 0x171   : > { %4686 = vmatprep.subr.bf16.mxu0 %v16604_v56  ;;  %5025 = vmatprep.subr.bf16.mxu1 %v16607_v57  ;;  %v16628_v56 = vld [vmem:[#allocation2 + $0xbb4] ss:$48 sps:$4 sm:$0xff]   ;;  %v16631_v57 = vld [vmem:[#allocation2 + $0xbbc] ss:$48 sps:$4 sm:$0xff]  }
 0x172   : > { %4643 = vmatprep.mubr.bf16.mxu0 %v19045_v25  ;;  %4982 = vmatprep.mubr.bf16.mxu1 %v19045_v25 }
 0x174   : > { %4687 = vmatpush1.bf16.msra.mxu0 %v16602_v60  ;;  %5026 = vmatpush1.bf16.msra.mxu1 %v16605_v2  ;;  %v16626_v60 = vld [vmem:[#allocation2 + $0xbb0] ss:$48 sps:$4 sm:$0xff]   ;;  %v16629_v2 = vld [vmem:[#allocation2 + $0xbb8] ss:$48 sps:$4 sm:$0xff]  }
 0x175   : > { %4688 = vmatprep.subr.bf16.mxu0 %v16610_v7  ;;  %5027 = vmatprep.subr.bf16.mxu1 %v16613_v9  ;;  %v16634_v7 = vld [vmem:[#allocation2 + $0xc14] ss:$48 sps:$4 sm:$0xff]   ;;  %v16637_v9 = vld [vmem:[#allocation2 + $0xc1c] ss:$48 sps:$4 sm:$0xff]  }
 0x177   : > { %4644 = vmatmul.mubr.bf16.gmra.mrb[56].mxu0 %v19053_v34  ;;  %4983 = vmatmul.mubr.bf16.gmra.mrb[56].mxu1 %v19053_v34 }
 0x178   : > { %4689 = vmatpush1.bf16.msra.mxu0 %v16608_v11  ;;  %5028 = vmatpush1.bf16.msra.mxu1 %v16611_v18  ;;  %v16632_v11 = vld [vmem:[#allocation2 + $0xc10] ss:$48 sps:$4 sm:$0xff]   ;;  %v16635_v18 = vld [vmem:[#allocation2 + $0xc18] ss:$48 sps:$4 sm:$0xff]  }
 0x179   : > { %4690 = vmatprep.subr.bf16.mxu0 %v16616_v21  ;;  %5029 = vmatprep.subr.bf16.mxu1 %v16619_v22  ;;  %v16640_v21 = vld [vmem:[#allocation2 + $0xc74] ss:$48 sps:$4 sm:$0xff]   ;;  %v16643_v22 = vld [vmem:[#allocation2 + $0xc7c] ss:$48 sps:$4 sm:$0xff]  }
 0x17a   : > { %4653 = vmatprep.mubr.bf16.mxu0 %v19057_v40  ;;  %4992 = vmatprep.mubr.bf16.mxu1 %v19057_v40 }
 0x17c   : > { %4691 = vmatpush1.bf16.msra.mxu0 %v16614_v30  ;;  %5030 = vmatpush1.bf16.msra.mxu1 %v16617_v35  ;;  %v16638_v30 = vld [vmem:[#allocation2 + $0xc70] ss:$48 sps:$4 sm:$0xff]   ;;  %v16641_v35 = vld [vmem:[#allocation2 + $0xc78] ss:$48 sps:$4 sm:$0xff]  }
 0x17d   : > { %4692 = vmatprep.subr.bf16.mxu0 %v16622_v38  ;;  %5031 = vmatprep.subr.bf16.mxu1 %v16625_v42  ;;  %v16646_v38 = vld [vmem:[#allocation2 + $0xcd4] ss:$48 sps:$4 sm:$0xff]   ;;  %v16649_v42 = vld [vmem:[#allocation2 + $0xcdc] ss:$48 sps:$4 sm:$0xff]  }
 0x17f   : > { %4654 = vmatmul.mubr.bf16.gmra.mrb[60].mxu0 %v19065_v52  ;;  %4993 = vmatmul.mubr.bf16.gmra.mrb[60].mxu1 %v19065_v52 }
 0x180   : > { %4693 = vmatpush1.bf16.msra.mxu0 %v16620_v47  ;;  %5032 = vmatpush1.bf16.msra.mxu1 %v16623_v55  ;;  %v16644_v47 = vld [vmem:[#allocation2 + $0xcd0] ss:$48 sps:$4 sm:$0xff]   ;;  %v16647_v55 = vld [vmem:[#allocation2 + $0xcd8] ss:$48 sps:$4 sm:$0xff]  }
 0x181   : > { %4694 = vmatprep.subr.bf16.mxu0 %v16628_v56  ;;  %5033 = vmatprep.subr.bf16.mxu1 %v16631_v57  ;;  %v16652_v56 = vld [vmem:[#allocation2 + $0xd34] ss:$48 sps:$4 sm:$0xff]   ;;  %v16655_v57 = vld [vmem:[#allocation2 + $0xd3c] ss:$48 sps:$4 sm:$0xff]  }
 0x182   : > { %4696 = vmatprep.mubr.bf16.mxu0 %v19069_v58  ;;  %5035 = vmatprep.mubr.bf16.mxu1 %v19069_v58 }
 0x184   : > { %4695 = vmatpush1.bf16.msra.mxu0 %v16626_v60  ;;  %5034 = vmatpush1.bf16.msra.mxu1 %v16629_v2  ;;  %v16650_v60 = vld [vmem:[#allocation2 + $0xd30] ss:$48 sps:$4 sm:$0xff]   ;;  %v16653_v2 = vld [vmem:[#allocation2 + $0xd38] ss:$48 sps:$4 sm:$0xff]  }
 0x185   : > { %4777 = vmatprep.subr.bf16.mxu0 %v16634_v7  ;;  %5116 = vmatprep.subr.bf16.mxu1 %v16637_v9  ;;  %v16658_v7 = vld [vmem:[#allocation2 + $0xd94] ss:$48 sps:$4 sm:$0xff]   ;;  %v16661_v9 = vld [vmem:[#allocation2 + $0xd9c] ss:$48 sps:$4 sm:$0xff]  }
 0x187   : > { %4697 = vmatmul.mubr.bf16.vlgmr.msra.gmra.mrb[32].mxu0 %v19077_v3  ;;  %5036 = vmatmul.mubr.bf16.vlgmr.msra.gmra.mrb[32].mxu1 %v19077_v3 }
 0x188   : > { %4778 = vmatpush1.bf16.msra.mxu0 %v16632_v11  ;;  %5117 = vmatpush1.bf16.msra.mxu1 %v16635_v18  ;;  %v16656_v11 = vld [vmem:[#allocation2 + $0xd90] ss:$48 sps:$4 sm:$0xff]   ;;  %v16659_v18 = vld [vmem:[#allocation2 + $0xd98] ss:$48 sps:$4 sm:$0xff]  }
 0x189   : > { %4779 = vmatprep.subr.bf16.mxu0 %v16640_v21  ;;  %5118 = vmatprep.subr.bf16.mxu1 %v16643_v22  ;;  %v16664_v21 = vld [vmem:[#allocation2 + $0xdf4] ss:$48 sps:$4 sm:$0xff]   ;;  %v16667_v22 = vld [vmem:[#allocation2 + $0xdfc] ss:$48 sps:$4 sm:$0xff]  }
 0x18a   : > { %4706 = vmatprep.mubr.bf16.mxu0 %v19081_v13  ;;  %5045 = vmatprep.mubr.bf16.mxu1 %v19081_v13 }
 0x18c   : > { %4780 = vmatpush1.bf16.msra.mxu0 %v16638_v30  ;;  %5119 = vmatpush1.bf16.msra.mxu1 %v16641_v35  ;;  %v16662_v30 = vld [vmem:[#allocation2 + $0xdf0] ss:$48 sps:$4 sm:$0xff]   ;;  %v16665_v35 = vld [vmem:[#allocation2 + $0xdf8] ss:$48 sps:$4 sm:$0xff]  }
 0x18d   : > { %4781 = vmatprep.subr.bf16.mxu0 %v16646_v38  ;;  %5120 = vmatprep.subr.bf16.mxu1 %v16649_v42  ;;  %v16670_v38 = vld [vmem:[#allocation2 + $0xe54] ss:$48 sps:$4 sm:$0xff]   ;;  %v16673_v42 = vld [vmem:[#allocation2 + $0xe5c] ss:$48 sps:$4 sm:$0xff]  }
 0x18f   : > { %4707 = vmatmul.mubr.bf16.gmra.mrb[36].mxu0 %v19089_v20  ;;  %5046 = vmatmul.mubr.bf16.gmra.mrb[36].mxu1 %v19089_v20 }
 0x190   : > { %4782 = vmatpush1.bf16.msra.mxu0 %v16644_v47  ;;  %5121 = vmatpush1.bf16.msra.mxu1 %v16647_v55  ;;  %v16668_v47 = vld [vmem:[#allocation2 + $0xe50] ss:$48 sps:$4 sm:$0xff]   ;;  %v16671_v55 = vld [vmem:[#allocation2 + $0xe58] ss:$48 sps:$4 sm:$0xff]  }
 0x191   : > { %4783 = vmatprep.subr.bf16.mxu0 %v16652_v56  ;;  %5122 = vmatprep.subr.bf16.mxu1 %v16655_v57  ;;  %v16676_v56 = vld [vmem:[#allocation2 + $0xeb4] ss:$48 sps:$4 sm:$0xff]   ;;  %v16679_v57 = vld [vmem:[#allocation2 + $0xebc] ss:$48 sps:$4 sm:$0xff]  }
 0x192   : > { %4716 = vmatprep.mubr.bf16.mxu0 %v19093_v32  ;;  %5055 = vmatprep.mubr.bf16.mxu1 %v19093_v32 }
 0x194   : > { %4784 = vmatpush1.bf16.msra.mxu0 %v16650_v60  ;;  %5123 = vmatpush1.bf16.msra.mxu1 %v16653_v2  ;;  %v16674_v60 = vld [vmem:[#allocation2 + $0xeb0] ss:$48 sps:$4 sm:$0xff]   ;;  %v16677_v2 = vld [vmem:[#allocation2 + $0xeb8] ss:$48 sps:$4 sm:$0xff]  }
 0x195   : > { %4785 = vmatprep.subr.bf16.mxu0 %v16658_v7  ;;  %5124 = vmatprep.subr.bf16.mxu1 %v16661_v9  ;;  %v16682_v7 = vld [vmem:[#allocation2 + $0xf14] ss:$48 sps:$4 sm:$0xff]   ;;  %v16685_v9 = vld [vmem:[#allocation2 + $0xf1c] ss:$48 sps:$4 sm:$0xff]  }
 0x197   : > { %4717 = vmatmul.mubr.bf16.gmra.mrb[40].mxu0 %v19101_v41  ;;  %5056 = vmatmul.mubr.bf16.gmra.mrb[40].mxu1 %v19101_v41 }
 0x198   : > { %4786 = vmatpush1.bf16.msra.mxu0 %v16656_v11  ;;  %5125 = vmatpush1.bf16.msra.mxu1 %v16659_v18  ;;  %v16680_v11 = vld [vmem:[#allocation2 + $0xf10] ss:$48 sps:$4 sm:$0xff]   ;;  %v16683_v18 = vld [vmem:[#allocation2 + $0xf18] ss:$48 sps:$4 sm:$0xff]  }
 0x199   : > { %4787 = vmatprep.subr.bf16.mxu0 %v16664_v21  ;;  %5126 = vmatprep.subr.bf16.mxu1 %v16667_v22  ;;  %v16688_v21 = vld [vmem:[#allocation2 + $0xf74] ss:$48 sps:$4 sm:$0xff]   ;;  %v16691_v22 = vld [vmem:[#allocation2 + $0xf7c] ss:$48 sps:$4 sm:$0xff]  }
 0x19a   : > { %4726 = vmatprep.mubr.bf16.mxu0 %v19105_v49  ;;  %5065 = vmatprep.mubr.bf16.mxu1 %v19105_v49 }
 0x19c   : > { %4788 = vmatpush1.bf16.msra.mxu0 %v16662_v30  ;;  %5127 = vmatpush1.bf16.msra.mxu1 %v16665_v35  ;;  %v16686_v30 = vld [vmem:[#allocation2 + $0xf70] ss:$48 sps:$4 sm:$0xff]   ;;  %v16689_v35 = vld [vmem:[#allocation2 + $0xf78] ss:$48 sps:$4 sm:$0xff]  }
 0x19d   : > { %4789 = vmatprep.subr.bf16.mxu0 %v16670_v38  ;;  %5128 = vmatprep.subr.bf16.mxu1 %v16673_v42  ;;  %v16694_v38 = vld [vmem:[#allocation2 + $0xfd4] ss:$48 sps:$4 sm:$0xff]   ;;  %v16697_v42 = vld [vmem:[#allocation2 + $0xfdc] ss:$48 sps:$4 sm:$0xff]  }
 0x19f   : > { %4727 = vmatmul.mubr.bf16.gmra.mrb[44].mxu0 %v19113_v62  ;;  %5066 = vmatmul.mubr.bf16.gmra.mrb[44].mxu1 %v19113_v62 }
 0x1a0   : > { %4790 = vmatpush1.bf16.msra.mxu0 %v16668_v47  ;;  %5129 = vmatpush1.bf16.msra.mxu1 %v16671_v55  ;;  %v16692_v47 = vld [vmem:[#allocation2 + $0xfd0] ss:$48 sps:$4 sm:$0xff]   ;;  %v16695_v55 = vld [vmem:[#allocation2 + $0xfd8] ss:$48 sps:$4 sm:$0xff]  }
 0x1a1   : > { %4791 = vmatprep.subr.bf16.mxu0 %v16676_v56  ;;  %5130 = vmatprep.subr.bf16.mxu1 %v16679_v57  ;;  %v16700_v56 = vld [vmem:[#allocation2 + $0x1034] ss:$48 sps:$4 sm:$0xff]   ;;  %v16703_v57 = vld [vmem:[#allocation2 + $0x103c] ss:$48 sps:$4 sm:$0xff]  }
 0x1a2   : > { %4736 = vmatprep.mubr.bf16.mxu0 %v19117_v5  ;;  %5075 = vmatprep.mubr.bf16.mxu1 %v19117_v5 }
 0x1a4   : > { %4792 = vmatpush1.bf16.msra.mxu0 %v16674_v60  ;;  %5131 = vmatpush1.bf16.msra.mxu1 %v16677_v2  ;;  %v16698_v60 = vld [vmem:[#allocation2 + $0x1030] ss:$48 sps:$4 sm:$0xff]   ;;  %v16701_v2 = vld [vmem:[#allocation2 + $0x1038] ss:$48 sps:$4 sm:$0xff]  }
 0x1a5   : > { %4793 = vmatprep.subr.bf16.mxu0 %v16682_v7  ;;  %5132 = vmatprep.subr.bf16.mxu1 %v16685_v9  ;;  %v16706_v7 = vld [vmem:[#allocation2 + $0x1094] ss:$48 sps:$4 sm:$0xff]   ;;  %v16709_v9 = vld [vmem:[#allocation2 + $0x109c] ss:$48 sps:$4 sm:$0xff]  }
 0x1a7   : > { %4737 = vmatmul.mubr.bf16.gmra.mrb[48].mxu0 %v19125_v19  ;;  %5076 = vmatmul.mubr.bf16.gmra.mrb[48].mxu1 %v19125_v19 }
 0x1a8   : > { %4794 = vmatpush1.bf16.msra.mxu0 %v16680_v11  ;;  %5133 = vmatpush1.bf16.msra.mxu1 %v16683_v18  ;;  %v16704_v11 = vld [vmem:[#allocation2 + $0x1090] ss:$48 sps:$4 sm:$0xff]   ;;  %v16707_v18 = vld [vmem:[#allocation2 + $0x1098] ss:$48 sps:$4 sm:$0xff]  }
 0x1a9   : > { %4795 = vmatprep.subr.bf16.mxu0 %v16688_v21  ;;  %5134 = vmatprep.subr.bf16.mxu1 %v16691_v22  ;;  %v16712_v21 = vld [vmem:[#allocation2 + $0x10f4] ss:$48 sps:$4 sm:$0xff]   ;;  %v16715_v22 = vld [vmem:[#allocation2 + $0x10fc] ss:$48 sps:$4 sm:$0xff]  }
 0x1aa   : > { %4746 = vmatprep.mubr.bf16.mxu0 %v19129_v29  ;;  %5085 = vmatprep.mubr.bf16.mxu1 %v19129_v29 }
 0x1ac   : > { %4796 = vmatpush1.bf16.msra.mxu0 %v16686_v30  ;;  %5135 = vmatpush1.bf16.msra.mxu1 %v16689_v35  ;;  %v16710_v30 = vld [vmem:[#allocation2 + $0x10f0] ss:$48 sps:$4 sm:$0xff]   ;;  %v16713_v35 = vld [vmem:[#allocation2 + $0x10f8] ss:$48 sps:$4 sm:$0xff]  }
 0x1ad   : > { %4797 = vmatprep.subr.bf16.mxu0 %v16694_v38  ;;  %5136 = vmatprep.subr.bf16.mxu1 %v16697_v42  ;;  %v16718_v38 = vld [vmem:[#allocation2 + $0x1154] ss:$48 sps:$4 sm:$0xff]   ;;  %v16721_v42 = vld [vmem:[#allocation2 + $0x115c] ss:$48 sps:$4 sm:$0xff]  }
 0x1af   : > { %4747 = vmatmul.mubr.bf16.gmra.mrb[52].mxu0 %v19137_v39  ;;  %5086 = vmatmul.mubr.bf16.gmra.mrb[52].mxu1 %v19137_v39 }
 0x1b0   : > { %4798 = vmatpush1.bf16.msra.mxu0 %v16692_v47  ;;  %5137 = vmatpush1.bf16.msra.mxu1 %v16695_v55  ;;  %v16716_v47 = vld [vmem:[#allocation2 + $0x1150] ss:$48 sps:$4 sm:$0xff]   ;;  %v16719_v55 = vld [vmem:[#allocation2 + $0x1158] ss:$48 sps:$4 sm:$0xff]  }
 0x1b1   : > { %4799 = vmatprep.subr.bf16.mxu0 %v16700_v56  ;;  %5138 = vmatprep.subr.bf16.mxu1 %v16703_v57  ;;  %v16724_v56 = vld [vmem:[#allocation2 + $0x11b4] ss:$48 sps:$4 sm:$0xff]   ;;  %v16727_v57 = vld [vmem:[#allocation2 + $0x11bc] ss:$48 sps:$4 sm:$0xff]  }
 0x1b2   : > { %4756 = vmatprep.mubr.bf16.mxu0 %v19141_v54  ;;  %5095 = vmatprep.mubr.bf16.mxu1 %v19141_v54 }
 0x1b4   : > { %4800 = vmatpush1.bf16.msra.mxu0 %v16698_v60  ;;  %5139 = vmatpush1.bf16.msra.mxu1 %v16701_v2  ;;  %v16722_v60 = vld [vmem:[#allocation2 + $0x11b0] ss:$48 sps:$4 sm:$0xff]   ;;  %v16725_v2 = vld [vmem:[#allocation2 + $0x11b8] ss:$48 sps:$4 sm:$0xff]  }
 0x1b5   : > { %4801 = vmatprep.subr.bf16.mxu0 %v16706_v7  ;;  %5140 = vmatprep.subr.bf16.mxu1 %v16709_v9  ;;  %v16730_v7 = vld [vmem:[#allocation2 + $0x24] ss:$48 sps:$4 sm:$0xff]   ;;  %v16733_v9 = vld [vmem:[#allocation2 + $0x2c] ss:$48 sps:$4 sm:$0xff]  }
 0x1b7   : > { %4757 = vmatmul.mubr.bf16.gmra.mrb[56].mxu0 %v19149_v61  ;;  %5096 = vmatmul.mubr.bf16.gmra.mrb[56].mxu1 %v19149_v61 }
 0x1b8   : > { %4802 = vmatpush1.bf16.msra.mxu0 %v16704_v11  ;;  %5141 = vmatpush1.bf16.msra.mxu1 %v16707_v18  ;;  %v16728_v11 = vld [vmem:[#allocation2 + $0x20] ss:$48 sps:$4 sm:$0xff]   ;;  %v16731_v18 = vld [vmem:[#allocation2 + $0x28] ss:$48 sps:$4 sm:$0xff]  }
 0x1b9   : > { %4803 = vmatprep.subr.bf16.mxu0 %v16712_v21  ;;  %5142 = vmatprep.subr.bf16.mxu1 %v16715_v22  ;;  %v16736_v21 = vld [vmem:[#allocation2 + $0x84] ss:$48 sps:$4 sm:$0xff]   ;;  %v16739_v22 = vld [vmem:[#allocation2 + $0x8c] ss:$48 sps:$4 sm:$0xff]  }
 0x1ba   : > { %4766 = vmatprep.mubr.bf16.mxu0 %v19153_v12  ;;  %5105 = vmatprep.mubr.bf16.mxu1 %v19153_v12 }
 0x1bc   : > { %4804 = vmatpush1.bf16.msra.mxu0 %v16710_v30  ;;  %5143 = vmatpush1.bf16.msra.mxu1 %v16713_v35  ;;  %v16734_v30 = vld [vmem:[#allocation2 + $0x80] ss:$48 sps:$4 sm:$0xff]   ;;  %v16737_v35 = vld [vmem:[#allocation2 + $0x88] ss:$48 sps:$4 sm:$0xff]  }
 0x1bd   : > { %4805 = vmatprep.subr.bf16.mxu0 %v16718_v38  ;;  %5144 = vmatprep.subr.bf16.mxu1 %v16721_v42  ;;  %v16742_v38 = vld [vmem:[#allocation2 + $0xe4] ss:$48 sps:$4 sm:$0xff]   ;;  %v16745_v42 = vld [vmem:[#allocation2 + $0xec] ss:$48 sps:$4 sm:$0xff]  }
 0x1bf   : > { %4767 = vmatmul.mubr.bf16.gmra.mrb[60].mxu0 %v19161_v24  ;;  %5106 = vmatmul.mubr.bf16.gmra.mrb[60].mxu1 %v19161_v24 }
 0x1c0   : > { %4806 = vmatpush1.bf16.msra.mxu0 %v16716_v47  ;;  %5145 = vmatpush1.bf16.msra.mxu1 %v16719_v55  ;;  %v16740_v47 = vld [vmem:[#allocation2 + $0xe0] ss:$48 sps:$4 sm:$0xff]   ;;  %v16743_v55 = vld [vmem:[#allocation2 + $0xe8] ss:$48 sps:$4 sm:$0xff]  }
 0x1c1   : > { %4807 = vmatprep.subr.bf16.mxu0 %v16724_v56  ;;  %5146 = vmatprep.subr.bf16.mxu1 %v16727_v57  ;;  %v16748_v56 = vld [vmem:[#allocation2 + $0x144] ss:$48 sps:$4 sm:$0xff]   ;;  %v16751_v57 = vld [vmem:[#allocation2 + $0x14c] ss:$48 sps:$4 sm:$0xff]  }
 0x1c2   : > { %4809 = vmatprep.mubr.bf16.mxu0 %v19165_v36  ;;  %5148 = vmatprep.mubr.bf16.mxu1 %v19165_v36 }
 0x1c4   : > { %4808 = vmatpush1.bf16.msra.mxu0 %v16722_v60  ;;  %5147 = vmatpush1.bf16.msra.mxu1 %v16725_v2  ;;  %v16746_v60 = vld [vmem:[#allocation2 + $0x140] ss:$48 sps:$4 sm:$0xff]   ;;  %v16749_v2 = vld [vmem:[#allocation2 + $0x148] ss:$48 sps:$4 sm:$0xff]  }
 0x1c5   : > { %5229 = vmatprep.subr.bf16.mxu0 %v16730_v7  ;;  %5568 = vmatprep.subr.bf16.mxu1 %v16733_v9  ;;  %v16754_v7 = vld [vmem:[#allocation2 + $0x1a4] ss:$48 sps:$4 sm:$0xff]   ;;  %v16757_v9 = vld [vmem:[#allocation2 + $0x1ac] ss:$48 sps:$4 sm:$0xff]  }
 0x1c7   : > { %4810 = vmatmul.mubr.bf16.vlgmr.msra.gmra.mrb[32].mxu0 %v19173_v53  ;;  %5149 = vmatmul.mubr.bf16.vlgmr.msra.gmra.mrb[32].mxu1 %v19173_v53 }
 0x1c8   : > { %5230 = vmatpush1.bf16.msra.mxu0 %v16728_v11  ;;  %5569 = vmatpush1.bf16.msra.mxu1 %v16731_v18  ;;  %v16752_v11 = vld [vmem:[#allocation2 + $0x1a0] ss:$48 sps:$4 sm:$0xff]   ;;  %v16755_v18 = vld [vmem:[#allocation2 + $0x1a8] ss:$48 sps:$4 sm:$0xff]  }
 0x1c9   : > { %5231 = vmatprep.subr.bf16.mxu0 %v16736_v21  ;;  %5570 = vmatprep.subr.bf16.mxu1 %v16739_v22  ;;  %v16760_v21 = vld [vmem:[#allocation2 + $0x204] ss:$48 sps:$4 sm:$0xff]   ;;  %v16763_v22 = vld [vmem:[#allocation2 + $0x20c] ss:$48 sps:$4 sm:$0xff]  }
 0x1ca   : > { %4819 = vmatprep.mubr.bf16.mxu0 %v19177_v63  ;;  %5158 = vmatprep.mubr.bf16.mxu1 %v19177_v63 }
 0x1cc   : > { %5232 = vmatpush1.bf16.msra.mxu0 %v16734_v30  ;;  %5571 = vmatpush1.bf16.msra.mxu1 %v16737_v35  ;;  %v16758_v30 = vld [vmem:[#allocation2 + $0x200] ss:$48 sps:$4 sm:$0xff]   ;;  %v16761_v35 = vld [vmem:[#allocation2 + $0x208] ss:$48 sps:$4 sm:$0xff]  }
 0x1cd   : > { %5233 = vmatprep.subr.bf16.mxu0 %v16742_v38  ;;  %5572 = vmatprep.subr.bf16.mxu1 %v16745_v42  ;;  %v16766_v38 = vld [vmem:[#allocation2 + $0x264] ss:$48 sps:$4 sm:$0xff]   ;;  %v16769_v42 = vld [vmem:[#allocation2 + $0x26c] ss:$48 sps:$4 sm:$0xff]  }
 0x1cf   : > { %4820 = vmatmul.mubr.bf16.gmra.mrb[36].mxu0 %v19185_v16  ;;  %5159 = vmatmul.mubr.bf16.gmra.mrb[36].mxu1 %v19185_v16 }
 0x1d0   : > { %5234 = vmatpush1.bf16.msra.mxu0 %v16740_v47  ;;  %5573 = vmatpush1.bf16.msra.mxu1 %v16743_v55 }
 0x1d1   : > { %5235 = vmatprep.subr.bf16.mxu0 %v16748_v56  ;;  %5574 = vmatprep.subr.bf16.mxu1 %v16751_v57  ;;  %v16764_v56 = vld [vmem:[#allocation2 + $0x260] ss:$48 sps:$4 sm:$0xff]   ;;  %v16767_v57 = vld [vmem:[#allocation2 + $0x268] ss:$48 sps:$4 sm:$0xff]  }
 0x1d2   : > { %4829 = vmatprep.mubr.bf16.mxu0 %v19189_v31  ;;  %5168 = vmatprep.mubr.bf16.mxu1 %v19189_v31 }
 0x1d4   : > { %5236 = vmatpush1.bf16.msra.mxu0 %v16746_v60  ;;  %5575 = vmatpush1.bf16.msra.mxu1 %v16749_v2 }
 0x1d5   : > { %5237 = vmatprep.subr.bf16.mxu0 %v16754_v7  ;;  %5576 = vmatprep.subr.bf16.mxu1 %v16757_v9 }
 0x1d7   : > { %4830 = vmatmul.mubr.bf16.gmra.mrb[40].mxu0 %v19197_v46  ;;  %5169 = vmatmul.mubr.bf16.gmra.mrb[40].mxu1 %v19197_v46 }
 0x1d8   : > { %5238 = vmatpush1.bf16.msra.mxu0 %v16752_v11  ;;  %5577 = vmatpush1.bf16.msra.mxu1 %v16755_v18 }
 0x1d9   : > { %5239 = vmatprep.subr.bf16.mxu0 %v16760_v21  ;;  %5578 = vmatprep.subr.bf16.mxu1 %v16763_v22  ;;  %v16772_v21 = vld [vmem:[#allocation2 + $0x2c4] ss:$48 sps:$4 sm:$0xff]   ;;  %v16775_v22 = vld [vmem:[#allocation2 + $0x2cc] ss:$48 sps:$4 sm:$0xff]  }
 0x1da   : > { %v19337_v47 = vpop.f32.mrb[0].mxu0  ;;  %v19339_v55 = vpop.f32.mrb[0].mxu1  ;;  %4839 = vmatprep.mubr.bf16.mxu0 %v19201_v1  ;;  %5178 = vmatprep.mubr.bf16.mxu1 %v19201_v1 }
 0x1db   : > { %23160 = vst [vmem:[#allocation13_spill] sm:$0xff] %v19339_v55  ;;  %v19343_v60 = vpop.f32.mrb[1].mxu0  ;;  %v19345_v2 = vpop.f32.mrb[1].mxu1  ;;  %v16773_v55 = vld [vmem:[#allocation2 + $0x2c8] ss:$48 sps:$4 sm:$0xff]  }
 0x1dc   : > { %23161 = vst [vmem:[#allocation14_spill] sm:$0xff] %v19345_v2  ;;  %v19347_v7 = vpop.f32.mrb[2].mxu0  ;;  %v19349_v9 = vpop.f32.mrb[2].mxu1  ;;  %5240 = vmatpush1.bf16.msra.mxu0 %v16758_v30  ;;  %5579 = vmatpush1.bf16.msra.mxu1 %v16761_v35  ;;  %v16770_v2 = vld [vmem:[#allocation2 + $0x2c0] ss:$48 sps:$4 sm:$0xff]  }
 0x1dd   : > { %23162 = vst [vmem:[#allocation15_spill] sm:$0xff] %v19347_v7  ;;  %23163 = vst [vmem:[#allocation16_spill] sm:$0xff] %v19349_v9  ;;  %v19351_v11 = vpop.f32.mrb[3].mxu0  ;;  %v19353_v18 = vpop.f32.mrb[3].mxu1  ;;  %5241 = vmatprep.subr.bf16.mxu0 %v16766_v38  ;;  %5580 = vmatprep.subr.bf16.mxu1 %v16769_v42  ;;  %v16778_v30 = vld [vmem:[#allocation2 + $0x324] ss:$48 sps:$4 sm:$0xff]  }
 0x1de   : > { %23164 = vst [vmem:[#allocation17_spill] sm:$0xff] %v19351_v11  ;;  %23165 = vst [vmem:[#allocation18_spill] sm:$0xff] %v19353_v18  ;;  %v16781_v35 = vld [vmem:[#allocation2 + $0x32c] ss:$48 sps:$4 sm:$0xff]   ;;  %v16776_v38 = vld [vmem:[#allocation2 + $0x320] ss:$48 sps:$4 sm:$0xff]  }
 0x1df   : > { %4840 = vmatmul.mubr.bf16.gmra.mrb[44].mxu0 %v19209_v14  ;;  %5179 = vmatmul.mubr.bf16.gmra.mrb[44].mxu1 %v19209_v14  ;;  %v16779_v42 = vld [vmem:[#allocation2 + $0x328] ss:$48 sps:$4 sm:$0xff]   ;;  %v16787_v7 = vld [vmem:[#allocation2 + $0x38c] ss:$48 sps:$4 sm:$0xff]  }
 0x1e0   : > { %5242 = vmatpush1.bf16.msra.mxu0 %v16764_v56  ;;  %5581 = vmatpush1.bf16.msra.mxu1 %v16767_v57 }
 0x1e1   : > { %5243 = vmatprep.subr.bf16.mxu0 %v16772_v21  ;;  %5582 = vmatprep.subr.bf16.mxu1 %v16775_v22 }
 0x1e2   : > { %v19357_v9 = vpop.f32.mrb[4].mxu0  ;;  %v19359_v11 = vpop.f32.mrb[4].mxu1  ;;  %4849 = vmatprep.mubr.bf16.mxu0 %v19213_v33  ;;  %5188 = vmatprep.mubr.bf16.mxu1 %v19213_v33 }
 0x1e3   : > { %23166 = vst [vmem:[#allocation19_spill] sm:$0xff] %v19357_v9  ;;  %23167 = vst [vmem:[#allocation20_spill] sm:$0xff] %v19359_v11  ;;  %v19363_v18 = vpop.f32.mrb[5].mxu0  ;;  %v19365_v56 = vpop.f32.mrb[5].mxu1  ;;  %v16784_v11 = vld [vmem:[#allocation2 + $0x384] ss:$48 sps:$4 sm:$0xff]  }
 0x1e4   : > { %23168 = vst [vmem:[#allocation21_spill] sm:$0xff] %v19363_v18  ;;  %23169 = vst [vmem:[#allocation22_spill] sm:$0xff] %v19365_v56  ;;  %v19367_v57 = vpop.f32.mrb[6].mxu0  ;;  %v19369_v21 = vpop.f32.mrb[6].mxu1  ;;  %5244 = vmatpush1.bf16.msra.mxu0 %v16770_v2  ;;  %5583 = vmatpush1.bf16.msra.mxu1 %v16773_v55  ;;  %v16782_v56 = vld [vmem:[#allocation2 + $0x380] ss:$48 sps:$4 sm:$0xff]  }
 0x1e5   : > { %23170 = vst [vmem:[#allocation23_spill] sm:$0xff] %v19367_v57  ;;  %23171 = vst [vmem:[#allocation24_spill] sm:$0xff] %v19369_v21  ;;  %v19371_v22 = vpop.f32.mrb[7].mxu0  ;;  %v19373_v9 = vpop.f32.mrb[7].mxu1  ;;  %5245 = vmatprep.subr.bf16.mxu0 %v16778_v30  ;;  %5584 = vmatprep.subr.bf16.mxu1 %v16781_v35  ;;  %v16785_v57 = vld [vmem:[#allocation2 + $0x388] ss:$48 sps:$4 sm:$0xff]  }
 0x1e6   : > { %23172 = vst [vmem:[#allocation25_spill] sm:$0xff] %v19371_v22  ;;  %23173 = vst [vmem:[#allocation26_spill] sm:$0xff] %v19373_v9  ;;  %v16790_v2 = vld [vmem:[#allocation2 + $0x3e4] ss:$48 sps:$4 sm:$0xff]   ;;  %v16793_v55 = vld [vmem:[#allocation2 + $0x3ec] ss:$48 sps:$4 sm:$0xff]  }
 0x1e7   : > { %4850 = vmatmul.mubr.bf16.gmra.mrb[48].mxu0 %v19221_v48  ;;  %5189 = vmatmul.mubr.bf16.gmra.mrb[48].mxu1 %v19221_v48  ;;  %v16788_v30 = vld [vmem:[#allocation2 + $0x3e0] ss:$48 sps:$4 sm:$0xff]   ;;  %v16791_v35 = vld [vmem:[#allocation2 + $0x3e8] ss:$48 sps:$4 sm:$0xff]   ;;  %v16799_v18 = vld [vmem:[#allocation2 + $0x44c] ss:$48 sps:$4 sm:$0xff]  }
 0x1e8   : > { %5246 = vmatpush1.bf16.msra.mxu0 %v16776_v38  ;;  %5585 = vmatpush1.bf16.msra.mxu1 %v16779_v42 }
 0x1e9   : > { %5247 = vmatprep.subr.bf16.mxu0 %v16784_v11  ;;  %5586 = vmatprep.subr.bf16.mxu1 %v16787_v7 }
 0x1ea   : > { %v19377_v21 = vpop.f32.mrb[8].mxu0  ;;  %v19379_v22 = vpop.f32.mrb[8].mxu1  ;;  %4859 = vmatprep.mubr.bf16.mxu0 %v19225_v6  ;;  %5198 = vmatprep.mubr.bf16.mxu1 %v19225_v6 }
 0x1eb   : > { %23174 = vst [vmem:[#allocation27_spill] sm:$0xff] %v19377_v21  ;;  %23175 = vst [vmem:[#allocation28_spill] sm:$0xff] %v19379_v22  ;;  %v19383_v9 = vpop.f32.mrb[9].mxu0  ;;  %v19385_v38 = vpop.f32.mrb[9].mxu1  ;;  %v16796_v22 = vld [vmem:[#allocation2 + $0x444] ss:$48 sps:$4 sm:$0xff]  }
 0x1ec   : > { %23176 = vst [vmem:[#allocation29_spill] sm:$0xff] %v19383_v9  ;;  %23177 = vst [vmem:[#allocation30_spill] sm:$0xff] %v19385_v38  ;;  %v19387_v42 = vpop.f32.mrb[10].mxu0  ;;  %v19389_v11 = vpop.f32.mrb[10].mxu1  ;;  %5248 = vmatpush1.bf16.msra.mxu0 %v16782_v56  ;;  %5587 = vmatpush1.bf16.msra.mxu1 %v16785_v57  ;;  %v16794_v38 = vld [vmem:[#allocation2 + $0x440] ss:$48 sps:$4 sm:$0xff]  }
 0x1ed   : > { %23178 = vst [vmem:[#allocation31_spill] sm:$0xff] %v19387_v42  ;;  %23179 = vst [vmem:[#allocation32_spill] sm:$0xff] %v19389_v11  ;;  %v19391_v7 = vpop.f32.mrb[11].mxu0  ;;  %v19393_v21 = vpop.f32.mrb[11].mxu1  ;;  %5249 = vmatprep.subr.bf16.mxu0 %v16790_v2  ;;  %5588 = vmatprep.subr.bf16.mxu1 %v16793_v55  ;;  %v16797_v42 = vld [vmem:[#allocation2 + $0x448] ss:$48 sps:$4 sm:$0xff]  }
 0x1ee   : > { %23180 = vst [vmem:[#allocation33_spill] sm:$0xff] %v19391_v7  ;;  %23181 = vst [vmem:[#allocation34_spill] sm:$0xff] %v19393_v21  ;;  %v16802_v56 = vld [vmem:[#allocation2 + $0x4a4] ss:$48 sps:$4 sm:$0xff]   ;;  %v16805_v57 = vld [vmem:[#allocation2 + $0x4ac] ss:$48 sps:$4 sm:$0xff]  }
 0x1ef   : > { %4860 = vmatmul.mubr.bf16.gmra.mrb[52].mxu0 %v19233_v26  ;;  %5199 = vmatmul.mubr.bf16.gmra.mrb[52].mxu1 %v19233_v26  ;;  %v16800_v2 = vld [vmem:[#allocation2 + $0x4a0] ss:$48 sps:$4 sm:$0xff]   ;;  %v16803_v55 = vld [vmem:[#allocation2 + $0x4a8] ss:$48 sps:$4 sm:$0xff]  }
 0x1f0   : > { %5250 = vmatpush1.bf16.msra.mxu0 %v16788_v30  ;;  %5589 = vmatpush1.bf16.msra.mxu1 %v16791_v35  ;;  %v933_v35 = vlaneseq }
 0x1f1   : > { %5251 = vmatprep.subr.bf16.mxu0 %v16796_v22  ;;  %5590 = vmatprep.subr.bf16.mxu1 %v16799_v18 }
 0x1f2   : > { %v19397_v11 = vpop.f32.mrb[12].mxu0  ;;  %v19399_v7 = vpop.f32.mrb[12].mxu1  ;;  %4869 = vmatprep.mubr.bf16.mxu0 %v19237_v45  ;;  %5208 = vmatprep.mubr.bf16.mxu1 %v19237_v45  ;;  %v16811_v45 = vld [vmem:[#allocation2 + $0x50c] ss:$48 sps:$4 sm:$0xff]  }
 0x1f3   : > { %23182 = vst [vmem:[#allocation35_spill] sm:$0xff] %v19397_v11  ;;  %23183 = vst [vmem:[#allocation36_spill] sm:$0xff] %v19399_v7  ;;  %v19403_v21 = vpop.f32.mrb[13].mxu0  ;;  %v19405_v30 = vpop.f32.mrb[13].mxu1  ;;  %v16808_v11 = vld [vmem:[#allocation2 + $0x504] ss:$48 sps:$4 sm:$0xff]  }
 0x1f4   : > { %23184 = vst [vmem:[#allocation37_spill] sm:$0xff] %v19403_v21  ;;  %23185 = vst [vmem:[#allocation38_spill] sm:$0xff] %v19405_v30  ;;  %v19407_v9 = vpop.f32.mrb[14].mxu0  ;;  %v19409_v18 = vpop.f32.mrb[14].mxu1  ;;  %5252 = vmatpush1.bf16.msra.mxu0 %v16794_v38  ;;  %5591 = vmatpush1.bf16.msra.mxu1 %v16797_v42  ;;  %v19417_v30 = vshrl.u32 %v933_v35, 7 }
 0x1f5   : > { %23186 = vst [vmem:[#allocation39_spill] sm:$0xff] %v19407_v9  ;;  %23187 = vst [vmem:[#allocation40_spill] sm:$0xff] %v19409_v18  ;;  %v19411_v22 = vpop.f32.mrb[15].mxu0  ;;  %v19413_v7 = vpop.f32.mrb[15].mxu1  ;;  %5253 = vmatprep.subr.bf16.mxu0 %v16802_v56  ;;  %5592 = vmatprep.subr.bf16.mxu1 %v16805_v57  ;;  %v16806_v9 = vld [vmem:[#allocation2 + $0x500] ss:$48 sps:$4 sm:$0xff]  }
 0x1f6   : > { %23188 = vst [vmem:[#allocation41_spill] sm:$0xff] %v19411_v22  ;;  %23189 = vst [vmem:[#allocation42_spill] sm:$0xff] %v19413_v7  ;;  %v16809_v18 = vld [vmem:[#allocation2 + $0x508] ss:$48 sps:$4 sm:$0xff]   ;;  %v16814_v38 = vld [vmem:[#allocation2 + $0x564] ss:$48 sps:$4 sm:$0xff]  }
 0x1f7   : > { %4870 = vmatmul.mubr.bf16.gmra.mrb[56].mxu0 %v19245_v4  ;;  %5209 = vmatmul.mubr.bf16.gmra.mrb[56].mxu1 %v19245_v4  ;;  %23190 = vst [vmem:[#allocation43_spill] sm:$0xff] %v19417_v30  ;;  %v16817_v42 = vld [vmem:[#allocation2 + $0x56c] ss:$48 sps:$4 sm:$0xff]   ;;  %v16812_v57 = vld [vmem:[#allocation2 + $0x560] ss:$48 sps:$4 sm:$0xff]  }
 0x1f8   : > { %5254 = vmatpush1.bf16.msra.mxu0 %v16800_v2  ;;  %5593 = vmatpush1.bf16.msra.mxu1 %v16803_v55  ;;  %v16815_v7 = vld [vmem:[#allocation2 + $0x568] ss:$48 sps:$4 sm:$0xff]   ;;  %v19430_v55 = vsub.s32 2, %v19417_v30  ;;  %v16820_v21 = vld [vmem:[#allocation2 + $0x5c4] ss:$48 sps:$4 sm:$0xff]  }
 0x1f9   : > { %5255 = vmatprep.subr.bf16.mxu0 %v16808_v11  ;;  %5594 = vmatprep.subr.bf16.mxu1 %v16811_v45 }
 0x1fa   : > { %v19419_v22 = vpop.f32.mrb[16].mxu0  ;;  %v19421_v56 = vpop.f32.mrb[16].mxu1  ;;  %4879 = vmatprep.mubr.bf16.mxu0 %v19249_v27  ;;  %5218 = vmatprep.mubr.bf16.mxu1 %v19249_v27  ;;  %23195 = vst [vmem:[#allocation48_spill] sm:$0xff] %v19430_v55  ;;  %v16823_v27 = vld [vmem:[#allocation2 + $0x5cc] ss:$48 sps:$4 sm:$0xff]  }
 0x1fb   : > { %23191 = vst [vmem:[#allocation44_spill] sm:$0xff] %v19419_v22  ;;  %23192 = vst [vmem:[#allocation45_spill] sm:$0xff] %v19421_v56  ;;  %v19425_v35 = vpop.f32.mrb[17].mxu0  ;;  %v19427_v2 = vpop.f32.mrb[17].mxu1 }
 0x1fc   : > { %23193 = vst [vmem:[#allocation46_spill] sm:$0xff] %v19425_v35  ;;  %23194 = vst [vmem:[#allocation47_spill] sm:$0xff] %v19427_v2  ;;  %v19432_v45 = vpop.f32.mrb[18].mxu0  ;;  %v19434_v11 = vpop.f32.mrb[18].mxu1  ;;  %5256 = vmatpush1.bf16.msra.mxu0 %v16806_v9  ;;  %5595 = vmatpush1.bf16.msra.mxu1 %v16809_v18  ;;  %v19440_v35 = vld [vmem:[#allocation4] sm:$0xff]  ;;  %v19443_v2 = vsub.s32 3, %v19417_v30 }
 0x1fd   : > { %23196 = vst [vmem:[#allocation49_spill] sm:$0xff] %v19432_v45  ;;  %23197 = vst [vmem:[#allocation50_spill] sm:$0xff] %v19434_v11  ;;  %v19436_v56 = vpop.f32.mrb[19].mxu0  ;;  %v19438_v22 = vpop.f32.mrb[19].mxu1  ;;  %5257 = vmatprep.subr.bf16.mxu0 %v16814_v38  ;;  %5596 = vmatprep.subr.bf16.mxu1 %v16817_v42  ;;  %v16818_v9 = vld [vmem:[#allocation2 + $0x5c0] ss:$48 sps:$4 sm:$0xff]  }
 0x1fe   : > { %23198 = vst [vmem:[#allocation51_spill] sm:$0xff] %v19436_v56  ;;  %23199 = vst [vmem:[#allocation52_spill] sm:$0xff] %v19438_v22  ;;  %v16821_v18 = vld [vmem:[#allocation2 + $0x5c8] ss:$48 sps:$4 sm:$0xff]   ;;  %v19449_v22 = vrot.slane %v19440_v35, %v19430_v55  ;;  %v16826_v38 = vld [vmem:[#allocation2 + $0x624] ss:$48 sps:$4 sm:$0xff]   ;;  %v19453_v11 = vrot.slane %v19440_v35, %v19443_v2 }
 0x1ff   : > { %23200 = vst [vmem:[#allocation53_spill] sm:$0xff] %v19443_v2  ;;  %4880 = vmatmul.mubr.bf16.gmra.mrb[60].mxu0 %v19257_v44  ;;  %5219 = vmatmul.mubr.bf16.gmra.mrb[60].mxu1 %v19257_v44  ;;  %v16829_v42 = vld [vmem:[#allocation2 + $0x62c] ss:$48 sps:$4 sm:$0xff]  }
 0x200   : > { %5258 = vmatpush1.bf16.msra.mxu0 %v16812_v57  ;;  %5597 = vmatpush1.bf16.msra.mxu1 %v16815_v7  ;;  %v16824_v7 = vld [vmem:[#allocation2 + $0x620] ss:$48 sps:$4 sm:$0xff]   ;;  %v16827_v57 = vld [vmem:[#allocation2 + $0x628] ss:$48 sps:$4 sm:$0xff]  }
 0x201   : > { %5259 = vmatprep.subr.bf16.mxu0 %v16820_v21  ;;  %5598 = vmatprep.subr.bf16.mxu1 %v16823_v27 }
 0x202   : > { %v19455_v56 = vpop.f32.mrb[20].mxu0  ;;  %v4522_v45 = vpop.f32.mrb[20].mxu1  ;;  %5261 = vmatprep.mubr.bf16.mxu0 %v18975_v51  ;;  %5600 = vmatprep.mubr.bf16.mxu1 %v18975_v51 }
 0x203   : > { %23201 = vst [vmem:[#allocation54_spill] sm:$0xff] %v19455_v56  ;;  %v19460_v55 = vadd.f32 %v4522_v45, %v19449_v22  ;;  %v19462_v21 = vpop.f32.mrb[21].mxu0  ;;  %v4524_v27 = vpop.f32.mrb[21].mxu1  ;;  %v16832_v45 = vld [vmem:[#allocation2 + $0x684] ss:$48 sps:$4 sm:$0xff]  }
 0x204   : > { %23203 = vst [vmem:[#allocation56_spill] sm:$0xff] %v19462_v21  ;;  %v19465_v44 = vadd.f32 %v4524_v27, %v19453_v11  ;;  %v19467_v2 = vpop.f32.mrb[22].mxu0  ;;  %v4526_v4 = vpop.f32.mrb[22].mxu1  ;;  %5260 = vmatpush1.bf16.msra.mxu0 %v16818_v9  ;;  %5599 = vmatpush1.bf16.msra.mxu1 %v16821_v18  ;;  %v16830_v9 = vld [vmem:[#allocation2 + $0x680] ss:$48 sps:$4 sm:$0xff]  }
 0x205   : > { %23202 = vst [vmem:[#allocation55_spill] sm:$0xff] %v19460_v55  ;;  %v19470_v56 = vadd.f32 %v4526_v4, %v19449_v22  ;;  %v19472_v51 = vpop.f32.mrb[23].mxu0  ;;  %v4528_v26 = vpop.f32.mrb[23].mxu1  ;;  %5342 = vmatprep.subr.bf16.mxu0 %v16826_v38  ;;  %5681 = vmatprep.subr.bf16.mxu1 %v16829_v42  ;;  %v16835_v55 = vld [vmem:[#allocation2 + $0x68c] ss:$48 sps:$4 sm:$0xff]  }
 0x206   : > { %23204 = vst [vmem:[#allocation57_spill] sm:$0xff] %v19465_v44  ;;  %23206 = vst [vmem:[#allocation59_spill] sm:$0xff] %v19472_v51  ;;  %v19475_v21 = vadd.f32 %v4528_v26, %v19453_v11  ;;  %v16833_v18 = vld [vmem:[#allocation2 + $0x688] ss:$48 sps:$4 sm:$0xff]   ;;  %v16838_v4 = vld [vmem:[#allocation2 + $0x6e4] ss:$48 sps:$4 sm:$0xff]  }
 0x207   : > { %23205 = vst [vmem:[#allocation58_spill] sm:$0xff] %v19470_v56  ;;  %5262 = vmatmul.mubr.bf16.vlgmr.msra.gmra.mrb[64].mxu0 %v18981_v8  ;;  %5601 = vmatmul.mubr.bf16.vlgmr.msra.gmra.mrb[64].mxu1 %v18981_v8  ;;  %v16841_v27 = vld [vmem:[#allocation2 + $0x6ec] ss:$48 sps:$4 sm:$0xff]   ;;  %v16836_v26 = vld [vmem:[#allocation2 + $0x6e0] ss:$48 sps:$4 sm:$0xff]   ;;  %v19502_v51 = vsub.s32 1, %v19417_v30 }
 0x208   : > { %23207 = vst [vmem:[#allocation60_spill] sm:$0xff] %v19475_v21  ;;  %5343 = vmatpush1.bf16.msra.mxu0 %v16824_v7  ;;  %5682 = vmatpush1.bf16.msra.mxu1 %v16827_v57  ;;  %v16839_v42 = vld [vmem:[#allocation2 + $0x6e8] ss:$48 sps:$4 sm:$0xff]   ;;  %v19489_v57 = vsub.s32 0, %v19417_v30 }
 0x209   : > { %5344 = vmatprep.subr.bf16.mxu0 %v16832_v45  ;;  %5683 = vmatprep.subr.bf16.mxu1 %v16835_v55  ;;  %23215 = vst [vmem:[#allocation68_spill] sm:$0xff] %v19502_v51 }
 0x20a   : > { %v19479_v56 = vpop.f32.mrb[24].mxu0  ;;  %v4532_v38 = vpop.f32.mrb[24].mxu1  ;;  %5271 = vmatprep.mubr.bf16.mxu0 %v18985_v15  ;;  %5610 = vmatprep.mubr.bf16.mxu1 %v18985_v15  ;;  %23211 = vst [vmem:[#allocation64_spill] sm:$0xff] %v19489_v57 }
 0x20b   : > { %23208 = vst [vmem:[#allocation61_spill] sm:$0xff] %v19479_v56  ;;  %v19484_v21 = vadd.f32 %v4532_v38, %v19449_v22  ;;  %v19486_v8 = vpop.f32.mrb[25].mxu0  ;;  %v4534_v7 = vpop.f32.mrb[25].mxu1 }
 0x20c   : > { %23210 = vst [vmem:[#allocation63_spill] sm:$0xff] %v19486_v8  ;;  %v19492_v55 = vadd.f32 %v4534_v7, %v19453_v11  ;;  %v19494_v45 = vpop.f32.mrb[26].mxu0  ;;  %v4536_v44 = vpop.f32.mrb[26].mxu1  ;;  %5345 = vmatpush1.bf16.msra.mxu0 %v16830_v9  ;;  %5684 = vmatpush1.bf16.msra.mxu1 %v16833_v18  ;;  %v16847_v8 = vld [vmem:[#allocation2 + $0x74c] ss:$48 sps:$4 sm:$0xff]   ;;  %v19511_v18 = vrot.slane %v19440_v35, %v19489_v57 }
 0x20d   : > { %23209 = vst [vmem:[#allocation62_spill] sm:$0xff] %v19484_v21  ;;  %v19497_v15 = vadd.f32 %v4536_v44, %v19449_v22  ;;  %v19499_v56 = vpop.f32.mrb[27].mxu0  ;;  %v4538_v38 = vpop.f32.mrb[27].mxu1  ;;  %5346 = vmatprep.subr.bf16.mxu0 %v16838_v4  ;;  %5685 = vmatprep.subr.bf16.mxu1 %v16841_v27  ;;  %v16844_v21 = vld [vmem:[#allocation2 + $0x744] ss:$48 sps:$4 sm:$0xff]  }
 0x20e   : > { %23212 = vst [vmem:[#allocation65_spill] sm:$0xff] %v19492_v55  ;;  %23214 = vst [vmem:[#allocation67_spill] sm:$0xff] %v19499_v56  ;;  %v19505_v7 = vadd.f32 %v4538_v38, %v19453_v11  ;;  %v16842_v44 = vld [vmem:[#allocation2 + $0x740] ss:$48 sps:$4 sm:$0xff]   ;;  %v16845_v9 = vld [vmem:[#allocation2 + $0x748] ss:$48 sps:$4 sm:$0xff]   ;;  %v19515_v38 = vrot.slane %v19440_v35, %v19502_v51 }
 0x20f   : > { %23213 = vst [vmem:[#allocation66_spill] sm:$0xff] %v19497_v15  ;;  %5272 = vmatmul.mubr.bf16.gmra.mrb[68].mxu0 %v18993_v23  ;;  %5611 = vmatmul.mubr.bf16.gmra.mrb[68].mxu1 %v18993_v23  ;;  %v16850_v4 = vld [vmem:[#allocation2 + $0x7a4] ss:$48 sps:$4 sm:$0xff]   ;;  %v16853_v27 = vld [vmem:[#allocation2 + $0x7ac] ss:$48 sps:$4 sm:$0xff]  }
 0x210   : > { %23216 = vst [vmem:[#allocation69_spill] sm:$0xff] %v19505_v7  ;;  %5347 = vmatpush1.bf16.msra.mxu0 %v16836_v26  ;;  %5686 = vmatpush1.bf16.msra.mxu1 %v16839_v42  ;;  %v16848_v23 = vld [vmem:[#allocation2 + $0x7a0] ss:$48 sps:$4 sm:$0xff]   ;;  %v16851_v26 = vld [vmem:[#allocation2 + $0x7a8] ss:$48 sps:$4 sm:$0xff]  }
 0x211   : > { %5348 = vmatprep.subr.bf16.mxu0 %v16844_v21  ;;  %5687 = vmatprep.subr.bf16.mxu1 %v16847_v8 }
 0x212   : > { %v4203_v7 = vpop.f32.mrb[28].mxu0  ;;  %v4542_v15 = vpop.f32.mrb[28].mxu1  ;;  %5281 = vmatprep.mubr.bf16.mxu0 %v18997_v28  ;;  %5620 = vmatprep.mubr.bf16.mxu1 %v18997_v28 }
 0x213   : > { %v19520_v42 = vadd.f32 %v4203_v7, %v19511_v18  ;;  %v19523_v21 = vadd.f32 %v4542_v15, %v19449_v22  ;;  %v4205_v8 = vpop.f32.mrb[29].mxu0  ;;  %v4544_v55 = vpop.f32.mrb[29].mxu1 }
 0x214   : > { %v19526_v57 = vadd.f32 %v4205_v8, %v19515_v38  ;;  %v19529_v35 = vadd.f32 %v4544_v55, %v19453_v11  ;;  %v4207_v51 = vpop.f32.mrb[30].mxu0  ;;  %v4546_v56 = vpop.f32.mrb[30].mxu1  ;;  %5349 = vmatpush1.bf16.msra.mxu0 %v16842_v44  ;;  %5688 = vmatpush1.bf16.msra.mxu1 %v16845_v9  ;;  %v16859_v8 = vld [vmem:[#allocation2 + $0x80c] ss:$48 sps:$4 sm:$0xff]   ;;  %v16854_v44 = vld [vmem:[#allocation2 + $0x800] ss:$48 sps:$4 sm:$0xff]  }
 0x215   : > { %23217 = vst [vmem:[#allocation70_spill] sm:$0xff] %v19520_v42  ;;  %23218 = vst [vmem:[#allocation71_spill] sm:$0xff] %v19523_v21  ;;  %v19532_v28 = vadd.f32 %v4207_v51, %v19511_v18  ;;  %v19535_v7 = vadd.f32 %v4546_v56, %v19449_v22  ;;  %v4209_v15 = vpop.f32.mrb[31].mxu0  ;;  %v4548_v21 = vpop.f32.mrb[31].mxu1  ;;  %5350 = vmatprep.subr.bf16.mxu0 %v16850_v4  ;;  %5689 = vmatprep.subr.bf16.mxu1 %v16853_v27  ;;  %v16856_v42 = vld [vmem:[#allocation2 + $0x804] ss:$48 sps:$4 sm:$0xff]  }
 0x216   : > { %23219 = vst [vmem:[#allocation72_spill] sm:$0xff] %v19526_v57  ;;  %23220 = vst [vmem:[#allocation73_spill] sm:$0xff] %v19529_v35  ;;  %v19538_v57 = vadd.f32 %v4209_v15, %v19515_v38  ;;  %v19541_v55 = vadd.f32 %v4548_v21, %v19453_v11  ;;  %v16857_v51 = vld [vmem:[#allocation2 + $0x808] ss:$48 sps:$4 sm:$0xff]   ;;  %v16862_v56 = vld [vmem:[#allocation2 + $0x864] ss:$48 sps:$4 sm:$0xff]  }
 0x217   : > { %23221 = vst [vmem:[#allocation74_spill] sm:$0xff] %v19535_v7  ;;  %5282 = vmatmul.mubr.bf16.gmra.mrb[72].mxu0 %v19005_v37  ;;  %5621 = vmatmul.mubr.bf16.gmra.mrb[72].mxu1 %v19005_v37  ;;  %v16865_v9 = vld [vmem:[#allocation2 + $0x86c] ss:$48 sps:$4 sm:$0xff]   ;;  %v16860_v4 = vld [vmem:[#allocation2 + $0x860] ss:$48 sps:$4 sm:$0xff]  }
 0x218   : > { %23222 = vst [vmem:[#allocation75_spill] sm:$0xff] %v19541_v55  ;;  %5351 = vmatpush1.bf16.msra.mxu0 %v16848_v23  ;;  %5690 = vmatpush1.bf16.msra.mxu1 %v16851_v26  ;;  %v16863_v27 = vld [vmem:[#allocation2 + $0x868] ss:$48 sps:$4 sm:$0xff]   ;;  %v16868_v21 = vld [vmem:[#allocation2 + $0x8c4] ss:$48 sps:$4 sm:$0xff]  }
 0x219   : > { %5352 = vmatprep.subr.bf16.mxu0 %v16856_v42  ;;  %5691 = vmatprep.subr.bf16.mxu1 %v16859_v8  ;;  %v16871_v15 = vld [vmem:[#allocation2 + $0x8cc] ss:$48 sps:$4 sm:$0xff]   ;;  %v16866_v37 = vld [vmem:[#allocation2 + $0x8c0] ss:$48 sps:$4 sm:$0xff]   ;;  %v16869_v55 = vld [vmem:[#allocation2 + $0x8c8] ss:$48 sps:$4 sm:$0xff]  }
 0x21a   : > { %5291 = vmatprep.mubr.bf16.mxu0 %v19009_v43  ;;  %5630 = vmatprep.mubr.bf16.mxu1 %v19009_v43  ;;  %v16874_v23 = vld [vmem:[#allocation2 + $0x924] ss:$48 sps:$4 sm:$0xff]   ;;  %v16877_v43 = vld [vmem:[#allocation2 + $0x92c] ss:$48 sps:$4 sm:$0xff]   ;;  %v16872_v26 = vld [vmem:[#allocation2 + $0x920] ss:$48 sps:$4 sm:$0xff]  }
 0x21b   : > { %v16875_v42 = vld [vmem:[#allocation2 + $0x928] ss:$48 sps:$4 sm:$0xff]   ;;  %v16880_v8 = vld [vmem:[#allocation2 + $0x984] ss:$48 sps:$4 sm:$0xff]  }
 0x21c   : > { %5353 = vmatpush1.bf16.msra.mxu0 %v16854_v44  ;;  %5692 = vmatpush1.bf16.msra.mxu1 %v16857_v51  ;;  %v16883_v44 = vld [vmem:[#allocation2 + $0x98c] ss:$48 sps:$4 sm:$0xff]   ;;  %v16878_v51 = vld [vmem:[#allocation2 + $0x980] ss:$48 sps:$4 sm:$0xff]  }
 0x21d   : > { %5354 = vmatprep.subr.bf16.mxu0 %v16862_v56  ;;  %5693 = vmatprep.subr.bf16.mxu1 %v16865_v9  ;;  %v16886_v56 = vld [vmem:[#allocation2 + $0x9e4] ss:$48 sps:$4 sm:$0xff]   ;;  %v16889_v9 = vld [vmem:[#allocation2 + $0x9ec] ss:$48 sps:$4 sm:$0xff]  }
 0x21f   : > { %5292 = vmatmul.mubr.bf16.gmra.mrb[76].mxu0 %v19017_v50  ;;  %5631 = vmatmul.mubr.bf16.gmra.mrb[76].mxu1 %v19017_v50  ;;  %v16881_v50 = vld [vmem:[#allocation2 + $0x988] ss:$48 sps:$4 sm:$0xff]  }
 0x220   : > { %5355 = vmatpush1.bf16.msra.mxu0 %v16860_v4  ;;  %5694 = vmatpush1.bf16.msra.mxu1 %v16863_v27  ;;  %v16892_v4 = vld [vmem:[#allocation2 + $0xa44] ss:$48 sps:$4 sm:$0xff]   ;;  %v16895_v27 = vld [vmem:[#allocation2 + $0xa4c] ss:$48 sps:$4 sm:$0xff]  }
 0x221   : > { %5356 = vmatprep.subr.bf16.mxu0 %v16868_v21  ;;  %5695 = vmatprep.subr.bf16.mxu1 %v16871_v15  ;;  %v16890_v21 = vld [vmem:[#allocation2 + $0xa40] ss:$48 sps:$4 sm:$0xff]   ;;  %v16898_v15 = vld [vmem:[#allocation2 + $0xaa4] ss:$48 sps:$4 sm:$0xff]  }
 0x222   : > { %5301 = vmatprep.mubr.bf16.mxu0 %v19021_v59  ;;  %5640 = vmatprep.mubr.bf16.mxu1 %v19021_v59  ;;  %v16884_v59 = vld [vmem:[#allocation2 + $0x9e0] ss:$48 sps:$4 sm:$0xff]  }
 0x224   : > { %5357 = vmatpush1.bf16.msra.mxu0 %v16866_v37  ;;  %5696 = vmatpush1.bf16.msra.mxu1 %v16869_v55  ;;  %v16887_v55 = vld [vmem:[#allocation2 + $0x9e8] ss:$48 sps:$4 sm:$0xff]   ;;  %v16901_v37 = vld [vmem:[#allocation2 + $0xaac] ss:$48 sps:$4 sm:$0xff]  }
 0x225   : > { %5358 = vmatprep.subr.bf16.mxu0 %v16874_v23  ;;  %5697 = vmatprep.subr.bf16.mxu1 %v16877_v43  ;;  %v16899_v23 = vld [vmem:[#allocation2 + $0xaa8] ss:$48 sps:$4 sm:$0xff]   ;;  %v16904_v43 = vld [vmem:[#allocation2 + $0xb04] ss:$48 sps:$4 sm:$0xff]  }
 0x227   : > { %5302 = vmatmul.mubr.bf16.gmra.mrb[80].mxu0 %v19029_v0  ;;  %5641 = vmatmul.mubr.bf16.gmra.mrb[80].mxu1 %v19029_v0  ;;  %v16893_v0 = vld [vmem:[#allocation2 + $0xa48] ss:$48 sps:$4 sm:$0xff]  }
 0x228   : > { %5359 = vmatpush1.bf16.msra.mxu0 %v16872_v26  ;;  %5698 = vmatpush1.bf16.msra.mxu1 %v16875_v42  ;;  %v16907_v26 = vld [vmem:[#allocation2 + $0xb0c] ss:$48 sps:$4 sm:$0xff]   ;;  %v16905_v42 = vld [vmem:[#allocation2 + $0xb08] ss:$48 sps:$4 sm:$0xff]  }
 0x229   : > { %5360 = vmatprep.subr.bf16.mxu0 %v16880_v8  ;;  %5699 = vmatprep.subr.bf16.mxu1 %v16883_v44  ;;  %v16910_v8 = vld [vmem:[#allocation2 + $0xb64] ss:$48 sps:$4 sm:$0xff]   ;;  %v16913_v44 = vld [vmem:[#allocation2 + $0xb6c] ss:$48 sps:$4 sm:$0xff]  }
 0x22a   : > { %5311 = vmatprep.mubr.bf16.mxu0 %v19033_v10  ;;  %5650 = vmatprep.mubr.bf16.mxu1 %v19033_v10  ;;  %v16896_v10 = vld [vmem:[#allocation2 + $0xaa0] ss:$48 sps:$4 sm:$0xff]  }
 0x22c   : > { %5361 = vmatpush1.bf16.msra.mxu0 %v16878_v51  ;;  %5700 = vmatpush1.bf16.msra.mxu1 %v16881_v50  ;;  %v16911_v51 = vld [vmem:[#allocation2 + $0xb68] ss:$48 sps:$4 sm:$0xff]   ;;  %v16916_v50 = vld [vmem:[#allocation2 + $0xbc4] ss:$48 sps:$4 sm:$0xff]  }
 0x22d   : > { %5362 = vmatprep.subr.bf16.mxu0 %v16886_v56  ;;  %5701 = vmatprep.subr.bf16.mxu1 %v16889_v9  ;;  %v16914_v56 = vld [vmem:[#allocation2 + $0xbc0] ss:$48 sps:$4 sm:$0xff]   ;;  %v16917_v9 = vld [vmem:[#allocation2 + $0xbc8] ss:$48 sps:$4 sm:$0xff]  }
 0x22f   : > { %5312 = vmatmul.mubr.bf16.gmra.mrb[84].mxu0 %v19041_v17  ;;  %5651 = vmatmul.mubr.bf16.gmra.mrb[84].mxu1 %v19041_v17  ;;  %v16902_v17 = vld [vmem:[#allocation2 + $0xb00] ss:$48 sps:$4 sm:$0xff]  }
 0x230   : > { %5363 = vmatpush1.bf16.msra.mxu0 %v16884_v59  ;;  %5702 = vmatpush1.bf16.msra.mxu1 %v16887_v55  ;;  %v16922_v59 = vld [vmem:[#allocation2 + $0xc24] ss:$48 sps:$4 sm:$0xff]   ;;  %v16920_v55 = vld [vmem:[#allocation2 + $0xc20] ss:$48 sps:$4 sm:$0xff]  }
 0x231   : > { %5364 = vmatprep.subr.bf16.mxu0 %v16892_v4  ;;  %5703 = vmatprep.subr.bf16.mxu1 %v16895_v27  ;;  %v16923_v4 = vld [vmem:[#allocation2 + $0xc28] ss:$48 sps:$4 sm:$0xff]   ;;  %v16928_v27 = vld [vmem:[#allocation2 + $0xc84] ss:$48 sps:$4 sm:$0xff]  }
 0x232   : > { %5321 = vmatprep.mubr.bf16.mxu0 %v19045_v25  ;;  %5660 = vmatprep.mubr.bf16.mxu1 %v19045_v25  ;;  %v16908_v25 = vld [vmem:[#allocation2 + $0xb60] ss:$48 sps:$4 sm:$0xff]  }
 0x234   : > { %5365 = vmatpush1.bf16.msra.mxu0 %v16890_v21  ;;  %5704 = vmatpush1.bf16.msra.mxu1 %v16893_v0  ;;  %v16931_v21 = vld [vmem:[#allocation2 + $0xc8c] ss:$48 sps:$4 sm:$0xff]   ;;  %v16926_v0 = vld [vmem:[#allocation2 + $0xc80] ss:$48 sps:$4 sm:$0xff]  }
 0x235   : > { %5366 = vmatprep.subr.bf16.mxu0 %v16898_v15  ;;  %5705 = vmatprep.subr.bf16.mxu1 %v16901_v37  ;;  %v16934_v15 = vld [vmem:[#allocation2 + $0xce4] ss:$48 sps:$4 sm:$0xff]   ;;  %v16932_v37 = vld [vmem:[#allocation2 + $0xce0] ss:$48 sps:$4 sm:$0xff]  }
 0x237   : > { %5322 = vmatmul.mubr.bf16.gmra.mrb[88].mxu0 %v19053_v34  ;;  %5661 = vmatmul.mubr.bf16.gmra.mrb[88].mxu1 %v19053_v34  ;;  %v16919_v34 = vld [vmem:[#allocation2 + $0xbcc] ss:$48 sps:$4 sm:$0xff]  }
 0x238   : > { %5367 = vmatpush1.bf16.msra.mxu0 %v16896_v10  ;;  %5706 = vmatpush1.bf16.msra.mxu1 %v16899_v23  ;;  %v16935_v10 = vld [vmem:[#allocation2 + $0xce8] ss:$48 sps:$4 sm:$0xff]   ;;  %v16940_v23 = vld [vmem:[#allocation2 + $0xd44] ss:$48 sps:$4 sm:$0xff]  }
 0x239   : > { %5368 = vmatprep.subr.bf16.mxu0 %v16904_v43  ;;  %5707 = vmatprep.subr.bf16.mxu1 %v16907_v26  ;;  %v16943_v43 = vld [vmem:[#allocation2 + $0xd4c] ss:$48 sps:$4 sm:$0xff]   ;;  %v16938_v26 = vld [vmem:[#allocation2 + $0xd40] ss:$48 sps:$4 sm:$0xff]  }
 0x23a   : > { %5331 = vmatprep.mubr.bf16.mxu0 %v19057_v40  ;;  %5670 = vmatprep.mubr.bf16.mxu1 %v19057_v40  ;;  %v16925_v40 = vld [vmem:[#allocation2 + $0xc2c] ss:$48 sps:$4 sm:$0xff]  }
 0x23c   : > { %5369 = vmatpush1.bf16.msra.mxu0 %v16902_v17  ;;  %5708 = vmatpush1.bf16.msra.mxu1 %v16905_v42  ;;  %v16946_v17 = vld [vmem:[#allocation2 + $0xda4] ss:$48 sps:$4 sm:$0xff]   ;;  %v16949_v42 = vld [vmem:[#allocation2 + $0xdac] ss:$48 sps:$4 sm:$0xff]  }
 0x23d   : > { %5370 = vmatprep.subr.bf16.mxu0 %v16910_v8  ;;  %5709 = vmatprep.subr.bf16.mxu1 %v16913_v44  ;;  %v16947_v8 = vld [vmem:[#allocation2 + $0xda8] ss:$48 sps:$4 sm:$0xff]   ;;  %v16952_v44 = vld [vmem:[#allocation2 + $0xe04] ss:$48 sps:$4 sm:$0xff]  }
 0x23f   : > { %5332 = vmatmul.mubr.bf16.gmra.mrb[92].mxu0 %v19065_v52  ;;  %5671 = vmatmul.mubr.bf16.gmra.mrb[92].mxu1 %v19065_v52  ;;  %v16929_v52 = vld [vmem:[#allocation2 + $0xc88] ss:$48 sps:$4 sm:$0xff]  }
 0x240   : > { %5371 = vmatpush1.bf16.msra.mxu0 %v16908_v25  ;;  %5710 = vmatpush1.bf16.msra.mxu1 %v16911_v51  ;;  %v16955_v25 = vld [vmem:[#allocation2 + $0xe0c] ss:$48 sps:$4 sm:$0xff]   ;;  %v16950_v51 = vld [vmem:[#allocation2 + $0xe00] ss:$48 sps:$4 sm:$0xff]  }
 0x241   : > { %5372 = vmatprep.subr.bf16.mxu0 %v16916_v50  ;;  %5711 = vmatprep.subr.bf16.mxu1 %v16919_v34  ;;  %v16958_v50 = vld [vmem:[#allocation2 + $0xe64] ss:$48 sps:$4 sm:$0xff]   ;;  %v16961_v34 = vld [vmem:[#allocation2 + $0xe6c] ss:$48 sps:$4 sm:$0xff]  }
 0x242   : > { %5374 = vmatprep.mubr.bf16.mxu0 %v19069_v58  ;;  %5713 = vmatprep.mubr.bf16.mxu1 %v19069_v58  ;;  %v16937_v58 = vld [vmem:[#allocation2 + $0xcec] ss:$48 sps:$4 sm:$0xff]  }
 0x244   : > { %5373 = vmatpush1.bf16.msra.mxu0 %v16914_v56  ;;  %5712 = vmatpush1.bf16.msra.mxu1 %v16917_v9  ;;  %v16959_v56 = vld [vmem:[#allocation2 + $0xe68] ss:$48 sps:$4 sm:$0xff]   ;;  %v16964_v9 = vld [vmem:[#allocation2 + $0xec4] ss:$48 sps:$4 sm:$0xff]  }
 0x245   : > { %5455 = vmatprep.subr.bf16.mxu0 %v16922_v59  ;;  %5794 = vmatprep.subr.bf16.mxu1 %v16925_v40  ;;  %v16967_v59 = vld [vmem:[#allocation2 + $0xecc] ss:$48 sps:$4 sm:$0xff]   ;;  %v16962_v40 = vld [vmem:[#allocation2 + $0xec0] ss:$48 sps:$4 sm:$0xff]  }
 0x247   : > { %5375 = vmatmul.mubr.bf16.vlgmr.msra.gmra.mrb[64].mxu0 %v19077_v3  ;;  %5714 = vmatmul.mubr.bf16.vlgmr.msra.gmra.mrb[64].mxu1 %v19077_v3  ;;  %v16941_v3 = vld [vmem:[#allocation2 + $0xd48] ss:$48 sps:$4 sm:$0xff]  }
 0x248   : > { %5456 = vmatpush1.bf16.msra.mxu0 %v16920_v55  ;;  %5795 = vmatpush1.bf16.msra.mxu1 %v16923_v4  ;;  %v16970_v55 = vld [vmem:[#allocation2 + $0xf24] ss:$48 sps:$4 sm:$0xff]   ;;  %v16973_v4 = vld [vmem:[#allocation2 + $0xf2c] ss:$48 sps:$4 sm:$0xff]  }
 0x249   : > { %5457 = vmatprep.subr.bf16.mxu0 %v16928_v27  ;;  %5796 = vmatprep.subr.bf16.mxu1 %v16931_v21  ;;  %v16971_v27 = vld [vmem:[#allocation2 + $0xf28] ss:$48 sps:$4 sm:$0xff]   ;;  %v16976_v21 = vld [vmem:[#allocation2 + $0xf84] ss:$48 sps:$4 sm:$0xff]  }
 0x24a   : > { %5384 = vmatprep.mubr.bf16.mxu0 %v19081_v13  ;;  %5723 = vmatprep.mubr.bf16.mxu1 %v19081_v13  ;;  %v16944_v13 = vld [vmem:[#allocation2 + $0xda0] ss:$48 sps:$4 sm:$0xff]  }
 0x24c   : > { %5458 = vmatpush1.bf16.msra.mxu0 %v16926_v0  ;;  %5797 = vmatpush1.bf16.msra.mxu1 %v16929_v52  ;;  %v16979_v0 = vld [vmem:[#allocation2 + $0xf8c] ss:$48 sps:$4 sm:$0xff]   ;;  %v16974_v52 = vld [vmem:[#allocation2 + $0xf80] ss:$48 sps:$4 sm:$0xff]  }
 0x24d   : > { %5459 = vmatprep.subr.bf16.mxu0 %v16934_v15  ;;  %5798 = vmatprep.subr.bf16.mxu1 %v16937_v58  ;;  %v16982_v15 = vld [vmem:[#allocation2 + $0xfe4] ss:$48 sps:$4 sm:$0xff]   ;;  %v16985_v58 = vld [vmem:[#allocation2 + $0xfec] ss:$48 sps:$4 sm:$0xff]  }
 0x24f   : > { %5385 = vmatmul.mubr.bf16.gmra.mrb[68].mxu0 %v19089_v20  ;;  %5724 = vmatmul.mubr.bf16.gmra.mrb[68].mxu1 %v19089_v20  ;;  %v16953_v20 = vld [vmem:[#allocation2 + $0xe08] ss:$48 sps:$4 sm:$0xff]  }
 0x250   : > { %5460 = vmatpush1.bf16.msra.mxu0 %v16932_v37  ;;  %5799 = vmatpush1.bf16.msra.mxu1 %v16935_v10  ;;  %v16983_v37 = vld [vmem:[#allocation2 + $0xfe8] ss:$48 sps:$4 sm:$0xff]   ;;  %v16988_v10 = vld [vmem:[#allocation2 + $0x1044] ss:$48 sps:$4 sm:$0xff]  }
 0x251   : > { %5461 = vmatprep.subr.bf16.mxu0 %v16940_v23  ;;  %5800 = vmatprep.subr.bf16.mxu1 %v16943_v43  ;;  %v16991_v23 = vld [vmem:[#allocation2 + $0x104c] ss:$48 sps:$4 sm:$0xff]   ;;  %v16986_v43 = vld [vmem:[#allocation2 + $0x1040] ss:$48 sps:$4 sm:$0xff]  }
 0x252   : > { %5394 = vmatprep.mubr.bf16.mxu0 %v19093_v32  ;;  %5733 = vmatprep.mubr.bf16.mxu1 %v19093_v32  ;;  %v16956_v32 = vld [vmem:[#allocation2 + $0xe60] ss:$48 sps:$4 sm:$0xff]  }
 0x254   : > { %5462 = vmatpush1.bf16.msra.mxu0 %v16938_v26  ;;  %5801 = vmatpush1.bf16.msra.mxu1 %v16941_v3  ;;  %v16994_v26 = vld [vmem:[#allocation2 + $0x10a4] ss:$48 sps:$4 sm:$0xff]   ;;  %v16997_v3 = vld [vmem:[#allocation2 + $0x10ac] ss:$48 sps:$4 sm:$0xff]  }
 0x255   : > { %5463 = vmatprep.subr.bf16.mxu0 %v16946_v17  ;;  %5802 = vmatprep.subr.bf16.mxu1 %v16949_v42  ;;  %v16995_v17 = vld [vmem:[#allocation2 + $0x10a8] ss:$48 sps:$4 sm:$0xff]   ;;  %v17000_v42 = vld [vmem:[#allocation2 + $0x1104] ss:$48 sps:$4 sm:$0xff]  }
 0x257   : > { %5395 = vmatmul.mubr.bf16.gmra.mrb[72].mxu0 %v19101_v41  ;;  %5734 = vmatmul.mubr.bf16.gmra.mrb[72].mxu1 %v19101_v41  ;;  %v16965_v41 = vld [vmem:[#allocation2 + $0xec8] ss:$48 sps:$4 sm:$0xff]  }
 0x258   : > { %5464 = vmatpush1.bf16.msra.mxu0 %v16944_v13  ;;  %5803 = vmatpush1.bf16.msra.mxu1 %v16947_v8  ;;  %v17003_v13 = vld [vmem:[#allocation2 + $0x110c] ss:$48 sps:$4 sm:$0xff]   ;;  %v16998_v8 = vld [vmem:[#allocation2 + $0x1100] ss:$48 sps:$4 sm:$0xff]  }
 0x259   : > { %5465 = vmatprep.subr.bf16.mxu0 %v16952_v44  ;;  %5804 = vmatprep.subr.bf16.mxu1 %v16955_v25  ;;  %v17006_v44 = vld [vmem:[#allocation2 + $0x1164] ss:$48 sps:$4 sm:$0xff]   ;;  %v17009_v25 = vld [vmem:[#allocation2 + $0x116c] ss:$48 sps:$4 sm:$0xff]  }
 0x25a   : > { %5404 = vmatprep.mubr.bf16.mxu0 %v19105_v49  ;;  %5743 = vmatprep.mubr.bf16.mxu1 %v19105_v49  ;;  %v16968_v49 = vld [vmem:[#allocation2 + $0xf20] ss:$48 sps:$4 sm:$0xff]  }
 0x25c   : > { %5466 = vmatpush1.bf16.msra.mxu0 %v16950_v51  ;;  %5805 = vmatpush1.bf16.msra.mxu1 %v16953_v20  ;;  %v17007_v51 = vld [vmem:[#allocation2 + $0x1168] ss:$48 sps:$4 sm:$0xff]   ;;  %v17012_v20 = vld [vmem:[#allocation2 + $0x11c4] ss:$48 sps:$4 sm:$0xff]  }
 0x25d   : > { %5467 = vmatprep.subr.bf16.mxu0 %v16958_v50  ;;  %5806 = vmatprep.subr.bf16.mxu1 %v16961_v34  ;;  %v17015_v50 = vld [vmem:[#allocation2 + $0x11cc] ss:$48 sps:$4 sm:$0xff]   ;;  %v17010_v34 = vld [vmem:[#allocation2 + $0x11c0] ss:$48 sps:$4 sm:$0xff]  }
 0x25f   : > { %5405 = vmatmul.mubr.bf16.gmra.mrb[76].mxu0 %v19113_v62  ;;  %5744 = vmatmul.mubr.bf16.gmra.mrb[76].mxu1 %v19113_v62  ;;  %v16977_v62 = vld [vmem:[#allocation2 + $0xf88] ss:$48 sps:$4 sm:$0xff]  }
 0x260   : > { %5468 = vmatpush1.bf16.msra.mxu0 %v16956_v32  ;;  %5807 = vmatpush1.bf16.msra.mxu1 %v16959_v56  ;;  %v17018_v32 = vld [vmem:[#allocation2 + $0x1204] ss:$48 sps:$4 sm:$0xff]   ;;  %v17021_v56 = vld [vmem:[#allocation2 + $0x120c] ss:$48 sps:$4 sm:$0xff]  }
 0x261   : > { %5469 = vmatprep.subr.bf16.mxu0 %v16964_v9  ;;  %5808 = vmatprep.subr.bf16.mxu1 %v16967_v59  ;;  %v17019_v9 = vld [vmem:[#allocation2 + $0x1208] ss:$48 sps:$4 sm:$0xff]   ;;  %v17024_v59 = vld [vmem:[#allocation2 + $0x1264] ss:$48 sps:$4 sm:$0xff]  }
 0x262   : > { %5414 = vmatprep.mubr.bf16.mxu0 %v19117_v5  ;;  %5753 = vmatprep.mubr.bf16.mxu1 %v19117_v5  ;;  %v16980_v5 = vld [vmem:[#allocation2 + $0xfe0] ss:$48 sps:$4 sm:$0xff]  }
 0x264   : > { %5470 = vmatpush1.bf16.msra.mxu0 %v16962_v40  ;;  %5809 = vmatpush1.bf16.msra.mxu1 %v16965_v41  ;;  %v17027_v40 = vld [vmem:[#allocation2 + $0x126c] ss:$48 sps:$4 sm:$0xff]   ;;  %v17022_v41 = vld [vmem:[#allocation2 + $0x1260] ss:$48 sps:$4 sm:$0xff]  }
 0x265   : > { %5471 = vmatprep.subr.bf16.mxu0 %v16970_v55  ;;  %5810 = vmatprep.subr.bf16.mxu1 %v16973_v4  ;;  %v17030_v55 = vld [vmem:[#allocation2 + $0x12c4] ss:$48 sps:$4 sm:$0xff]   ;;  %v17033_v4 = vld [vmem:[#allocation2 + $0x12cc] ss:$48 sps:$4 sm:$0xff]  }
 0x267   : > { %5415 = vmatmul.mubr.bf16.gmra.mrb[80].mxu0 %v19125_v19  ;;  %5754 = vmatmul.mubr.bf16.gmra.mrb[80].mxu1 %v19125_v19  ;;  %v16989_v19 = vld [vmem:[#allocation2 + $0x1048] ss:$48 sps:$4 sm:$0xff]  }
 0x268   : > { %5472 = vmatpush1.bf16.msra.mxu0 %v16968_v49  ;;  %5811 = vmatpush1.bf16.msra.mxu1 %v16971_v27  ;;  %v17031_v49 = vld [vmem:[#allocation2 + $0x12c8] ss:$48 sps:$4 sm:$0xff]   ;;  %v17036_v27 = vld [vmem:[#allocation2 + $0x1324] ss:$48 sps:$4 sm:$0xff]  }
 0x269   : > { %5473 = vmatprep.subr.bf16.mxu0 %v16976_v21  ;;  %5812 = vmatprep.subr.bf16.mxu1 %v16979_v0  ;;  %v17039_v21 = vld [vmem:[#allocation2 + $0x132c] ss:$48 sps:$4 sm:$0xff]   ;;  %v17037_v0 = vld [vmem:[#allocation2 + $0x1328] ss:$48 sps:$4 sm:$0xff]  }
 0x26a   : > { %5424 = vmatprep.mubr.bf16.mxu0 %v19129_v29  ;;  %5763 = vmatprep.mubr.bf16.mxu1 %v19129_v29  ;;  %v16992_v29 = vld [vmem:[#allocation2 + $0x10a0] ss:$48 sps:$4 sm:$0xff]  }
 0x26c   : > { %5474 = vmatpush1.bf16.msra.mxu0 %v16974_v52  ;;  %5813 = vmatpush1.bf16.msra.mxu1 %v16977_v62  ;;  %v17042_v52 = vld [vmem:[#allocation2 + $0x1384] ss:$48 sps:$4 sm:$0xff]   ;;  %v22888_v62 = vsub.s32 6, %v19417_v30 }
 0x26d   : > { %5475 = vmatprep.subr.bf16.mxu0 %v16982_v15  ;;  %5814 = vmatprep.subr.bf16.mxu1 %v16985_v58  ;;  %v17040_v15 = vld [vmem:[#allocation2 + $0x1380] ss:$48 sps:$4 sm:$0xff]   ;;  %v17043_v58 = vld [vmem:[#allocation2 + $0x1388] ss:$48 sps:$4 sm:$0xff]  }
 0x26f   : > { %5425 = vmatmul.mubr.bf16.gmra.mrb[84].mxu0 %v19137_v39  ;;  %5764 = vmatmul.mubr.bf16.gmra.mrb[84].mxu1 %v19137_v39  ;;  %v17001_v39 = vld [vmem:[#allocation2 + $0x1108] ss:$48 sps:$4 sm:$0xff]  }
 0x270   : > { %5476 = vmatpush1.bf16.msra.mxu0 %v16980_v5  ;;  %5815 = vmatpush1.bf16.msra.mxu1 %v16983_v37  ;;  %v17048_v5 = vld [vmem:[#allocation2 + $0x13e4] ss:$48 sps:$4 sm:$0xff]   ;;  %v17051_v37 = vld [vmem:[#allocation2 + $0x13ec] ss:$48 sps:$4 sm:$0xff]  }
 0x271   : > { %5477 = vmatprep.subr.bf16.mxu0 %v16988_v10  ;;  %5816 = vmatprep.subr.bf16.mxu1 %v16991_v23  ;;  %v18648_v10 = vld [vmem:[#allocation4] sm:$0xff] }
 0x272   : > { %5434 = vmatprep.mubr.bf16.mxu0 %v19141_v54  ;;  %5773 = vmatprep.mubr.bf16.mxu1 %v19141_v54  ;;  %v17004_v54 = vld [vmem:[#allocation2 + $0x1160] ss:$48 sps:$4 sm:$0xff]  }
 0x274   : > { %5478 = vmatpush1.bf16.msra.mxu0 %v16986_v43  ;;  %5817 = vmatpush1.bf16.msra.mxu1 %v16989_v19  ;;  %v17046_v43 = vld [vmem:[#allocation2 + $0x13e0] ss:$48 sps:$4 sm:$0xff]   ;;  %v17049_v19 = vld [vmem:[#allocation2 + $0x13e8] ss:$48 sps:$4 sm:$0xff]  }
 0x275   : > { %5479 = vmatprep.subr.bf16.mxu0 %v16994_v26  ;;  %5818 = vmatprep.subr.bf16.mxu1 %v16997_v3  ;;  %v17054_v26 = vld [vmem:[#allocation2 + $0x1444] ss:$48 sps:$4 sm:$0xff]   ;;  %v17057_v3 = vld [vmem:[#allocation2 + $0x144c] ss:$48 sps:$4 sm:$0xff]  }
 0x277   : > { %5435 = vmatmul.mubr.bf16.gmra.mrb[88].mxu0 %v19149_v61  ;;  %5774 = vmatmul.mubr.bf16.gmra.mrb[88].mxu1 %v19149_v61  ;;  %v17013_v61 = vld [vmem:[#allocation2 + $0x11c8] ss:$48 sps:$4 sm:$0xff]  }
 0x278   : > { %5480 = vmatpush1.bf16.msra.mxu0 %v16992_v29  ;;  %5819 = vmatpush1.bf16.msra.mxu1 %v16995_v17  ;;  %v17052_v17 = vld [vmem:[#allocation2 + $0x1440] ss:$48 sps:$4 sm:$0xff]  }
 0x279   : > { %5481 = vmatprep.subr.bf16.mxu0 %v17000_v42  ;;  %5820 = vmatprep.subr.bf16.mxu1 %v17003_v13  ;;  %v17055_v42 = vld [vmem:[#allocation2 + $0x1448] ss:$48 sps:$4 sm:$0xff]  }
 0x27a   : > { %5444 = vmatprep.mubr.bf16.mxu0 %v19153_v12  ;;  %5783 = vmatprep.mubr.bf16.mxu1 %v19153_v12  ;;  %v17016_v12 = vld [vmem:[#allocation2 + $0x1200] ss:$48 sps:$4 sm:$0xff]  }
 0x27c   : > { %5482 = vmatpush1.bf16.msra.mxu0 %v16998_v8  ;;  %5821 = vmatpush1.bf16.msra.mxu1 %v17001_v39 }
 0x27d   : > { %5483 = vmatprep.subr.bf16.mxu0 %v17006_v44  ;;  %5822 = vmatprep.subr.bf16.mxu1 %v17009_v25  ;;  %v17060_v44 = vld [vmem:[#allocation2 + $0x14a4] ss:$48 sps:$4 sm:$0xff]   ;;  %v17063_v25 = vld [vmem:[#allocation2 + $0x14ac] ss:$48 sps:$4 sm:$0xff]  }
 0x27f   : > { %5445 = vmatmul.mubr.bf16.gmra.mrb[92].mxu0 %v19161_v24  ;;  %5784 = vmatmul.mubr.bf16.gmra.mrb[92].mxu1 %v19161_v24  ;;  %v17025_v24 = vld [vmem:[#allocation2 + $0x1268] ss:$48 sps:$4 sm:$0xff]  }
 0x280   : > { %5484 = vmatpush1.bf16.msra.mxu0 %v17004_v54  ;;  %5823 = vmatpush1.bf16.msra.mxu1 %v17007_v51 }
 0x281   : > { %5485 = vmatprep.subr.bf16.mxu0 %v17012_v20  ;;  %5824 = vmatprep.subr.bf16.mxu1 %v17015_v50 }
 0x282   : > { %5487 = vmatprep.mubr.bf16.mxu0 %v19165_v36  ;;  %5826 = vmatprep.mubr.bf16.mxu1 %v19165_v36  ;;  %v17028_v36 = vld [vmem:[#allocation2 + $0x12c0] ss:$48 sps:$4 sm:$0xff]  }
 0x284   : > { %5486 = vmatpush1.bf16.msra.mxu0 %v17010_v34  ;;  %5825 = vmatpush1.bf16.msra.mxu1 %v17013_v61 }
 0x285   : > { %10437 = vmatprep.subr.bf16.mxu0 %v17018_v32  ;;  %10776 = vmatprep.subr.bf16.mxu1 %v17021_v56 }
 0x287   : > { %5488 = vmatmul.mubr.bf16.vlgmr.msra.gmra.mrb[64].mxu0 %v19173_v53  ;;  %5827 = vmatmul.mubr.bf16.vlgmr.msra.gmra.mrb[64].mxu1 %v19173_v53  ;;  %v17034_v53 = vld [vmem:[#allocation2 + $0x1320] ss:$48 sps:$4 sm:$0xff]  }
 0x288   : > { %10438 = vmatpush1.bf16.msra.mxu0 %v17016_v12  ;;  %10777 = vmatpush1.bf16.msra.mxu1 %v17019_v9  ;;  %v17058_v12 = vld [vmem:[#allocation2 + $0x14a0] ss:$48 sps:$4 sm:$0xff]   ;;  %v17061_v9 = vld [vmem:[#allocation2 + $0x14a8] ss:$48 sps:$4 sm:$0xff]  }
 0x289   : > { %10439 = vmatprep.subr.bf16.mxu0 %v17024_v59  ;;  %10778 = vmatprep.subr.bf16.mxu1 %v17027_v40  ;;  %v17066_v40 = vld [vmem:[#allocation2 + $0x1504] ss:$48 sps:$4 sm:$0xff]  }
 0x28a   : > { %5497 = vmatprep.mubr.bf16.mxu0 %v19177_v63  ;;  %5836 = vmatprep.mubr.bf16.mxu1 %v19177_v63  ;;  %v17045_v63 = vld [vmem:[#allocation2 + $0x138c] ss:$48 sps:$4 sm:$0xff]  }
 0x28c   : > { %10440 = vmatpush1.bf16.msra.mxu0 %v17022_v41  ;;  %10779 = vmatpush1.bf16.msra.mxu1 %v17025_v24  ;;  %v17069_v41 = vld [vmem:[#allocation2 + $0x150c] ss:$48 sps:$4 sm:$0xff]  }
 0x28d   : > { %10441 = vmatprep.subr.bf16.mxu0 %v17030_v55  ;;  %10780 = vmatprep.subr.bf16.mxu1 %v17033_v4 }
 0x28f   : > { %5498 = vmatmul.mubr.bf16.gmra.mrb[68].mxu0 %v19185_v16  ;;  %5837 = vmatmul.mubr.bf16.gmra.mrb[68].mxu1 %v19185_v16  ;;  %v22887_v16 = vsub.s32 7, %v19417_v30 }
 0x290   : > { %10442 = vmatpush1.bf16.msra.mxu0 %v17028_v36  ;;  %10781 = vmatpush1.bf16.msra.mxu1 %v17031_v49  ;;  %v17064_v36 = vld [vmem:[#allocation2 + $0x1500] ss:$48 sps:$4 sm:$0xff]   ;;  %v17067_v49 = vld [vmem:[#allocation2 + $0x1508] ss:$48 sps:$4 sm:$0xff]  }
 0x291   : > { %10443 = vmatprep.subr.bf16.mxu0 %v17036_v27  ;;  %10782 = vmatprep.subr.bf16.mxu1 %v17039_v21  ;;  %v19617_v23 = vrot.slane %v18648_v10, %v22887_v16 }
 0x292   : > { %5507 = vmatprep.mubr.bf16.mxu0 %v19189_v31  ;;  %5846 = vmatprep.mubr.bf16.mxu1 %v19189_v31  ;;  %v19613_v31 = vrot.slane %v18648_v10, %v22888_v62  ;;  %v17105_v62 = vld [vmem:[#allocation2 + $0x174c] ss:$48 sps:$4 sm:$0xff]  }
 0x294   : > { %10444 = vmatpush1.bf16.msra.mxu0 %v17034_v53  ;;  %10783 = vmatpush1.bf16.msra.mxu1 %v17037_v0  ;;  %v17072_v53 = vld [vmem:[#allocation2 + $0x1564] ss:$48 sps:$4 sm:$0xff]   ;;  %v17075_v0 = vld [vmem:[#allocation2 + $0x156c] ss:$48 sps:$4 sm:$0xff]  }
 0x295   : > { %10445 = vmatprep.subr.bf16.mxu0 %v17042_v52  ;;  %10784 = vmatprep.subr.bf16.mxu1 %v17045_v63 }
 0x297   : > { %5508 = vmatmul.mubr.bf16.gmra.mrb[72].mxu0 %v19197_v46  ;;  %5847 = vmatmul.mubr.bf16.gmra.mrb[72].mxu1 %v19197_v46 }
 0x298   : > { %10446 = vmatpush1.bf16.msra.mxu0 %v17040_v15  ;;  %10785 = vmatpush1.bf16.msra.mxu1 %v17043_v58  ;;  %v19647_v58 = vadd.f32 %v19337_v47, %v19511_v18  ;;  %v17078_v47 = vld [vmem:[#allocation2 + $0x15c4] ss:$48 sps:$4 sm:$0xff]  }
 0x299   : > { %10447 = vmatprep.subr.bf16.mxu0 %v17048_v5  ;;  %10786 = vmatprep.subr.bf16.mxu1 %v17051_v37 }
 0x29a   : > { %v19619_v29 = vpop.f32.mrb[32].mxu0  ;;  %v5150_v46 = vpop.f32.mrb[32].mxu1  ;;  %5517 = vmatprep.mubr.bf16.mxu0 %v19201_v1  ;;  %5856 = vmatprep.mubr.bf16.mxu1 %v19201_v1 }
 0x29b   : > { %v15062_v13 = vadd.f32 %v5150_v46, %v19613_v31  ;;  %v19624_v8 = vpop.f32.mrb[33].mxu0  ;;  %v5152_v39 = vpop.f32.mrb[33].mxu1 }
 0x29c   : > { %v15063_v54 = vadd.f32 %v5152_v39, %v19617_v23  ;;  %v19627_v51 = vpop.f32.mrb[34].mxu0  ;;  %v5154_v20 = vpop.f32.mrb[34].mxu1  ;;  %10448 = vmatpush1.bf16.msra.mxu0 %v17046_v43  ;;  %10787 = vmatpush1.bf16.msra.mxu1 %v17049_v19  ;;  %v5907_v39 = vmax.f32 %v19647_v58, 0.0 }
 0x29d   : > { %v14196_v50 = vmul.f32 -1.442695, %v15062_v13  ;;  %v15064_v34 = vadd.f32 %v5154_v20, %v19613_v31  ;;  %v19630_v1 = vpop.f32.mrb[35].mxu0  ;;  %v5156_v61 = vpop.f32.mrb[35].mxu1  ;;  %10449 = vmatprep.subr.bf16.mxu0 %v17054_v26  ;;  %10788 = vmatprep.subr.bf16.mxu1 %v17057_v3  ;;  %v17070_v26 = vld [vmem:[#allocation2 + $0x1560] ss:$48 sps:$4 sm:$0xff]  }
 0x29e   : > { %23223 = vst [vmem:[#allocation76_spill] sm:$0xff] %v19630_v1  ;;  %v14197_v32 = vmul.f32 -1.442695, %v15063_v54  ;;  %v15065_v56 = vadd.f32 %v5156_v61, %v19617_v23  ;;  %v17073_v3 = vld [vmem:[#allocation2 + $0x1568] ss:$48 sps:$4 sm:$0xff]  }
 0x29f   : > { %17880 = vpow2.f32 %v14196_v50  ;;  %v14202_v59 = vmul.f32 -1.442695, %v15064_v34  ;;  %5518 = vmatmul.mubr.bf16.gmra.mrb[76].mxu0 %v19209_v14  ;;  %5857 = vmatmul.mubr.bf16.gmra.mrb[76].mxu1 %v19209_v14  ;;  %v17076_v50 = vld [vmem:[#allocation2 + $0x15c0] ss:$48 sps:$4 sm:$0xff]   ;;  %v17079_v34 = vld [vmem:[#allocation2 + $0x15c8] ss:$48 sps:$4 sm:$0xff]  }
 0x2a0   : > { %17882 = vpow2.f32 %v14197_v32  ;;  %v14203_v24 = vmul.f32 -1.442695, %v15065_v56  ;;  %10450 = vmatpush1.bf16.msra.mxu0 %v17052_v17  ;;  %10789 = vmatpush1.bf16.msra.mxu1 %v17055_v42  ;;  %v17081_v17 = vld [vmem:[#allocation2 + $0x15cc] ss:$48 sps:$4 sm:$0xff]  }
 0x2a1   : > { %17884 = vpow2.f32 %v14202_v59  ;;  %10451 = vmatprep.subr.bf16.mxu0 %v17060_v44  ;;  %10790 = vmatprep.subr.bf16.mxu1 %v17063_v25  ;;  %v14967_v25 = vadd.f32 %v19343_v60, %v19515_v38  ;;  %v17084_v59 = vld [vmem:[#allocation2 + $0x1624] ss:$48 sps:$4 sm:$0xff]   ;;  %v17087_v60 = vld [vmem:[#allocation2 + $0x162c] ss:$48 sps:$4 sm:$0xff]  }
 0x2a2   : > { %17886 = vpow2.f32 %v14203_v24  ;;  %v19635_v55 = vpop.f32.mrb[36].mxu0  ;;  %v5160_v4 = vpop.f32.mrb[36].mxu1  ;;  %5527 = vmatprep.mubr.bf16.mxu0 %v19213_v33  ;;  %5866 = vmatprep.mubr.bf16.mxu1 %v19213_v33 }
 0x2a3   : > { %23224 = vst [vmem:[#allocation77_spill] sm:$0xff] %v19635_v55  ;;  %v15066_v14 = vadd.f32 %v5160_v4, %v19613_v31  ;;  %v19640_v27 = vpop.f32.mrb[37].mxu0  ;;  %v5162_v21 = vpop.f32.mrb[37].mxu1  ;;  %v5908_v58 = vmax.f32 %v14967_v25, 0.0  ;;  %v19685_v25 = vld [vmem:[%s18971_s20] sm:$0xff] }
 0x2a4   : > { %23225 = vst [vmem:[#allocation78_spill] sm:$0xff] %v19640_v27  ;;  %v15067_v52 = vadd.f32 %v5162_v21, %v19617_v23  ;;  %v19643_v63 = vpop.f32.mrb[38].mxu0  ;;  %v5164_v15 = vpop.f32.mrb[38].mxu1  ;;  %10452 = vmatpush1.bf16.msra.mxu0 %v17058_v12  ;;  %10791 = vmatpush1.bf16.msra.mxu1 %v17061_v9  ;;  %v19981_v27 = vld [vmem:[%s18971_s20 + $0x180] sm:$0xff] }
 0x2a5   : > { %23226 = vst [vmem:[#allocation79_spill] sm:$0xff] %v19643_v63  ;;  %v14208_v33 = vmul.f32 -1.442695, %v15066_v14  ;;  %v15068_v5 = vadd.f32 %v5164_v15, %v19613_v31  ;;  %v19650_v37 = vpop.f32.mrb[39].mxu0  ;;  %v5166_v10 = vpop.f32.mrb[39].mxu1  ;;  %10453 = vmatprep.subr.bf16.mxu0 %v17066_v40  ;;  %10792 = vmatprep.subr.bf16.mxu1 %v17069_v41  ;;  %v23230_v41 = vld [vmem:[#allocation15_spill] sm:$0xff] }
 0x2a6   : > { %23227 = vst [vmem:[#allocation80_spill] sm:$0xff] %v19650_v37  ;;  %v14209_v43 = vmul.f32 -1.442695, %v15067_v52  ;;  %v15069_v19 = vadd.f32 %v5166_v10, %v19617_v23  ;;  %v19667_v24 = vadd.f32 %v23230_v41, %v19511_v18  ;;  %v23232_v14 = vld [vmem:[#allocation17_spill] sm:$0xff]  ;;  %v17085_v10 = vld [vmem:[#allocation2 + $0x1628] ss:$48 sps:$4 sm:$0xff]  }
 0x2a7   : > { %17888 = vpow2.f32 %v14208_v33  ;;  %v14214_v46 = vmul.f32 -1.442695, %v15068_v5  ;;  %5528 = vmatmul.mubr.bf16.gmra.mrb[80].mxu0 %v19221_v48  ;;  %5867 = vmatmul.mubr.bf16.gmra.mrb[80].mxu1 %v19221_v48  ;;  %v19674_v21 = vadd.f32 %v23232_v14, %v19515_v38  ;;  %v17082_v5 = vld [vmem:[#allocation2 + $0x1620] ss:$48 sps:$4 sm:$0xff]  }
 0x2a8   : > { %17890 = vpow2.f32 %v14209_v43  ;;  %v14215_v42 = vmul.f32 -1.442695, %v15069_v19  ;;  %10454 = vmatpush1.bf16.msra.mxu0 %v17064_v36  ;;  %10793 = vmatpush1.bf16.msra.mxu1 %v17067_v49  ;;  %v23234_v19 = vld [vmem:[#allocation8_spill] sm:$0xff]  ;;  %v23237_v41 = vld [vmem:[#allocation19_spill] sm:$0xff] }
 0x2a9   : > { %v17881_v13 = vpop.eup %17880  ;;  %17892 = vpow2.f32 %v14214_v46  ;;  %10455 = vmatprep.subr.bf16.mxu0 %v17072_v53  ;;  %10794 = vmatprep.subr.bf16.mxu1 %v17075_v0  ;;  %v5913_v46 = vmax.f32 %v19667_v24, 0.0  ;;  %v19698_v24 = vadd.f32 %v23237_v41, %v19511_v18 }
 0x2aa   : > { %v17883_v44 = vpop.eup %17882  ;;  %v6291_v54 = vadd.f32 1.0, %v17881_v13  ;;  %17894 = vpow2.f32 %v14215_v42  ;;  %v19658_v20 = vpop.f32.mrb[40].mxu0  ;;  %5537 = vmatprep.mubr.bf16.mxu0 %v19225_v6  ;;  %5876 = vmatprep.mubr.bf16.mxu1 %v19225_v6  ;;  %v5914_v42 = vmax.f32 %v19674_v21, 0.0  ;;  %v17096_v21 = vld [vmem:[#allocation2 + $0x16e4] ss:$48 sps:$4 sm:$0xff]  }
 0x2ab   : > { %23228 = vst [vmem:[#allocation81_spill] sm:$0xff] %v19658_v20  ;;  %v5170_v48 = vpop.f32.mrb[40].mxu1  ;;  %v17885_v61 = vpop.eup %17884  ;;  %v6292_v32 = vadd.f32 1.0, %v17883_v44  ;;  %v17123_v20 = vld [vmem:[#allocation2 + $0x186c] ss:$48 sps:$4 sm:$0xff]  }
 0x2ac   : > { %v15070_v56 = vadd.f32 %v5170_v48, %v19613_v31  ;;  %v19663_v12 = vpop.f32.mrb[41].mxu0  ;;  %v5172_v9 = vpop.f32.mrb[41].mxu1  ;;  %17896 = vrcp.f32 %v6291_v54  ;;  %v6297_v4 = vadd.f32 1.0, %v17885_v61  ;;  %10456 = vmatpush1.bf16.msra.mxu0 %v17070_v26  ;;  %10795 = vmatpush1.bf16.msra.mxu1 %v17073_v3  ;;  %v17090_v26 = vld [vmem:[#allocation2 + $0x1684] ss:$48 sps:$4 sm:$0xff]   ;;  %v6579_v54 = vsub.f32 %v5907_v39, %v19685_v25  ;;  %v19689_v48 = vld [vmem:[%s18971_s20 + $0x8] sm:$0xff] }
 0x2ad   : > { %23229 = vst [vmem:[#allocation82_spill] sm:$0xff] %v19663_v12  ;;  %v17887_v40 = vpop.eup %17886  ;;  %v15071_v6 = vadd.f32 %v5172_v9, %v19617_v23  ;;  %v19670_v36 = vpop.f32.mrb[42].mxu0  ;;  %17898 = vrcp.f32 %v6292_v32  ;;  %10457 = vmatprep.subr.bf16.mxu0 %v17078_v47  ;;  %10796 = vmatprep.subr.bf16.mxu1 %v17081_v17  ;;  %v17093_v3 = vld [vmem:[#allocation2 + $0x168c] ss:$48 sps:$4 sm:$0xff]   ;;  %v6580_v61 = vsub.f32 %v5908_v58, %v19689_v48  ;;  %v23236_v9 = vld [vmem:[#allocation9_spill] sm:$0xff] }
 0x2ae   : > { %23231 = vst [vmem:[#allocation15_spill] sm:$0xff] %v19670_v36  ;;  %v5174_v49 = vpop.f32.mrb[42].mxu1  ;;  %v6298_v53 = vadd.f32 1.0, %v17887_v40  ;;  %v14220_v0 = vmul.f32 -1.442695, %v15070_v56  ;;  %v19676_v52 = vpop.f32.mrb[43].mxu0  ;;  %17900 = vrcp.f32 %v6297_v4 }
 0x2af   : > { %23233 = vst [vmem:[#allocation17_spill] sm:$0xff] %v19676_v52  ;;  %v5176_v15 = vpop.f32.mrb[43].mxu1  ;;  %v14221_v33 = vmul.f32 -1.442695, %v15071_v6  ;;  %v15072_v43 = vadd.f32 %v5174_v49, %v19613_v31  ;;  %5538 = vmatmul.mubr.bf16.gmra.mrb[84].mxu0 %v23234_v19  ;;  %5877 = vmatmul.mubr.bf16.gmra.mrb[84].mxu1 %v23234_v19  ;;  %v23238_v39 = vld [vmem:[#allocation21_spill] sm:$0xff] }
 0x2b0   : > { %17902 = vrcp.f32 %v6298_v53  ;;  %v15073_v47 = vadd.f32 %v5176_v15, %v19617_v23  ;;  %10458 = vmatpush1.bf16.msra.mxu0 %v17076_v50  ;;  %10797 = vmatpush1.bf16.msra.mxu1 %v17079_v34  ;;  %v19702_v4 = vadd.f32 %v23238_v39, %v19515_v38  ;;  %v17099_v53 = vld [vmem:[#allocation2 + $0x16ec] ss:$48 sps:$4 sm:$0xff]   ;;  %v23240_v15 = vld [vmem:[#allocation23_spill] sm:$0xff]  ;;  %v17109_v52 = vld [vmem:[#allocation2 + $0x17a8] ss:$48 sps:$4 sm:$0xff]  }
 0x2b1   : > { %17904 = vpow2.f32 %v14220_v0  ;;  %v17889_v17 = vpop.eup %17888  ;;  %v14226_v13 = vmul.f32 -1.442695, %v15072_v43  ;;  %10459 = vmatprep.subr.bf16.mxu0 %v17084_v59  ;;  %10798 = vmatprep.subr.bf16.mxu1 %v17087_v60  ;;  %v17088_v59 = vld [vmem:[#allocation2 + $0x1680] ss:$48 sps:$4 sm:$0xff]   ;;  %v17091_v60 = vld [vmem:[#allocation2 + $0x1688] ss:$48 sps:$4 sm:$0xff]   ;;  %v19708_v58 = vadd.f32 %v23240_v15, %v19511_v18 }
 0x2b2   : > { %17906 = vpow2.f32 %v14221_v33  ;;  %v17891_v44 = vpop.eup %17890  ;;  %v6303_v32 = vadd.f32 1.0, %v17889_v17  ;;  %v14227_v56 = vmul.f32 -1.442695, %v15073_v47  ;;  %v19692_v50 = vpop.f32.mrb[44].mxu0  ;;  %5547 = vmatprep.mubr.bf16.mxu0 %v23236_v9  ;;  %5886 = vmatprep.mubr.bf16.mxu1 %v23236_v9  ;;  %v19714_v17 = vld [vmem:[%s18971_s20 + $0x30] sm:$0xff] }
 0x2b3   : > { %23235 = vst [vmem:[#allocation8_spill] sm:$0xff] %v19692_v50  ;;  %v5180_v34 = vpop.f32.mrb[44].mxu1  ;;  %v17893_v40 = vpop.eup %17892  ;;  %v6304_v6 = vadd.f32 1.0, %v17891_v44  ;;  %17908 = vpow2.f32 %v14226_v13  ;;  %v6585_v13 = vsub.f32 %v5913_v46, %v19714_v17 }
 0x2b4   : > { %v19704_v49 = vpop.f32.mrb[45].mxu0  ;;  %v5182_v14 = vpop.f32.mrb[45].mxu1  ;;  %17910 = vrcp.f32 %v6303_v32  ;;  %v6309_v33 = vadd.f32 1.0, %v17893_v40  ;;  %v15074_v43 = vadd.f32 %v5180_v34, %v19613_v31  ;;  %10460 = vmatpush1.bf16.msra.mxu0 %v17082_v5  ;;  %10799 = vmatpush1.bf16.msra.mxu1 %v17085_v10  ;;  %v19721_v34 = vld [vmem:[%s18971_s20 + $0x38] sm:$0xff]  ;;  %v23243_v5 = vld [vmem:[#allocation25_spill] sm:$0xff] }
 0x2b5   : > { %23239 = vst [vmem:[#allocation9_spill] sm:$0xff] %v19704_v49  ;;  %v17895_v0 = vpop.eup %17894  ;;  %v19711_v19 = vpop.f32.mrb[46].mxu0  ;;  %17912 = vrcp.f32 %v6304_v6  ;;  %v15075_v9 = vadd.f32 %v5182_v14, %v19617_v23  ;;  %10461 = vmatprep.subr.bf16.mxu0 %v17090_v26  ;;  %10800 = vmatprep.subr.bf16.mxu1 %v17093_v3  ;;  %v6586_v39 = vsub.f32 %v5914_v42, %v19721_v34  ;;  %v17094_v6 = vld [vmem:[#allocation2 + $0x16e0] ss:$48 sps:$4 sm:$0xff]   ;;  %v5919_v14 = vmax.f32 %v19698_v24, 0.0  ;;  %v23244_v3 = vld [vmem:[#allocation10_spill] sm:$0xff] }
 0x2b6   : > { %23241 = vst [vmem:[#allocation19_spill] sm:$0xff] %v19711_v19  ;;  %v5184_v47 = vpop.f32.mrb[46].mxu1  ;;  %v6310_v44 = vadd.f32 1.0, %v17895_v0  ;;  %v19718_v41 = vpop.f32.mrb[47].mxu0  ;;  %v19726_v10 = vadd.f32 %v23243_v5, %v19515_v38  ;;  %17914 = vrcp.f32 %v6309_v33  ;;  %v14232_v46 = vmul.f32 -1.442695, %v15074_v43 }
 0x2b7   : > { %23242 = vst [vmem:[#allocation21_spill] sm:$0xff] %v19718_v41  ;;  %v5186_v32 = vpop.f32.mrb[47].mxu1  ;;  %v17897_v40 = vpop.eup %17896  ;;  %v17097_v0 = vld [vmem:[#allocation2 + $0x16e8] ss:$48 sps:$4 sm:$0xff]   ;;  %v14233_v26 = vmul.f32 -1.442695, %v15075_v9  ;;  %5548 = vmatmul.mubr.bf16.gmra.mrb[88].mxu0 %v23244_v3  ;;  %5887 = vmatmul.mubr.bf16.gmra.mrb[88].mxu1 %v23244_v3 }
 0x2b8   : > { %v17899_v15 = vpop.eup %17898  ;;  %v19729_v16 = vmul.f32 %v17897_v40, %v6579_v54  ;;  %17916 = vrcp.f32 %v6310_v44  ;;  %v17102_v42 = vld [vmem:[#allocation2 + $0x1744] ss:$48 sps:$4 sm:$0xff]   ;;  %v5920_v5 = vmax.f32 %v19702_v4, 0.0  ;;  %v5925_v33 = vmax.f32 %v19708_v58, 0.0  ;;  %10462 = vmatpush1.bf16.msra.mxu0 %v17088_v59  ;;  %10801 = vmatpush1.bf16.msra.mxu1 %v17091_v60  ;;  %v17111_v3 = vld [vmem:[#allocation2 + $0x17ac] ss:$48 sps:$4 sm:$0xff]  }
 0x2b9   : > { %v17901_v7 = vpop.eup %17900  ;;  %v19735_v43 = vmul.f32 %v17899_v15, %v6580_v61  ;;  %17918 = vpow2.f32 %v14227_v56  ;;  %v23245_v24 = vld [vmem:[#allocation27_spill] sm:$0xff]  ;;  %v15076_v40 = vadd.f32 %v5184_v47, %v19613_v31  ;;  %10463 = vmatprep.subr.bf16.mxu0 %v17096_v21  ;;  %10802 = vmatprep.subr.bf16.mxu1 %v17099_v53  ;;  %v5926_v58 = vmax.f32 %v19726_v10, 0.0  ;;  %v23248_v21 = vld [vmem:[#allocation29_spill] sm:$0xff] }
 0x2ba   : > { %v17903_v54 = vpop.eup %17902  ;;  %v19739_v44 = vadd.f32 %v23245_v24, %v19511_v18  ;;  %v19741_v9 = vmul.f32 %v17901_v7, %v6585_v13  ;;  %17920 = vpow2.f32 %v14232_v46  ;;  %v19747_v56 = vpop.f32.mrb[48].mxu0  ;;  %v23247_v60 = vld [vmem:[#allocation11_spill] sm:$0xff]  ;;  %v17103_v13 = vld [vmem:[#allocation2 + $0x1748] ss:$48 sps:$4 sm:$0xff]   ;;  %v19753_v53 = vadd.f32 %v23248_v21, %v19515_v38 }
 0x2bb   : > { %v17905_v4 = vpop.eup %17904  ;;  %v19745_v61 = vmul.f32 %v17903_v54, %v6586_v39  ;;  %17922 = vpow2.f32 %v14233_v26  ;;  %23246 = vst [vmem:[#allocation23_spill] sm:$0xff] %v19747_v56  ;;  %v5190_v59 = vpop.f32.mrb[48].mxu1  ;;  %5557 = vmatprep.mubr.bf16.mxu0 %v23247_v60  ;;  %5896 = vmatprep.mubr.bf16.mxu1 %v23247_v60  ;;  %v17100_v7 = vld [vmem:[#allocation2 + $0x1740] ss:$48 sps:$4 sm:$0xff]   ;;  %v14238_v39 = vmul.f32 -1.442695, %v15076_v40  ;;  %v15077_v21 = vadd.f32 %v5186_v32, %v19617_v23 }
 0x2bc   : > { %v17907_v47 = vpop.eup %17906  ;;  %v6315_v10 = vadd.f32 1.0, %v17905_v4  ;;  %v19755_v46 = vpop.f32.mrb[49].mxu0  ;;  %v17108_v26 = vld [vmem:[#allocation2 + $0x17a4] ss:$48 sps:$4 sm:$0xff]   ;;  %v19762_v60 = vld [vmem:[%s18971_s20 + $0x68] sm:$0xff]  ;;  %10464 = vmatpush1.bf16.msra.mxu0 %v17094_v6  ;;  %10803 = vmatpush1.bf16.msra.mxu1 %v17097_v0  ;;  %v15078_v49 = vadd.f32 %v5190_v59, %v19613_v31 }
 0x2bd   : > { %23249 = vst [vmem:[#allocation25_spill] sm:$0xff] %v19755_v46  ;;  %v5192_v15 = vpop.f32.mrb[49].mxu1  ;;  %v19758_v54 = vld [vmem:[%s18971_s20 + $0x60] sm:$0xff]  ;;  %v6592_v35 = vsub.f32 %v5920_v5, %v19762_v60  ;;  %v6316_v56 = vadd.f32 1.0, %v17907_v47  ;;  %v19766_v41 = vpop.f32.mrb[50].mxu0  ;;  %v19771_v46 = vld [vmem:[%s18971_s20 + $0x90] sm:$0xff]  ;;  %10465 = vmatprep.subr.bf16.mxu0 %v17102_v42  ;;  %10804 = vmatprep.subr.bf16.mxu1 %v17105_v62 }
 0x2be   : > { %v6591_v24 = vsub.f32 %v5919_v14, %v19758_v54  ;;  %23250 = vst [vmem:[#allocation10_spill] sm:$0xff] %v19766_v41  ;;  %v19768_v40 = vpop.f32.mrb[50].mxu1  ;;  %v17909_v4 = vpop.eup %17908  ;;  %v6597_v19 = vsub.f32 %v5925_v33, %v19771_v46  ;;  %v5931_v14 = vmax.f32 %v19739_v44, 0.0  ;;  %17924 = vrcp.f32 %v6315_v10  ;;  %v23252_v41 = vld [vmem:[#allocation31_spill] sm:$0xff]  ;;  %v23253_v62 = vld [vmem:[#allocation12_spill] sm:$0xff] }
 0x2bf   : > { %v19776_v5 = vpop.f32.mrb[51].mxu0  ;;  %v5196_v47 = vpop.f32.mrb[51].mxu1  ;;  %v19780_v6 = vadd.f32 %v23252_v41, %v19511_v18  ;;  %17926 = vrcp.f32 %v6316_v56  ;;  %v6321_v0 = vadd.f32 1.0, %v17909_v4  ;;  %v14239_v50 = vmul.f32 -1.442695, %v15077_v21  ;;  %5558 = vmatmul.mubr.bf16.gmra.mrb[92].mxu0 %v23253_v62  ;;  %5897 = vmatmul.mubr.bf16.gmra.mrb[92].mxu1 %v23253_v62  ;;  %v19788_v56 = vld [vmem:[%s18971_s20 + $0x98] sm:$0xff] }
 0x2c0   : > { %23251 = vst [vmem:[#allocation27_spill] sm:$0xff] %v19776_v5  ;;  %v17911_v32 = vpop.eup %17910  ;;  %v17106_v33 = vld [vmem:[#allocation2 + $0x17a0] ss:$48 sps:$4 sm:$0xff]   ;;  %v5932_v10 = vmax.f32 %v19753_v53, 0.0  ;;  %17928 = vpow2.f32 %v14238_v39  ;;  %v14244_v42 = vmul.f32 -1.442695, %v15078_v49  ;;  %v6598_v21 = vsub.f32 %v5926_v58, %v19788_v56  ;;  %10466 = vmatpush1.bf16.msra.mxu0 %v17100_v7  ;;  %10805 = vmatpush1.bf16.msra.mxu1 %v17103_v13 }
 0x2c1   : > { %v17913_v44 = vpop.eup %17912  ;;  %v19783_v59 = vmul.f32 %v17911_v32, %v6591_v24  ;;  %v17114_v41 = vld [vmem:[#allocation2 + $0x1804] ss:$48 sps:$4 sm:$0xff]   ;;  %v17117_v5 = vld [vmem:[#allocation2 + $0x180c] ss:$48 sps:$4 sm:$0xff]   ;;  %17930 = vrcp.f32 %v6321_v0  ;;  %v15079_v58 = vadd.f32 %v5192_v15, %v19617_v23  ;;  %10467 = vmatprep.subr.bf16.mxu0 %v17108_v26  ;;  %10806 = vmatprep.subr.bf16.mxu1 %v17111_v3  ;;  %v19807_v7 = vadd.f32 %v19721_v34, %v19745_v61 }
 0x2c2   : > { %v17915_v36 = vpop.eup %17914  ;;  %v23254_v4 = vld [vmem:[#allocation33_spill] sm:$0xff]  ;;  %v19795_v53 = vmul.f32 %v17913_v44, %v6592_v35  ;;  %17932 = vpow2.f32 %v14239_v50  ;;  %v5937_v35 = vmax.f32 %v19780_v6, 0.0  ;;  %v19811_v0 = vpop.f32.mrb[52].mxu0  ;;  %v23257_v15 = vld [vmem:[#allocation35_spill] sm:$0xff] }
 0x2c3   : > { %v19793_v12 = vadd.f32 %v23254_v4, %v19515_v38  ;;  %v17917_v49 = vpop.eup %17916  ;;  %v19798_v39 = vld [vmem:[%s18971_s20 + $0xc0] sm:$0xff]  ;;  %v19801_v32 = vmul.f32 %v17915_v36, %v6597_v19  ;;  %23255 = vst [vmem:[#allocation11_spill] sm:$0xff] %v19807_v7  ;;  %17934 = vpow2.f32 %v14244_v42  ;;  %23256 = vst [vmem:[#allocation29_spill] sm:$0xff] %v19811_v0  ;;  %v19814_v19 = vld [vmem:[%s18971_s20 + $0xc8] sm:$0xff]  ;;  %v14978_v26 = vadd.f32 %v23257_v15, %v19511_v18  ;;  %v19819_v44 = vpop.f32.mrb[53].mxu0 }
 0x2c4   : > { %v6603_v24 = vsub.f32 %v5931_v14, %v19798_v39  ;;  %v17919_v62 = vpop.eup %17918  ;;  %v19809_v13 = vmul.f32 %v17917_v49, %v6598_v21  ;;  %v5200_v14 = vpop.f32.mrb[52].mxu1  ;;  %v6604_v50 = vsub.f32 %v5932_v10, %v19814_v19  ;;  %v14245_v6 = vmul.f32 -1.442695, %v15079_v58  ;;  %23258 = vst [vmem:[#allocation31_spill] sm:$0xff] %v19819_v44  ;;  %v23259_v21 = vld [vmem:[#allocation37_spill] sm:$0xff]  ;;  %10468 = vmatpush1.bf16.msra.mxu0 %v17106_v33  ;;  %v23262_v58 = vld [vmem:[#allocation39_spill] sm:$0xff] }
 0x2c5   : > { %v17921_v36 = vpop.eup %17920  ;;  %v6322_v3 = vadd.f32 1.0, %v17919_v62  ;;  %v5202_v34 = vpop.f32.mrb[53].mxu1  ;;  %v14979_v42 = vadd.f32 %v23259_v21, %v19515_v38  ;;  %v19825_v4 = vadd.f32 %v19689_v48, %v19735_v43  ;;  %v15080_v10 = vadd.f32 %v19768_v40, %v19613_v31  ;;  %10807 = vmatpush1.bf16.msra.mxu1 %v17109_v52  ;;  %10550 = vmatprep.subr.bf16.mxu0 %v17114_v41 }
 0x2c6   : > { %v17923_v61 = vpop.eup %17922  ;;  %v6327_v49 = vadd.f32 1.0, %v17921_v36  ;;  %v19829_v0 = vpop.f32.mrb[54].mxu0  ;;  %v19835_v62 = vadd.f32 %v23262_v58, %v19511_v18  ;;  %v15081_v44 = vadd.f32 %v5196_v47, %v19617_v23  ;;  %10889 = vmatprep.subr.bf16.mxu1 %v17117_v5  ;;  %v5938_v40 = vmax.f32 %v19793_v12, 0.0 }
 0x2c7   : > { %23260 = vst [vmem:[#allocation12_spill] sm:$0xff] %v19825_v4  ;;  %23261 = vst [vmem:[#allocation33_spill] sm:$0xff] %v19829_v0  ;;  %v19831_v15 = vpop.f32.mrb[54].mxu1  ;;  %17936 = vrcp.f32 %v6322_v3  ;;  %v6328_v21 = vadd.f32 1.0, %v17923_v61  ;;  %v19838_v48 = vpop.f32.mrb[55].mxu0  ;;  %v19845_v52 = vpack.c.bf16 %v19807_v7, %v19825_v4  ;;  %v5943_v3 = vmax.f32 %v14978_v26, 0.0 }
 0x2c8   : > { %23263 = vst [vmem:[#allocation35_spill] sm:$0xff] %v19838_v48  ;;  %v19840_v43 = vpop.f32.mrb[55].mxu1  ;;  %17938 = vrcp.f32 %v6327_v49  ;;  %v14250_v33 = vmul.f32 -1.442695, %v15080_v10  ;;  %v17925_v36 = vpop.eup %17924  ;;  %v23265_v61 = vld [vmem:[#allocation41_spill] sm:$0xff]  ;;  %v5944_v5 = vmax.f32 %v14979_v42, 0.0  ;;  %v15082_v12 = vadd.f32 %v5200_v14, %v19613_v31 }
 0x2c9   : > { %23264 = vst [vmem:[#allocation37_spill] sm:$0xff] %v19845_v52  ;;  %v19849_v47 = vadd.f32 %v23265_v61, %v19515_v38  ;;  %17940 = vrcp.f32 %v6328_v21  ;;  %v14251_v58 = vmul.f32 -1.442695, %v15081_v44  ;;  %v17927_v41 = vpop.eup %17926  ;;  %v19851_v48 = vmul.f32 %v17925_v36, %v6603_v24  ;;  %10469 = vmatprep.mubr.bf16.mxu0 %v19845_v52  ;;  %10808 = vmatprep.mubr.bf16.mxu1 %v19845_v52  ;;  %v19857_v49 = vld [vmem:[%s18971_s20 + $0xf0] sm:$0xff]  ;;  %v19864_v42 = vld [vmem:[%s18971_s20 + $0xf8] sm:$0xff] }
 0x2ca   : > { %17942 = vpow2.f32 %v14245_v6  ;;  %v17929_v26 = vpop.eup %17928  ;;  %v6609_v10 = vsub.f32 %v5937_v35, %v19857_v49  ;;  %v19861_v44 = vmul.f32 %v17927_v41, %v6604_v50  ;;  %v6610_v6 = vsub.f32 %v5938_v40, %v19864_v42  ;;  %v19867_v61 = vpop.f32.mrb[56].mxu0  ;;  %v19872_v35 = vld [vmem:[%s18971_s20 + $0x120] sm:$0xff] }
 0x2cb   : > { %17944 = vpow2.f32 %v14250_v33  ;;  %v17931_v24 = vpop.eup %17930  ;;  %v6333_v36 = vadd.f32 1.0, %v17929_v26  ;;  %v14256_v14 = vmul.f32 -1.442695, %v15082_v12  ;;  %23266 = vst [vmem:[#allocation39_spill] sm:$0xff] %v19867_v61  ;;  %v19869_v7 = vpop.f32.mrb[56].mxu1  ;;  %v6615_v50 = vsub.f32 %v5943_v3, %v19872_v35  ;;  %v19887_v26 = vld [vmem:[%s18971_s20 + $0x128] sm:$0xff] }
 0x2cc   : > { %17946 = vpow2.f32 %v14251_v58  ;;  %v17933_v4 = vpop.eup %17932  ;;  %v19878_v41 = vadd.f32 %v19714_v17, %v19741_v9  ;;  %v19880_v21 = vmul.f32 %v17931_v24, %v6609_v10  ;;  %v19882_v40 = vpop.f32.mrb[57].mxu0  ;;  %v6616_v52 = vsub.f32 %v5944_v5, %v19887_v26  ;;  %v17112_v17 = vld [vmem:[#allocation2 + $0x1800] ss:$48 sps:$4 sm:$0xff]   ;;  %v17115_v9 = vld [vmem:[#allocation2 + $0x1808] ss:$48 sps:$4 sm:$0xff]  }
 0x2cd   : > { %23268 = vst [vmem:[#allocation83_spill] sm:$0xff] %v19882_v40  ;;  %v19884_v58 = vpop.f32.mrb[57].mxu1  ;;  %v17935_v12 = vpop.eup %17934  ;;  %17948 = vrcp.f32 %v6333_v36  ;;  %v6334_v61 = vadd.f32 1.0, %v17933_v4  ;;  %v15083_v3 = vadd.f32 %v5202_v34, %v19617_v23  ;;  %v19897_v10 = vadd.f32 %v19685_v25, %v19729_v16  ;;  %v23273_v34 = vld [vmem:[#allocation44_spill] sm:$0xff]  ;;  %v17120_v25 = vld [vmem:[#allocation2 + $0x1864] ss:$48 sps:$4 sm:$0xff]  }
 0x2ce   : > { %23267 = vst [vmem:[#allocation41_spill] sm:$0xff] %v19878_v41  ;;  %v19891_v33 = vpop.f32.mrb[58].mxu0  ;;  %v19893_v0 = vpop.f32.mrb[58].mxu1  ;;  %v19901_v24 = vadd.f32 %v19788_v56, %v19809_v13  ;;  %v6339_v40 = vadd.f32 1.0, %v17935_v12  ;;  %17950 = vpow2.f32 %v14256_v14  ;;  %v19909_v36 = vadd.f32 %v23273_v34, %v19511_v18  ;;  %v23276_v12 = vld [vmem:[#allocation46_spill] sm:$0xff] }
 0x2cf   : > { %23269 = vst [vmem:[#allocation84_spill] sm:$0xff] %v19891_v33  ;;  %23270 = vst [vmem:[#allocation85_spill] sm:$0xff] %v19897_v10  ;;  %v19903_v5 = vpop.f32.mrb[59].mxu0  ;;  %v19905_v4 = vpop.f32.mrb[59].mxu1  ;;  %17952 = vrcp.f32 %v6334_v61  ;;  %v14257_v33 = vmul.f32 -1.442695, %v15083_v3  ;;  %v15084_v16 = vadd.f32 %v19831_v15, %v19613_v31  ;;  %v19915_v56 = vadd.f32 %v19762_v60, %v19795_v53 }
 0x2d0   : > { %23271 = vst [vmem:[#allocation86_spill] sm:$0xff] %v19901_v24  ;;  %23272 = vst [vmem:[#allocation87_spill] sm:$0xff] %v19903_v5  ;;  %17954 = vrcp.f32 %v6339_v40  ;;  %v15085_v13 = vadd.f32 %v19840_v43, %v19617_v23  ;;  %v19921_v14 = vpack.c.bf16 %v19878_v41, %v19897_v10  ;;  %v19925_v3 = vadd.f32 %v23276_v12, %v19515_v38  ;;  %v17118_v5 = vld [vmem:[#allocation2 + $0x1860] ss:$48 sps:$4 sm:$0xff]   ;;  %v17121_v60 = vld [vmem:[#allocation2 + $0x1868] ss:$48 sps:$4 sm:$0xff]  }
 0x2d1   : > { %v17937_v37 = vpop.eup %17936  ;;  %23274 = vst [vmem:[#allocation44_spill] sm:$0xff] %v19915_v56  ;;  %17956 = vpow2.f32 %v14257_v33  ;;  %v14262_v34 = vmul.f32 -1.442695, %v15084_v16  ;;  %v23277_v40 = vld [vmem:[#allocation49_spill] sm:$0xff]  ;;  %v17129_v33 = vld [vmem:[#allocation2 + $0x18cc] ss:$48 sps:$4 sm:$0xff]  }
 0x2d2   : > { %23275 = vst [vmem:[#allocation88_spill] sm:$0xff] %v19921_v14  ;;  %v17939_v61 = vpop.eup %17938  ;;  %v19927_v15 = vmul.f32 %v17937_v37, %v6610_v6  ;;  %v19931_v63 = vadd.f32 %v23277_v40, %v19511_v18  ;;  %v14263_v41 = vmul.f32 -1.442695, %v15085_v13  ;;  %10470 = vmatmul.mubr.bf16.vlgmr.msra.gmra.mrb[96].mxu0 %v19921_v14  ;;  %10809 = vmatmul.mubr.bf16.vlgmr.msra.gmra.mrb[96].mxu1 %v19921_v14  ;;  %v17126_v6 = vld [vmem:[#allocation2 + $0x18c4] ss:$48 sps:$4 sm:$0xff]   ;;  %v5955_v12 = vmax.f32 %v19909_v36, 0.0 }
 0x2d3   : > { %v17941_v53 = vpop.eup %17940  ;;  %v19933_v43 = vmul.f32 %v17939_v61, %v6615_v50  ;;  %v19939_v37 = vpack.c.bf16 %v19901_v24, %v19915_v56  ;;  %17958 = vpow2.f32 %v14262_v34  ;;  %v19944_v50 = vpop.f32.mrb[60].mxu0  ;;  %10551 = vmatpush1.bf16.msra.mxu0 %v17112_v17  ;;  %10890 = vmatpush1.bf16.msra.mxu1 %v17115_v9  ;;  %v19949_v40 = vld [vmem:[%s18971_s20 + $0x150] sm:$0xff]  ;;  %v23280_v24 = vmax.f32 %v19835_v62, 0.0  ;;  %v19961_v17 = vld [vmem:[%s18971_s20 + $0x158] sm:$0xff] }
 0x2d4   : > { %v17943_v16 = vpop.eup %17942  ;;  %v19942_v10 = vmul.f32 %v17941_v53, %v6616_v52  ;;  %23279 = vst [vmem:[#allocation49_spill] sm:$0xff] %v19944_v50  ;;  %v19946_v13 = vpop.f32.mrb[60].mxu1  ;;  %17960 = vpow2.f32 %v14263_v41  ;;  %v23282_v9 = vmax.f32 %v19849_v47, 0.0  ;;  %v5956_v62 = vmax.f32 %v19925_v3, 0.0  ;;  %10552 = vmatprep.subr.bf16.mxu0 %v17120_v25  ;;  %10891 = vmatprep.subr.bf16.mxu1 %v17123_v20 }
 0x2d5   : > { %23278 = vst [vmem:[#allocation46_spill] sm:$0xff] %v19939_v37  ;;  %v17945_v61 = vpop.eup %17944  ;;  %v6621_v56 = vsub.f32 %v23280_v24, %v19949_v40  ;;  %v6340_v14 = vadd.f32 1.0, %v17943_v16  ;;  %10479 = vmatprep.mubr.bf16.mxu0 %v19939_v37  ;;  %10818 = vmatprep.mubr.bf16.mxu1 %v19939_v37  ;;  %v19956_v52 = vpop.f32.mrb[61].mxu0  ;;  %v15086_v41 = vadd.f32 %v19869_v7, %v19613_v31 }
 0x2d6   : > { %23281 = vst [vmem:[#allocation89_spill] sm:$0xff] %v19956_v52  ;;  %v19958_v36 = vpop.f32.mrb[61].mxu1  ;;  %v17947_v34 = vpop.eup %17946  ;;  %v6622_v53 = vsub.f32 %v23282_v9, %v19961_v17  ;;  %v6345_v24 = vadd.f32 1.0, %v17945_v61  ;;  %v15087_v47 = vadd.f32 %v19884_v58, %v19617_v23  ;;  %v6627_v7 = vsub.f32 %v5955_v12, %v19981_v27  ;;  %v17132_v12 = vld [vmem:[#allocation2 + $0x1924] ss:$48 sps:$4 sm:$0xff]  }
 0x2d7   : > { %v19969_v16 = vpop.f32.mrb[62].mxu0  ;;  %v19971_v37 = vpop.f32.mrb[62].mxu1  ;;  %17962 = vrcp.f32 %v6340_v14  ;;  %v6346_v50 = vadd.f32 1.0, %v17947_v34  ;;  %v14268_v20 = vmul.f32 -1.442695, %v15086_v41  ;;  %10553 = vmatpush1.bf16.msra.mxu0 %v17118_v5  ;;  %10892 = vmatpush1.bf16.msra.mxu1 %v17121_v60  ;;  %v19990_v52 = vadd.f32 %v19771_v46, %v19801_v32  ;;  %v23288_v32 = vld [vmem:[#allocation54_spill] sm:$0xff] }
 0x2d8   : > { %23283 = vst [vmem:[#allocation90_spill] sm:$0xff] %v19969_v16  ;;  %v19976_v9 = vpop.f32.mrb[63].mxu0  ;;  %v19978_v3 = vpop.f32.mrb[63].mxu1  ;;  %v23285_v16 = vld [vmem:[#allocation51_spill] sm:$0xff]  ;;  %17964 = vrcp.f32 %v6345_v24  ;;  %v17127_v34 = vld [vmem:[#allocation2 + $0x18c8] ss:$48 sps:$4 sm:$0xff]   ;;  %10554 = vmatprep.subr.bf16.mxu0 %v17126_v6  ;;  %10893 = vmatprep.subr.bf16.mxu1 %v17129_v33  ;;  %v19996_v5 = vadd.f32 %v19864_v42, %v19927_v15  ;;  %v15088_v24 = vadd.f32 %v19893_v0, %v19613_v31 }
 0x2d9   : > { %23284 = vst [vmem:[#allocation91_spill] sm:$0xff] %v19976_v9  ;;  %v17949_v61 = vpop.eup %17948  ;;  %v19986_v25 = vadd.f32 %v23285_v16, %v19515_v38  ;;  %v17124_v14 = vld [vmem:[#allocation2 + $0x18c0] ss:$48 sps:$4 sm:$0xff]   ;;  %23286 = vst [vmem:[#allocation51_spill] sm:$0xff] %v19990_v52  ;;  %17966 = vrcp.f32 %v6346_v50  ;;  %v14269_v55 = vmul.f32 -1.442695, %v15087_v47  ;;  %v20004_v6 = vadd.f32 %v19758_v54, %v19783_v59 }
 0x2da   : > { %v17951_v58 = vpop.eup %17950  ;;  %v19992_v9 = vmul.f32 %v17949_v61, %v6621_v56  ;;  %v17135_v16 = vld [vmem:[#allocation2 + $0x192c] ss:$48 sps:$4 sm:$0xff]   ;;  %23287 = vst [vmem:[#allocation92_spill] sm:$0xff] %v19996_v5  ;;  %17968 = vpow2.f32 %v14268_v20  ;;  %v14986_v56 = vadd.f32 %v23288_v32, %v19511_v18  ;;  %v20010_v42 = vadd.f32 %v19814_v19, %v19861_v44 }
 0x2db   : > { %v17953_v1 = vpop.eup %17952  ;;  %v6351_v60 = vadd.f32 1.0, %v17951_v58  ;;  %23289 = vst [vmem:[#allocation54_spill] sm:$0xff] %v20004_v6  ;;  %17970 = vpow2.f32 %v14269_v55  ;;  %v14274_v0 = vmul.f32 -1.442695, %v15088_v24  ;;  %10555 = vmatpush1.bf16.msra.mxu0 %v17124_v14  ;;  %10894 = vmatpush1.bf16.msra.mxu1 %v17127_v34  ;;  %v5962_v41 = vmax.f32 %v19986_v25, 0.0  ;;  %v23291_v54 = vld [vmem:[#allocation56_spill] sm:$0xff] }
 0x2dc   : > { %v17955_v46 = vpop.eup %17954  ;;  %v20006_v33 = vmul.f32 %v17953_v1, %v6622_v53  ;;  %23290 = vst [vmem:[#allocation93_spill] sm:$0xff] %v20010_v42  ;;  %v14987_v59 = vadd.f32 %v23291_v54, %v19515_v38  ;;  %v15089_v55 = vadd.f32 %v19905_v4, %v19617_v23  ;;  %10556 = vmatprep.subr.bf16.mxu0 %v17132_v12  ;;  %v20020_v44 = vld [vmem:[%s18971_s20 + $0x188] sm:$0xff]  ;;  %v17138_v4 = vld [vmem:[#allocation2 + $0x1984] ss:$48 sps:$4 sm:$0xff]   ;;  %v5967_v14 = vmax.f32 %v14986_v56, 0.0 }
 0x2dd   : > { %v17957_v50 = vpop.eup %17956  ;;  %v20012_v15 = vmul.f32 %v17955_v46, %v6627_v7  ;;  %17972 = vrcp.f32 %v6351_v60  ;;  %10895 = vmatprep.subr.bf16.mxu1 %v17135_v16  ;;  %v6628_v53 = vsub.f32 %v5956_v62, %v20020_v44  ;;  %v20025_v47 = vpack.c.bf16 %v19990_v52, %v20004_v6  ;;  %v17130_v7 = vld [vmem:[#allocation2 + $0x1920] ss:$48 sps:$4 sm:$0xff]   ;;  %v17133_v25 = vld [vmem:[#allocation2 + $0x1928] ss:$48 sps:$4 sm:$0xff]   ;;  %v17141_v12 = vld [vmem:[#allocation2 + $0x198c] ss:$48 sps:$4 sm:$0xff]  }
 0x2de   : > { %v6352_v1 = vadd.f32 1.0, %v17957_v50  ;;  %v17959_v19 = vpop.eup %17958  ;;  %17974 = vpow2.f32 %v14274_v0  ;;  %v20029_v61 = vpack.c.bf16 %v19996_v5, %v20010_v42  ;;  %v14275_v58 = vmul.f32 -1.442695, %v15089_v55  ;;  %v20032_v62 = vld [vmem:[%s18971_s20 + $0x1b0] sm:$0xff]  ;;  %v20071_v42 = vld [vmem:[%s18971_s20 + $0x1e8] sm:$0xff]  ;;  %v18695_v52 = vld [vmem:[%s18971_s20 + $0x138] sm:$0xff] }
 0x2df   : > { %23292 = vst [vmem:[#allocation56_spill] sm:$0xff] %v20025_v47  ;;  %v17961_v20 = vpop.eup %17960  ;;  %v6357_v34 = vadd.f32 1.0, %v17959_v19  ;;  %v23294_v16 = vmax.f32 %v19931_v63, 0.0  ;;  %v20039_v24 = vadd.f32 %v19467_v2, %v19511_v18  ;;  %10480 = vmatmul.mubr.bf16.gmra.mrb[100].mxu0 %v20025_v47  ;;  %10819 = vmatmul.mubr.bf16.gmra.mrb[100].mxu1 %v20025_v47  ;;  %v15090_v32 = vadd.f32 %v19946_v13, %v19613_v31  ;;  %v23295_v0 = vld [vmem:[#allocation59_spill] sm:$0xff] }
 0x2e0   : > { %23293 = vst [vmem:[#allocation94_spill] sm:$0xff] %v20029_v61  ;;  %17976 = vrcp.f32 %v6352_v1  ;;  %v6358_v46 = vadd.f32 1.0, %v17961_v20  ;;  %v5968_v50 = vmax.f32 %v14987_v59, 0.0  ;;  %v20047_v54 = vadd.f32 %v23295_v0, %v19515_v38  ;;  %10489 = vmatprep.mubr.bf16.mxu0 %v20029_v61  ;;  %10828 = vmatprep.mubr.bf16.mxu1 %v20029_v61  ;;  %v20054_v1 = vld [vmem:[%s18971_s20 + $0x1b8] sm:$0xff]  ;;  %v17136_v19 = vld [vmem:[#allocation2 + $0x1980] ss:$48 sps:$4 sm:$0xff]  }
 0x2e1   : > { %v6633_v60 = vsub.f32 %v23294_v16, %v20032_v62  ;;  %v17963_v56 = vpop.eup %17962  ;;  %17978 = vrcp.f32 %v6357_v34  ;;  %v15091_v2 = vadd.f32 %v19958_v36, %v19617_v23  ;;  %v6634_v13 = vsub.f32 %v5962_v41, %v20054_v1  ;;  %10557 = vmatpush1.bf16.msra.mxu0 %v17130_v7  ;;  %10896 = vmatpush1.bf16.msra.mxu1 %v17133_v25  ;;  %v17139_v20 = vld [vmem:[#allocation2 + $0x1988] ss:$48 sps:$4 sm:$0xff]   ;;  %v20060_v16 = vld [vmem:[%s18971_s20 + $0x1e0] sm:$0xff]  ;;  %v18702_v61 = vld [vmem:[%s18971_s20 + $0x1f0] sm:$0xff] }
 0x2e2   : > { %v17965_v63 = vpop.eup %17964  ;;  %v20057_v55 = vmul.f32 %v17963_v56, %v6628_v53  ;;  %17980 = vrcp.f32 %v6358_v46  ;;  %v14280_v59 = vmul.f32 -1.442695, %v15090_v32  ;;  %v6639_v0 = vsub.f32 %v5967_v14, %v20060_v16  ;;  %10558 = vmatprep.subr.bf16.mxu0 %v17138_v4  ;;  %10897 = vmatprep.subr.bf16.mxu1 %v17141_v12  ;;  %v17144_v41 = vld [vmem:[#allocation2 + $0x19e4] ss:$48 sps:$4 sm:$0xff]   ;;  %v17147_v53 = vld [vmem:[#allocation2 + $0x19ec] ss:$48 sps:$4 sm:$0xff]  }
 0x2e3   : > { %v17967_v34 = vpop.eup %17966  ;;  %v20063_v36 = vmul.f32 %v17965_v63, %v6633_v60  ;;  %17982 = vpow2.f32 %v14275_v58  ;;  %v14281_v5 = vmul.f32 -1.442695, %v15091_v2  ;;  %v5973_v7 = vmax.f32 %v20039_v24, 0.0  ;;  %v17150_v63 = vld [vmem:[#allocation2 + $0x1a44] ss:$48 sps:$4 sm:$0xff]  }
 0x2e4   : > { %v17969_v46 = vpop.eup %17968  ;;  %v20068_v25 = vadd.f32 %v19857_v49, %v19880_v21  ;;  %v6730_v32 = vmul.f32 %v17967_v34, %v6634_v13  ;;  %17984 = vpow2.f32 %v14280_v59  ;;  %v6640_v14 = vsub.f32 %v5968_v50, %v20071_v42  ;;  %v23299_v50 = vld [vmem:[#allocation61_spill] sm:$0xff]  ;;  %v20102_v34 = vld [vmem:[%s18971_s20 + $0x210] sm:$0xff] }
 0x2e5   : > { %v17971_v56 = vpop.eup %17970  ;;  %v5974_v58 = vmax.f32 %v20047_v54, 0.0  ;;  %v6363_v4 = vadd.f32 1.0, %v17969_v46  ;;  %17986 = vpow2.f32 %v14281_v5  ;;  %v20077_v60 = vadd.f32 %v19798_v39, %v19851_v48  ;;  %10559 = vmatpush1.bf16.msra.mxu0 %v17136_v19  ;;  %10898 = vmatpush1.bf16.msra.mxu1 %v17139_v20  ;;  %v17142_v48 = vld [vmem:[#allocation2 + $0x19e0] ss:$48 sps:$4 sm:$0xff]   ;;  %v17153_v20 = vld [vmem:[#allocation2 + $0x1a4c] ss:$48 sps:$4 sm:$0xff]  }
 0x2e6   : > { %23296 = vst [vmem:[#allocation59_spill] sm:$0xff] %v20068_v25  ;;  %v20081_v49 = vadd.f32 %v19961_v17, %v20006_v33  ;;  %v6364_v21 = vadd.f32 1.0, %v17971_v56  ;;  %v15092_v24 = vadd.f32 %v19971_v37, %v19613_v31  ;;  %v14990_v54 = vadd.f32 %v23299_v50, %v19511_v18  ;;  %10560 = vmatprep.subr.bf16.mxu0 %v17144_v41  ;;  %v17145_v17 = vld [vmem:[#allocation2 + $0x19e8] ss:$48 sps:$4 sm:$0xff]  }
 0x2e7   : > { %v17973_v12 = vpop.eup %17972  ;;  %23297 = vst [vmem:[#allocation95_spill] sm:$0xff] %v20077_v60  ;;  %17988 = vrcp.f32 %v6363_v4  ;;  %v15093_v39 = vadd.f32 %v19978_v3, %v19617_v23  ;;  %10899 = vmatprep.subr.bf16.mxu1 %v17147_v53  ;;  %v20093_v31 = vadd.f32 %v19887_v26, %v19942_v10  ;;  %v20097_v33 = vpack.c.bf16 %v20068_v25, %v20077_v60  ;;  %v23302_v23 = vld [vmem:[#allocation63_spill] sm:$0xff]  ;;  %v18672_v53 = vld [vmem:[%s18971_s20 + $0x218] sm:$0xff] }
 0x2e8   : > { %23298 = vst [vmem:[#allocation96_spill] sm:$0xff] %v20081_v49  ;;  %v20087_v2 = vmul.f32 %v17973_v12, %v6639_v0  ;;  %v17975_v5 = vpop.eup %17974  ;;  %17990 = vrcp.f32 %v6364_v21  ;;  %v14286_v37 = vmul.f32 -1.442695, %v15092_v24  ;;  %v14991_v3 = vadd.f32 %v23302_v23, %v19515_v38  ;;  %v23368_v25 = vld [vmem:[#allocation68_spill] sm:$0xff] }
 0x2e9   : > { %23300 = vst [vmem:[#allocation61_spill] sm:$0xff] %v20093_v31  ;;  %23301 = vst [vmem:[#allocation97_spill] sm:$0xff] %v20097_v33  ;;  %v6369_v59 = vadd.f32 1.0, %v17975_v5  ;;  %v14287_v19 = vmul.f32 -1.442695, %v15093_v39  ;;  %v6645_v26 = vsub.f32 %v5973_v7, %v20102_v34  ;;  %10490 = vmatmul.mubr.bf16.gmra.mrb[104].mxu0 %v20097_v33  ;;  %10829 = vmatmul.mubr.bf16.gmra.mrb[104].mxu1 %v20097_v33  ;;  %v5979_v56 = vmax.f32 %v14990_v54, 0.0 }
 0x2ea   : > { %v17977_v13 = vpop.eup %17976  ;;  %17992 = vpow2.f32 %v14286_v37  ;;  %v20109_v0 = vpack.c.bf16 %v20081_v49, %v20093_v31  ;;  %v6646_v46 = vsub.f32 %v5974_v58, %v18672_v53  ;;  %v20113_v4 = vadd.f32 %v20054_v1, %v6730_v32  ;;  %10561 = vmatpush1.bf16.msra.mxu0 %v17142_v48  ;;  %10900 = vmatpush1.bf16.msra.mxu1 %v17145_v17  ;;  %v17148_v7 = vld [vmem:[#allocation2 + $0x1a40] ss:$48 sps:$4 sm:$0xff]   ;;  %v18674_v37 = vld [vmem:[%s18971_s20 + $0x248] sm:$0xff]  ;;  %v23361_v31 = vld [vmem:[#allocation52_spill] sm:$0xff] }
 0x2eb   : > { %v6736_v10 = vmul.f32 %v17977_v13, %v6640_v14  ;;  %v17979_v41 = vpop.eup %17978  ;;  %17994 = vrcp.f32 %v6369_v59  ;;  %v17151_v14 = vld [vmem:[#allocation2 + $0x1a48] ss:$48 sps:$4 sm:$0xff]   ;;  %v14992_v21 = vadd.f32 %v19494_v45, %v19511_v18  ;;  %v20119_v24 = vadd.f32 %v19949_v40, %v19992_v9  ;;  %10562 = vmatprep.subr.bf16.mxu0 %v17150_v63  ;;  %10901 = vmatprep.subr.bf16.mxu1 %v17153_v20  ;;  %v20134_v39 = vld [vmem:[%s18971_s20 + $0x240] sm:$0xff]  ;;  %v23310_v13 = vld [vmem:[#allocation67_spill] sm:$0xff] }
 0x2ec   : > { %23303 = vst [vmem:[#allocation63_spill] sm:$0xff] %v20109_v0  ;;  %23304 = vst [vmem:[#allocation98_spill] sm:$0xff] %v20113_v4  ;;  %v17981_v12 = vpop.eup %17980  ;;  %v20121_v50 = vmul.f32 %v17979_v41, %v6645_v26  ;;  %17996 = vpow2.f32 %v14287_v19  ;;  %10499 = vmatprep.mubr.bf16.mxu0 %v20109_v0  ;;  %10838 = vmatprep.mubr.bf16.mxu1 %v20109_v0  ;;  %v5980_v32 = vmax.f32 %v14991_v3, 0.0  ;;  %v20157_v41 = vld [vmem:[%s18971_s20 + $0x270] sm:$0xff]  ;;  %v18701_v33 = vld [vmem:[%s18971_s20 + $0x1c8] sm:$0xff] }
 0x2ed   : > { %23305 = vst [vmem:[#allocation99_spill] sm:$0xff] %v20119_v24  ;;  %v17983_v1 = vpop.eup %17982  ;;  %v20127_v58 = vadd.f32 %v20020_v44, %v20057_v55  ;;  %v6742_v54 = vmul.f32 %v17981_v12, %v6646_v46  ;;  %v20131_v18 = vadd.f32 %v19872_v35, %v19933_v43  ;;  %v6651_v48 = vsub.f32 %v5979_v56, %v20134_v39 }
 0x2ee   : > { %v17985_v45 = vpop.eup %17984  ;;  %v6370_v40 = vadd.f32 1.0, %v17983_v1  ;;  %10563 = vmatpush1.bf16.msra.mxu0 %v17148_v7  ;;  %10902 = vmatpush1.bf16.msra.mxu1 %v17151_v14  ;;  %v5985_v55 = vmax.f32 %v14992_v21, 0.0  ;;  %v6652_v63 = vsub.f32 %v5980_v32, %v18674_v37  ;;  %v14993_v23 = vadd.f32 %v23310_v13, %v19515_v38  ;;  %v23314_v21 = vld [vmem:[#allocation70_spill] sm:$0xff] }
 0x2ef   : > { %23306 = vst [vmem:[#allocation100_spill] sm:$0xff] %v20127_v58  ;;  %23307 = vst [vmem:[#allocation101_spill] sm:$0xff] %v20131_v18  ;;  %v17987_v9 = vpop.eup %17986  ;;  %v6375_v17 = vadd.f32 1.0, %v17985_v45  ;;  %v20139_v44 = vpack.c.bf16 %v20113_v4, %v20127_v58  ;;  %v20143_v35 = vpack.c.bf16 %v20119_v24, %v20131_v18  ;;  %v20152_v19 = vadd.f32 %v18672_v53, %v6742_v54  ;;  %v17156_v45 = vld [vmem:[#allocation2 + $0x1aa4] ss:$48 sps:$4 sm:$0xff]   ;;  %v20367_v18 = vld [vmem:[%s18971_s20 + $0x108] sm:$0xff] }
 0x2f0   : > { %17998 = vrcp.f32 %v6370_v40  ;;  %v6376_v5 = vadd.f32 1.0, %v17987_v9  ;;  %v6657_v38 = vsub.f32 %v5985_v55, %v20157_v41  ;;  %v20162_v46 = vadd.f32 %v20032_v62, %v20063_v36  ;;  %v17159_v40 = vld [vmem:[#allocation2 + $0x1aac] ss:$48 sps:$4 sm:$0xff]   ;;  %10564 = vmatprep.subr.bf16.mxu0 %v17156_v45 }
 0x2f1   : > { %23308 = vst [vmem:[#allocation102_spill] sm:$0xff] %v20139_v44  ;;  %23309 = vst [vmem:[#allocation103_spill] sm:$0xff] %v20143_v35  ;;  %v17989_v43 = vpop.eup %17988  ;;  %18000 = vrcp.f32 %v6375_v17  ;;  %10500 = vmatmul.mubr.bf16.gmra.mrb[108].mxu0 %v20143_v35  ;;  %10839 = vmatmul.mubr.bf16.gmra.mrb[108].mxu1 %v20143_v35  ;;  %v5986_v7 = vmax.f32 %v14993_v23, 0.0  ;;  %v20165_v14 = vadd.f32 %v20071_v42, %v6736_v10  ;;  %v5991_v1 = vmax.f32 %v23314_v21, 0.0  ;;  %v23316_v62 = vld [vmem:[#allocation72_spill] sm:$0xff] }
 0x2f2   : > { %v17991_v3 = vpop.eup %17990  ;;  %v20148_v59 = vmul.f32 %v17989_v43, %v6651_v48  ;;  %18002 = vrcp.f32 %v6376_v5  ;;  %23311 = vst [vmem:[#allocation67_spill] sm:$0xff] %v20152_v19  ;;  %10509 = vmatprep.mubr.bf16.mxu0 %v20139_v44  ;;  %10848 = vmatprep.mubr.bf16.mxu1 %v20139_v44  ;;  %23312 = vst [vmem:[#allocation104_spill] sm:$0xff] %v20162_v46  ;;  %v20170_v32 = vadd.f32 %v19981_v27, %v20012_v15  ;;  %v17154_v10 = vld [vmem:[#allocation2 + $0x1aa0] ss:$48 sps:$4 sm:$0xff]   ;;  %v17157_v48 = vld [vmem:[#allocation2 + $0x1aa8] ss:$48 sps:$4 sm:$0xff]  }
 0x2f3   : > { %v6748_v20 = vmul.f32 %v17991_v3, %v6652_v63  ;;  %23313 = vst [vmem:[#allocation105_spill] sm:$0xff] %v20165_v14  ;;  %v5992_v36 = vmax.f32 %v23316_v62, 0.0  ;;  %v20177_v42 = vpack.c.bf16 %v20152_v19, %v20165_v14  ;;  %10903 = vmatprep.subr.bf16.mxu1 %v17159_v40  ;;  %v18676_v27 = vld [vmem:[%s18971_s20 + $0x278] sm:$0xff]  ;;  %10565 = vmatpush1.bf16.msra.mxu0 %v17154_v10  ;;  %v20185_v5 = vld [vmem:[%s18971_s20 + $0x2a0] sm:$0xff]  ;;  %v18678_v3 = vld [vmem:[%s18971_s20 + $0x2a8] sm:$0xff] }
 0x2f4   : > { %v17993_v26 = vpop.eup %17992  ;;  %23315 = vst [vmem:[#allocation70_spill] sm:$0xff] %v20170_v32  ;;  %v20181_v17 = vpack.c.bf16 %v20162_v46, %v20170_v32  ;;  %v6658_v15 = vsub.f32 %v5986_v7, %v18676_v27  ;;  %10904 = vmatpush1.bf16.msra.mxu1 %v17157_v48  ;;  %v6663_v43 = vsub.f32 %v5991_v1, %v20185_v5  ;;  %v17162_v63 = vld [vmem:[#allocation2 + $0x1b04] ss:$48 sps:$4 sm:$0xff]   ;;  %v17165_v13 = vld [vmem:[#allocation2 + $0x1b0c] ss:$48 sps:$4 sm:$0xff]  }
 0x2f5   : > { %v17995_v56 = vpop.eup %17994  ;;  %v6381_v53 = vadd.f32 1.0, %v17993_v26  ;;  %23317 = vst [vmem:[#allocation72_spill] sm:$0xff] %v20177_v42  ;;  %v6664_v26 = vsub.f32 %v5992_v36, %v18678_v3  ;;  %v17163_v7 = vld [vmem:[#allocation2 + $0x1b08] ss:$48 sps:$4 sm:$0xff]   ;;  %v20196_v21 = vadd.f32 %v20102_v34, %v20121_v50  ;;  %10566 = vmatprep.subr.bf16.mxu0 %v17162_v63  ;;  %10905 = vmatprep.subr.bf16.mxu1 %v17165_v13  ;;  %v5998_v36 = vmax.f32 %v19538_v57, 0.0  ;;  %v18679_v10 = vld [vmem:[%s18971_s20 + $0x2d0] sm:$0xff] }
 0x2f6   : > { %v17997_v12 = vpop.eup %17996  ;;  %v20172_v54 = vmul.f32 %v17995_v56, %v6657_v38  ;;  %23318 = vst [vmem:[#allocation106_spill] sm:$0xff] %v20181_v17  ;;  %v17160_v56 = vld [vmem:[#allocation2 + $0x1b00] ss:$48 sps:$4 sm:$0xff]   ;;  %v20200_v45 = vadd.f32 %v18674_v37, %v6748_v20  ;;  %v17168_v34 = vld [vmem:[#allocation2 + $0x1b64] ss:$48 sps:$4 sm:$0xff]   ;;  %v23352_v19 = vld [vmem:[#allocation50_spill] sm:$0xff] }
 0x2f7   : > { %18004 = vrcp.f32 %v6381_v53  ;;  %v6382_v9 = vadd.f32 1.0, %v17997_v12  ;;  %v5997_v12 = vmax.f32 %v19532_v28, 0.0  ;;  %23319 = vst [vmem:[#allocation107_spill] sm:$0xff] %v20196_v21  ;;  %10567 = vmatpush1.bf16.msra.mxu0 %v17160_v56  ;;  %v20207_v28 = vadd.f32 %v20060_v16, %v20087_v2  ;;  %v17171_v50 = vld [vmem:[#allocation2 + $0x1b6c] ss:$48 sps:$4 sm:$0xff]   ;;  %v20334_v14 = vld [vmem:[%s18971_s20 + $0xa0] sm:$0xff] }
 0x2f8   : > { %23320 = vst [vmem:[#allocation108_spill] sm:$0xff] %v20200_v45  ;;  %10906 = vmatpush1.bf16.msra.mxu1 %v17163_v7  ;;  %v17166_v37 = vld [vmem:[#allocation2 + $0x1b60] ss:$48 sps:$4 sm:$0xff]   ;;  %v17169_v20 = vld [vmem:[#allocation2 + $0x1b68] ss:$48 sps:$4 sm:$0xff]   ;;  %10568 = vmatprep.subr.bf16.mxu0 %v17168_v34  ;;  %v20229_v56 = vadd.f32 %v20134_v39, %v20148_v59 }
 0x2f9   : > { %18006 = vrcp.f32 %v6382_v9  ;;  %10510 = vmatmul.mubr.bf16.gmra.mrb[112].mxu0 %v20181_v17  ;;  %10849 = vmatmul.mubr.bf16.gmra.mrb[112].mxu1 %v20181_v17  ;;  %23322 = vst [vmem:[#allocation110_spill] sm:$0xff] %v20207_v28  ;;  %v6669_v48 = vsub.f32 %v5997_v12, %v18679_v10  ;;  %v18680_v16 = vld [vmem:[%s18971_s20 + $0x2d8] sm:$0xff]  ;;  %v17172_v13 = vld [vmem:[#allocation2 + $0x1bc0] ss:$48 sps:$4 sm:$0xff]   ;;  %v17180_v12 = vld [vmem:[#allocation2 + $0x1c24] ss:$48 sps:$4 sm:$0xff]  }
 0x2fa   : > { %v17999_v55 = vpop.eup %17998  ;;  %10519 = vmatprep.mubr.bf16.mxu0 %v20177_v42  ;;  %10858 = vmatprep.mubr.bf16.mxu1 %v20177_v42  ;;  %v6670_v2 = vsub.f32 %v5998_v36, %v18680_v16  ;;  %23326 = vst [vmem:[#allocation114_spill] sm:$0xff] %v20229_v56  ;;  %v17183_v36 = vld [vmem:[#allocation2 + $0x1c2c] ss:$48 sps:$4 sm:$0xff]   ;;  %v17178_v34 = vld [vmem:[#allocation2 + $0x1c20] ss:$48 sps:$4 sm:$0xff]  }
 0x2fb   : > { %v18001_v23 = vpop.eup %18000  ;;  %v6754_v38 = vmul.f32 %v17999_v55, %v6658_v15  ;;  %10907 = vmatprep.subr.bf16.mxu1 %v17171_v50  ;;  %10569 = vmatpush1.bf16.msra.mxu0 %v17166_v37  ;;  %v17174_v55 = vld [vmem:[#allocation2 + $0x1bc4] ss:$48 sps:$4 sm:$0xff]   ;;  %v17181_v50 = vld [vmem:[#allocation2 + $0x1c28] ss:$48 sps:$4 sm:$0xff]   ;;  %v17189_v59 = vld [vmem:[#allocation2 + $0x1c8c] ss:$48 sps:$4 sm:$0xff]  }
 0x2fc   : > { %v18003_v53 = vpop.eup %18002  ;;  %v20198_v1 = vmul.f32 %v18001_v23, %v6663_v43  ;;  %10908 = vmatpush1.bf16.msra.mxu1 %v17169_v20  ;;  %v17177_v43 = vld [vmem:[#allocation2 + $0x1bcc] ss:$48 sps:$4 sm:$0xff]   ;;  %v17175_v23 = vld [vmem:[#allocation2 + $0x1bc8] ss:$48 sps:$4 sm:$0xff]   ;;  %10570 = vmatprep.subr.bf16.mxu0 %v17174_v55  ;;  %v17186_v39 = vld [vmem:[#allocation2 + $0x1c84] ss:$48 sps:$4 sm:$0xff]  }
 0x2fd   : > { %v20202_v40 = vadd.f32 %v18676_v27, %v6754_v38  ;;  %v6760_v62 = vmul.f32 %v18003_v53, %v6664_v26  ;;  %v20216_v27 = vpack.c.bf16 %v20196_v21, %v20207_v28  ;;  %v20225_v26 = vadd.f32 %v20157_v41, %v20172_v54  ;;  %10909 = vmatprep.subr.bf16.mxu1 %v17177_v43  ;;  %v17201_v55 = vld [vmem:[#allocation2 + $0x1d4c] ss:$48 sps:$4 sm:$0xff]   ;;  %v17204_v43 = vld [vmem:[#allocation2 + $0x1da4] ss:$48 sps:$4 sm:$0xff]  }
 0x2fe   : > { %v20251_v20 = vadd.f32 %v20185_v5, %v20198_v1  ;;  %v17196_v5 = vld [vmem:[#allocation2 + $0x1d40] ss:$48 sps:$4 sm:$0xff]   ;;  %v17199_v1 = vld [vmem:[#allocation2 + $0x1d48] ss:$48 sps:$4 sm:$0xff]  }
 0x2ff   : > { %23321 = vst [vmem:[#allocation109_spill] sm:$0xff] %v20202_v40  ;;  %v20211_v9 = vpack.c.bf16 %v20202_v40, %v20200_v45  ;;  %23324 = vst [vmem:[#allocation112_spill] sm:$0xff] %v20216_v27  ;;  %10571 = vmatpush1.bf16.msra.mxu0 %v17172_v13  ;;  %v20231_v7 = vadd.f32 %v18678_v3, %v6760_v62  ;;  %v20237_v41 = vpack.c.bf16 %v20225_v26, %v20229_v56  ;;  %v17184_v3 = vld [vmem:[#allocation2 + $0x1c80] ss:$48 sps:$4 sm:$0xff]   ;;  %v17187_v62 = vld [vmem:[#allocation2 + $0x1c88] ss:$48 sps:$4 sm:$0xff]  }
 0x300   : > { %23325 = vst [vmem:[#allocation113_spill] sm:$0xff] %v20225_v26  ;;  %10910 = vmatpush1.bf16.msra.mxu1 %v17175_v23  ;;  %10572 = vmatprep.subr.bf16.mxu0 %v17180_v12  ;;  %23332 = vst [vmem:[#allocation120_spill] sm:$0xff] %v20251_v20  ;;  %v17202_v13 = vld [vmem:[#allocation2 + $0x1da0] ss:$48 sps:$4 sm:$0xff]   ;;  %v17205_v23 = vld [vmem:[#allocation2 + $0x1da8] ss:$48 sps:$4 sm:$0xff]  }
 0x301   : > { %23323 = vst [vmem:[#allocation111_spill] sm:$0xff] %v20211_v9  ;;  %v18005_v57 = vpop.eup %18004  ;;  %10520 = vmatmul.mubr.bf16.gmra.mrb[116].mxu0 %v20216_v27  ;;  %10859 = vmatmul.mubr.bf16.gmra.mrb[116].mxu1 %v20216_v27  ;;  %23327 = vst [vmem:[#allocation115_spill] sm:$0xff] %v20231_v7  ;;  %v17213_v12 = vld [vmem:[#allocation2 + $0x1e0c] ss:$48 sps:$4 sm:$0xff]   ;;  %v23350_v45 = vld [vmem:[#allocation45_spill] sm:$0xff] }
 0x302   : > { %v6765_v15 = vmul.f32 %v18005_v57, %v6669_v48  ;;  %10529 = vmatprep.mubr.bf16.mxu0 %v20211_v9  ;;  %10868 = vmatprep.mubr.bf16.mxu1 %v20211_v9  ;;  %23329 = vst [vmem:[#allocation117_spill] sm:$0xff] %v20237_v41  ;;  %v17192_v57 = vld [vmem:[#allocation2 + $0x1ce4] ss:$48 sps:$4 sm:$0xff]   ;;  %v23349_v26 = vld [vmem:[#allocation42_spill] sm:$0xff]  ;;  %v15014_v56 = vadd.f32 %v23350_v45, %v19449_v22  ;;  %v20328_v21 = vld [vmem:[%s18971_s20 + $0x78] sm:$0xff] }
 0x303   : > { %v18007_v63 = vpop.eup %18006  ;;  %10911 = vmatprep.subr.bf16.mxu1 %v17183_v36  ;;  %10573 = vmatpush1.bf16.msra.mxu0 %v17178_v34  ;;  %v23334_v36 = vld [vmem:[#allocation13_spill] sm:$0xff]  ;;  %v18699_v9 = vld [vmem:[%s18971_s20 + $0x198] sm:$0xff] }
 0x304   : > { %v6766_v38 = vmul.f32 %v18007_v63, %v6670_v2  ;;  %10912 = vmatpush1.bf16.msra.mxu1 %v17181_v50  ;;  %v20247_v37 = vadd.f32 %v18679_v10, %v6765_v15  ;;  %10574 = vmatprep.subr.bf16.mxu0 %v17186_v39  ;;  %v17190_v10 = vld [vmem:[#allocation2 + $0x1ce0] ss:$48 sps:$4 sm:$0xff]   ;;  %v17193_v2 = vld [vmem:[#allocation2 + $0x1ce8] ss:$48 sps:$4 sm:$0xff]   ;;  %v17198_v15 = vld [vmem:[#allocation2 + $0x1d44] ss:$48 sps:$4 sm:$0xff]   ;;  %v14998_v34 = vadd.f32 %v23334_v36, %v19449_v22 }
 0x305   : > { %10913 = vmatprep.subr.bf16.mxu1 %v17189_v59  ;;  %v17207_v63 = vld [vmem:[#allocation2 + $0x1dac] ss:$48 sps:$4 sm:$0xff]   ;;  %23353 = vst [vmem:[#allocation13_spill] sm:$0xff] %v20334_v14  ;;  %v20359_v32 = vld [vmem:[%s18971_s20 + $0x100] sm:$0xff] }
 0x306   : > { %v20233_v53 = vadd.f32 %v18680_v16, %v6766_v38  ;;  %23331 = vst [vmem:[#allocation119_spill] sm:$0xff] %v20247_v37  ;;  %v20255_v48 = vpack.c.bf16 %v20247_v37, %v20251_v20  ;;  %v17195_v16 = vld [vmem:[#allocation2 + $0x1cec] ss:$48 sps:$4 sm:$0xff]   ;;  %v17210_v38 = vld [vmem:[#allocation2 + $0x1e04] ss:$48 sps:$4 sm:$0xff]  }
 0x307   : > { %10575 = vmatpush1.bf16.msra.mxu0 %v17184_v3  ;;  %v23335_v50 = vld [vmem:[#allocation14_spill] sm:$0xff]  ;;  %v23336_v59 = vld [vmem:[#allocation16_spill] sm:$0xff]  ;;  %v23377_v17 = vld [vmem:[#allocation57_spill] sm:$0xff] }
 0x308   : > { %23328 = vst [vmem:[#allocation116_spill] sm:$0xff] %v20233_v53  ;;  %v20241_v54 = vpack.c.bf16 %v20233_v53, %v20231_v7  ;;  %10914 = vmatpush1.bf16.msra.mxu1 %v17187_v62  ;;  %23333 = vst [vmem:[#allocation121_spill] sm:$0xff] %v20255_v48  ;;  %10576 = vmatprep.subr.bf16.mxu0 %v17192_v57  ;;  %v14999_v39 = vadd.f32 %v23335_v50, %v19453_v11  ;;  %v23337_v62 = vld [vmem:[#allocation18_spill] sm:$0xff]  ;;  %v23346_v37 = vld [vmem:[#allocation36_spill] sm:$0xff] }
 0x309   : > { %10530 = vmatmul.mubr.bf16.gmra.mrb[120].mxu0 %v20237_v41  ;;  %10869 = vmatmul.mubr.bf16.gmra.mrb[120].mxu1 %v20237_v41  ;;  %v15000_v3 = vadd.f32 %v23336_v59, %v19449_v22  ;;  %v15001_v57 = vadd.f32 %v23337_v62, %v19453_v11  ;;  %v20304_v7 = vld [vmem:[%s18971_s20 + $0x48] sm:$0xff]  ;;  %v18698_v41 = vld [vmem:[%s18971_s20 + $0x190] sm:$0xff] }
 0x30a   : > { %23330 = vst [vmem:[#allocation118_spill] sm:$0xff] %v20241_v54  ;;  %10539 = vmatprep.mubr.bf16.mxu0 %v20241_v54  ;;  %10878 = vmatprep.mubr.bf16.mxu1 %v20241_v54 }
 0x30b   : > { %10915 = vmatprep.subr.bf16.mxu1 %v17195_v16  ;;  %10577 = vmatpush1.bf16.msra.mxu0 %v17190_v10  ;;  %v5909_v16 = vmax.f32 %v14998_v34, 0.0  ;;  %v5910_v10 = vmax.f32 %v14999_v39, 0.0  ;;  %v23343_v34 = vld [vmem:[#allocation30_spill] sm:$0xff]  ;;  %v20280_v39 = vld [vmem:[%s18971_s20 + $0x10] sm:$0xff] }
 0x30c   : > { %10916 = vmatpush1.bf16.msra.mxu1 %v17193_v2  ;;  %10578 = vmatprep.subr.bf16.mxu0 %v17198_v15  ;;  %v5915_v2 = vmax.f32 %v15000_v3, 0.0  ;;  %v23338_v15 = vld [vmem:[#allocation20_spill] sm:$0xff]  ;;  %v15007_v50 = vadd.f32 %v23343_v34, %v19453_v11 }
 0x30d   : > { %10917 = vmatprep.subr.bf16.mxu1 %v17201_v55  ;;  %v15002_v55 = vadd.f32 %v23338_v15, %v19449_v22  ;;  %v20283_v59 = vsub.f32 %v5909_v16, %v20280_v39  ;;  %v20286_v3 = vld [vmem:[%s18971_s20 + $0x18] sm:$0xff]  ;;  %v23345_v16 = vld [vmem:[#allocation34_spill] sm:$0xff] }
 0x30e   : > { %v20289_v62 = vsub.f32 %v5910_v10, %v20286_v3  ;;  %v15009_v53 = vadd.f32 %v23345_v16, %v19453_v11  ;;  %v15010_v10 = vadd.f32 %v23346_v37, %v19449_v22  ;;  %v5934_v40 = vmax.f32 %v15007_v50, 0.0  ;;  %v23351_v50 = vld [vmem:[#allocation47_spill] sm:$0xff] }
 0x30f   : > { %10579 = vmatpush1.bf16.msra.mxu0 %v17196_v5  ;;  %v23339_v5 = vld [vmem:[#allocation22_spill] sm:$0xff]  ;;  %v15013_v37 = vadd.f32 %v23349_v26, %v19453_v11 }
 0x310   : > { %10918 = vmatpush1.bf16.msra.mxu1 %v17199_v1  ;;  %10580 = vmatprep.subr.bf16.mxu0 %v17204_v43  ;;  %v15003_v1 = vadd.f32 %v23339_v5, %v19453_v11  ;;  %v23340_v43 = vld [vmem:[#allocation24_spill] sm:$0xff]  ;;  %v5921_v5 = vmax.f32 %v15002_v55, 0.0  ;;  %v5945_v28 = vmax.f32 %v15010_v10, 0.0 }
 0x311   : > { %10540 = vmatmul.mubr.bf16.gmra.mrb[124].mxu0 %v20255_v48  ;;  %10879 = vmatmul.mubr.bf16.gmra.mrb[124].mxu1 %v20255_v48  ;;  %v5952_v58 = vmax.f32 %v15013_v37, 0.0  ;;  %23359 = vst [vmem:[#allocation24_spill] sm:$0xff] %v20359_v32  ;;  %v23365_v37 = vld [vmem:[#allocation64_spill] sm:$0xff]  ;;  %v18697_v48 = vld [vmem:[%s18971_s20 + $0x168] sm:$0xff] }
 0x312   : > { %10919 = vmatprep.subr.bf16.mxu1 %v17207_v63  ;;  %v15004_v63 = vadd.f32 %v23340_v43, %v19449_v22  ;;  %v23344_v43 = vld [vmem:[#allocation32_spill] sm:$0xff] }
 0x313   : > { %10581 = vmatpush1.bf16.msra.mxu0 %v17202_v13  ;;  %v5916_v13 = vmax.f32 %v15001_v57, 0.0  ;;  %v20292_v57 = vld [vmem:[%s18971_s20 + $0x40] sm:$0xff]  ;;  %v20399_v54 = vsub.f32 %v5952_v58, %v18697_v48 }
 0x314   : > { %10920 = vmatpush1.bf16.msra.mxu1 %v17205_v23  ;;  %10663 = vmatprep.subr.bf16.mxu0 %v17210_v38  ;;  %v23341_v23 = vld [vmem:[#allocation26_spill] sm:$0xff]  ;;  %v20295_v15 = vsub.f32 %v5915_v2, %v20292_v57  ;;  %v5927_v34 = vmax.f32 %v15004_v63, 0.0  ;;  %v23348_v63 = vld [vmem:[#allocation40_spill] sm:$0xff] }
 0x315   : > { %11002 = vmatprep.subr.bf16.mxu1 %v17213_v12  ;;  %v15005_v38 = vadd.f32 %v23341_v23, %v19453_v11  ;;  %v23342_v12 = vld [vmem:[#allocation28_spill] sm:$0xff]  ;;  %v15008_v23 = vadd.f32 %v23344_v43, %v19449_v22  ;;  %v20307_v2 = vsub.f32 %v5916_v13, %v20304_v7  ;;  %v23347_v43 = vld [vmem:[#allocation38_spill] sm:$0xff]  ;;  %v15012_v16 = vadd.f32 %v23348_v63, %v19449_v22  ;;  %v20318_v13 = vld [vmem:[%s18971_s20 + $0x70] sm:$0xff] }
 0x316   : > { %v15006_v36 = vadd.f32 %v23342_v12, %v19449_v22  ;;  %v5922_v12 = vmax.f32 %v15003_v1, 0.0  ;;  %v15011_v1 = vadd.f32 %v23347_v43, %v19453_v11  ;;  %v15015_v43 = vadd.f32 %v23351_v50, %v19453_v11  ;;  %23362 = vst [vmem:[#allocation28_spill] sm:$0xff] %v20367_v18  ;;  %23372 = vst [vmem:[#allocation38_spill] sm:$0xff] %v20399_v54  ;;  %v23395_v54 = vld [vmem:[#allocation82_spill] sm:$0xff] }
 0x317   : > { %v5928_v20 = vmax.f32 %v15005_v38, 0.0  ;;  %v20321_v38 = vsub.f32 %v5921_v5, %v20318_v13  ;;  %v15016_v63 = vadd.f32 %v23352_v19, %v19449_v22  ;;  %v20337_v45 = vsub.f32 %v5927_v34, %v20334_v14  ;;  %v20346_v22 = vld [vmem:[%s18971_s20 + $0xd0] sm:$0xff]  ;;  %v882_v34 = vld [vmem:[#allocation4 + $0x8] sm:$0xf] }
 0x318   : > { %v5933_v55 = vmax.f32 %v15006_v36, 0.0  ;;  %v5939_v36 = vmax.f32 %v15008_v23, 0.0  ;;  %v20331_v26 = vsub.f32 %v5922_v12, %v20328_v21  ;;  %v5940_v5 = vmax.f32 %v15009_v53, 0.0  ;;  %v20340_v23 = vld [vmem:[%s18971_s20 + $0xa8] sm:$0xff]  ;;  %23355 = vst [vmem:[#allocation16_spill] sm:$0xff] %v20346_v22  ;;  %v20352_v12 = vld [vmem:[%s18971_s20 + $0xd8] sm:$0xff] }
 0x319   : > { %23354 = vst [vmem:[#allocation14_spill] sm:$0xff] %v20340_v23  ;;  %v20343_v50 = vsub.f32 %v5928_v20, %v20340_v23  ;;  %23357 = vst [vmem:[#allocation20_spill] sm:$0xff] %v20352_v12  ;;  %v20355_v4 = vsub.f32 %v5934_v40, %v20352_v12  ;;  %v5946_v10 = vmax.f32 %v15011_v1, 0.0  ;;  %v5951_v46 = vmax.f32 %v15012_v16, 0.0 }
 0x31a   : > { %v20349_v19 = vsub.f32 %v5933_v55, %v20346_v22  ;;  %v5957_v20 = vmax.f32 %v15014_v56, 0.0  ;;  %v20362_v49 = vsub.f32 %v5939_v36, %v20359_v32  ;;  %v5958_v55 = vmax.f32 %v15015_v43, 0.0  ;;  %v18693_v56 = vld [vmem:[%s18971_s20 + $0x130] sm:$0xff]  ;;  %v23366_v43 = vld [vmem:[#allocation48_spill] sm:$0xff] }
 0x31b   : > { %23358 = vst [vmem:[#allocation22_spill] sm:$0xff] %v20355_v4  ;;  %v5963_v24 = vmax.f32 %v15016_v63, 0.0  ;;  %v15017_v40 = vadd.f32 %v23361_v31, %v19453_v11  ;;  %v20370_v1 = vsub.f32 %v5940_v5, %v20367_v18  ;;  %v20373_v16 = vsub.f32 %v5945_v28, %v18693_v56  ;;  %v18694_v63 = vld [vmem:[#allocation4] sm:$0xff] }
 0x31c   : > { %23356 = vst [vmem:[#allocation18_spill] sm:$0xff] %v20349_v19  ;;  %23360 = vst [vmem:[#allocation26_spill] sm:$0xff] %v20362_v49  ;;  %v20376_v36 = vrot.slane %v882_v34, %v23365_v37  ;;  %v20379_v53 = vrot.slane %v882_v34, %v23366_v43  ;;  %v23367_v11 = vsub.s32 4, %v19417_v30  ;;  %v20387_v60 = vrot.slane %v882_v34, %v23368_v25  ;;  %v23369_v28 = vld [vmem:[#allocation53_spill] sm:$0xff] }
 0x31d   : > { %23363 = vst [vmem:[#allocation30_spill] sm:$0xff] %v20370_v1  ;;  %23364 = vst [vmem:[#allocation32_spill] sm:$0xff] %v20373_v16  ;;  %v20390_v56 = vrot.slane %v882_v34, %v23369_v28  ;;  %v20393_v6 = vsub.f32 %v5946_v10, %v18695_v52  ;;  %v18696_v37 = vld [vmem:[%s18971_s20 + $0x160] sm:$0xff]  ;;  %v20405_v5 = vsub.f32 %v5958_v55, %v18699_v9  ;;  %v5964_v34 = vmax.f32 %v15017_v40, 0.0  ;;  %v23376_v28 = vld [vmem:[#allocation55_spill] sm:$0xff] }
 0x31e   : > { %v20383_v31 = vrot.slane %v18694_v63, %v23367_v11  ;;  %v20396_v43 = vsub.f32 %v5951_v46, %v18696_v37  ;;  %v20402_v11 = vsub.f32 %v5957_v20, %v18698_v41  ;;  %v18700_v25 = vld [vmem:[%s18971_s20 + $0x1c0] sm:$0xff]  ;;  %v5969_v42 = vmax.f32 %v23376_v28, 0.0  ;;  %v23378_v37 = vld [vmem:[#allocation58_spill] sm:$0xff] }
 0x31f   : > { %23370 = vst [vmem:[#allocation34_spill] sm:$0xff] %v20393_v6  ;;  %23374 = vst [vmem:[#allocation42_spill] sm:$0xff] %v20405_v5  ;;  %v20408_v27 = vsub.f32 %v5963_v24, %v18700_v25  ;;  %v5970_v46 = vmax.f32 %v23377_v17, 0.0  ;;  %v5975_v44 = vmax.f32 %v23378_v37, 0.0  ;;  %v23379_v25 = vsub.s32 5, %v19417_v30 }
 0x320   : > { %23371 = vst [vmem:[#allocation36_spill] sm:$0xff] %v20396_v43  ;;  %23373 = vst [vmem:[#allocation40_spill] sm:$0xff] %v20402_v11  ;;  %v20417_v9 = vadd.f32 %v19619_v29, %v20383_v31 }
 0x321   : > { %23375 = vst [vmem:[#allocation45_spill] sm:$0xff] %v20408_v27  ;;  %v20421_v24 = vrot.slane %v18694_v63, %v23379_v25 }
 0x323   : > { %v20513_v43 = vadd.f32 %v23395_v54, %v20421_v24 }
 0x35a   : > { %v5489_v52 = vpop.f32.mrb[64].mxu0  ;;  %v5828_v10 = vpop.f32.mrb[64].mxu1 }
 0x35b   : > { %v15094_v58 = vadd.f32 %v5489_v52, %v20376_v36  ;;  %v15126_v41 = vadd.f32 %v5828_v10, %v20379_v53  ;;  %v5491_v48 = vpop.f32.mrb[65].mxu0  ;;  %v5830_v20 = vpop.f32.mrb[65].mxu1 }
 0x35c   : > { %v15095_v55 = vadd.f32 %v5491_v48, %v20387_v60  ;;  %v15127_v17 = vadd.f32 %v5830_v20, %v20390_v56  ;;  %v5493_v40 = vpop.f32.mrb[66].mxu0  ;;  %v5832_v28 = vpop.f32.mrb[66].mxu1  ;;  %v20430_v20 = vsub.f32 %v5964_v34, %v18701_v33  ;;  %v23385_v34 = vld [vmem:[#allocation62_spill] sm:$0xff] }
 0x35d   : > { %v14198_v52 = vmul.f32 -1.442695, %v15094_v58  ;;  %v14200_v10 = vmul.f32 -1.442695, %v15126_v41  ;;  %v15096_v37 = vadd.f32 %v5493_v40, %v20376_v36  ;;  %v15128_v29 = vadd.f32 %v5832_v28, %v20379_v53  ;;  %v5495_v35 = vpop.f32.mrb[67].mxu0  ;;  %v5834_v0 = vpop.f32.mrb[67].mxu1 }
 0x35e   : > { %v14199_v30 = vmul.f32 -1.442695, %v15095_v55  ;;  %v14201_v63 = vmul.f32 -1.442695, %v15127_v17  ;;  %v15097_v25 = vadd.f32 %v5495_v35, %v20387_v60  ;;  %v15129_v48 = vadd.f32 %v5834_v0, %v20390_v56  ;;  %23380 = vst [vmem:[#allocation47_spill] sm:$0xff] %v20430_v20  ;;  %v18703_v40 = vld [vmem:[%s18971_s20 + $0x1f8] sm:$0xff] }
 0x35f   : > { %v20433_v58 = vsub.f32 %v5969_v42, %v18702_v61  ;;  %18008 = vpow2.f32 %v14198_v52  ;;  %v14204_v41 = vmul.f32 -1.442695, %v15096_v37  ;;  %v20436_v47 = vsub.f32 %v5970_v46, %v18703_v40  ;;  %v18704_v17 = vld [vmem:[%s18971_s20 + $0x220] sm:$0xff]  ;;  %v23384_v0 = vld [vmem:[#allocation60_spill] sm:$0xff] }
 0x360   : > { %v15031_v28 = vadd.f32 %v19624_v8, %v20421_v24  ;;  %18010 = vpow2.f32 %v14200_v10  ;;  %v14206_v55 = vmul.f32 -1.442695, %v15128_v29  ;;  %v20441_v35 = vsub.f32 %v5975_v44, %v18704_v17 }
 0x361   : > { %23381 = vst [vmem:[#allocation50_spill] sm:$0xff] %v20433_v58  ;;  %23382 = vst [vmem:[#allocation52_spill] sm:$0xff] %v20436_v47  ;;  %v5976_v27 = vmax.f32 %v23384_v0, 0.0  ;;  %18012 = vpow2.f32 %v14199_v30  ;;  %v14205_v33 = vmul.f32 -1.442695, %v15097_v25  ;;  %v5981_v61 = vmax.f32 %v23385_v34, 0.0 }
 0x362   : > { %23383 = vst [vmem:[#allocation55_spill] sm:$0xff] %v20441_v35  ;;  %v5911_v42 = vmax.f32 %v20417_v9, 0.0  ;;  %18014 = vpow2.f32 %v14201_v63  ;;  %v14207_v52 = vmul.f32 -1.442695, %v15129_v48  ;;  %v5499_v46 = vpop.f32.mrb[68].mxu0  ;;  %v5838_v37 = vpop.f32.mrb[68].mxu1  ;;  %v20448_v8 = vadd.f32 %v19627_v51, %v20383_v31 }
 0x363   : > { %18016 = vpow2.f32 %v14204_v41  ;;  %v15098_v44 = vadd.f32 %v5499_v46, %v20376_v36  ;;  %v15130_v10 = vadd.f32 %v5838_v37, %v20379_v53  ;;  %v5501_v29 = vpop.f32.mrb[69].mxu0  ;;  %v5840_v30 = vpop.f32.mrb[69].mxu1  ;;  %v5912_v25 = vmax.f32 %v15031_v28, 0.0  ;;  %v23386_v28 = vld [vmem:[#allocation76_spill] sm:$0xff] }
 0x364   : > { %18018 = vpow2.f32 %v14206_v55  ;;  %v15099_v40 = vadd.f32 %v5501_v29, %v20387_v60  ;;  %v15131_v9 = vadd.f32 %v5840_v30, %v20390_v56  ;;  %v5503_v63 = vpop.f32.mrb[70].mxu0  ;;  %v20454_v48 = vpop.f32.mrb[70].mxu1  ;;  %v15033_v55 = vadd.f32 %v23386_v28, %v20421_v24  ;;  %v23387_v29 = vld [vmem:[#allocation77_spill] sm:$0xff]  ;;  %v23391_v28 = vld [vmem:[#allocation79_spill] sm:$0xff] }
 0x365   : > { %18020 = vpow2.f32 %v14205_v33  ;;  %v14210_v51 = vmul.f32 -1.442695, %v15098_v44  ;;  %v14212_v17 = vmul.f32 -1.442695, %v15130_v10  ;;  %v15100_v41 = vadd.f32 %v5503_v63, %v20376_v36  ;;  %v20457_v0 = vpop.f32.mrb[71].mxu0  ;;  %v20459_v34 = vpop.f32.mrb[71].mxu1 }
 0x366   : > { %18022 = vpow2.f32 %v14207_v52  ;;  %v14211_v46 = vmul.f32 -1.442695, %v15099_v40  ;;  %v14213_v37 = vmul.f32 -1.442695, %v15131_v9  ;;  %v15034_v30 = vadd.f32 %v23387_v29, %v20383_v31  ;;  %v23388_v33 = vld [vmem:[#allocation78_spill] sm:$0xff]  ;;  %v18706_v40 = vld [vmem:[%s18971_s20 + $0x250] sm:$0xff] }
 0x367   : > { %v15035_v44 = vadd.f32 %v23388_v33, %v20421_v24  ;;  %18024 = vpow2.f32 %v14210_v51  ;;  %v14216_v10 = vmul.f32 -1.442695, %v15100_v41  ;;  %v18705_v63 = vld [vmem:[%s18971_s20 + $0x228] sm:$0xff]  ;;  %v15036_v20 = vadd.f32 %v23391_v28, %v20383_v31  ;;  %v18707_v29 = vld [vmem:[%s18971_s20 + $0x20] sm:$0xff] }
 0x368   : > { %v20468_v35 = vsub.f32 %v5976_v27, %v18705_v63  ;;  %18026 = vpow2.f32 %v14212_v17  ;;  %v20474_v9 = vsub.f32 %v5981_v61, %v18706_v40  ;;  %v20477_v5 = vsub.f32 %v5911_v42, %v18707_v29  ;;  %v18708_v41 = vld [vmem:[%s18971_s20 + $0x28] sm:$0xff] }
 0x369   : > { %v18009_v52 = vpop.eup %18008  ;;  %v5917_v33 = vmax.f32 %v20448_v8, 0.0  ;;  %18028 = vpow2.f32 %v14211_v46  ;;  %v20481_v27 = vsub.f32 %v5912_v25, %v18708_v41  ;;  %v5918_v63 = vmax.f32 %v15033_v55, 0.0  ;;  %v23393_v55 = vld [vmem:[#allocation80_spill] sm:$0xff] }
 0x36a   : > { %23389 = vst [vmem:[#allocation57_spill] sm:$0xff] %v20468_v35  ;;  %23392 = vst [vmem:[#allocation58_spill] sm:$0xff] %v20474_v9  ;;  %v18011_v51 = vpop.eup %18010  ;;  %v6293_v58 = vadd.f32 1.0, %v18009_v52  ;;  %18030 = vpow2.f32 %v14213_v37  ;;  %v20483_v35 = vpop.f32.mrb[72].mxu0  ;;  %v5923_v28 = vmax.f32 %v15034_v30, 0.0  ;;  %v5924_v40 = vmax.f32 %v15035_v44, 0.0 }
 0x36b   : > { %v20485_v17 = vpop.f32.mrb[72].mxu1  ;;  %v18013_v61 = vpop.eup %18012  ;;  %v6295_v42 = vadd.f32 1.0, %v18011_v51  ;;  %18032 = vpow2.f32 %v14216_v10  ;;  %v5929_v46 = vmax.f32 %v15036_v20, 0.0  ;;  %v20493_v37 = vadd.f32 %v23393_v55, %v20421_v24  ;;  %v18709_v44 = vld [vmem:[%s18971_s20 + $0x50] sm:$0xff]  ;;  %v23394_v51 = vld [vmem:[#allocation81_spill] sm:$0xff] }
 0x36c   : > { %v20487_v29 = vpop.f32.mrb[73].mxu0  ;;  %v20489_v8 = vpop.f32.mrb[73].mxu1  ;;  %18034 = vrcp.f32 %v6293_v58  ;;  %v6294_v52 = vadd.f32 1.0, %v18013_v61  ;;  %v20500_v10 = vsub.f32 %v5917_v33, %v18709_v44  ;;  %v20504_v47 = vadd.f32 %v23394_v51, %v20383_v31  ;;  %v18710_v61 = vld [vmem:[%s18971_s20 + $0x58] sm:$0xff]  ;;  %v18711_v51 = vld [vmem:[%s18971_s20 + $0x80] sm:$0xff] }
 0x36d   : > { %v18015_v25 = vpop.eup %18014  ;;  %v20495_v41 = vpop.f32.mrb[74].mxu0  ;;  %18036 = vrcp.f32 %v6295_v42  ;;  %v20509_v11 = vsub.f32 %v5918_v63, %v18710_v61  ;;  %v20518_v22 = vsub.f32 %v5923_v28, %v18711_v51  ;;  %v18712_v42 = vld [vmem:[%s18971_s20 + $0x88] sm:$0xff]  ;;  %v18713_v63 = vld [vmem:[%s18971_s20 + $0xb0] sm:$0xff]  ;;  %v15132_v28 = vadd.f32 %v20454_v48, %v20379_v53 }
 0x36e   : > { %v20497_v9 = vpop.f32.mrb[74].mxu1  ;;  %v18017_v30 = vpop.eup %18016  ;;  %v6296_v20 = vadd.f32 1.0, %v18015_v25  ;;  %18038 = vrcp.f32 %v6294_v52  ;;  %v20521_v25 = vsub.f32 %v5924_v40, %v18712_v42  ;;  %v20524_v61 = vsub.f32 %v5929_v46, %v18713_v63 }
 0x36f   : > { %v20506_v55 = vpop.f32.mrb[75].mxu0  ;;  %v18019_v58 = vpop.eup %18018  ;;  %v6299_v33 = vadd.f32 1.0, %v18017_v30  ;;  %v15101_v46 = vadd.f32 %v20457_v0, %v20387_v60  ;;  %v15102_v18 = vadd.f32 %v20483_v35, %v20376_v36  ;;  %v14218_v54 = vmul.f32 -1.442695, %v15132_v28 }
 0x370   : > { %v20515_v44 = vpop.f32.mrb[75].mxu1  ;;  %v18021_v6 = vpop.eup %18020  ;;  %18040 = vrcp.f32 %v6296_v20  ;;  %v6301_v12 = vadd.f32 1.0, %v18019_v58  ;;  %v15134_v1 = vadd.f32 %v20485_v17, %v20379_v53  ;;  %v15103_v35 = vadd.f32 %v20487_v29, %v20387_v60 }
 0x371   : > { %v18023_v32 = vpop.eup %18022  ;;  %18042 = vrcp.f32 %v6299_v33  ;;  %v6300_v52 = vadd.f32 1.0, %v18021_v6  ;;  %v23396_v6 = vld [vmem:[#allocation15_spill] sm:$0xff]  ;;  %v14217_v4 = vmul.f32 -1.442695, %v15101_v46  ;;  %v15135_v17 = vadd.f32 %v20489_v8, %v20390_v56 }
 0x372   : > { %v18025_v30 = vpop.eup %18024  ;;  %18044 = vrcp.f32 %v6301_v12  ;;  %v6302_v16 = vadd.f32 1.0, %v18023_v32  ;;  %v5519_v51 = vpop.f32.mrb[76].mxu0  ;;  %v20535_v33 = vadd.f32 %v23396_v6, %v20383_v31  ;;  %v15133_v32 = vadd.f32 %v20459_v34, %v20390_v56 }
 0x373   : > { %v18027_v40 = vpop.eup %18026  ;;  %18046 = vrcp.f32 %v6300_v52  ;;  %v6305_v58 = vadd.f32 1.0, %v18025_v30  ;;  %v5858_v48 = vpop.f32.mrb[76].mxu1  ;;  %v23397_v52 = vld [vmem:[#allocation17_spill] sm:$0xff]  ;;  %v14222_v46 = vmul.f32 -1.442695, %v15102_v18  ;;  %v15104_v29 = vadd.f32 %v20495_v41, %v20376_v36 }
 0x374   : > { %v18029_v42 = vpop.eup %18028  ;;  %18048 = vrcp.f32 %v6302_v16  ;;  %v6307_v12 = vadd.f32 1.0, %v18027_v40  ;;  %v20539_v63 = vpop.f32.mrb[77].mxu0  ;;  %v20543_v30 = vadd.f32 %v23397_v52, %v20421_v24  ;;  %v14219_v28 = vmul.f32 -1.442695, %v15133_v32 }
 0x375   : > { %v18031_v20 = vpop.eup %18030  ;;  %18050 = vrcp.f32 %v6305_v58  ;;  %v6306_v0 = vadd.f32 1.0, %v18029_v42  ;;  %v20547_v6 = vpop.f32.mrb[77].mxu1  ;;  %v15136_v32 = vadd.f32 %v20497_v9, %v20379_v53  ;;  %v15105_v18 = vadd.f32 %v20506_v55, %v20387_v60 }
 0x376   : > { %v20549_v16 = vpop.f32.mrb[78].mxu0  ;;  %v18033_v40 = vpop.eup %18032  ;;  %18052 = vrcp.f32 %v6307_v12  ;;  %v6308_v34 = vadd.f32 1.0, %v18031_v20  ;;  %v15137_v9 = vadd.f32 %v20515_v44, %v20390_v56 }
 0x377   : > { %v20553_v49 = vpop.f32.mrb[78].mxu1  ;;  %v20555_v52 = vpop.f32.mrb[79].mxu0  ;;  %18054 = vrcp.f32 %v6306_v0  ;;  %v6311_v42 = vadd.f32 1.0, %v18033_v40  ;;  %v14230_v44 = vmul.f32 -1.442695, %v15136_v32 }
 0x378   : > { %v18035_v58 = vpop.eup %18034  ;;  %v20559_v19 = vpop.f32.mrb[79].mxu1  ;;  %18056 = vrcp.f32 %v6308_v34 }
 0x379   : > { %v18037_v23 = vpop.eup %18036  ;;  %v20562_v20 = vmul.f32 %v18035_v58, %v20283_v59  ;;  %18058 = vrcp.f32 %v6311_v42  ;;  %v14224_v59 = vmul.f32 -1.442695, %v15134_v1  ;;  %v14225_v1 = vmul.f32 -1.442695, %v15135_v17 }
 0x37a   : > { %v18039_v12 = vpop.eup %18038  ;;  %v20567_v14 = vmul.f32 %v18037_v23, %v20477_v5  ;;  %18060 = vpow2.f32 %v14218_v54  ;;  %v14223_v23 = vmul.f32 -1.442695, %v15103_v35  ;;  %v20581_v5 = vpop.f32.mrb[80].mxu0  ;;  %v14228_v42 = vmul.f32 -1.442695, %v15104_v29 }
 0x37b   : > { %v18041_v0 = vpop.eup %18040  ;;  %v20572_v40 = vmul.f32 %v18039_v12, %v20289_v62  ;;  %18062 = vpow2.f32 %v14217_v4  ;;  %v20583_v41 = vpop.f32.mrb[80].mxu1  ;;  %v15106_v35 = vadd.f32 %v5519_v51, %v20376_v36  ;;  %v14229_v29 = vmul.f32 -1.442695, %v15105_v18 }
 0x37c   : > { %23398 = vst [vmem:[#allocation60_spill] sm:$0xff] %v20567_v14  ;;  %v18043_v34 = vpop.eup %18042  ;;  %v20577_v8 = vmul.f32 %v18041_v0, %v20481_v27  ;;  %18064 = vpow2.f32 %v14219_v28  ;;  %v20590_v27 = vpop.f32.mrb[81].mxu0  ;;  %v15138_v0 = vadd.f32 %v5858_v48, %v20379_v53  ;;  %v14231_v48 = vmul.f32 -1.442695, %v15137_v9  ;;  %v18714_v9 = vld [vmem:[%s18971_s20 + $0xb8] sm:$0xff] }
 0x37d   : > { %v18045_v62 = vpop.eup %18044  ;;  %v20586_v54 = vmul.f32 %v18043_v34, %v20295_v15  ;;  %v20592_v4 = vpop.f32.mrb[81].mxu1  ;;  %18066 = vpow2.f32 %v14222_v46  ;;  %v5941_v46 = vmax.f32 %v20535_v33, 0.0 }
 0x37e   : > { %23399 = vst [vmem:[#allocation62_spill] sm:$0xff] %v20577_v8  ;;  %v18047_v58 = vpop.eup %18046  ;;  %v20595_v55 = vmul.f32 %v18045_v62, %v20500_v10  ;;  %v20598_v12 = vpop.f32.mrb[82].mxu0  ;;  %18068 = vpow2.f32 %v14224_v59 }
 0x37f   : > { %v20600_v15 = vpop.f32.mrb[82].mxu1  ;;  %v18049_v28 = vpop.eup %18048  ;;  %v6684_v17 = vmul.f32 %v18047_v58, %v20307_v2  ;;  %18070 = vpow2.f32 %v14223_v23  ;;  %v23403_v58 = vld [vmem:[#allocation9_spill] sm:$0xff]  ;;  %v14234_v23 = vmul.f32 -1.442695, %v15106_v35 }
 0x380   : > { %23400 = vst [vmem:[#allocation76_spill] sm:$0xff] %v20595_v55  ;;  %v20604_v34 = vpop.f32.mrb[83].mxu0  ;;  %v20606_v14 = vpop.f32.mrb[83].mxu1  ;;  %v20610_v51 = vmul.f32 %v18049_v28, %v20509_v11  ;;  %v23402_v55 = vld [vmem:[#allocation8_spill] sm:$0xff]  ;;  %18072 = vpow2.f32 %v14225_v1  ;;  %v15043_v33 = vadd.f32 %v23403_v58, %v20421_v24  ;;  %v5942_v28 = vmax.f32 %v20543_v30, 0.0 }
 0x381   : > { %v18051_v10 = vpop.eup %18050  ;;  %v15042_v2 = vadd.f32 %v23402_v55, %v20383_v31  ;;  %18074 = vpow2.f32 %v14228_v42  ;;  %v23406_v42 = vmax.f32 %v20504_v47, 0.0 }
 0x382   : > { %23401 = vst [vmem:[#allocation77_spill] sm:$0xff] %v20610_v51  ;;  %v18053_v62 = vpop.eup %18052  ;;  %v20615_v59 = vmul.f32 %v18051_v10, %v20321_v38  ;;  %18076 = vpow2.f32 %v14230_v44  ;;  %v14236_v38 = vmul.f32 -1.442695, %v15138_v0  ;;  %v23405_v10 = vmax.f32 %v20493_v37, 0.0  ;;  %v20641_v30 = vpop.f32.mrb[84].mxu1  ;;  %v18716_v0 = vld [vmem:[%s18971_s20 + $0xe8] sm:$0xff] }
 0x383   : > { %v18055_v32 = vpop.eup %18054  ;;  %v20620_v11 = vmul.f32 %v18053_v62, %v20518_v22  ;;  %v18715_v22 = vld [vmem:[%s18971_s20 + $0xe0] sm:$0xff]  ;;  %18078 = vpow2.f32 %v14229_v29  ;;  %v23408_v37 = vmax.f32 %v20513_v43, 0.0  ;;  %v5947_v58 = vmax.f32 %v15042_v2, 0.0  ;;  %v18720_v51 = vld [vmem:[%s18971_s20 + $0x148] sm:$0xff] }
 0x384   : > { %v18057_v18 = vpop.eup %18056  ;;  %v20624_v55 = vmul.f32 %v18055_v32, %v20331_v26  ;;  %v20629_v8 = vsub.f32 %v23405_v10, %v18714_v9  ;;  %v20634_v35 = vsub.f32 %v23406_v42, %v18715_v22  ;;  %v20639_v26 = vpop.f32.mrb[84].mxu0  ;;  %18080 = vpow2.f32 %v14231_v48 }
 0x385   : > { %23404 = vst [vmem:[#allocation78_spill] sm:$0xff] %v20620_v11  ;;  %v18059_v1 = vpop.eup %18058  ;;  %v20637_v62 = vmul.f32 %v18057_v18, %v20521_v25  ;;  %v20646_v32 = vsub.f32 %v23408_v37, %v18716_v0  ;;  %v20651_v9 = vpop.f32.mrb[85].mxu0  ;;  %v18717_v18 = vld [vmem:[%s18971_s20 + $0x110] sm:$0xff]  ;;  %v5948_v22 = vmax.f32 %v15043_v33, 0.0  ;;  %18082 = vpow2.f32 %v14234_v23 }
 0x386   : > { %v18061_v44 = vpop.eup %18060  ;;  %v20649_v47 = vmul.f32 %v18059_v1, %v20337_v45  ;;  %v20653_v25 = vpop.f32.mrb[85].mxu1  ;;  %v20656_v10 = vsub.f32 %v5941_v46, %v18717_v18  ;;  %v18718_v45 = vld [vmem:[%s18971_s20 + $0x118] sm:$0xff]  ;;  %v20666_v48 = vadd.f32 %v20304_v7, %v6684_v17  ;;  %18084 = vpow2.f32 %v14236_v38  ;;  %v18719_v17 = vld [vmem:[%s18971_s20 + $0x140] sm:$0xff] }
 0x387   : > { %23407 = vst [vmem:[#allocation79_spill] sm:$0xff] %v20637_v62  ;;  %v18063_v29 = vpop.eup %18062  ;;  %v6313_v42 = vadd.f32 1.0, %v18061_v44  ;;  %v20658_v43 = vpop.f32.mrb[86].mxu0  ;;  %v20663_v1 = vsub.f32 %v5942_v28, %v18718_v45  ;;  %v23410_v44 = vld [vmem:[#allocation19_spill] sm:$0xff]  ;;  %v20678_v11 = vadd.f32 %v20292_v57, %v20586_v54  ;;  %v20685_v38 = vadd.f32 %v20286_v3, %v20572_v40 }
 0x388   : > { %v20660_v0 = vpop.f32.mrb[86].mxu1  ;;  %v18065_v2 = vpop.eup %18064  ;;  %23409 = vst [vmem:[#allocation80_spill] sm:$0xff] %v20666_v48  ;;  %v6312_v37 = vadd.f32 1.0, %v18063_v29  ;;  %v20674_v18 = vadd.f32 %v23410_v44, %v20383_v31  ;;  %v20681_v29 = vsub.f32 %v5947_v58, %v18719_v17  ;;  %v20688_v44 = vsub.f32 %v5948_v22, %v18720_v51  ;;  %v17216_v51 = vld [vmem:[#allocation2 + $0x1e64] ss:$48 sps:$4 sm:$0xff]  }
 0x389   : > { %v20668_v46 = vpop.f32.mrb[87].mxu0  ;;  %v20670_v33 = vpop.f32.mrb[87].mxu1  ;;  %23411 = vst [vmem:[#allocation81_spill] sm:$0xff] %v20678_v11  ;;  %18086 = vrcp.f32 %v6313_v42  ;;  %v6314_v28 = vadd.f32 1.0, %v18065_v2  ;;  %23412 = vst [vmem:[#allocation82_spill] sm:$0xff] %v20685_v38  ;;  %v20692_v57 = vadd.f32 %v20280_v39, %v20562_v20  ;;  %v15107_v3 = vadd.f32 %v20539_v63, %v20387_v60 }
 0x38a   : > { %v18067_v23 = vpop.eup %18066  ;;  %18088 = vrcp.f32 %v6312_v37  ;;  %23413 = vst [vmem:[#allocation15_spill] sm:$0xff] %v20688_v44  ;;  %v17208_v42 = vld [vmem:[#allocation2 + $0x1e00] ss:$48 sps:$4 sm:$0xff]   ;;  %v20698_v40 = vpack.c.bf16 %v20666_v48, %v20685_v38  ;;  %v17211_v37 = vld [vmem:[#allocation2 + $0x1e08] ss:$48 sps:$4 sm:$0xff]   ;;  %v15139_v39 = vadd.f32 %v20547_v6, %v20390_v56  ;;  %v20708_v63 = vpop.f32.mrb[88].mxu1 }
 0x38b   : > { %v18069_v7 = vpop.eup %18068  ;;  %v6317_v45 = vadd.f32 1.0, %v18067_v23  ;;  %23414 = vst [vmem:[#allocation17_spill] sm:$0xff] %v20692_v57  ;;  %18090 = vrcp.f32 %v6314_v28  ;;  %v20704_v20 = vpack.c.bf16 %v20678_v11, %v20692_v57  ;;  %v20706_v28 = vpop.f32.mrb[88].mxu0  ;;  %23418 = vst [vmem:[#allocation122_spill] sm:$0xff] %v20708_v63  ;;  %v17214_v6 = vld [vmem:[#allocation2 + $0x1e60] ss:$48 sps:$4 sm:$0xff]  }
 0x38c   : > { %v18071_v62 = vpop.eup %18070  ;;  %v6319_v54 = vadd.f32 1.0, %v18069_v7  ;;  %23415 = vst [vmem:[#allocation8_spill] sm:$0xff] %v20698_v40  ;;  %23417 = vst [vmem:[#allocation19_spill] sm:$0xff] %v20706_v28  ;;  %10582 = vmatprep.mubr.bf16.mxu0 %v20698_v40  ;;  %10921 = vmatprep.mubr.bf16.mxu1 %v20698_v40  ;;  %v20718_v48 = vpop.f32.mrb[89].mxu1  ;;  %v14237_v63 = vmul.f32 -1.442695, %v15139_v39 }
 0x38d   : > { %v18073_v2 = vpop.eup %18072  ;;  %18092 = vrcp.f32 %v6317_v45  ;;  %v6318_v58 = vadd.f32 1.0, %v18071_v62  ;;  %23416 = vst [vmem:[#allocation9_spill] sm:$0xff] %v20704_v20  ;;  %v17219_v62 = vld [vmem:[#allocation2 + $0x1e6c] ss:$48 sps:$4 sm:$0xff]   ;;  %v15108_v45 = vadd.f32 %v20549_v16, %v20376_v36  ;;  %23420 = vst [vmem:[#allocation124_spill] sm:$0xff] %v20718_v48  ;;  %v15141_v16 = vadd.f32 %v20559_v19, %v20390_v56  ;;  %10583 = vmatmul.mubr.bf16.vlgmr.msra.gmra.mrb[96].mxu0 %v20704_v20  ;;  %v20728_v57 = vpop.f32.mrb[90].mxu1 }
 0x38e   : > { %v18075_v22 = vpop.eup %18074  ;;  %18094 = vrcp.f32 %v6319_v54  ;;  %v6320_v23 = vadd.f32 1.0, %v18073_v2  ;;  %v15140_v54 = vadd.f32 %v20553_v49, %v20379_v53  ;;  %v20716_v2 = vpop.f32.mrb[89].mxu0  ;;  %10922 = vmatmul.mubr.bf16.vlgmr.msra.gmra.mrb[96].mxu1 %v20704_v20  ;;  %v17217_v49 = vld [vmem:[#allocation2 + $0x1e68] ss:$48 sps:$4 sm:$0xff]   ;;  %23422 = vst [vmem:[#allocation126_spill] sm:$0xff] %v20728_v57  ;;  %10664 = vmatpush1.bf16.msra.mxu0 %v17208_v42 }
 0x38f   : > { %v18077_v7 = vpop.eup %18076  ;;  %18096 = vrcp.f32 %v6318_v58  ;;  %v6323_v17 = vadd.f32 1.0, %v18075_v22  ;;  %23419 = vst [vmem:[#allocation123_spill] sm:$0xff] %v20716_v2  ;;  %v15109_v58 = vadd.f32 %v20555_v52, %v20387_v60  ;;  %v20726_v22 = vpop.f32.mrb[90].mxu0  ;;  %11003 = vmatpush1.bf16.msra.mxu1 %v17211_v37  ;;  %v17222_v52 = vld [vmem:[#allocation2 + $0x1ec4] ss:$48 sps:$4 sm:$0xff]   ;;  %10665 = vmatprep.subr.bf16.mxu0 %v17216_v51  ;;  %v15111_v51 = vadd.f32 %v20590_v27, %v20387_v60 }
 0x390   : > { %v18079_v11 = vpop.eup %18078  ;;  %18098 = vrcp.f32 %v6320_v23  ;;  %v6325_v38 = vadd.f32 1.0, %v18077_v7  ;;  %23421 = vst [vmem:[#allocation125_spill] sm:$0xff] %v20726_v22  ;;  %v14235_v23 = vmul.f32 -1.442695, %v15107_v3  ;;  %v15110_v7 = vadd.f32 %v20581_v5, %v20376_v36  ;;  %v20732_v19 = vpop.f32.mrb[91].mxu0  ;;  %11004 = vmatprep.subr.bf16.mxu1 %v17219_v62 }
 0x391   : > { %v18081_v40 = vpop.eup %18080  ;;  %18100 = vrcp.f32 %v6323_v17  ;;  %v6324_v48 = vadd.f32 1.0, %v18079_v11  ;;  %23423 = vst [vmem:[#allocation127_spill] sm:$0xff] %v20732_v19  ;;  %v15142_v22 = vadd.f32 %v20583_v41, %v20379_v53  ;;  %v17225_v17 = vld [vmem:[#allocation2 + $0x1ecc] ss:$48 sps:$4 sm:$0xff]   ;;  %v20736_v11 = vpop.f32.mrb[91].mxu1 }
 0x392   : > { %v18083_v2 = vpop.eup %18082  ;;  %18102 = vrcp.f32 %v6325_v38  ;;  %v6326_v20 = vadd.f32 1.0, %v18081_v40  ;;  %v14240_v42 = vmul.f32 -1.442695, %v15108_v45  ;;  %v14242_v37 = vmul.f32 -1.442695, %v15140_v54  ;;  %10666 = vmatpush1.bf16.msra.mxu0 %v17214_v6 }
 0x393   : > { %v18085_v3 = vpop.eup %18084  ;;  %18104 = vrcp.f32 %v6324_v48  ;;  %v6329_v5 = vadd.f32 1.0, %v18083_v2  ;;  %v17220_v57 = vld [vmem:[#allocation2 + $0x1ec0] ss:$48 sps:$4 sm:$0xff]   ;;  %v14241_v38 = vmul.f32 -1.442695, %v15109_v58  ;;  %11005 = vmatpush1.bf16.msra.mxu1 %v17217_v49  ;;  %10667 = vmatprep.subr.bf16.mxu0 %v17222_v52  ;;  %v20750_v2 = vpop.f32.mrb[92].mxu0  ;;  %v20756_v6 = vadd.f32 %v20328_v21, %v20624_v55 }
 0x394   : > { %v18087_v28 = vpop.eup %18086  ;;  %18106 = vrcp.f32 %v6326_v20  ;;  %v6331_v19 = vadd.f32 1.0, %v18085_v3  ;;  %v14243_v40 = vmul.f32 -1.442695, %v15141_v16  ;;  %v20741_v41 = vmul.f32 -1.442695, %v15110_v7  ;;  %11006 = vmatprep.subr.bf16.mxu1 %v17225_v17  ;;  %v20752_v58 = vpop.f32.mrb[92].mxu1 }
 0x395   : > { %v18089_v39 = vpop.eup %18088  ;;  %v20739_v44 = vmul.f32 %v18087_v28, %v20524_v61  ;;  %18108 = vrcp.f32 %v6329_v5  ;;  %v17223_v48 = vld [vmem:[#allocation2 + $0x1ec8] ss:$48 sps:$4 sm:$0xff]   ;;  %v17228_v62 = vld [vmem:[#allocation2 + $0x1f24] ss:$48 sps:$4 sm:$0xff]   ;;  %v20747_v20 = vadd.f32 %v20318_v13, %v20615_v59  ;;  %v14248_v61 = vmul.f32 -1.442695, %v15142_v22 }
 0x396   : > { %v18091_v45 = vpop.eup %18090  ;;  %v6696_v54 = vmul.f32 %v18089_v39, %v20343_v50  ;;  %18110 = vrcp.f32 %v6331_v19  ;;  %v17231_v28 = vld [vmem:[#allocation2 + $0x1f2c] ss:$48 sps:$4 sm:$0xff]   ;;  %23425 = vst [vmem:[#allocation129_spill] sm:$0xff] %v20756_v6  ;;  %v23426_v16 = vld [vmem:[#allocation13_spill] sm:$0xff]  ;;  %v20765_v59 = vpop.f32.mrb[93].mxu0  ;;  %v15143_v21 = vadd.f32 %v20592_v4, %v20390_v56  ;;  %v15112_v5 = vadd.f32 %v20598_v12, %v20376_v36  ;;  %10668 = vmatpush1.bf16.msra.mxu0 %v17220_v57 }
 0x397   : > { %23424 = vst [vmem:[#allocation128_spill] sm:$0xff] %v20747_v20  ;;  %v18093_v27 = vpop.eup %18092  ;;  %v20760_v13 = vadd.f32 %v23426_v16, %v20649_v47  ;;  %v20763_v50 = vmul.f32 %v18091_v45, %v20629_v8  ;;  %18112 = vpow2.f32 %v14235_v23  ;;  %v20767_v49 = vpop.f32.mrb[93].mxu1  ;;  %v23428_v7 = vld [vmem:[#allocation14_spill] sm:$0xff]  ;;  %v14247_v3 = vmul.f32 -1.442695, %v15111_v51  ;;  %11007 = vmatpush1.bf16.msra.mxu1 %v17223_v48  ;;  %10669 = vmatprep.subr.bf16.mxu0 %v17228_v62 }
 0x398   : > { %v18095_v22 = vpop.eup %18094  ;;  %v20770_v52 = vadd.f32 %v23428_v7, %v6696_v54  ;;  %v23430_v19 = vld [vmem:[#allocation18_spill] sm:$0xff]  ;;  %18114 = vpow2.f32 %v14237_v63  ;;  %v20777_v55 = vpop.f32.mrb[94].mxu0  ;;  %v17226_v51 = vld [vmem:[#allocation2 + $0x1f20] ss:$48 sps:$4 sm:$0xff]   ;;  %11008 = vmatprep.subr.bf16.mxu1 %v17231_v28  ;;  %v5953_v7 = vmax.f32 %v20674_v18, 0.0 }
 0x399   : > { %23427 = vst [vmem:[#allocation13_spill] sm:$0xff] %v20760_v13  ;;  %v20773_v17 = vmul.f32 %v18093_v27, %v23430_v19  ;;  %v20779_v8 = vpop.f32.mrb[94].mxu1  ;;  %v18097_v47 = vpop.eup %18096  ;;  %v20782_v23 = vmul.f32 %v18095_v22, %v20634_v35  ;;  %18116 = vpow2.f32 %v14240_v42  ;;  %v23431_v45 = vld [vmem:[#allocation22_spill] sm:$0xff]  ;;  %v15144_v35 = vadd.f32 %v20600_v15, %v20379_v53  ;;  %v17234_v15 = vld [vmem:[#allocation2 + $0x1f84] ss:$48 sps:$4 sm:$0xff]  }
 0x39a   : > { %23429 = vst [vmem:[#allocation14_spill] sm:$0xff] %v20770_v52  ;;  %v20786_v39 = vpop.f32.mrb[95].mxu0  ;;  %v20788_v63 = vpop.f32.mrb[95].mxu1  ;;  %v20791_v54 = vmul.f32 %v18097_v47, %v23431_v45  ;;  %18118 = vpow2.f32 %v14242_v37  ;;  %v20797_v42 = vpack.c.bf16 %v20770_v52, %v20756_v6  ;;  %v17229_v12 = vld [vmem:[#allocation2 + $0x1f28] ss:$48 sps:$4 sm:$0xff]   ;;  %v15113_v27 = vadd.f32 %v20604_v34, %v20387_v60  ;;  %v23435_v34 = vld [vmem:[#allocation21_spill] sm:$0xff]  ;;  %10670 = vmatpush1.bf16.msra.mxu0 %v17226_v51 }
 0x39b   : > { %v18099_v4 = vpop.eup %18098  ;;  %18120 = vpow2.f32 %v14241_v38  ;;  %v20806_v37 = vpack.c.bf16 %v20760_v13, %v20747_v20  ;;  %v17237_v16 = vld [vmem:[#allocation2 + $0x1f8c] ss:$48 sps:$4 sm:$0xff]   ;;  %v14249_v28 = vmul.f32 -1.442695, %v15143_v21  ;;  %v15045_v38 = vadd.f32 %v23435_v34, %v20421_v24  ;;  %11009 = vmatpush1.bf16.msra.mxu1 %v17229_v12  ;;  %10671 = vmatprep.subr.bf16.mxu0 %v17234_v15 }
 0x39c   : > { %23432 = vst [vmem:[#allocation18_spill] sm:$0xff] %v20797_v42  ;;  %v18101_v57 = vpop.eup %18100  ;;  %v20800_v48 = vmul.f32 %v18099_v4, %v20646_v32  ;;  %v23434_v62 = vld [vmem:[#allocation26_spill] sm:$0xff]  ;;  %18122 = vpow2.f32 %v14243_v40  ;;  %10592 = vmatprep.mubr.bf16.mxu0 %v20797_v42  ;;  %10931 = vmatprep.mubr.bf16.mxu1 %v20797_v42  ;;  %v14252_v4 = vmul.f32 -1.442695, %v15112_v5  ;;  %v23436_v40 = vld [vmem:[#allocation23_spill] sm:$0xff]  ;;  %v23438_v5 = vld [vmem:[#allocation25_spill] sm:$0xff] }
 0x39d   : > { %23433 = vst [vmem:[#allocation22_spill] sm:$0xff] %v20806_v37  ;;  %v18103_v22 = vpop.eup %18102  ;;  %v6707_v19 = vmul.f32 %v18101_v57, %v23434_v62  ;;  %18124 = vpow2.f32 %v20741_v41  ;;  %10593 = vmatmul.mubr.bf16.gmra.mrb[100].mxu0 %v20806_v37  ;;  %10932 = vmatmul.mubr.bf16.gmra.mrb[100].mxu1 %v20806_v37  ;;  %v20822_v21 = vadd.f32 %v23436_v40, %v20383_v31  ;;  %v23437_v45 = vld [vmem:[#allocation30_spill] sm:$0xff]  ;;  %v14254_v62 = vmul.f32 -1.442695, %v15144_v35  ;;  %v17240_v40 = vld [vmem:[#allocation2 + $0x1fe4] ss:$48 sps:$4 sm:$0xff]  }
 0x39e   : > { %v18105_v32 = vpop.eup %18104  ;;  %v20815_v47 = vmul.f32 %v18103_v22, %v20656_v10  ;;  %18126 = vpow2.f32 %v14248_v61  ;;  %v17232_v10 = vld [vmem:[#allocation2 + $0x1f80] ss:$48 sps:$4 sm:$0xff]   ;;  %v17235_v22 = vld [vmem:[#allocation2 + $0x1f88] ss:$48 sps:$4 sm:$0xff]   ;;  %v15047_v34 = vadd.f32 %v23438_v5, %v20421_v24  ;;  %v14253_v13 = vmul.f32 -1.442695, %v15113_v27  ;;  %11010 = vmatprep.subr.bf16.mxu1 %v17237_v16 }
 0x39f   : > { %v18107_v18 = vpop.eup %18106  ;;  %v6708_v57 = vmul.f32 %v18105_v32, %v23437_v45  ;;  %18128 = vpow2.f32 %v14247_v3  ;;  %v17243_v32 = vld [vmem:[#allocation2 + $0x1fec] ss:$48 sps:$4 sm:$0xff]   ;;  %v18721_v45 = vld [vmem:[%s18971_s20 + $0x170] sm:$0xff]  ;;  %v5959_v16 = vmax.f32 %v20822_v21, 0.0  ;;  %10672 = vmatpush1.bf16.msra.mxu0 %v17232_v10  ;;  %11011 = vmatpush1.bf16.msra.mxu1 %v17235_v22 }
 0x3a0   : > { %v18109_v41 = vpop.eup %18108  ;;  %v20828_v52 = vmul.f32 %v18107_v18, %v20663_v1  ;;  %v20831_v35 = vsub.f32 %v5953_v7, %v18721_v45  ;;  %v23439_v51 = vld [vmem:[#allocation10_spill] sm:$0xff]  ;;  %v23440_v6 = vld [vmem:[#allocation32_spill] sm:$0xff]  ;;  %18130 = vpow2.f32 %v14249_v28  ;;  %v5954_v1 = vmax.f32 %v15045_v38, 0.0  ;;  %10673 = vmatprep.subr.bf16.mxu0 %v17240_v40  ;;  %11012 = vmatprep.subr.bf16.mxu1 %v17243_v32  ;;  %v17246_v40 = vld [vmem:[#allocation2 + $0x2044] ss:$48 sps:$4 sm:$0xff]  }
 0x3a1   : > { %v18111_v61 = vpop.eup %18110  ;;  %v15048_v12 = vadd.f32 %v23439_v51, %v20383_v31  ;;  %v20836_v20 = vmul.f32 %v18109_v41, %v23440_v6  ;;  %v23441_v18 = vld [vmem:[#allocation28_spill] sm:$0xff]  ;;  %18132 = vpow2.f32 %v14252_v4  ;;  %v17238_v6 = vld [vmem:[#allocation2 + $0x1fe0] ss:$48 sps:$4 sm:$0xff]  }
 0x3a2   : > { %v18113_v5 = vpop.eup %18112  ;;  %v20839_v3 = vadd.f32 %v23441_v18, %v6708_v57  ;;  %v20842_v27 = vmul.f32 %v18111_v61, %v20681_v29  ;;  %v23444_v7 = vld [vmem:[#allocation24_spill] sm:$0xff]  ;;  %18134 = vpow2.f32 %v14254_v62  ;;  %v5960_v57 = vmax.f32 %v15047_v34, 0.0  ;;  %v23456_v37 = vld [vmem:[#allocation15_spill] sm:$0xff] }
 0x3a3   : > { %v18115_v15 = vpop.eup %18114  ;;  %v20846_v45 = vadd.f32 %v23444_v7, %v6707_v19  ;;  %v6330_v51 = vadd.f32 1.0, %v18113_v5  ;;  %v17241_v28 = vld [vmem:[#allocation2 + $0x1fe8] ss:$48 sps:$4 sm:$0xff]   ;;  %18136 = vpow2.f32 %v14253_v13  ;;  %v5965_v19 = vmax.f32 %v15048_v12, 0.0  ;;  %v17249_v32 = vld [vmem:[#allocation2 + $0x204c] ss:$48 sps:$4 sm:$0xff]   ;;  %10674 = vmatpush1.bf16.msra.mxu0 %v17238_v6 }
 0x3a4   : > { %23442 = vst [vmem:[#allocation26_spill] sm:$0xff] %v20839_v3  ;;  %23443 = vst [vmem:[#allocation21_spill] sm:$0xff] %v20842_v27  ;;  %v18117_v38 = vpop.eup %18116  ;;  %v23446_v41 = vld [vmem:[#allocation20_spill] sm:$0xff]  ;;  %v6332_v4 = vadd.f32 1.0, %v18115_v15  ;;  %v15145_v18 = vadd.f32 %v20606_v14, %v20390_v56  ;;  %11013 = vmatpush1.bf16.msra.mxu1 %v17241_v28  ;;  %v17244_v15 = vld [vmem:[#allocation2 + $0x2040] ss:$48 sps:$4 sm:$0xff]   ;;  %10675 = vmatprep.subr.bf16.mxu0 %v17246_v40  ;;  %v15115_v40 = vadd.f32 %v20651_v9, %v20387_v60 }
 0x3a5   : > { %23445 = vst [vmem:[#allocation23_spill] sm:$0xff] %v20846_v45  ;;  %v20850_v29 = vadd.f32 %v23446_v41, %v20791_v54  ;;  %v18119_v21 = vpop.eup %18118  ;;  %v23448_v61 = vld [vmem:[#allocation16_spill] sm:$0xff]  ;;  %18138 = vrcp.f32 %v6330_v51  ;;  %v6335_v10 = vadd.f32 1.0, %v18117_v38  ;;  %v18723_v38 = vld [vmem:[%s18971_s20 + $0x1a0] sm:$0xff]  ;;  %11014 = vmatprep.subr.bf16.mxu1 %v17249_v32  ;;  %v15117_v9 = vadd.f32 %v20668_v46, %v20387_v60 }
 0x3a6   : > { %v20854_v62 = vadd.f32 %v23448_v61, %v20773_v17  ;;  %v18121_v22 = vpop.eup %18120  ;;  %v20857_v5 = vld [vmem:[%s18971_s20 + $0x178] sm:$0xff]  ;;  %18140 = vrcp.f32 %v6332_v4  ;;  %v6337_v54 = vadd.f32 1.0, %v18119_v21  ;;  %v20873_v41 = vsub.f32 %v5959_v16, %v18723_v38  ;;  %v18724_v4 = vld [vmem:[%s18971_s20 + $0x1a8] sm:$0xff]  ;;  %v17252_v14 = vld [vmem:[#allocation2 + $0x20a4] ss:$48 sps:$4 sm:$0xff]  }
 0x3a7   : > { %23447 = vst [vmem:[#allocation30_spill] sm:$0xff] %v20850_v29  ;;  %v20860_v34 = vsub.f32 %v5954_v1, %v20857_v5  ;;  %v20864_v13 = vpack.c.bf16 %v20839_v3, %v20850_v29  ;;  %v18123_v17 = vpop.eup %18122  ;;  %18142 = vrcp.f32 %v6335_v10  ;;  %v6336_v12 = vadd.f32 1.0, %v18121_v22  ;;  %v17247_v7 = vld [vmem:[#allocation2 + $0x2048] ss:$48 sps:$4 sm:$0xff]   ;;  %v17255_v10 = vld [vmem:[#allocation2 + $0x20ac] ss:$48 sps:$4 sm:$0xff]   ;;  %10676 = vmatpush1.bf16.msra.mxu0 %v17244_v15 }
 0x3a8   : > { %23449 = vst [vmem:[#allocation25_spill] sm:$0xff] %v20854_v62  ;;  %v20870_v1 = vpack.c.bf16 %v20846_v45, %v20854_v62  ;;  %v18125_v51 = vpop.eup %18124  ;;  %v20876_v21 = vsub.f32 %v5960_v57, %v18724_v4  ;;  %18144 = vrcp.f32 %v6337_v54  ;;  %v6338_v61 = vadd.f32 1.0, %v18123_v17  ;;  %v18725_v22 = vld [vmem:[%s18971_s20 + $0x1d0] sm:$0xff]  ;;  %v23453_v54 = vld [vmem:[#allocation29_spill] sm:$0xff]  ;;  %11015 = vmatpush1.bf16.msra.mxu1 %v17247_v7  ;;  %10677 = vmatprep.subr.bf16.mxu0 %v17252_v14  ;;  %v17267_v46 = vld [vmem:[#allocation2 + $0x216c] ss:$48 sps:$4 sm:$0xff]  }
 0x3a9   : > { %23450 = vst [vmem:[#allocation10_spill] sm:$0xff] %v20864_v13  ;;  %10602 = vmatprep.mubr.bf16.mxu0 %v20864_v13  ;;  %10941 = vmatprep.mubr.bf16.mxu1 %v20864_v13  ;;  %v18127_v6 = vpop.eup %18126  ;;  %v20881_v28 = vsub.f32 %v5965_v19, %v18725_v22  ;;  %v23452_v3 = vld [vmem:[#allocation27_spill] sm:$0xff]  ;;  %18146 = vrcp.f32 %v6336_v12  ;;  %v6341_v16 = vadd.f32 1.0, %v18125_v51  ;;  %v20891_v17 = vadd.f32 %v23453_v54, %v20383_v31  ;;  %v17253_v54 = vld [vmem:[#allocation2 + $0x20a8] ss:$48 sps:$4 sm:$0xff]  }
 0x3aa   : > { %23451 = vst [vmem:[#allocation32_spill] sm:$0xff] %v20870_v1  ;;  %v20885_v45 = vadd.f32 %v23452_v3, %v20421_v24  ;;  %10603 = vmatmul.mubr.bf16.gmra.mrb[104].mxu0 %v20870_v1  ;;  %10942 = vmatmul.mubr.bf16.gmra.mrb[104].mxu1 %v20870_v1  ;;  %v18129_v57 = vpop.eup %18128  ;;  %v23454_v38 = vld [vmem:[#allocation31_spill] sm:$0xff]  ;;  %18148 = vrcp.f32 %v6338_v61  ;;  %v6343_v19 = vadd.f32 1.0, %v18127_v6  ;;  %v14255_v22 = vmul.f32 -1.442695, %v15145_v18 }
 0x3ab   : > { %v20895_v4 = vadd.f32 %v23454_v38, %v20421_v24  ;;  %v17250_v3 = vld [vmem:[#allocation2 + $0x20a0] ss:$48 sps:$4 sm:$0xff]   ;;  %v18131_v12 = vpop.eup %18130  ;;  %18150 = vrcp.f32 %v6341_v16  ;;  %v6342_v51 = vadd.f32 1.0, %v18129_v57  ;;  %v15114_v29 = vadd.f32 %v20639_v26, %v20376_v36  ;;  %11016 = vmatprep.subr.bf16.mxu1 %v17255_v10  ;;  %v17258_v32 = vld [vmem:[#allocation2 + $0x2104] ss:$48 sps:$4 sm:$0xff]  }
 0x3ac   : > { %v18133_v62 = vpop.eup %18132  ;;  %18152 = vrcp.f32 %v6343_v19  ;;  %v6344_v1 = vadd.f32 1.0, %v18131_v12  ;;  %v15146_v61 = vadd.f32 %v20641_v30, %v20379_v53  ;;  %v17261_v6 = vld [vmem:[#allocation2 + $0x210c] ss:$48 sps:$4 sm:$0xff]   ;;  %v15147_v26 = vadd.f32 %v20653_v25, %v20390_v56  ;;  %v17256_v14 = vld [vmem:[#allocation2 + $0x2100] ss:$48 sps:$4 sm:$0xff]   ;;  %10678 = vmatpush1.bf16.msra.mxu0 %v17250_v3  ;;  %11017 = vmatpush1.bf16.msra.mxu1 %v17253_v54 }
 0x3ad   : > { %v18135_v18 = vpop.eup %18134  ;;  %18154 = vrcp.f32 %v6342_v51  ;;  %v6347_v16 = vadd.f32 1.0, %v18133_v62  ;;  %v15116_v15 = vadd.f32 %v20658_v43, %v20376_v36  ;;  %v15148_v30 = vadd.f32 %v20660_v0, %v20379_v53  ;;  %v17259_v10 = vld [vmem:[#allocation2 + $0x2108] ss:$48 sps:$4 sm:$0xff]   ;;  %v17264_v43 = vld [vmem:[#allocation2 + $0x2164] ss:$48 sps:$4 sm:$0xff]   ;;  %10679 = vmatprep.subr.bf16.mxu0 %v17258_v32  ;;  %11018 = vmatprep.subr.bf16.mxu1 %v17261_v6 }
 0x3ae   : > { %v18137_v7 = vpop.eup %18136  ;;  %18156 = vrcp.f32 %v6344_v1  ;;  %v6349_v57 = vadd.f32 1.0, %v18135_v18  ;;  %v14258_v19 = vmul.f32 -1.442695, %v15114_v29  ;;  %v15149_v25 = vadd.f32 %v20670_v33, %v20390_v56  ;;  %v23455_v12 = vld [vmem:[#allocation34_spill] sm:$0xff]  ;;  %v23457_v3 = vld [vmem:[#allocation36_spill] sm:$0xff]  ;;  %v23458_v32 = vld [vmem:[#allocation19_spill] sm:$0xff] }
 0x3af   : > { %v18139_v38 = vpop.eup %18138  ;;  %18158 = vrcp.f32 %v6347_v16  ;;  %v6348_v62 = vadd.f32 1.0, %v18137_v7  ;;  %v14260_v0 = vmul.f32 -1.442695, %v15146_v61  ;;  %v14259_v18 = vmul.f32 -1.442695, %v15115_v40 }
 0x3b0   : > { %v18141_v1 = vpop.eup %18140  ;;  %v6714_v51 = vmul.f32 %v18139_v38, %v23455_v12  ;;  %18160 = vrcp.f32 %v6349_v57  ;;  %v14261_v29 = vmul.f32 -1.442695, %v15147_v26  ;;  %v14264_v7 = vmul.f32 -1.442695, %v15116_v15  ;;  %10680 = vmatpush1.bf16.msra.mxu0 %v17256_v14  ;;  %11019 = vmatpush1.bf16.msra.mxu1 %v17259_v10  ;;  %v17262_v6 = vld [vmem:[#allocation2 + $0x2160] ss:$48 sps:$4 sm:$0xff]  }
 0x3b1   : > { %v18143_v13 = vpop.eup %18142  ;;  %v20915_v16 = vmul.f32 %v18141_v1, %v23456_v37  ;;  %18162 = vrcp.f32 %v6348_v62  ;;  %v14266_v42 = vmul.f32 -1.442695, %v15148_v30  ;;  %v14265_v27 = vmul.f32 -1.442695, %v15117_v9  ;;  %v17265_v26 = vld [vmem:[#allocation2 + $0x2168] ss:$48 sps:$4 sm:$0xff]   ;;  %10681 = vmatprep.subr.bf16.mxu0 %v17264_v43  ;;  %11020 = vmatprep.subr.bf16.mxu1 %v17267_v46 }
 0x3b2   : > { %v18145_v33 = vpop.eup %18144  ;;  %v6719_v54 = vmul.f32 %v18143_v13, %v23457_v3  ;;  %18164 = vpow2.f32 %v14255_v22  ;;  %v14267_v40 = vmul.f32 -1.442695, %v15149_v25  ;;  %v15118_v37 = vadd.f32 %v23458_v32, %v20376_v36  ;;  %v23459_v57 = vld [vmem:[#allocation38_spill] sm:$0xff]  ;;  %v23461_v30 = vld [vmem:[#allocation123_spill] sm:$0xff]  ;;  %v23463_v12 = vld [vmem:[#allocation124_spill] sm:$0xff] }
 0x3b3   : > { %v18147_v38 = vpop.eup %18146  ;;  %v20919_v61 = vmul.f32 %v18145_v33, %v20831_v35  ;;  %18166 = vpow2.f32 %v14258_v19  ;;  %v23460_v22 = vld [vmem:[#allocation122_spill] sm:$0xff]  ;;  %v15119_v9 = vadd.f32 %v23461_v30, %v20387_v60  ;;  %v17270_v62 = vld [vmem:[#allocation2 + $0x21c4] ss:$48 sps:$4 sm:$0xff]   ;;  %v18727_v3 = vld [vmem:[%s18971_s20 + $0x138] sm:$0xff] }
 0x3b4   : > { %v18149_v15 = vpop.eup %18148  ;;  %v6720_v13 = vmul.f32 %v18147_v38, %v23459_v57  ;;  %18168 = vpow2.f32 %v14260_v0  ;;  %v15150_v35 = vadd.f32 %v23460_v22, %v20379_v53  ;;  %v17273_v14 = vld [vmem:[#allocation2 + $0x21cc] ss:$48 sps:$4 sm:$0xff]   ;;  %v18726_v19 = vld [vmem:[%s18971_s20 + $0x160] sm:$0xff]  ;;  %v15151_v0 = vadd.f32 %v23463_v12, %v20390_v56  ;;  %v18729_v22 = vld [vmem:[%s18971_s20 + $0x130] sm:$0xff]  ;;  %10682 = vmatpush1.bf16.msra.mxu0 %v17262_v6  ;;  %11021 = vmatpush1.bf16.msra.mxu1 %v17265_v26 }
 0x3b5   : > { %v18151_v10 = vpop.eup %18150  ;;  %v20929_v25 = vadd.f32 %v18726_v19, %v6719_v54  ;;  %v20932_v1 = vmul.f32 %v18149_v15, %v20860_v34  ;;  %18170 = vpow2.f32 %v14259_v18  ;;  %v20937_v38 = vadd.f32 %v18727_v3, %v6714_v51  ;;  %v18728_v43 = vld [vmem:[%s18971_s20 + $0x168] sm:$0xff]  ;;  %v23466_v32 = vld [vmem:[#allocation40_spill] sm:$0xff]  ;;  %v17268_v19 = vld [vmem:[#allocation2 + $0x21c0] ss:$48 sps:$4 sm:$0xff]   ;;  %10683 = vmatprep.subr.bf16.mxu0 %v17270_v62  ;;  %11022 = vmatprep.subr.bf16.mxu1 %v17273_v14 }
 0x3b6   : > { %v18153_v33 = vpop.eup %18152  ;;  %v20940_v46 = vadd.f32 %v18728_v43, %v6720_v13  ;;  %v20943_v57 = vmul.f32 %v18151_v10, %v23466_v32  ;;  %18172 = vpow2.f32 %v14261_v29  ;;  %v20947_v34 = vadd.f32 %v18729_v22, %v20836_v20  ;;  %v23468_v30 = vld [vmem:[#allocation42_spill] sm:$0xff]  ;;  %v20965_v12 = vld [vmem:[%s18971_s20 + $0x258] sm:$0xff]  ;;  %v23473_v14 = vld [vmem:[#allocation45_spill] sm:$0xff] }
 0x3b7   : > { %23462 = vst [vmem:[#allocation28_spill] sm:$0xff] %v20929_v25  ;;  %23464 = vst [vmem:[#allocation24_spill] sm:$0xff] %v20937_v38  ;;  %v18155_v54 = vpop.eup %18154  ;;  %v20950_v18 = vmul.f32 %v18153_v33, %v20873_v41  ;;  %18174 = vpow2.f32 %v14264_v7  ;;  %v14270_v15 = vmul.f32 -1.442695, %v15118_v37  ;;  %v14272_v10 = vmul.f32 -1.442695, %v15150_v35 }
 0x3b8   : > { %23465 = vst [vmem:[#allocation20_spill] sm:$0xff] %v20940_v46  ;;  %23467 = vst [vmem:[#allocation16_spill] sm:$0xff] %v20947_v34  ;;  %v18157_v51 = vpop.eup %18156  ;;  %v6726_v13 = vmul.f32 %v18155_v54, %v23468_v30  ;;  %18176 = vpow2.f32 %v14266_v42  ;;  %v20955_v29 = vpack.c.bf16 %v20940_v46, %v20937_v38  ;;  %v17271_v20 = vld [vmem:[#allocation2 + $0x21c8] ss:$48 sps:$4 sm:$0xff]   ;;  %v14271_v37 = vmul.f32 -1.442695, %v15119_v9  ;;  %10684 = vmatpush1.bf16.msra.mxu0 %v17268_v19 }
 0x3b9   : > { %v18159_v41 = vpop.eup %18158  ;;  %v20958_v7 = vmul.f32 %v18157_v51, %v20876_v21  ;;  %18178 = vpow2.f32 %v14265_v27  ;;  %v20962_v6 = vpack.c.bf16 %v20929_v25, %v20947_v34  ;;  %v17276_v42 = vld [vmem:[#allocation2 + $0x2224] ss:$48 sps:$4 sm:$0xff]   ;;  %v17279_v26 = vld [vmem:[#allocation2 + $0x222c] ss:$48 sps:$4 sm:$0xff]   ;;  %v14273_v21 = vmul.f32 -1.442695, %v15151_v0  ;;  %11023 = vmatpush1.bf16.msra.mxu1 %v17271_v20 }
 0x3ba   : > { %23469 = vst [vmem:[#allocation27_spill] sm:$0xff] %v20955_v29  ;;  %v18161_v35 = vpop.eup %18160  ;;  %v23471_v33 = vld [vmem:[#allocation65_spill] sm:$0xff]  ;;  %v6731_v43 = vmul.f32 %v18159_v41, %v23473_v14  ;;  %18180 = vpow2.f32 %v14267_v40  ;;  %10612 = vmatprep.mubr.bf16.mxu0 %v20955_v29  ;;  %10951 = vmatprep.mubr.bf16.mxu1 %v20955_v29  ;;  %v5966_v9 = vmax.f32 %v20885_v45, 0.0  ;;  %v5971_v0 = vmax.f32 %v20891_v17, 0.0  ;;  %v23475_v51 = vld [vmem:[#allocation35_spill] sm:$0xff]  ;;  %v18733_v20 = vld [vmem:[%s18971_s20 + $0x1c8] sm:$0xff] }
 0x3bb   : > { %23470 = vst [vmem:[#allocation29_spill] sm:$0xff] %v20962_v6  ;;  %v23472_v62 = vmax.f32 %v23471_v33, 0.0  ;;  %v18163_v27 = vpop.eup %18162  ;;  %v23474_v32 = vld [vmem:[#allocation33_spill] sm:$0xff]  ;;  %v20981_v22 = vmul.f32 %v18161_v35, %v20881_v28  ;;  %18182 = vpow2.f32 %v14270_v15  ;;  %10613 = vmatmul.mubr.bf16.gmra.mrb[108].mxu0 %v20962_v6  ;;  %10952 = vmatmul.mubr.bf16.gmra.mrb[108].mxu1 %v20962_v6  ;;  %v20988_v30 = vadd.f32 %v23475_v51, %v20421_v24  ;;  %v23476_v45 = vld [vmem:[#allocation47_spill] sm:$0xff]  ;;  %v17277_v15 = vld [vmem:[#allocation2 + $0x2228] ss:$48 sps:$4 sm:$0xff]  }
 0x3bc   : > { %v20978_v54 = vadd.f32 %v23474_v32, %v20383_v31  ;;  %v18165_v40 = vpop.eup %18164  ;;  %v6732_v41 = vmul.f32 %v18163_v27, %v23476_v45  ;;  %18184 = vpow2.f32 %v14272_v10  ;;  %v17274_v28 = vld [vmem:[#allocation2 + $0x2220] ss:$48 sps:$4 sm:$0xff]   ;;  %v5972_v33 = vmax.f32 %v20895_v4, 0.0  ;;  %10685 = vmatprep.subr.bf16.mxu0 %v17276_v42  ;;  %11024 = vmatprep.subr.bf16.mxu1 %v17279_v26  ;;  %v17282_v32 = vld [vmem:[#allocation2 + $0x2284] ss:$48 sps:$4 sm:$0xff]   ;;  %v18732_v51 = vld [vmem:[%s18971_s20 + $0x198] sm:$0xff] }
 0x3bd   : > { %v20970_v3 = vsub.f32 %v23472_v62, %v20965_v12  ;;  %v18167_v35 = vpop.eup %18166  ;;  %v18731_v62 = vld [vmem:[%s18971_s20 + $0x1c0] sm:$0xff]  ;;  %v6350_v17 = vadd.f32 1.0, %v18165_v40  ;;  %18186 = vpow2.f32 %v14271_v37  ;;  %v17285_v27 = vld [vmem:[#allocation2 + $0x228c] ss:$48 sps:$4 sm:$0xff]   ;;  %v20996_v19 = vadd.f32 %v18732_v51, %v6726_v13  ;;  %10686 = vmatpush1.bf16.msra.mxu0 %v17274_v28  ;;  %11025 = vmatpush1.bf16.msra.mxu1 %v17277_v15  ;;  %v23488_v34 = vld [vmem:[#allocation127_spill] sm:$0xff] }
 0x3be   : > { %v20993_v14 = vadd.f32 %v18731_v62, %v6731_v43  ;;  %v18169_v10 = vpop.eup %18168  ;;  %v20999_v45 = vadd.f32 %v18733_v20, %v6732_v41  ;;  %v6353_v46 = vadd.f32 1.0, %v18167_v35  ;;  %18188 = vpow2.f32 %v14273_v21  ;;  %v18734_v62 = vld [vmem:[%s18971_s20 + $0x190] sm:$0xff]  ;;  %v21012_v51 = vld [vmem:[%s18971_s20 + $0x1d8] sm:$0xff]  ;;  %10687 = vmatprep.subr.bf16.mxu0 %v17282_v32  ;;  %11026 = vmatprep.subr.bf16.mxu1 %v17285_v27  ;;  %v21034_v27 = vld [vmem:[%s18971_s20 + $0x208] sm:$0xff] }
 0x3bf   : > { %23478 = vst [vmem:[#allocation34_spill] sm:$0xff] %v20996_v19  ;;  %v18171_v4 = vpop.eup %18170  ;;  %v5977_v43 = vmax.f32 %v20978_v54, 0.0  ;;  %v21004_v37 = vadd.f32 %v18734_v62, %v20943_v57  ;;  %18190 = vrcp.f32 %v6350_v17  ;;  %v6355_v42 = vadd.f32 1.0, %v18169_v10  ;;  %v17280_v21 = vld [vmem:[#allocation2 + $0x2280] ss:$48 sps:$4 sm:$0xff]   ;;  %v23487_v25 = vld [vmem:[#allocation126_spill] sm:$0xff] }
 0x3c0   : > { %23477 = vst [vmem:[#allocation31_spill] sm:$0xff] %v20993_v14  ;;  %23479 = vst [vmem:[#allocation15_spill] sm:$0xff] %v20999_v45  ;;  %v18173_v26 = vpop.eup %18172  ;;  %v5978_v40 = vmax.f32 %v20988_v30, 0.0  ;;  %18192 = vrcp.f32 %v6353_v46  ;;  %v6354_v13 = vadd.f32 1.0, %v18171_v4  ;;  %v21009_v41 = vpack.c.bf16 %v20999_v45, %v20996_v19  ;;  %v17283_v54 = vld [vmem:[#allocation2 + $0x2288] ss:$48 sps:$4 sm:$0xff]  }
 0x3c1   : > { %23480 = vst [vmem:[#allocation36_spill] sm:$0xff] %v21004_v37  ;;  %v18175_v35 = vpop.eup %18174  ;;  %v21015_v57 = vsub.f32 %v5966_v9, %v21012_v51  ;;  %18194 = vrcp.f32 %v6355_v42  ;;  %v6356_v30 = vadd.f32 1.0, %v18173_v26  ;;  %v21019_v46 = vpack.c.bf16 %v20993_v14, %v21004_v37  ;;  %v17288_v28 = vld [vmem:[#allocation2 + $0x22e4] ss:$48 sps:$4 sm:$0xff]   ;;  %v17291_v15 = vld [vmem:[#allocation2 + $0x22ec] ss:$48 sps:$4 sm:$0xff]   ;;  %10688 = vmatpush1.bf16.msra.mxu0 %v17280_v21  ;;  %11027 = vmatpush1.bf16.msra.mxu1 %v17283_v54 }
 0x3c2   : > { %23481 = vst [vmem:[#allocation19_spill] sm:$0xff] %v21009_v41  ;;  %v18177_v17 = vpop.eup %18176  ;;  %v21022_v10 = vld [vmem:[%s18971_s20 + $0x200] sm:$0xff]  ;;  %v23484_v9 = vld [vmem:[#allocation39_spill] sm:$0xff]  ;;  %18196 = vrcp.f32 %v6354_v13  ;;  %v6359_v62 = vadd.f32 1.0, %v18175_v35  ;;  %10622 = vmatprep.mubr.bf16.mxu0 %v21009_v41  ;;  %10961 = vmatprep.mubr.bf16.mxu1 %v21009_v41  ;;  %v21037_v42 = vsub.f32 %v5972_v33, %v21034_v27  ;;  %v21048_v35 = vld [vmem:[%s18971_s20 + $0x238] sm:$0xff]  ;;  %v15152_v38 = vadd.f32 %v23487_v25, %v20379_v53 }
 0x3c3   : > { %23482 = vst [vmem:[#allocation38_spill] sm:$0xff] %v21019_v46  ;;  %23483 = vst [vmem:[#allocation122_spill] sm:$0xff] %v21022_v10  ;;  %v21025_v20 = vsub.f32 %v5971_v0, %v21022_v10  ;;  %v21029_v4 = vadd.f32 %v23484_v9, %v20383_v31  ;;  %v18179_v32 = vpop.eup %18178  ;;  %v21040_v26 = vld [vmem:[%s18971_s20 + $0x230] sm:$0xff]  ;;  %18198 = vrcp.f32 %v6356_v30  ;;  %v6361_v9 = vadd.f32 1.0, %v18177_v17  ;;  %10623 = vmatmul.mubr.bf16.gmra.mrb[112].mxu0 %v21019_v46  ;;  %v23486_v14 = vld [vmem:[#allocation125_spill] sm:$0xff] }
 0x3c4   : > { %23485 = vst [vmem:[#allocation123_spill] sm:$0xff] %v21040_v26  ;;  %v21043_v0 = vsub.f32 %v5977_v43, %v21040_v26  ;;  %10962 = vmatmul.mubr.bf16.gmra.mrb[112].mxu1 %v21019_v46  ;;  %v18181_v13 = vpop.eup %18180  ;;  %v21051_v45 = vsub.f32 %v5978_v40, %v21048_v35  ;;  %18200 = vrcp.f32 %v6359_v62  ;;  %v6360_v33 = vadd.f32 1.0, %v18179_v32  ;;  %v17286_v43 = vld [vmem:[#allocation2 + $0x22e0] ss:$48 sps:$4 sm:$0xff]   ;;  %v17289_v30 = vld [vmem:[#allocation2 + $0x22e8] ss:$48 sps:$4 sm:$0xff]   ;;  %10689 = vmatprep.subr.bf16.mxu0 %v17288_v28 }
 0x3c5   : > { %v15120_v19 = vadd.f32 %v23486_v14, %v20376_v36  ;;  %v18183_v17 = vpop.eup %18182  ;;  %18202 = vrcp.f32 %v6361_v9  ;;  %v6362_v37 = vadd.f32 1.0, %v18181_v13  ;;  %v15121_v46 = vadd.f32 %v23488_v34, %v20387_v60  ;;  %11028 = vmatprep.subr.bf16.mxu1 %v17291_v15  ;;  %v17294_v40 = vld [vmem:[#allocation2 + $0x2344] ss:$48 sps:$4 sm:$0xff]   ;;  %v17297_v62 = vld [vmem:[#allocation2 + $0x234c] ss:$48 sps:$4 sm:$0xff]   ;;  %10690 = vmatpush1.bf16.msra.mxu0 %v17286_v43 }
 0x3c6   : > { %v18185_v32 = vpop.eup %18184  ;;  %v5983_v14 = vmax.f32 %v21029_v4, 0.0  ;;  %18204 = vrcp.f32 %v6360_v33  ;;  %v6365_v21 = vadd.f32 1.0, %v18183_v17  ;;  %v15153_v54 = vadd.f32 %v20736_v11, %v20390_v56  ;;  %v17292_v9 = vld [vmem:[#allocation2 + $0x2340] ss:$48 sps:$4 sm:$0xff]   ;;  %v17295_v15 = vld [vmem:[#allocation2 + $0x2348] ss:$48 sps:$4 sm:$0xff]   ;;  %11029 = vmatpush1.bf16.msra.mxu1 %v17289_v30  ;;  %10691 = vmatprep.subr.bf16.mxu0 %v17294_v40 }
 0x3c7   : > { %v18187_v13 = vpop.eup %18186  ;;  %v23489_v41 = vld [vmem:[#allocation83_spill] sm:$0xff]  ;;  %18206 = vrcp.f32 %v6362_v37  ;;  %v6367_v34 = vadd.f32 1.0, %v18185_v32  ;;  %v15122_v28 = vadd.f32 %v20750_v2, %v20376_v36  ;;  %v14276_v33 = vmul.f32 -1.442695, %v15120_v19  ;;  %v17303_v17 = vld [vmem:[#allocation2 + $0x23ac] ss:$48 sps:$4 sm:$0xff]   ;;  %11030 = vmatprep.subr.bf16.mxu1 %v17297_v62 }
 0x3c8   : > { %v21064_v25 = vadd.f32 %v23489_v41, %v20421_v24  ;;  %v17300_v6 = vld [vmem:[#allocation2 + $0x23a4] ss:$48 sps:$4 sm:$0xff]   ;;  %v18189_v29 = vpop.eup %18188  ;;  %18208 = vrcp.f32 %v6365_v21  ;;  %v6366_v4 = vadd.f32 1.0, %v18187_v13  ;;  %v15154_v11 = vadd.f32 %v20752_v58, %v20379_v53  ;;  %v23490_v43 = vld [vmem:[#allocation50_spill] sm:$0xff] }
 0x3c9   : > { %v18191_v10 = vpop.eup %18190  ;;  %18210 = vrcp.f32 %v6367_v34  ;;  %v6368_v41 = vadd.f32 1.0, %v18189_v29  ;;  %v14278_v37 = vmul.f32 -1.442695, %v15152_v38  ;;  %v14277_v32 = vmul.f32 -1.442695, %v15121_v46  ;;  %10692 = vmatpush1.bf16.msra.mxu0 %v17292_v9 }
 0x3ca   : > { %v18193_v2 = vpop.eup %18192  ;;  %v21071_v26 = vmul.f32 %v18191_v10, %v21015_v57  ;;  %18212 = vrcp.f32 %v6366_v4  ;;  %v14279_v21 = vmul.f32 -1.442695, %v15153_v54  ;;  %v15123_v19 = vadd.f32 %v20765_v59, %v20387_v60  ;;  %11031 = vmatpush1.bf16.msra.mxu1 %v17295_v15  ;;  %v17298_v59 = vld [vmem:[#allocation2 + $0x23a0] ss:$48 sps:$4 sm:$0xff]   ;;  %v17301_v40 = vld [vmem:[#allocation2 + $0x23a8] ss:$48 sps:$4 sm:$0xff]   ;;  %10693 = vmatprep.subr.bf16.mxu0 %v17300_v6 }
 0x3cb   : > { %v18195_v58 = vpop.eup %18194  ;;  %v21076_v30 = vmul.f32 %v18193_v2, %v23490_v43  ;;  %18214 = vrcp.f32 %v6368_v41  ;;  %v14282_v13 = vmul.f32 -1.442695, %v15122_v28  ;;  %v15155_v38 = vadd.f32 %v20767_v49, %v20390_v56  ;;  %v23491_v54 = vld [vmem:[#allocation52_spill] sm:$0xff]  ;;  %11032 = vmatprep.subr.bf16.mxu1 %v17303_v17  ;;  %v17306_v28 = vld [vmem:[#allocation2 + $0x1214] ss:$48 sps:$4 sm:$0xff]  }
 0x3cc   : > { %v18197_v29 = vpop.eup %18196  ;;  %v21081_v46 = vmul.f32 %v18195_v58, %v21025_v20  ;;  %18216 = vpow2.f32 %v14276_v33  ;;  %v14284_v57 = vmul.f32 -1.442695, %v15154_v11  ;;  %v15124_v10 = vadd.f32 %v20777_v55, %v20376_v36  ;;  %v17309_v4 = vld [vmem:[#allocation2 + $0x121c] ss:$48 sps:$4 sm:$0xff]   ;;  %v21096_v11 = vld [vmem:[%s18971_s20 + $0x260] sm:$0xff] }
 0x3cd   : > { %v18199_v62 = vpop.eup %18198  ;;  %v6738_v34 = vmul.f32 %v18197_v29, %v23491_v54  ;;  %18218 = vpow2.f32 %v14278_v37  ;;  %v15156_v49 = vadd.f32 %v20779_v8, %v20379_v53  ;;  %v15125_v20 = vadd.f32 %v20786_v39, %v20387_v60  ;;  %v23492_v8 = vld [vmem:[#allocation55_spill] sm:$0xff]  ;;  %10694 = vmatpush1.bf16.msra.mxu0 %v17298_v59  ;;  %v18742_v43 = vld [vmem:[%s18971_s20 + $0x1f8] sm:$0xff] }
 0x3ce   : > { %v18201_v36 = vpop.eup %18200  ;;  %v21091_v55 = vmul.f32 %v18199_v62, %v21037_v42  ;;  %18220 = vpow2.f32 %v14277_v32  ;;  %v14283_v9 = vmul.f32 -1.442695, %v15123_v19  ;;  %v15157_v15 = vadd.f32 %v20788_v63, %v20390_v56  ;;  %11033 = vmatpush1.bf16.msra.mxu1 %v17301_v40  ;;  %v23493_v63 = vld [vmem:[#allocation57_spill] sm:$0xff]  ;;  %11115 = vmatprep.subr.bf16.mxu0 %v17306_v28  ;;  %v21121_v40 = vld [vmem:[%s18971_s20 + $0x268] sm:$0xff] }
 0x3cf   : > { %v18203_v33 = vpop.eup %18202  ;;  %v6655_v53 = vsub.f32 %v5983_v14, %v21096_v11  ;;  %v6743_v60 = vmul.f32 %v18201_v36, %v23492_v8  ;;  %18222 = vpow2.f32 %v14279_v21  ;;  %v14285_v39 = vmul.f32 -1.442695, %v15155_v38  ;;  %11454 = vmatprep.subr.bf16.mxu1 %v17309_v4  ;;  %v18743_v38 = vld [vmem:[%s18971_s20 + $0x228] sm:$0xff] }
 0x3d0   : > { %v18205_v6 = vpop.eup %18204  ;;  %v5984_v17 = vmax.f32 %v21064_v25, 0.0  ;;  %v21102_v42 = vmul.f32 %v18203_v33, %v21043_v0  ;;  %18224 = vpow2.f32 %v14282_v13  ;;  %v14288_v41 = vmul.f32 -1.442695, %v15124_v10  ;;  %v18741_v25 = vld [vmem:[%s18971_s20 + $0x220] sm:$0xff] }
 0x3d1   : > { %v18207_v56 = vpop.eup %18206  ;;  %v6744_v14 = vmul.f32 %v18205_v6, %v23493_v63  ;;  %18226 = vpow2.f32 %v14284_v57  ;;  %v14290_v37 = vmul.f32 -1.442695, %v15156_v49  ;;  %v14289_v32 = vmul.f32 -1.442695, %v15125_v20  ;;  %v23497_v57 = vld [vmem:[#allocation58_spill] sm:$0xff] }
 0x3d2   : > { %v18209_v2 = vpop.eup %18208  ;;  %v21106_v0 = vadd.f32 %v18741_v25, %v6743_v60  ;;  %v21109_v21 = vmul.f32 %v18207_v56, %v21051_v45  ;;  %18228 = vpow2.f32 %v14283_v9  ;;  %v14291_v19 = vmul.f32 -1.442695, %v15157_v15  ;;  %v18745_v45 = vld [vmem:[%s18971_s20 + $0x1f0] sm:$0xff] }
 0x3d3   : > { %v18211_v58 = vpop.eup %18210  ;;  %v21112_v13 = vadd.f32 %v18742_v43, %v6738_v34  ;;  %v21115_v29 = vadd.f32 %v18743_v38, %v6744_v14  ;;  %v21118_v10 = vmul.f32 %v18209_v2, %v23497_v57  ;;  %18230 = vpow2.f32 %v14285_v39  ;;  %v23500_v14 = vld [vmem:[#allocation66_spill] sm:$0xff]  ;;  %v23501_v25 = vld [vmem:[#allocation87_spill] sm:$0xff] }
 0x3d4   : > { %23494 = vst [vmem:[#allocation124_spill] sm:$0xff] %v21106_v0  ;;  %v18213_v59 = vpop.eup %18212  ;;  %v6656_v62 = vsub.f32 %v5984_v17, %v21121_v40  ;;  %v21126_v54 = vadd.f32 %v18745_v45, %v21076_v30  ;;  %v21128_v49 = vmul.f32 %v18211_v58, %v6655_v53  ;;  %18232 = vpow2.f32 %v14288_v41  ;;  %v23499_v17 = vld [vmem:[#allocation84_spill] sm:$0xff] }
 0x3d5   : > { %23495 = vst [vmem:[#allocation40_spill] sm:$0xff] %v21112_v13  ;;  %23496 = vst [vmem:[#allocation42_spill] sm:$0xff] %v21115_v29  ;;  %v18215_v34 = vpop.eup %18214  ;;  %v21131_v20 = vmul.f32 %v18213_v59, %v20970_v3  ;;  %18234 = vpow2.f32 %v14290_v37  ;;  %v21135_v28 = vpack.c.bf16 %v21115_v29, %v21112_v13  ;;  %v15056_v41 = vadd.f32 %v23499_v17, %v20383_v31  ;;  %v21179_v29 = vld [vmem:[%s18971_s20 + $0x2c0] sm:$0xff] }
 0x3d6   : > { %23498 = vst [vmem:[#allocation65_spill] sm:$0xff] %v21126_v54  ;;  %v18217_v4 = vpop.eup %18216  ;;  %v21137_v36 = vmul.f32 %v18215_v34, %v6656_v62  ;;  %18236 = vpow2.f32 %v14289_v32  ;;  %v21141_v30 = vpack.c.bf16 %v21106_v0, %v21126_v54  ;;  %v5987_v37 = vmax.f32 %v23500_v14, 0.0  ;;  %v23502_v62 = vld [vmem:[#allocation49_spill] sm:$0xff]  ;;  %v21194_v0 = vld [vmem:[%s18971_s20 + $0x2c8] sm:$0xff] }
 0x3d7   : > { %v18219_v9 = vpop.eup %18218  ;;  %v6371_v15 = vadd.f32 1.0, %v18217_v4  ;;  %18238 = vpow2.f32 %v14291_v19  ;;  %10632 = vmatprep.mubr.bf16.mxu0 %v21135_v28  ;;  %10971 = vmatprep.mubr.bf16.mxu1 %v21135_v28  ;;  %v15057_v19 = vadd.f32 %v23501_v25, %v20421_v24  ;;  %v5989_v59 = vmax.f32 %v15056_v41, 0.0  ;;  %v23505_v41 = vld [vmem:[#allocation71_spill] sm:$0xff]  ;;  %v17633_v54 = vld [vmem:[#allocation2 + $0x146c] ss:$48 sps:$4 sm:$0xff]  }
 0x3d8   : > { %v18221_v3 = vpop.eup %18220  ;;  %v6373_v33 = vadd.f32 1.0, %v18219_v9  ;;  %10633 = vmatmul.mubr.bf16.gmra.mrb[116].mxu0 %v21141_v30  ;;  %10972 = vmatmul.mubr.bf16.gmra.mrb[116].mxu1 %v21141_v30  ;;  %v15058_v45 = vadd.f32 %v23502_v62, %v20383_v31  ;;  %v18746_v9 = vld [vmem:[%s18971_s20 + $0x280] sm:$0xff] }
 0x3d9   : > { %v18223_v53 = vpop.eup %18222  ;;  %18240 = vrcp.f32 %v6371_v15  ;;  %v6372_v8 = vadd.f32 1.0, %v18221_v3  ;;  %v6659_v15 = vsub.f32 %v5987_v37, %v18746_v9  ;;  %v23503_v3 = vld [vmem:[#allocation69_spill] sm:$0xff] }
 0x3da   : > { %v18225_v60 = vpop.eup %18224  ;;  %18242 = vrcp.f32 %v6373_v33  ;;  %v6374_v39 = vadd.f32 1.0, %v18223_v53  ;;  %v5988_v33 = vmax.f32 %v23503_v3, 0.0  ;;  %v21168_v3 = vld [vmem:[%s18971_s20 + $0x298] sm:$0xff] }
 0x3db   : > { %v18227_v6 = vpop.eup %18226  ;;  %18244 = vrcp.f32 %v6372_v8  ;;  %v6377_v56 = vadd.f32 1.0, %v18225_v60  ;;  %v5990_v60 = vmax.f32 %v15057_v19, 0.0  ;;  %v23507_v19 = vld [vmem:[#allocation90_spill] sm:$0xff] }
 0x3dc   : > { %v18229_v63 = vpop.eup %18228  ;;  %18246 = vrcp.f32 %v6374_v39  ;;  %v6379_v32 = vadd.f32 1.0, %v18227_v6  ;;  %v23504_v39 = vld [vmem:[#allocation89_spill] sm:$0xff] }
 0x3dd   : > { %v18231_v2 = vpop.eup %18230  ;;  %18248 = vrcp.f32 %v6377_v56  ;;  %v6378_v58 = vadd.f32 1.0, %v18229_v63  ;;  %v15059_v6 = vadd.f32 %v23504_v39, %v20421_v24  ;;  %v5993_v56 = vmax.f32 %v23505_v41, 0.0  ;;  %v23506_v63 = vld [vmem:[#allocation73_spill] sm:$0xff]  ;;  %v18750_v41 = vld [vmem:[%s18971_s20 + $0x2b0] sm:$0xff] }
 0x3de   : > { %v18233_v43 = vpop.eup %18232  ;;  %18250 = vrcp.f32 %v6379_v32  ;;  %v6380_v38 = vadd.f32 1.0, %v18231_v2  ;;  %v5994_v14 = vmax.f32 %v23506_v63, 0.0  ;;  %v21161_v2 = vld [vmem:[%s18971_s20 + $0x290] sm:$0xff]  ;;  %v18751_v63 = vld [vmem:[%s18971_s20 + $0x2b8] sm:$0xff] }
 0x3df   : > { %v18235_v57 = vpop.eup %18234  ;;  %18252 = vrcp.f32 %v6378_v58  ;;  %v6383_v34 = vadd.f32 1.0, %v18233_v43  ;;  %v6661_v25 = vsub.f32 %v5989_v59, %v21161_v2  ;;  %v5995_v58 = vmax.f32 %v15058_v45, 0.0  ;;  %v23508_v59 = vld [vmem:[#allocation91_spill] sm:$0xff] }
 0x3e0   : > { %v18237_v4 = vpop.eup %18236  ;;  %18254 = vrcp.f32 %v6380_v38  ;;  %v6385_v53 = vadd.f32 1.0, %v18235_v57  ;;  %v15060_v43 = vadd.f32 %v23507_v19, %v20383_v31  ;;  %v18748_v57 = vld [vmem:[%s18971_s20 + $0x288] sm:$0xff]  ;;  %v15061_v45 = vadd.f32 %v23508_v59, %v20421_v24 }
 0x3e1   : > { %v18239_v8 = vpop.eup %18238  ;;  %18256 = vrcp.f32 %v6383_v34  ;;  %v6384_v17 = vadd.f32 1.0, %v18237_v4  ;;  %v6660_v62 = vsub.f32 %v5988_v33, %v18748_v57  ;;  %v6666_v33 = vsub.f32 %v5994_v14, %v18751_v63 }
 0x3e2   : > { %18258 = vrcp.f32 %v6385_v53  ;;  %v6386_v32 = vadd.f32 1.0, %v18239_v8  ;;  %v6662_v53 = vsub.f32 %v5990_v60, %v21168_v3  ;;  %v5996_v8 = vmax.f32 %v15059_v6, 0.0 }
 0x3e3   : > { %v18241_v37 = vpop.eup %18240  ;;  %18260 = vrcp.f32 %v6384_v17  ;;  %v6665_v17 = vsub.f32 %v5993_v56, %v18750_v41  ;;  %v6667_v60 = vsub.f32 %v5995_v58, %v21179_v29  ;;  %v6001_v6 = vmax.f32 %v15060_v43, 0.0  ;;  %v23511_v56 = vld [vmem:[#allocation75_spill] sm:$0xff] }
 0x3e4   : > { %v18243_v38 = vpop.eup %18242  ;;  %v6755_v34 = vmul.f32 %v18241_v37, %v6659_v15  ;;  %18262 = vrcp.f32 %v6386_v32  ;;  %v23509_v15 = vld [vmem:[#allocation74_spill] sm:$0xff]  ;;  %v6000_v59 = vmax.f32 %v23511_v56, 0.0  ;;  %v21189_v14 = vadd.f32 %v20965_v12, %v21131_v20  ;;  %v18754_v43 = vld [vmem:[%s18971_s20 + $0x250] sm:$0xff]  ;;  %v18755_v12 = vld [vmem:[%s18971_s20 + $0x2e0] sm:$0xff] }
 0x3e5   : > { %v18245_v4 = vpop.eup %18244  ;;  %v21173_v39 = vmul.f32 %v18243_v38, %v6661_v25  ;;  %v5999_v37 = vmax.f32 %v23509_v15, 0.0  ;;  %v6668_v58 = vsub.f32 %v5996_v8, %v21194_v0 }
 0x3e6   : > { %v18247_v31 = vpop.eup %18246  ;;  %v6756_v32 = vmul.f32 %v18245_v4, %v6660_v62  ;;  %v21182_v24 = vadd.f32 %v18746_v9, %v6755_v34  ;;  %23512 = vst [vmem:[#allocation33_spill] sm:$0xff] %v21189_v14  ;;  %v6002_v9 = vmax.f32 %v15061_v45, 0.0  ;;  %v21199_v34 = vadd.f32 %v18754_v43, %v21118_v10 }
 0x3e7   : > { %v18249_v19 = vpop.eup %18248  ;;  %v21184_v25 = vmul.f32 %v18247_v31, %v6662_v53  ;;  %v6671_v20 = vsub.f32 %v5999_v37, %v18755_v12 }
 0x3e8   : > { %23510 = vst [vmem:[#allocation45_spill] sm:$0xff] %v21182_v24  ;;  %v18251_v38 = vpop.eup %18250  ;;  %v21191_v62 = vadd.f32 %v18748_v57, %v6756_v32  ;;  %v6761_v4 = vmul.f32 %v18249_v19, %v6665_v17  ;;  %23514 = vst [vmem:[#allocation47_spill] sm:$0xff] %v21199_v34  ;;  %v21209_v19 = vld [vmem:[%s18971_s20 + $0x2f0] sm:$0xff]  ;;  %v21216_v10 = vpack.c.bf16 %v21182_v24, %v21199_v34  ;;  %v23521_v34 = vld [vmem:[#allocation62_spill] sm:$0xff] }
 0x3e9   : > { %v18253_v15 = vpop.eup %18252  ;;  %v21201_v53 = vmul.f32 %v18251_v38, %v6667_v60  ;;  %v6673_v8 = vsub.f32 %v6001_v6, %v21209_v19  ;;  %v18757_v38 = vld [vmem:[%s18971_s20 + $0x2e8] sm:$0xff] }
 0x3ea   : > { %23513 = vst [vmem:[#allocation35_spill] sm:$0xff] %v21191_v62  ;;  %v18255_v31 = vpop.eup %18254  ;;  %v6762_v57 = vmul.f32 %v18253_v15, %v6666_v33  ;;  %v21206_v17 = vpack.c.bf16 %v21191_v62, %v21189_v14  ;;  %v6672_v37 = vsub.f32 %v6000_v59, %v18757_v38  ;;  %v21222_v15 = vld [vmem:[%s18971_s20 + $0x2f8] sm:$0xff]  ;;  %v23516_v62 = vld [vmem:[#allocation77_spill] sm:$0xff] }
 0x3eb   : > { %v18257_v32 = vpop.eup %18256  ;;  %v21212_v45 = vmul.f32 %v18255_v31, %v6668_v58  ;;  %v6674_v6 = vsub.f32 %v6002_v9, %v21222_v15 }
 0x3ec   : > { %v18259_v60 = vpop.eup %18258  ;;  %v6767_v33 = vmul.f32 %v18257_v32, %v6671_v20  ;;  %10642 = vmatprep.mubr.bf16.mxu0 %v21206_v17  ;;  %10981 = vmatprep.mubr.bf16.mxu1 %v21206_v17  ;;  %v18759_v32 = vld [vmem:[%s18971_s20 + $0x58] sm:$0xff]  ;;  %v21237_v14 = vadd.f32 %v18751_v63, %v6762_v57  ;;  %v18761_v63 = vld [vmem:[%s18971_s20 + $0x50] sm:$0xff] }
 0x3ed   : > { %v18261_v56 = vpop.eup %18260  ;;  %v21225_v58 = vmul.f32 %v18259_v60, %v6673_v8  ;;  %10643 = vmatmul.mubr.bf16.gmra.mrb[120].mxu0 %v21216_v10  ;;  %10982 = vmatmul.mubr.bf16.gmra.mrb[120].mxu1 %v21216_v10  ;;  %v21235_v24 = vadd.f32 %v18759_v32, %v23516_v62  ;;  %v21241_v8 = vadd.f32 %v18750_v41, %v6761_v4  ;;  %v18760_v60 = vld [vmem:[%s18971_s20 + $0x28] sm:$0xff]  ;;  %v23523_v4 = vld [vmem:[#allocation76_spill] sm:$0xff] }
 0x3ee   : > { %v18263_v43 = vpop.eup %18262  ;;  %v6768_v31 = vmul.f32 %v18261_v56, %v6672_v37  ;;  %v21229_v59 = vadd.f32 %v18755_v12, %v6767_v33  ;;  %23518 = vst [vmem:[#allocation126_spill] sm:$0xff] %v21237_v14  ;;  %v21245_v37 = vadd.f32 %v18760_v60, %v23521_v34  ;;  %v21267_v34 = vadd.f32 %v18761_v63, %v23523_v4  ;;  %v18762_v57 = vld [vmem:[%s18971_s20 + $0xb8] sm:$0xff]  ;;  %v18763_v33 = vld [vmem:[%s18971_s20 + $0x20] sm:$0xff] }
 0x3ef   : > { %v21231_v20 = vmul.f32 %v18263_v43, %v6674_v6  ;;  %23517 = vst [vmem:[#allocation125_spill] sm:$0xff] %v21235_v24  ;;  %23520 = vst [vmem:[#allocation83_spill] sm:$0xff] %v21241_v8  ;;  %v23526_v56 = vld [vmem:[#allocation60_spill] sm:$0xff]  ;;  %v18764_v43 = vld [vmem:[%s18971_s20 + $0x88] sm:$0xff] }
 0x3f0   : > { %23515 = vst [vmem:[#allocation39_spill] sm:$0xff] %v21229_v59  ;;  %v21239_v9 = vadd.f32 %v18757_v38, %v6768_v31  ;;  %23522 = vst [vmem:[#allocation50_spill] sm:$0xff] %v21245_v37  ;;  %v21253_v62 = vpack.c.bf16 %v21229_v59, %v21241_v8  ;;  %v21259_v41 = vpack.c.bf16 %v21235_v24, %v21245_v37  ;;  %v23528_v31 = vld [vmem:[#allocation79_spill] sm:$0xff]  ;;  %v17307_v4 = vld [vmem:[#allocation2 + $0x1218] ss:$48 sps:$4 sm:$0xff]  }
 0x3f1   : > { %23524 = vst [vmem:[#allocation52_spill] sm:$0xff] %v21267_v34  ;;  %v21271_v38 = vadd.f32 %v18762_v57, %v20763_v50  ;;  %v21275_v6 = vadd.f32 %v18763_v33, %v23526_v56  ;;  %v21279_v32 = vadd.f32 %v18764_v43, %v23528_v31  ;;  %v17304_v63 = vld [vmem:[#allocation2 + $0x1210] ss:$48 sps:$4 sm:$0xff]   ;;  %v17312_v50 = vld [vmem:[#allocation2 + $0x1274] ss:$48 sps:$4 sm:$0xff]   ;;  %v18766_v59 = vld [vmem:[%s18971_s20 + $0x118] sm:$0xff] }
 0x3f2   : > { %23519 = vst [vmem:[#allocation127_spill] sm:$0xff] %v21239_v9  ;;  %v21249_v12 = vpack.c.bf16 %v21239_v9, %v21237_v14  ;;  %v17315_v57 = vld [vmem:[#allocation2 + $0x127c] ss:$48 sps:$4 sm:$0xff]   ;;  %v18765_v33 = vld [vmem:[%s18971_s20 + $0xb0] sm:$0xff]  ;;  %v17313_v31 = vld [vmem:[#allocation2 + $0x1278] ss:$48 sps:$4 sm:$0xff]   ;;  %v21299_v14 = vadd.f32 %v18766_v59, %v20828_v52 }
 0x3f3   : > { %23525 = vst [vmem:[#allocation55_spill] sm:$0xff] %v21271_v38  ;;  %23527 = vst [vmem:[#allocation57_spill] sm:$0xff] %v21275_v6  ;;  %v21283_v60 = vpack.c.bf16 %v21267_v34, %v21275_v6  ;;  %v21287_v9 = vpack.c.bf16 %v21271_v38, %v21279_v32  ;;  %v21295_v56 = vadd.f32 %v18765_v33, %v20739_v44  ;;  %v17310_v43 = vld [vmem:[#allocation2 + $0x1270] ss:$48 sps:$4 sm:$0xff]   ;;  %v17318_v8 = vld [vmem:[#allocation2 + $0x12d4] ss:$48 sps:$4 sm:$0xff]  }
 0x3f4   : > { %10652 = vmatprep.mubr.bf16.mxu0 %v21249_v12  ;;  %10991 = vmatprep.mubr.bf16.mxu1 %v21249_v12  ;;  %23529 = vst [vmem:[#allocation58_spill] sm:$0xff] %v21279_v32  ;;  %23531 = vst [vmem:[#allocation66_spill] sm:$0xff] %v21299_v14  ;;  %v17321_v38 = vld [vmem:[#allocation2 + $0x12dc] ss:$48 sps:$4 sm:$0xff]   ;;  %v18767_v32 = vld [vmem:[%s18971_s20 + $0x80] sm:$0xff] }
 0x3f5   : > { %10653 = vmatmul.mubr.bf16.gmra.mrb[124].mxu0 %v21253_v62  ;;  %10992 = vmatmul.mubr.bf16.gmra.mrb[124].mxu1 %v21253_v62  ;;  %23530 = vst [vmem:[#allocation84_spill] sm:$0xff] %v21295_v56  ;;  %v23532_v24 = vld [vmem:[#allocation78_spill] sm:$0xff]  ;;  %v17316_v52 = vld [vmem:[#allocation2 + $0x12d0] ss:$48 sps:$4 sm:$0xff]  }
 0x3f6   : > { %10695 = vmatprep.mubr.bf16.mxu0 %v21259_v41  ;;  %11034 = vmatprep.mubr.bf16.mxu1 %v21259_v41  ;;  %v21303_v34 = vadd.f32 %v18767_v32, %v23532_v24  ;;  %v18768_v37 = vld [vmem:[%s18971_s20 + $0xe8] sm:$0xff]  ;;  %v17324_v24 = vld [vmem:[#allocation2 + $0x1334] ss:$48 sps:$4 sm:$0xff]  }
 0x3f7   : > { %v21307_v44 = vadd.f32 %v18768_v37, %v20800_v48  ;;  %v17319_v59 = vld [vmem:[#allocation2 + $0x12d8] ss:$48 sps:$4 sm:$0xff]   ;;  %v17327_v32 = vld [vmem:[#allocation2 + $0x133c] ss:$48 sps:$4 sm:$0xff]   ;;  %v18769_v48 = vld [vmem:[%s18971_s20 + $0x110] sm:$0xff] }
 0x3f8   : > { %23533 = vst [vmem:[#allocation87_spill] sm:$0xff] %v21303_v34  ;;  %v17322_v37 = vld [vmem:[#allocation2 + $0x1330] ss:$48 sps:$4 sm:$0xff]   ;;  %v17333_v33 = vld [vmem:[#allocation2 + $0x139c] ss:$48 sps:$4 sm:$0xff]  }
 0x3f9   : > { %23534 = vst [vmem:[#allocation49_spill] sm:$0xff] %v21307_v44 }
 0x3fd   : > { %10696 = vmatmul.mubr.bf16.vlgmr.msra.gmra.mrb[96].mxu0 %v21283_v60  ;;  %11035 = vmatmul.mubr.bf16.vlgmr.msra.gmra.mrb[96].mxu1 %v21283_v60 }
 0x3fe   : > { %10705 = vmatprep.mubr.bf16.mxu0 %v21287_v9  ;;  %11044 = vmatprep.mubr.bf16.mxu1 %v21287_v9 }
 0x3ff   : > { %11116 = vmatpush1.bf16.msra.mxu0 %v17304_v63  ;;  %11455 = vmatpush1.bf16.msra.mxu1 %v17307_v4  ;;  %v21311_v63 = vpack.c.bf16 %v21295_v56, %v21303_v34  ;;  %v21315_v4 = vpack.c.bf16 %v21299_v14, %v21307_v44  ;;  %v18771_v14 = vld [vmem:[%s18971_s20 + $0x148] sm:$0xff]  ;;  %v17630_v34 = vld [vmem:[#allocation2 + $0x1464] ss:$48 sps:$4 sm:$0xff]  }
 0x400   : > { %11117 = vmatprep.subr.bf16.mxu0 %v17312_v50  ;;  %11456 = vmatprep.subr.bf16.mxu1 %v17315_v57  ;;  %v21327_v50 = vadd.f32 %v20857_v5, %v20932_v1  ;;  %v17330_v57 = vld [vmem:[#allocation2 + $0x1394] ss:$48 sps:$4 sm:$0xff]   ;;  %v17328_v5 = vld [vmem:[#allocation2 + $0x1390] ss:$48 sps:$4 sm:$0xff]   ;;  %v17331_v1 = vld [vmem:[#allocation2 + $0x1398] ss:$48 sps:$4 sm:$0xff]  }
 0x401   : > { %v17543_v44 = vld [vmem:[#allocation2 + $0x20bc] ss:$48 sps:$4 sm:$0xff]  }
 0x402   : > { %23536 = vst [vmem:[#allocation89_spill] sm:$0xff] %v21327_v50  ;;  %v17555_v56 = vld [vmem:[#allocation2 + $0x217c] ss:$48 sps:$4 sm:$0xff]  }
 0x403   : > { %11118 = vmatpush1.bf16.msra.mxu0 %v17310_v43  ;;  %11457 = vmatpush1.bf16.msra.mxu1 %v17313_v31  ;;  %v18770_v43 = vld [vmem:[%s18971_s20 + $0xe0] sm:$0xff] }
 0x404   : > { %11119 = vmatprep.subr.bf16.mxu0 %v17318_v8  ;;  %11458 = vmatprep.subr.bf16.mxu1 %v17321_v38  ;;  %v21323_v8 = vadd.f32 %v18769_v48, %v20815_v47  ;;  %v17325_v38 = vld [vmem:[#allocation2 + $0x1338] ss:$48 sps:$4 sm:$0xff]   ;;  %v21331_v31 = vadd.f32 %v18770_v43, %v20782_v23  ;;  %v21335_v47 = vadd.f32 %v18771_v14, %v20915_v16  ;;  %v17336_v23 = vld [vmem:[#allocation2 + $0x13f4] ss:$48 sps:$4 sm:$0xff]  }
 0x405   : > { %10706 = vmatmul.mubr.bf16.gmra.mrb[100].mxu0 %v21311_v63  ;;  %11045 = vmatmul.mubr.bf16.gmra.mrb[100].mxu1 %v21311_v63  ;;  %v18772_v16 = vld [vmem:[%s18971_s20 + $0x170] sm:$0xff]  ;;  %v17337_v48 = vld [vmem:[#allocation2 + $0x13f8] ss:$48 sps:$4 sm:$0xff]   ;;  %v23541_v43 = vld [vmem:[#allocation21_spill] sm:$0xff] }
 0x406   : > { %10715 = vmatprep.mubr.bf16.mxu0 %v21315_v4  ;;  %11054 = vmatprep.mubr.bf16.mxu1 %v21315_v4  ;;  %23535 = vst [vmem:[#allocation69_spill] sm:$0xff] %v21323_v8  ;;  %23537 = vst [vmem:[#allocation71_spill] sm:$0xff] %v21331_v31  ;;  %v21351_v14 = vadd.f32 %v18772_v16, %v20919_v61  ;;  %v17346_v16 = vld [vmem:[#allocation2 + $0x14b0] ss:$48 sps:$4 sm:$0xff]  }
 0x407   : > { %11120 = vmatpush1.bf16.msra.mxu0 %v17316_v52  ;;  %11459 = vmatpush1.bf16.msra.mxu1 %v17319_v59  ;;  %23538 = vst [vmem:[#allocation73_spill] sm:$0xff] %v21335_v47  ;;  %v21339_v52 = vpack.c.bf16 %v21323_v8, %v21331_v31  ;;  %v21343_v59 = vpack.c.bf16 %v21327_v50, %v21335_v47  ;;  %v18774_v47 = vld [vmem:[%s18971_s20 + $0x1a8] sm:$0xff]  ;;  %v23586_v8 = vld [vmem:[#allocation29_spill] sm:$0xff] }
 0x408   : > { %11121 = vmatprep.subr.bf16.mxu0 %v17324_v24  ;;  %11460 = vmatprep.subr.bf16.mxu1 %v17327_v32  ;;  %v17339_v24 = vld [vmem:[#allocation2 + $0x13fc] ss:$48 sps:$4 sm:$0xff]   ;;  %23539 = vst [vmem:[#allocation90_spill] sm:$0xff] %v21351_v14  ;;  %v17334_v32 = vld [vmem:[#allocation2 + $0x13f0] ss:$48 sps:$4 sm:$0xff]   ;;  %v21363_v61 = vadd.f32 %v18774_v47, %v20958_v7 }
 0x409   : > { %v18775_v7 = vld [vmem:[%s18971_s20 + $0x1d0] sm:$0xff]  ;;  %v23588_v31 = vld [vmem:[#allocation38_spill] sm:$0xff] }
 0x40a   : > { %23543 = vst [vmem:[#allocation75_spill] sm:$0xff] %v21363_v61  ;;  %v21379_v47 = vadd.f32 %v18775_v7, %v20981_v22  ;;  %v21391_v22 = vadd.f32 %v21034_v27, %v21091_v55  ;;  %v23548_v27 = vld [vmem:[#allocation123_spill] sm:$0xff]  ;;  %v17361_v7 = vld [vmem:[#allocation2 + $0x1578] ss:$48 sps:$4 sm:$0xff]  }
 0x40b   : > { %11122 = vmatpush1.bf16.msra.mxu0 %v17322_v37  ;;  %11461 = vmatpush1.bf16.msra.mxu1 %v17325_v38  ;;  %v21355_v37 = vadd.f32 %v21012_v51, %v21071_v26  ;;  %v17342_v38 = vld [vmem:[#allocation2 + $0x1454] ss:$48 sps:$4 sm:$0xff]   ;;  %v17340_v51 = vld [vmem:[#allocation2 + $0x1450] ss:$48 sps:$4 sm:$0xff]   ;;  %v17343_v26 = vld [vmem:[#allocation2 + $0x1458] ss:$48 sps:$4 sm:$0xff]   ;;  %v21407_v55 = vadd.f32 %v23548_v27, %v21102_v42  ;;  %v21419_v42 = vadd.f32 %v21121_v40, %v21137_v36 }
 0x40c   : > { %11123 = vmatprep.subr.bf16.mxu0 %v17330_v57  ;;  %11462 = vmatprep.subr.bf16.mxu1 %v17333_v33  ;;  %v17345_v57 = vld [vmem:[#allocation2 + $0x145c] ss:$48 sps:$4 sm:$0xff]   ;;  %v18773_v33 = vld [vmem:[%s18971_s20 + $0x140] sm:$0xff]  ;;  %23544 = vst [vmem:[#allocation77_spill] sm:$0xff] %v21379_v47  ;;  %23547 = vst [vmem:[#allocation60_spill] sm:$0xff] %v21391_v22  ;;  %v21435_v40 = vadd.f32 %v21161_v2, %v21173_v39  ;;  %v21439_v27 = vadd.f32 %v21222_v15, %v21231_v20 }
 0x40d   : > { %10716 = vmatmul.mubr.bf16.gmra.mrb[104].mxu0 %v21339_v52  ;;  %11055 = vmatmul.mubr.bf16.gmra.mrb[104].mxu1 %v21339_v52  ;;  %23540 = vst [vmem:[#allocation91_spill] sm:$0xff] %v21355_v37  ;;  %v21359_v50 = vadd.f32 %v18773_v33, %v23541_v43  ;;  %v18776_v33 = vld [vmem:[%s18971_s20 + $0x1a0] sm:$0xff]  ;;  %23549 = vst [vmem:[#allocation79_spill] sm:$0xff] %v21407_v55  ;;  %v21447_v2 = vadd.f32 %v21194_v0, %v21212_v45  ;;  %v17379_v20 = vld [vmem:[#allocation2 + $0x1698] ss:$48 sps:$4 sm:$0xff]  }
 0x40e   : > { %10725 = vmatprep.mubr.bf16.mxu0 %v21343_v59  ;;  %11064 = vmatprep.mubr.bf16.mxu1 %v21343_v59  ;;  %v21387_v43 = vadd.f32 %v18776_v33, %v20950_v18  ;;  %v17360_v18 = vld [vmem:[#allocation2 + $0x1574] ss:$48 sps:$4 sm:$0xff]   ;;  %23553 = vst [vmem:[#allocation123_spill] sm:$0xff] %v21419_v42  ;;  %v17370_v36 = vld [vmem:[#allocation2 + $0x1630] ss:$48 sps:$4 sm:$0xff]   ;;  %23555 = vst [vmem:[#allocation130_spill] sm:$0xff] %v21439_v27  ;;  %v21463_v0 = vadd.f32 %v21209_v19, %v21225_v58 }
 0x40f   : > { %11124 = vmatpush1.bf16.msra.mxu0 %v17328_v5  ;;  %11463 = vmatpush1.bf16.msra.mxu1 %v17331_v1  ;;  %23542 = vst [vmem:[#allocation74_spill] sm:$0xff] %v21359_v50  ;;  %v21367_v5 = vpack.c.bf16 %v21351_v14, %v21359_v50  ;;  %v21371_v1 = vpack.c.bf16 %v21355_v37, %v21363_v61  ;;  %23557 = vst [vmem:[#allocation132_spill] sm:$0xff] %v21447_v2  ;;  %v17376_v15 = vld [vmem:[#allocation2 + $0x1690] ss:$48 sps:$4 sm:$0xff]   ;;  %v17391_v58 = vld [vmem:[#allocation2 + $0x1758] ss:$48 sps:$4 sm:$0xff]  }
 0x410   : > { %11125 = vmatprep.subr.bf16.mxu0 %v17336_v23  ;;  %11464 = vmatprep.subr.bf16.mxu1 %v17339_v24  ;;  %v17348_v23 = vld [vmem:[#allocation2 + $0x14b4] ss:$48 sps:$4 sm:$0xff]   ;;  %v17351_v24 = vld [vmem:[#allocation2 + $0x14bc] ss:$48 sps:$4 sm:$0xff]   ;;  %23546 = vst [vmem:[#allocation76_spill] sm:$0xff] %v21387_v43  ;;  %23560 = vst [vmem:[#allocation135_spill] sm:$0xff] %v21463_v0 }
 0x411   : > { %v17382_v45 = vld [vmem:[#allocation2 + $0x16f0] ss:$48 sps:$4 sm:$0xff]   ;;  %v23582_v61 = vld [vmem:[#allocation22_spill] sm:$0xff]  ;;  %v23584_v14 = vld [vmem:[#allocation32_spill] sm:$0xff] }
 0x412   : > { %v17388_v19 = vld [vmem:[#allocation2 + $0x1750] ss:$48 sps:$4 sm:$0xff]   ;;  %v17531_v50 = vld [vmem:[#allocation2 + $0x1ffc] ss:$48 sps:$4 sm:$0xff]  }
 0x413   : > { %11126 = vmatpush1.bf16.msra.mxu0 %v17334_v32  ;;  %11465 = vmatpush1.bf16.msra.mxu1 %v17337_v48  ;;  %v17349_v32 = vld [vmem:[#allocation2 + $0x14b8] ss:$48 sps:$4 sm:$0xff]   ;;  %v21383_v48 = vadd.f32 %v21048_v35, %v21109_v21  ;;  %v17352_v35 = vld [vmem:[#allocation2 + $0x1510] ss:$48 sps:$4 sm:$0xff]  }
 0x414   : > { %11127 = vmatprep.subr.bf16.mxu0 %v17342_v38  ;;  %11466 = vmatprep.subr.bf16.mxu1 %v17345_v57  ;;  %v17354_v38 = vld [vmem:[#allocation2 + $0x1514] ss:$48 sps:$4 sm:$0xff]   ;;  %v17357_v57 = vld [vmem:[#allocation2 + $0x151c] ss:$48 sps:$4 sm:$0xff]   ;;  %v17355_v21 = vld [vmem:[#allocation2 + $0x1518] ss:$48 sps:$4 sm:$0xff]  }
 0x415   : > { %10726 = vmatmul.mubr.bf16.gmra.mrb[108].mxu0 %v21367_v5  ;;  %11065 = vmatmul.mubr.bf16.gmra.mrb[108].mxu1 %v21367_v5  ;;  %23545 = vst [vmem:[#allocation62_spill] sm:$0xff] %v21383_v48  ;;  %v23580_v37 = vld [vmem:[#allocation9_spill] sm:$0xff] }
 0x416   : > { %10735 = vmatprep.mubr.bf16.mxu0 %v21371_v1  ;;  %11074 = vmatprep.mubr.bf16.mxu1 %v21371_v1 }
 0x417   : > { %11128 = vmatpush1.bf16.msra.mxu0 %v17340_v51  ;;  %11467 = vmatpush1.bf16.msra.mxu1 %v17343_v26  ;;  %v21395_v51 = vpack.c.bf16 %v21379_v47, %v21387_v43  ;;  %v21399_v26 = vpack.c.bf16 %v21383_v48, %v21391_v22  ;;  %v17483_v48 = vld [vmem:[#allocation2 + $0x1cfc] ss:$48 sps:$4 sm:$0xff]   ;;  %v17516_v47 = vld [vmem:[#allocation2 + $0x1f34] ss:$48 sps:$4 sm:$0xff]  }
 0x418   : > { %11129 = vmatprep.subr.bf16.mxu0 %v17348_v23  ;;  %11468 = vmatprep.subr.bf16.mxu1 %v17351_v24  ;;  %v17363_v23 = vld [vmem:[#allocation2 + $0x157c] ss:$48 sps:$4 sm:$0xff]   ;;  %v17358_v24 = vld [vmem:[#allocation2 + $0x1570] ss:$48 sps:$4 sm:$0xff]  }
 0x419   : > { %v17495_v22 = vld [vmem:[#allocation2 + $0x1dbc] ss:$48 sps:$4 sm:$0xff]  }
 0x41a   : > { %v17519_v43 = vld [vmem:[#allocation2 + $0x1f3c] ss:$48 sps:$4 sm:$0xff]  }
 0x41b   : > { %11130 = vmatpush1.bf16.msra.mxu0 %v17346_v16  ;;  %11469 = vmatpush1.bf16.msra.mxu1 %v17349_v32  ;;  %v21411_v16 = vadd.f32 %v21168_v3, %v21184_v25  ;;  %v17366_v32 = vld [vmem:[#allocation2 + $0x15d4] ss:$48 sps:$4 sm:$0xff]   ;;  %v17364_v3 = vld [vmem:[#allocation2 + $0x15d0] ss:$48 sps:$4 sm:$0xff]   ;;  %v17367_v25 = vld [vmem:[#allocation2 + $0x15d8] ss:$48 sps:$4 sm:$0xff]  }
 0x41c   : > { %11131 = vmatprep.subr.bf16.mxu0 %v17354_v38  ;;  %11470 = vmatprep.subr.bf16.mxu1 %v17357_v57  ;;  %v17369_v38 = vld [vmem:[#allocation2 + $0x15dc] ss:$48 sps:$4 sm:$0xff]  }
 0x41d   : > { %10736 = vmatmul.mubr.bf16.gmra.mrb[112].mxu0 %v21395_v51  ;;  %11075 = vmatmul.mubr.bf16.gmra.mrb[112].mxu1 %v21395_v51  ;;  %23550 = vst [vmem:[#allocation78_spill] sm:$0xff] %v21411_v16  ;;  %v23551_v57 = vld [vmem:[#allocation122_spill] sm:$0xff] }
 0x41e   : > { %10745 = vmatprep.mubr.bf16.mxu0 %v21399_v26  ;;  %11084 = vmatprep.mubr.bf16.mxu1 %v21399_v26  ;;  %v21415_v33 = vadd.f32 %v23551_v57, %v21081_v46  ;;  %v17372_v46 = vld [vmem:[#allocation2 + $0x1634] ss:$48 sps:$4 sm:$0xff]   ;;  %23554 = vst [vmem:[#allocation122_spill] sm:$0xff] %v21435_v40  ;;  %v17385_v57 = vld [vmem:[#allocation2 + $0x16f8] ss:$48 sps:$4 sm:$0xff]  }
 0x41f   : > { %11132 = vmatpush1.bf16.msra.mxu0 %v17352_v35  ;;  %11471 = vmatpush1.bf16.msra.mxu1 %v17355_v21  ;;  %v21427_v21 = vpack.c.bf16 %v21411_v16, %v21419_v42  ;;  %v17459_v16 = vld [vmem:[#allocation2 + $0x1b7c] ss:$48 sps:$4 sm:$0xff]  }
 0x420   : > { %11133 = vmatprep.subr.bf16.mxu0 %v17360_v18  ;;  %11472 = vmatprep.subr.bf16.mxu1 %v17363_v23  ;;  %23552 = vst [vmem:[#allocation21_spill] sm:$0xff] %v21415_v33  ;;  %v21423_v35 = vpack.c.bf16 %v21407_v55, %v21415_v33  ;;  %v17375_v18 = vld [vmem:[#allocation2 + $0x163c] ss:$48 sps:$4 sm:$0xff]   ;;  %v17373_v23 = vld [vmem:[#allocation2 + $0x1638] ss:$48 sps:$4 sm:$0xff]   ;;  %v23576_v55 = vld [vmem:[#allocation117_spill] sm:$0xff] }
 0x421   : > { %v17471_v42 = vld [vmem:[#allocation2 + $0x1c3c] ss:$48 sps:$4 sm:$0xff]   ;;  %v23578_v33 = vld [vmem:[#allocation121_spill] sm:$0xff] }
 0x423   : > { %11134 = vmatpush1.bf16.msra.mxu0 %v17358_v24  ;;  %11473 = vmatpush1.bf16.msra.mxu1 %v17361_v7  ;;  %v17378_v24 = vld [vmem:[#allocation2 + $0x1694] ss:$48 sps:$4 sm:$0xff]   ;;  %v17381_v7 = vld [vmem:[#allocation2 + $0x169c] ss:$48 sps:$4 sm:$0xff]  }
 0x424   : > { %11135 = vmatprep.subr.bf16.mxu0 %v17366_v32  ;;  %11474 = vmatprep.subr.bf16.mxu1 %v17369_v38  ;;  %v21443_v32 = vadd.f32 %v21096_v11, %v21128_v49  ;;  %v21455_v38 = vpack.c.bf16 %v21439_v27, %v21447_v2  ;;  %v17384_v11 = vld [vmem:[#allocation2 + $0x16f4] ss:$48 sps:$4 sm:$0xff]   ;;  %v17387_v49 = vld [vmem:[#allocation2 + $0x16fc] ss:$48 sps:$4 sm:$0xff]  }
 0x425   : > { %10746 = vmatmul.mubr.bf16.gmra.mrb[116].mxu0 %v21423_v35  ;;  %11085 = vmatmul.mubr.bf16.gmra.mrb[116].mxu1 %v21423_v35  ;;  %v17435_v27 = vld [vmem:[#allocation2 + $0x19fc] ss:$48 sps:$4 sm:$0xff]  }
 0x426   : > { %10755 = vmatprep.mubr.bf16.mxu0 %v21427_v21  ;;  %11094 = vmatprep.mubr.bf16.mxu1 %v21427_v21  ;;  %23556 = vst [vmem:[#allocation131_spill] sm:$0xff] %v21443_v32  ;;  %v21451_v39 = vpack.c.bf16 %v21435_v40, %v21443_v32  ;;  %23559 = vst [vmem:[#allocation134_spill] sm:$0xff] %v21455_v38  ;;  %v17447_v2 = vld [vmem:[#allocation2 + $0x1abc] ss:$48 sps:$4 sm:$0xff]  }
 0x427   : > { %11136 = vmatpush1.bf16.msra.mxu0 %v17364_v3  ;;  %11475 = vmatpush1.bf16.msra.mxu1 %v17367_v25  ;;  %v17390_v3 = vld [vmem:[#allocation2 + $0x1754] ss:$48 sps:$4 sm:$0xff]   ;;  %v17393_v25 = vld [vmem:[#allocation2 + $0x175c] ss:$48 sps:$4 sm:$0xff]  }
 0x428   : > { %11137 = vmatprep.subr.bf16.mxu0 %v17372_v46  ;;  %11476 = vmatprep.subr.bf16.mxu1 %v17375_v18  ;;  %23558 = vst [vmem:[#allocation133_spill] sm:$0xff] %v21451_v39  ;;  %v21467_v46 = vadd.f32 %v21179_v29, %v21201_v53  ;;  %v17394_v29 = vld [vmem:[#allocation2 + $0x17b0] ss:$48 sps:$4 sm:$0xff]   ;;  %v17397_v53 = vld [vmem:[#allocation2 + $0x17b8] ss:$48 sps:$4 sm:$0xff]  }
 0x429   : > { %v23572_v40 = vld [vmem:[#allocation106_spill] sm:$0xff]  ;;  %v23574_v32 = vld [vmem:[#allocation112_spill] sm:$0xff] }
 0x42a   : > { %23561 = vst [vmem:[#allocation136_spill] sm:$0xff] %v21467_v46  ;;  %v21471_v18 = vpack.c.bf16 %v21463_v0, %v21467_v46  ;;  %v23568_v0 = vld [vmem:[#allocation97_spill] sm:$0xff]  ;;  %v23570_v46 = vld [vmem:[#allocation103_spill] sm:$0xff] }
 0x42b   : > { %11138 = vmatpush1.bf16.msra.mxu0 %v17370_v36  ;;  %11477 = vmatpush1.bf16.msra.mxu1 %v17373_v23  ;;  %v17396_v36 = vld [vmem:[#allocation2 + $0x17b4] ss:$48 sps:$4 sm:$0xff]   ;;  %v17399_v23 = vld [vmem:[#allocation2 + $0x17bc] ss:$48 sps:$4 sm:$0xff]  }
 0x42c   : > { %11139 = vmatprep.subr.bf16.mxu0 %v17378_v24  ;;  %11478 = vmatprep.subr.bf16.mxu1 %v17381_v7  ;;  %23562 = vst [vmem:[#allocation137_spill] sm:$0xff] %v21471_v18  ;;  %v23563_v24 = vld [vmem:[#allocation37_spill] sm:$0xff] }
 0x42d   : > { %10756 = vmatmul.mubr.bf16.gmra.mrb[120].mxu0 %v21451_v39  ;;  %11095 = vmatmul.mubr.bf16.gmra.mrb[120].mxu1 %v21451_v39  ;;  %v17402_v7 = vld [vmem:[#allocation2 + $0x1814] ss:$48 sps:$4 sm:$0xff]  }
 0x42e   : > { %10765 = vmatprep.mubr.bf16.mxu0 %v21455_v38  ;;  %11104 = vmatprep.mubr.bf16.mxu1 %v21455_v38 }
 0x42f   : > { %11140 = vmatpush1.bf16.msra.mxu0 %v17376_v15  ;;  %11479 = vmatpush1.bf16.msra.mxu1 %v17379_v20  ;;  %v17405_v15 = vld [vmem:[#allocation2 + $0x181c] ss:$48 sps:$4 sm:$0xff]   ;;  %v17400_v20 = vld [vmem:[#allocation2 + $0x1810] ss:$48 sps:$4 sm:$0xff]  }
 0x430   : > { %11141 = vmatprep.subr.bf16.mxu0 %v17384_v11  ;;  %11480 = vmatprep.subr.bf16.mxu1 %v17387_v49  ;;  %v17403_v11 = vld [vmem:[#allocation2 + $0x1818] ss:$48 sps:$4 sm:$0xff]   ;;  %v17408_v49 = vld [vmem:[#allocation2 + $0x1874] ss:$48 sps:$4 sm:$0xff]  }
 0x433   : > { %11142 = vmatpush1.bf16.msra.mxu0 %v17382_v45  ;;  %11481 = vmatpush1.bf16.msra.mxu1 %v17385_v57  ;;  %v17411_v45 = vld [vmem:[#allocation2 + $0x187c] ss:$48 sps:$4 sm:$0xff]  }
 0x434   : > { %11143 = vmatprep.subr.bf16.mxu0 %v17390_v3  ;;  %11482 = vmatprep.subr.bf16.mxu1 %v17393_v25  ;;  %v23564_v57 = vld [vmem:[#allocation88_spill] sm:$0xff]  ;;  %v23565_v3 = vld [vmem:[#allocation46_spill] sm:$0xff]  ;;  %v17406_v25 = vld [vmem:[#allocation2 + $0x1870] ss:$48 sps:$4 sm:$0xff]  }
 0x435   : > { %10766 = vmatmul.mubr.bf16.gmra.mrb[124].mxu0 %v21471_v18  ;;  %11105 = vmatmul.mubr.bf16.gmra.mrb[124].mxu1 %v21471_v18 }
 0x436   : > { %11147 = vmatprep.mubr.bf16.mxu0 %v23563_v24  ;;  %11486 = vmatprep.mubr.bf16.mxu1 %v23563_v24 }
 0x437   : > { %11144 = vmatpush1.bf16.msra.mxu0 %v17388_v19  ;;  %11483 = vmatpush1.bf16.msra.mxu1 %v17391_v58  ;;  %v17409_v19 = vld [vmem:[#allocation2 + $0x1878] ss:$48 sps:$4 sm:$0xff]   ;;  %v17414_v58 = vld [vmem:[#allocation2 + $0x18d4] ss:$48 sps:$4 sm:$0xff]  }
 0x438   : > { %11145 = vmatprep.subr.bf16.mxu0 %v17396_v36  ;;  %11484 = vmatprep.subr.bf16.mxu1 %v17399_v23  ;;  %v17417_v36 = vld [vmem:[#allocation2 + $0x18dc] ss:$48 sps:$4 sm:$0xff]   ;;  %v17412_v23 = vld [vmem:[#allocation2 + $0x18d0] ss:$48 sps:$4 sm:$0xff]  }
 0x43b   : > { %11146 = vmatpush1.bf16.msra.mxu0 %v17394_v29  ;;  %11485 = vmatpush1.bf16.msra.mxu1 %v17397_v53  ;;  %v17415_v29 = vld [vmem:[#allocation2 + $0x18d8] ss:$48 sps:$4 sm:$0xff]   ;;  %v17420_v53 = vld [vmem:[#allocation2 + $0x1934] ss:$48 sps:$4 sm:$0xff]  }
 0x43c   : > { %11228 = vmatprep.subr.bf16.mxu0 %v17402_v7  ;;  %11567 = vmatprep.subr.bf16.mxu1 %v17405_v15  ;;  %v17423_v7 = vld [vmem:[#allocation2 + $0x193c] ss:$48 sps:$4 sm:$0xff]  }
 0x43d   : > { %v23566_v15 = vld [vmem:[#allocation56_spill] sm:$0xff] }
 0x43e   : > { %11148 = vmatmul.mubr.bf16.vlgmr.msra.gmra.mrb[128].mxu0 %v23564_v57  ;;  %11487 = vmatmul.mubr.bf16.vlgmr.msra.gmra.mrb[128].mxu1 %v23564_v57 }
 0x43f   : > { %11157 = vmatprep.mubr.bf16.mxu0 %v23565_v3  ;;  %11229 = vmatpush1.bf16.msra.mxu0 %v17400_v20  ;;  %v23567_v20 = vld [vmem:[#allocation94_spill] sm:$0xff] }
 0x440   : > { %11496 = vmatprep.mubr.bf16.mxu1 %v23565_v3  ;;  %11568 = vmatpush1.bf16.msra.mxu1 %v17403_v11  ;;  %v17418_v11 = vld [vmem:[#allocation2 + $0x1930] ss:$48 sps:$4 sm:$0xff]  }
 0x441   : > { %11230 = vmatprep.subr.bf16.mxu0 %v17408_v49  ;;  %11569 = vmatprep.subr.bf16.mxu1 %v17411_v45  ;;  %v17421_v49 = vld [vmem:[#allocation2 + $0x1938] ss:$48 sps:$4 sm:$0xff]   ;;  %v17426_v45 = vld [vmem:[#allocation2 + $0x1994] ss:$48 sps:$4 sm:$0xff]  }
 0x443   : > { %11231 = vmatpush1.bf16.msra.mxu0 %v17406_v25  ;;  %v17429_v25 = vld [vmem:[#allocation2 + $0x199c] ss:$48 sps:$4 sm:$0xff]  }
 0x444   : > { %11570 = vmatpush1.bf16.msra.mxu1 %v17409_v19  ;;  %11232 = vmatprep.subr.bf16.mxu0 %v17414_v58  ;;  %v17424_v19 = vld [vmem:[#allocation2 + $0x1990] ss:$48 sps:$4 sm:$0xff]   ;;  %v17427_v58 = vld [vmem:[#allocation2 + $0x1998] ss:$48 sps:$4 sm:$0xff]  }
 0x445   : > { %11571 = vmatprep.subr.bf16.mxu1 %v17417_v36  ;;  %v17432_v36 = vld [vmem:[#allocation2 + $0x19f4] ss:$48 sps:$4 sm:$0xff]  }
 0x446   : > { %11158 = vmatmul.mubr.bf16.gmra.mrb[132].mxu0 %v23566_v15  ;;  %11497 = vmatmul.mubr.bf16.gmra.mrb[132].mxu1 %v23566_v15 }
 0x447   : > { %11167 = vmatprep.mubr.bf16.mxu0 %v23567_v20  ;;  %11233 = vmatpush1.bf16.msra.mxu0 %v17412_v23  ;;  %v23569_v23 = vld [vmem:[#allocation63_spill] sm:$0xff] }
 0x448   : > { %11506 = vmatprep.mubr.bf16.mxu1 %v23567_v20  ;;  %11572 = vmatpush1.bf16.msra.mxu1 %v17415_v29  ;;  %v17430_v29 = vld [vmem:[#allocation2 + $0x19f0] ss:$48 sps:$4 sm:$0xff]  }
 0x449   : > { %11234 = vmatprep.subr.bf16.mxu0 %v17420_v53  ;;  %11573 = vmatprep.subr.bf16.mxu1 %v17423_v7  ;;  %v17433_v53 = vld [vmem:[#allocation2 + $0x19f8] ss:$48 sps:$4 sm:$0xff]   ;;  %v17438_v7 = vld [vmem:[#allocation2 + $0x1a54] ss:$48 sps:$4 sm:$0xff]  }
 0x44b   : > { %11235 = vmatpush1.bf16.msra.mxu0 %v17418_v11  ;;  %v17441_v11 = vld [vmem:[#allocation2 + $0x1a5c] ss:$48 sps:$4 sm:$0xff]  }
 0x44c   : > { %11574 = vmatpush1.bf16.msra.mxu1 %v17421_v49  ;;  %11236 = vmatprep.subr.bf16.mxu0 %v17426_v45  ;;  %v17436_v49 = vld [vmem:[#allocation2 + $0x1a50] ss:$48 sps:$4 sm:$0xff]   ;;  %v17439_v45 = vld [vmem:[#allocation2 + $0x1a58] ss:$48 sps:$4 sm:$0xff]  }
 0x44d   : > { %11575 = vmatprep.subr.bf16.mxu1 %v17429_v25  ;;  %v17444_v25 = vld [vmem:[#allocation2 + $0x1ab4] ss:$48 sps:$4 sm:$0xff]  }
 0x44e   : > { %11168 = vmatmul.mubr.bf16.gmra.mrb[136].mxu0 %v23568_v0  ;;  %11507 = vmatmul.mubr.bf16.gmra.mrb[136].mxu1 %v23568_v0 }
 0x44f   : > { %11177 = vmatprep.mubr.bf16.mxu0 %v23569_v23  ;;  %11237 = vmatpush1.bf16.msra.mxu0 %v17424_v19  ;;  %v23571_v19 = vld [vmem:[#allocation102_spill] sm:$0xff] }
 0x450   : > { %11516 = vmatprep.mubr.bf16.mxu1 %v23569_v23  ;;  %11576 = vmatpush1.bf16.msra.mxu1 %v17427_v58  ;;  %v17442_v58 = vld [vmem:[#allocation2 + $0x1ab0] ss:$48 sps:$4 sm:$0xff]  }
 0x451   : > { %11238 = vmatprep.subr.bf16.mxu0 %v17432_v36  ;;  %11577 = vmatprep.subr.bf16.mxu1 %v17435_v27  ;;  %v17445_v27 = vld [vmem:[#allocation2 + $0x1ab8] ss:$48 sps:$4 sm:$0xff]   ;;  %v17450_v36 = vld [vmem:[#allocation2 + $0x1b14] ss:$48 sps:$4 sm:$0xff]  }
 0x453   : > { %11239 = vmatpush1.bf16.msra.mxu0 %v17430_v29  ;;  %v17453_v29 = vld [vmem:[#allocation2 + $0x1b1c] ss:$48 sps:$4 sm:$0xff]  }
 0x454   : > { %11578 = vmatpush1.bf16.msra.mxu1 %v17433_v53  ;;  %11240 = vmatprep.subr.bf16.mxu0 %v17438_v7  ;;  %v17448_v53 = vld [vmem:[#allocation2 + $0x1b10] ss:$48 sps:$4 sm:$0xff]   ;;  %v17451_v7 = vld [vmem:[#allocation2 + $0x1b18] ss:$48 sps:$4 sm:$0xff]  }
 0x455   : > { %11579 = vmatprep.subr.bf16.mxu1 %v17441_v11  ;;  %v17456_v11 = vld [vmem:[#allocation2 + $0x1b74] ss:$48 sps:$4 sm:$0xff]  }
 0x456   : > { %11178 = vmatmul.mubr.bf16.gmra.mrb[140].mxu0 %v23570_v46  ;;  %11517 = vmatmul.mubr.bf16.gmra.mrb[140].mxu1 %v23570_v46 }
 0x457   : > { %11187 = vmatprep.mubr.bf16.mxu0 %v23571_v19  ;;  %11241 = vmatpush1.bf16.msra.mxu0 %v17436_v49  ;;  %v23573_v49 = vld [vmem:[#allocation72_spill] sm:$0xff] }
 0x458   : > { %11526 = vmatprep.mubr.bf16.mxu1 %v23571_v19  ;;  %11580 = vmatpush1.bf16.msra.mxu1 %v17439_v45  ;;  %v17454_v45 = vld [vmem:[#allocation2 + $0x1b70] ss:$48 sps:$4 sm:$0xff]  }
 0x459   : > { %11242 = vmatprep.subr.bf16.mxu0 %v17444_v25  ;;  %11581 = vmatprep.subr.bf16.mxu1 %v17447_v2  ;;  %v17457_v2 = vld [vmem:[#allocation2 + $0x1b78] ss:$48 sps:$4 sm:$0xff]   ;;  %v17462_v25 = vld [vmem:[#allocation2 + $0x1bd4] ss:$48 sps:$4 sm:$0xff]  }
 0x45b   : > { %11243 = vmatpush1.bf16.msra.mxu0 %v17442_v58  ;;  %v17465_v58 = vld [vmem:[#allocation2 + $0x1bdc] ss:$48 sps:$4 sm:$0xff]  }
 0x45c   : > { %11582 = vmatpush1.bf16.msra.mxu1 %v17445_v27  ;;  %11244 = vmatprep.subr.bf16.mxu0 %v17450_v36  ;;  %v17460_v27 = vld [vmem:[#allocation2 + $0x1bd0] ss:$48 sps:$4 sm:$0xff]   ;;  %v17463_v36 = vld [vmem:[#allocation2 + $0x1bd8] ss:$48 sps:$4 sm:$0xff]  }
 0x45d   : > { %11583 = vmatprep.subr.bf16.mxu1 %v17453_v29  ;;  %v17468_v29 = vld [vmem:[#allocation2 + $0x1c34] ss:$48 sps:$4 sm:$0xff]  }
 0x45e   : > { %11188 = vmatmul.mubr.bf16.gmra.mrb[144].mxu0 %v23572_v40  ;;  %11527 = vmatmul.mubr.bf16.gmra.mrb[144].mxu1 %v23572_v40 }
 0x45f   : > { %11197 = vmatprep.mubr.bf16.mxu0 %v23573_v49  ;;  %11245 = vmatpush1.bf16.msra.mxu0 %v17448_v53  ;;  %v23575_v53 = vld [vmem:[#allocation111_spill] sm:$0xff] }
 0x460   : > { %11536 = vmatprep.mubr.bf16.mxu1 %v23573_v49  ;;  %11584 = vmatpush1.bf16.msra.mxu1 %v17451_v7  ;;  %v17466_v7 = vld [vmem:[#allocation2 + $0x1c30] ss:$48 sps:$4 sm:$0xff]  }
 0x461   : > { %11246 = vmatprep.subr.bf16.mxu0 %v17456_v11  ;;  %11585 = vmatprep.subr.bf16.mxu1 %v17459_v16  ;;  %v17469_v16 = vld [vmem:[#allocation2 + $0x1c38] ss:$48 sps:$4 sm:$0xff]   ;;  %v17474_v11 = vld [vmem:[#allocation2 + $0x1c94] ss:$48 sps:$4 sm:$0xff]  }
 0x463   : > { %11247 = vmatpush1.bf16.msra.mxu0 %v17454_v45  ;;  %v17477_v45 = vld [vmem:[#allocation2 + $0x1c9c] ss:$48 sps:$4 sm:$0xff]  }
 0x464   : > { %11586 = vmatpush1.bf16.msra.mxu1 %v17457_v2  ;;  %11248 = vmatprep.subr.bf16.mxu0 %v17462_v25  ;;  %v17472_v2 = vld [vmem:[#allocation2 + $0x1c90] ss:$48 sps:$4 sm:$0xff]   ;;  %v17475_v25 = vld [vmem:[#allocation2 + $0x1c98] ss:$48 sps:$4 sm:$0xff]  }
 0x465   : > { %11587 = vmatprep.subr.bf16.mxu1 %v17465_v58  ;;  %v17480_v58 = vld [vmem:[#allocation2 + $0x1cf4] ss:$48 sps:$4 sm:$0xff]  }
 0x466   : > { %11198 = vmatmul.mubr.bf16.gmra.mrb[148].mxu0 %v23574_v32  ;;  %11537 = vmatmul.mubr.bf16.gmra.mrb[148].mxu1 %v23574_v32 }
 0x467   : > { %11207 = vmatprep.mubr.bf16.mxu0 %v23575_v53  ;;  %11249 = vmatpush1.bf16.msra.mxu0 %v17460_v27  ;;  %v23577_v27 = vld [vmem:[#allocation118_spill] sm:$0xff] }
 0x468   : > { %11546 = vmatprep.mubr.bf16.mxu1 %v23575_v53  ;;  %11588 = vmatpush1.bf16.msra.mxu1 %v17463_v36  ;;  %v17478_v36 = vld [vmem:[#allocation2 + $0x1cf0] ss:$48 sps:$4 sm:$0xff]  }
 0x469   : > { %11250 = vmatprep.subr.bf16.mxu0 %v17468_v29  ;;  %11589 = vmatprep.subr.bf16.mxu1 %v17471_v42  ;;  %v17481_v42 = vld [vmem:[#allocation2 + $0x1cf8] ss:$48 sps:$4 sm:$0xff]   ;;  %v17486_v29 = vld [vmem:[#allocation2 + $0x1d54] ss:$48 sps:$4 sm:$0xff]  }
 0x46b   : > { %11251 = vmatpush1.bf16.msra.mxu0 %v17466_v7  ;;  %v17489_v7 = vld [vmem:[#allocation2 + $0x1d5c] ss:$48 sps:$4 sm:$0xff]  }
 0x46c   : > { %11590 = vmatpush1.bf16.msra.mxu1 %v17469_v16  ;;  %11252 = vmatprep.subr.bf16.mxu0 %v17474_v11  ;;  %v17484_v16 = vld [vmem:[#allocation2 + $0x1d50] ss:$48 sps:$4 sm:$0xff]   ;;  %v17487_v11 = vld [vmem:[#allocation2 + $0x1d58] ss:$48 sps:$4 sm:$0xff]  }
 0x46d   : > { %11591 = vmatprep.subr.bf16.mxu1 %v17477_v45  ;;  %v17492_v45 = vld [vmem:[#allocation2 + $0x1db4] ss:$48 sps:$4 sm:$0xff]  }
 0x46e   : > { %11208 = vmatmul.mubr.bf16.gmra.mrb[152].mxu0 %v23576_v55  ;;  %11547 = vmatmul.mubr.bf16.gmra.mrb[152].mxu1 %v23576_v55 }
 0x46f   : > { %11217 = vmatprep.mubr.bf16.mxu0 %v23577_v27  ;;  %11253 = vmatpush1.bf16.msra.mxu0 %v17472_v2  ;;  %v23579_v2 = vld [vmem:[#allocation8_spill] sm:$0xff] }
 0x470   : > { %11556 = vmatprep.mubr.bf16.mxu1 %v23577_v27  ;;  %11592 = vmatpush1.bf16.msra.mxu1 %v17475_v25  ;;  %v17490_v25 = vld [vmem:[#allocation2 + $0x1db0] ss:$48 sps:$4 sm:$0xff]  }
 0x471   : > { %11254 = vmatprep.subr.bf16.mxu0 %v17480_v58  ;;  %11593 = vmatprep.subr.bf16.mxu1 %v17483_v48  ;;  %v17493_v48 = vld [vmem:[#allocation2 + $0x1db8] ss:$48 sps:$4 sm:$0xff]   ;;  %v17498_v58 = vld [vmem:[#allocation2 + $0x1e14] ss:$48 sps:$4 sm:$0xff]  }
 0x473   : > { %11255 = vmatpush1.bf16.msra.mxu0 %v17478_v36  ;;  %v17501_v36 = vld [vmem:[#allocation2 + $0x1e1c] ss:$48 sps:$4 sm:$0xff]  }
 0x474   : > { %11594 = vmatpush1.bf16.msra.mxu1 %v17481_v42  ;;  %11256 = vmatprep.subr.bf16.mxu0 %v17486_v29  ;;  %v17496_v42 = vld [vmem:[#allocation2 + $0x1e10] ss:$48 sps:$4 sm:$0xff]   ;;  %v17499_v29 = vld [vmem:[#allocation2 + $0x1e18] ss:$48 sps:$4 sm:$0xff]  }
 0x475   : > { %11595 = vmatprep.subr.bf16.mxu1 %v17489_v7  ;;  %v17504_v7 = vld [vmem:[#allocation2 + $0x1e74] ss:$48 sps:$4 sm:$0xff]  }
 0x476   : > { %11218 = vmatmul.mubr.bf16.gmra.mrb[156].mxu0 %v23578_v33  ;;  %11557 = vmatmul.mubr.bf16.gmra.mrb[156].mxu1 %v23578_v33 }
 0x477   : > { %11257 = vmatpush1.bf16.msra.mxu0 %v17484_v16  ;;  %11260 = vmatprep.mubr.bf16.mxu0 %v23579_v2  ;;  %v17507_v16 = vld [vmem:[#allocation2 + $0x1e7c] ss:$48 sps:$4 sm:$0xff]  }
 0x478   : > { %11596 = vmatpush1.bf16.msra.mxu1 %v17487_v11  ;;  %11599 = vmatprep.mubr.bf16.mxu1 %v23579_v2  ;;  %v23581_v11 = vld [vmem:[#allocation18_spill] sm:$0xff] }
 0x479   : > { %11258 = vmatprep.subr.bf16.mxu0 %v17492_v45  ;;  %11597 = vmatprep.subr.bf16.mxu1 %v17495_v22  ;;  %v17502_v45 = vld [vmem:[#allocation2 + $0x1e70] ss:$48 sps:$4 sm:$0xff]   ;;  %v17505_v22 = vld [vmem:[#allocation2 + $0x1e78] ss:$48 sps:$4 sm:$0xff]  }
 0x47b   : > { %11259 = vmatpush1.bf16.msra.mxu0 %v17490_v25  ;;  %v17510_v25 = vld [vmem:[#allocation2 + $0x1ed4] ss:$48 sps:$4 sm:$0xff]  }
 0x47c   : > { %11598 = vmatpush1.bf16.msra.mxu1 %v17493_v48  ;;  %11341 = vmatprep.subr.bf16.mxu0 %v17498_v58  ;;  %v17513_v48 = vld [vmem:[#allocation2 + $0x1edc] ss:$48 sps:$4 sm:$0xff]   ;;  %v17508_v58 = vld [vmem:[#allocation2 + $0x1ed0] ss:$48 sps:$4 sm:$0xff]  }
 0x47d   : > { %11680 = vmatprep.subr.bf16.mxu1 %v17501_v36  ;;  %v17511_v36 = vld [vmem:[#allocation2 + $0x1ed8] ss:$48 sps:$4 sm:$0xff]  }
 0x47e   : > { %11261 = vmatmul.mubr.bf16.vlgmr.msra.gmra.mrb[128].mxu0 %v23580_v37 }
 0x47f   : > { %11600 = vmatmul.mubr.bf16.vlgmr.msra.gmra.mrb[128].mxu1 %v23580_v37  ;;  %11270 = vmatprep.mubr.bf16.mxu0 %v23581_v11 }
 0x480   : > { %11342 = vmatpush1.bf16.msra.mxu0 %v17496_v42  ;;  %11609 = vmatprep.mubr.bf16.mxu1 %v23581_v11  ;;  %v23583_v42 = vld [vmem:[#allocation10_spill] sm:$0xff] }
 0x481   : > { %11681 = vmatpush1.bf16.msra.mxu1 %v17499_v29  ;;  %11343 = vmatprep.subr.bf16.mxu0 %v17504_v7  ;;  %v17514_v29 = vld [vmem:[#allocation2 + $0x1f30] ss:$48 sps:$4 sm:$0xff]   ;;  %v17517_v7 = vld [vmem:[#allocation2 + $0x1f38] ss:$48 sps:$4 sm:$0xff]  }
 0x482   : > { %11682 = vmatprep.subr.bf16.mxu1 %v17507_v16  ;;  %v17522_v16 = vld [vmem:[#allocation2 + $0x1f94] ss:$48 sps:$4 sm:$0xff]  }
 0x484   : > { %11344 = vmatpush1.bf16.msra.mxu0 %v17502_v45  ;;  %v17525_v45 = vld [vmem:[#allocation2 + $0x1f9c] ss:$48 sps:$4 sm:$0xff]  }
 0x485   : > { %11683 = vmatpush1.bf16.msra.mxu1 %v17505_v22  ;;  %11345 = vmatprep.subr.bf16.mxu0 %v17510_v25  ;;  %v17520_v22 = vld [vmem:[#allocation2 + $0x1f90] ss:$48 sps:$4 sm:$0xff]   ;;  %v17523_v25 = vld [vmem:[#allocation2 + $0x1f98] ss:$48 sps:$4 sm:$0xff]  }
 0x486   : > { %11271 = vmatmul.mubr.bf16.gmra.mrb[132].mxu0 %v23582_v61  ;;  %11684 = vmatprep.subr.bf16.mxu1 %v17513_v48  ;;  %v17528_v48 = vld [vmem:[#allocation2 + $0x1ff4] ss:$48 sps:$4 sm:$0xff]  }
 0x487   : > { %11610 = vmatmul.mubr.bf16.gmra.mrb[132].mxu1 %v23582_v61  ;;  %11280 = vmatprep.mubr.bf16.mxu0 %v23583_v42 }
 0x488   : > { %11346 = vmatpush1.bf16.msra.mxu0 %v17508_v58  ;;  %11619 = vmatprep.mubr.bf16.mxu1 %v23583_v42  ;;  %v23585_v58 = vld [vmem:[#allocation27_spill] sm:$0xff] }
 0x489   : > { %11685 = vmatpush1.bf16.msra.mxu1 %v17511_v36  ;;  %11347 = vmatprep.subr.bf16.mxu0 %v17516_v47  ;;  %v17526_v47 = vld [vmem:[#allocation2 + $0x1ff0] ss:$48 sps:$4 sm:$0xff]   ;;  %v17534_v36 = vld [vmem:[#allocation2 + $0x2054] ss:$48 sps:$4 sm:$0xff]  }
 0x48a   : > { %11686 = vmatprep.subr.bf16.mxu1 %v17519_v43  ;;  %v17529_v43 = vld [vmem:[#allocation2 + $0x1ff8] ss:$48 sps:$4 sm:$0xff]  }
 0x48c   : > { %11348 = vmatpush1.bf16.msra.mxu0 %v17514_v29  ;;  %v17537_v29 = vld [vmem:[#allocation2 + $0x205c] ss:$48 sps:$4 sm:$0xff]  }
 0x48d   : > { %11687 = vmatpush1.bf16.msra.mxu1 %v17517_v7  ;;  %11349 = vmatprep.subr.bf16.mxu0 %v17522_v16  ;;  %v17532_v7 = vld [vmem:[#allocation2 + $0x2050] ss:$48 sps:$4 sm:$0xff]   ;;  %v17535_v16 = vld [vmem:[#allocation2 + $0x2058] ss:$48 sps:$4 sm:$0xff]  }
 0x48e   : > { %11281 = vmatmul.mubr.bf16.gmra.mrb[136].mxu0 %v23584_v14  ;;  %11688 = vmatprep.subr.bf16.mxu1 %v17525_v45  ;;  %v17540_v45 = vld [vmem:[#allocation2 + $0x20b4] ss:$48 sps:$4 sm:$0xff]  }
 0x48f   : > { %11620 = vmatmul.mubr.bf16.gmra.mrb[136].mxu1 %v23584_v14  ;;  %11290 = vmatprep.mubr.bf16.mxu0 %v23585_v58 }
 0x490   : > { %11350 = vmatpush1.bf16.msra.mxu0 %v17520_v22  ;;  %11629 = vmatprep.mubr.bf16.mxu1 %v23585_v58  ;;  %v23587_v22 = vld [vmem:[#allocation19_spill] sm:$0xff] }
 0x491   : > { %11689 = vmatpush1.bf16.msra.mxu1 %v17523_v25  ;;  %11351 = vmatprep.subr.bf16.mxu0 %v17528_v48  ;;  %v17538_v25 = vld [vmem:[#allocation2 + $0x20b0] ss:$48 sps:$4 sm:$0xff]   ;;  %v17546_v48 = vld [vmem:[#allocation2 + $0x2114] ss:$48 sps:$4 sm:$0xff]  }
 0x492   : > { %11690 = vmatprep.subr.bf16.mxu1 %v17531_v50  ;;  %v17541_v50 = vld [vmem:[#allocation2 + $0x20b8] ss:$48 sps:$4 sm:$0xff]  }
 0x494   : > { %11352 = vmatpush1.bf16.msra.mxu0 %v17526_v47  ;;  %v17549_v47 = vld [vmem:[#allocation2 + $0x211c] ss:$48 sps:$4 sm:$0xff]  }
 0x495   : > { %11691 = vmatpush1.bf16.msra.mxu1 %v17529_v43  ;;  %11353 = vmatprep.subr.bf16.mxu0 %v17534_v36  ;;  %v17544_v43 = vld [vmem:[#allocation2 + $0x2110] ss:$48 sps:$4 sm:$0xff]   ;;  %v17547_v36 = vld [vmem:[#allocation2 + $0x2118] ss:$48 sps:$4 sm:$0xff]  }
 0x496   : > { %11291 = vmatmul.mubr.bf16.gmra.mrb[140].mxu0 %v23586_v8  ;;  %11692 = vmatprep.subr.bf16.mxu1 %v17537_v29  ;;  %v17552_v29 = vld [vmem:[#allocation2 + $0x2174] ss:$48 sps:$4 sm:$0xff]  }
 0x497   : > { %11630 = vmatmul.mubr.bf16.gmra.mrb[140].mxu1 %v23586_v8  ;;  %11300 = vmatprep.mubr.bf16.mxu0 %v23587_v22 }
 0x498   : > { %11354 = vmatpush1.bf16.msra.mxu0 %v17532_v7  ;;  %11639 = vmatprep.mubr.bf16.mxu1 %v23587_v22  ;;  %v17550_v7 = vld [vmem:[#allocation2 + $0x2170] ss:$48 sps:$4 sm:$0xff]  }
 0x499   : > { %11693 = vmatpush1.bf16.msra.mxu1 %v17535_v16  ;;  %11355 = vmatprep.subr.bf16.mxu0 %v17540_v45  ;;  %v17558_v16 = vld [vmem:[#allocation2 + $0x21d4] ss:$48 sps:$4 sm:$0xff]   ;;  %v17561_v45 = vld [vmem:[#allocation2 + $0x21dc] ss:$48 sps:$4 sm:$0xff]  }
 0x49a   : > { %11694 = vmatprep.subr.bf16.mxu1 %v17543_v44  ;;  %v17553_v44 = vld [vmem:[#allocation2 + $0x2178] ss:$48 sps:$4 sm:$0xff]  }
 0x49c   : > { %11356 = vmatpush1.bf16.msra.mxu0 %v17538_v25  ;;  %v17556_v25 = vld [vmem:[#allocation2 + $0x21d0] ss:$48 sps:$4 sm:$0xff]  }
 0x49d   : > { %11695 = vmatpush1.bf16.msra.mxu1 %v17541_v50  ;;  %11357 = vmatprep.subr.bf16.mxu0 %v17546_v48  ;;  %v17559_v50 = vld [vmem:[#allocation2 + $0x21d8] ss:$48 sps:$4 sm:$0xff]   ;;  %v17564_v48 = vld [vmem:[#allocation2 + $0x2234] ss:$48 sps:$4 sm:$0xff]  }
 0x49e   : > { %11301 = vmatmul.mubr.bf16.gmra.mrb[144].mxu0 %v23588_v31  ;;  %11696 = vmatprep.subr.bf16.mxu1 %v17549_v47  ;;  %v17567_v47 = vld [vmem:[#allocation2 + $0x223c] ss:$48 sps:$4 sm:$0xff]  }
 0x49f   : > { %11640 = vmatmul.mubr.bf16.gmra.mrb[144].mxu1 %v23588_v31  ;;  %11310 = vmatprep.mubr.bf16.mxu0 %v21135_v28 }
 0x4a0   : > { %11358 = vmatpush1.bf16.msra.mxu0 %v17544_v43  ;;  %11649 = vmatprep.mubr.bf16.mxu1 %v21135_v28  ;;  %v17562_v43 = vld [vmem:[#allocation2 + $0x2230] ss:$48 sps:$4 sm:$0xff]  }
 0x4a1   : > { %11697 = vmatpush1.bf16.msra.mxu1 %v17547_v36  ;;  %11359 = vmatprep.subr.bf16.mxu0 %v17552_v29  ;;  %v17570_v36 = vld [vmem:[#allocation2 + $0x2294] ss:$48 sps:$4 sm:$0xff]   ;;  %v17573_v29 = vld [vmem:[#allocation2 + $0x229c] ss:$48 sps:$4 sm:$0xff]  }
 0x4a2   : > { %11698 = vmatprep.subr.bf16.mxu1 %v17555_v56  ;;  %v17565_v56 = vld [vmem:[#allocation2 + $0x2238] ss:$48 sps:$4 sm:$0xff]  }
 0x4a4   : > { %11360 = vmatpush1.bf16.msra.mxu0 %v17550_v7  ;;  %v17568_v7 = vld [vmem:[#allocation2 + $0x2290] ss:$48 sps:$4 sm:$0xff]  }
 0x4a5   : > { %11699 = vmatpush1.bf16.msra.mxu1 %v17553_v44  ;;  %11361 = vmatprep.subr.bf16.mxu0 %v17558_v16  ;;  %v17571_v44 = vld [vmem:[#allocation2 + $0x2298] ss:$48 sps:$4 sm:$0xff]   ;;  %v17576_v16 = vld [vmem:[#allocation2 + $0x22f4] ss:$48 sps:$4 sm:$0xff]  }
 0x4a6   : > { %11311 = vmatmul.mubr.bf16.gmra.mrb[148].mxu0 %v21141_v30  ;;  %11700 = vmatprep.subr.bf16.mxu1 %v17561_v45  ;;  %v17579_v45 = vld [vmem:[#allocation2 + $0x22fc] ss:$48 sps:$4 sm:$0xff]  }
 0x4a7   : > { %11650 = vmatmul.mubr.bf16.gmra.mrb[148].mxu1 %v21141_v30  ;;  %11320 = vmatprep.mubr.bf16.mxu0 %v21206_v17 }
 0x4a8   : > { %11362 = vmatpush1.bf16.msra.mxu0 %v17556_v25  ;;  %11659 = vmatprep.mubr.bf16.mxu1 %v21206_v17  ;;  %v17574_v25 = vld [vmem:[#allocation2 + $0x22f0] ss:$48 sps:$4 sm:$0xff]  }
 0x4a9   : > { %11701 = vmatpush1.bf16.msra.mxu1 %v17559_v50  ;;  %11363 = vmatprep.subr.bf16.mxu0 %v17564_v48  ;;  %v17577_v50 = vld [vmem:[#allocation2 + $0x22f8] ss:$48 sps:$4 sm:$0xff]   ;;  %v17582_v48 = vld [vmem:[#allocation2 + $0x2354] ss:$48 sps:$4 sm:$0xff]  }
 0x4aa   : > { %11702 = vmatprep.subr.bf16.mxu1 %v17567_v47  ;;  %v17585_v47 = vld [vmem:[#allocation2 + $0x235c] ss:$48 sps:$4 sm:$0xff]  }
 0x4ac   : > { %11364 = vmatpush1.bf16.msra.mxu0 %v17562_v43  ;;  %v17580_v43 = vld [vmem:[#allocation2 + $0x2350] ss:$48 sps:$4 sm:$0xff]  }
 0x4ad   : > { %11703 = vmatpush1.bf16.msra.mxu1 %v17565_v56  ;;  %11365 = vmatprep.subr.bf16.mxu0 %v17570_v36  ;;  %v17583_v56 = vld [vmem:[#allocation2 + $0x2358] ss:$48 sps:$4 sm:$0xff]   ;;  %v17588_v36 = vld [vmem:[#allocation2 + $0x23b4] ss:$48 sps:$4 sm:$0xff]  }
 0x4ae   : > { %11321 = vmatmul.mubr.bf16.gmra.mrb[152].mxu0 %v21216_v10  ;;  %11704 = vmatprep.subr.bf16.mxu1 %v17573_v29  ;;  %v17591_v29 = vld [vmem:[#allocation2 + $0x23bc] ss:$48 sps:$4 sm:$0xff]  }
 0x4af   : > { %11660 = vmatmul.mubr.bf16.gmra.mrb[152].mxu1 %v21216_v10  ;;  %11330 = vmatprep.mubr.bf16.mxu0 %v21249_v12 }
 0x4b0   : > { %11366 = vmatpush1.bf16.msra.mxu0 %v17568_v7  ;;  %11669 = vmatprep.mubr.bf16.mxu1 %v21249_v12  ;;  %v17586_v7 = vld [vmem:[#allocation2 + $0x23b0] ss:$48 sps:$4 sm:$0xff]  }
 0x4b1   : > { %11705 = vmatpush1.bf16.msra.mxu1 %v17571_v44  ;;  %11367 = vmatprep.subr.bf16.mxu0 %v17576_v16  ;;  %v17589_v44 = vld [vmem:[#allocation2 + $0x23b8] ss:$48 sps:$4 sm:$0xff]   ;;  %v17594_v16 = vld [vmem:[#allocation2 + $0x1224] ss:$48 sps:$4 sm:$0xff]  }
 0x4b2   : > { %11706 = vmatprep.subr.bf16.mxu1 %v17579_v45  ;;  %v17597_v45 = vld [vmem:[#allocation2 + $0x122c] ss:$48 sps:$4 sm:$0xff]  }
 0x4b4   : > { %11368 = vmatpush1.bf16.msra.mxu0 %v17574_v25  ;;  %v17592_v25 = vld [vmem:[#allocation2 + $0x1220] ss:$48 sps:$4 sm:$0xff]  }
 0x4b5   : > { %11707 = vmatpush1.bf16.msra.mxu1 %v17577_v50  ;;  %11369 = vmatprep.subr.bf16.mxu0 %v17582_v48  ;;  %v17595_v50 = vld [vmem:[#allocation2 + $0x1228] ss:$48 sps:$4 sm:$0xff]   ;;  %v17600_v48 = vld [vmem:[#allocation2 + $0x1284] ss:$48 sps:$4 sm:$0xff]  }
 0x4b6   : > { %11331 = vmatmul.mubr.bf16.gmra.mrb[156].mxu0 %v21253_v62  ;;  %11708 = vmatprep.subr.bf16.mxu1 %v17585_v47  ;;  %v17603_v47 = vld [vmem:[#allocation2 + $0x128c] ss:$48 sps:$4 sm:$0xff]  }
 0x4b7   : > { %11670 = vmatmul.mubr.bf16.gmra.mrb[156].mxu1 %v21253_v62  ;;  %11373 = vmatprep.mubr.bf16.mxu0 %v21259_v41 }
 0x4b8   : > { %11370 = vmatpush1.bf16.msra.mxu0 %v17580_v43  ;;  %11712 = vmatprep.mubr.bf16.mxu1 %v21259_v41  ;;  %v17598_v43 = vld [vmem:[#allocation2 + $0x1280] ss:$48 sps:$4 sm:$0xff]  }
 0x4b9   : > { %11709 = vmatpush1.bf16.msra.mxu1 %v17583_v56  ;;  %11371 = vmatprep.subr.bf16.mxu0 %v17588_v36  ;;  %v17601_v56 = vld [vmem:[#allocation2 + $0x1288] ss:$48 sps:$4 sm:$0xff]   ;;  %v17606_v36 = vld [vmem:[#allocation2 + $0x12e4] ss:$48 sps:$4 sm:$0xff]  }
 0x4ba   : > { %11710 = vmatprep.subr.bf16.mxu1 %v17591_v29  ;;  %v17609_v29 = vld [vmem:[#allocation2 + $0x12ec] ss:$48 sps:$4 sm:$0xff]  }
 0x4bc   : > { %11372 = vmatpush1.bf16.msra.mxu0 %v17586_v7  ;;  %v17604_v7 = vld [vmem:[#allocation2 + $0x12e0] ss:$48 sps:$4 sm:$0xff]  }
 0x4bd   : > { %11711 = vmatpush1.bf16.msra.mxu1 %v17589_v44  ;;  %11793 = vmatprep.subr.bf16.mxu0 %v17594_v16  ;;  %v17607_v44 = vld [vmem:[#allocation2 + $0x12e8] ss:$48 sps:$4 sm:$0xff]   ;;  %v17612_v16 = vld [vmem:[#allocation2 + $0x1344] ss:$48 sps:$4 sm:$0xff]  }
 0x4be   : > { %12132 = vmatprep.subr.bf16.mxu1 %v17597_v45  ;;  %v17615_v45 = vld [vmem:[#allocation2 + $0x134c] ss:$48 sps:$4 sm:$0xff]  }
 0x4bf   : > { %11374 = vmatmul.mubr.bf16.vlgmr.msra.gmra.mrb[128].mxu0 %v21283_v60 }
 0x4c0   : > { %11713 = vmatmul.mubr.bf16.vlgmr.msra.gmra.mrb[128].mxu1 %v21283_v60  ;;  %11383 = vmatprep.mubr.bf16.mxu0 %v21287_v9 }
 0x4c1   : > { %11722 = vmatprep.mubr.bf16.mxu1 %v21287_v9  ;;  %11794 = vmatpush1.bf16.msra.mxu0 %v17592_v25  ;;  %v17610_v25 = vld [vmem:[#allocation2 + $0x1340] ss:$48 sps:$4 sm:$0xff]  }
 0x4c2   : > { %12133 = vmatpush1.bf16.msra.mxu1 %v17595_v50  ;;  %11795 = vmatprep.subr.bf16.mxu0 %v17600_v48  ;;  %v17613_v50 = vld [vmem:[#allocation2 + $0x1348] ss:$48 sps:$4 sm:$0xff]   ;;  %v17618_v48 = vld [vmem:[#allocation2 + $0x13a4] ss:$48 sps:$4 sm:$0xff]  }
 0x4c3   : > { %12134 = vmatprep.subr.bf16.mxu1 %v17603_v47  ;;  %v17621_v47 = vld [vmem:[#allocation2 + $0x13ac] ss:$48 sps:$4 sm:$0xff]  }
 0x4c5   : > { %11796 = vmatpush1.bf16.msra.mxu0 %v17598_v43  ;;  %v17616_v43 = vld [vmem:[#allocation2 + $0x13a0] ss:$48 sps:$4 sm:$0xff]  }
 0x4c6   : > { %12135 = vmatpush1.bf16.msra.mxu1 %v17601_v56  ;;  %11797 = vmatprep.subr.bf16.mxu0 %v17606_v36  ;;  %v17619_v56 = vld [vmem:[#allocation2 + $0x13a8] ss:$48 sps:$4 sm:$0xff]   ;;  %v17624_v36 = vld [vmem:[#allocation2 + $0x1404] ss:$48 sps:$4 sm:$0xff]  }
 0x4c7   : > { %11384 = vmatmul.mubr.bf16.gmra.mrb[132].mxu0 %v21311_v63  ;;  %12136 = vmatprep.subr.bf16.mxu1 %v17609_v29  ;;  %v17627_v29 = vld [vmem:[#allocation2 + $0x140c] ss:$48 sps:$4 sm:$0xff]  }
 0x4c8   : > { %11723 = vmatmul.mubr.bf16.gmra.mrb[132].mxu1 %v21311_v63  ;;  %11393 = vmatprep.mubr.bf16.mxu0 %v21315_v4 }
 0x4c9   : > { %11732 = vmatprep.mubr.bf16.mxu1 %v21315_v4  ;;  %11798 = vmatpush1.bf16.msra.mxu0 %v17604_v7 }
 0x4ca   : > { %12137 = vmatpush1.bf16.msra.mxu1 %v17607_v44  ;;  %11799 = vmatprep.subr.bf16.mxu0 %v17612_v16 }
 0x4cb   : > { %12138 = vmatprep.subr.bf16.mxu1 %v17615_v45 }
 0x4cd   : > { %11800 = vmatpush1.bf16.msra.mxu0 %v17610_v25  ;;  %v17622_v25 = vld [vmem:[#allocation2 + $0x1400] ss:$48 sps:$4 sm:$0xff]  }
 0x4ce   : > { %12139 = vmatpush1.bf16.msra.mxu1 %v17613_v50  ;;  %11801 = vmatprep.subr.bf16.mxu0 %v17618_v48  ;;  %v17625_v50 = vld [vmem:[#allocation2 + $0x1408] ss:$48 sps:$4 sm:$0xff]  }
 0x4cf   : > { %11394 = vmatmul.mubr.bf16.gmra.mrb[136].mxu0 %v21339_v52  ;;  %12140 = vmatprep.subr.bf16.mxu1 %v17621_v47 }
 0x4d0   : > { %11733 = vmatmul.mubr.bf16.gmra.mrb[136].mxu1 %v21339_v52  ;;  %11403 = vmatprep.mubr.bf16.mxu0 %v21343_v59  ;;  %v21552_v7 = vpop.f32.mrb[96].mxu0  ;;  %v21554_v44 = vpop.f32.mrb[96].mxu1 }
 0x4d1   : > { %23589 = vst [vmem:[#allocation37_spill] sm:$0xff] %v21554_v44  ;;  %11742 = vmatprep.mubr.bf16.mxu1 %v21343_v59  ;;  %11802 = vmatpush1.bf16.msra.mxu0 %v17616_v43  ;;  %v21557_v16 = vpop.f32.mrb[97].mxu0  ;;  %v21559_v45 = vpop.f32.mrb[97].mxu1  ;;  %v17628_v43 = vld [vmem:[#allocation2 + $0x1460] ss:$48 sps:$4 sm:$0xff]  }
 0x4d2   : > { %23590 = vst [vmem:[#allocation88_spill] sm:$0xff] %v21559_v45  ;;  %12141 = vmatpush1.bf16.msra.mxu1 %v17619_v56  ;;  %11803 = vmatprep.subr.bf16.mxu0 %v17624_v36  ;;  %v21561_v48 = vpop.f32.mrb[98].mxu0  ;;  %v21563_v47 = vpop.f32.mrb[98].mxu1  ;;  %v17631_v45 = vld [vmem:[#allocation2 + $0x1468] ss:$48 sps:$4 sm:$0xff]  }
 0x4d3   : > { %23591 = vst [vmem:[#allocation46_spill] sm:$0xff] %v21561_v48  ;;  %23592 = vst [vmem:[#allocation56_spill] sm:$0xff] %v21563_v47  ;;  %12142 = vmatprep.subr.bf16.mxu1 %v17627_v29  ;;  %v21565_v6 = vpop.f32.mrb[99].mxu0  ;;  %v21567_v13 = vpop.f32.mrb[99].mxu1  ;;  %v17636_v44 = vld [vmem:[#allocation2 + $0x14c4] ss:$48 sps:$4 sm:$0xff]  }
 0x4d4   : > { %23593 = vst [vmem:[#allocation94_spill] sm:$0xff] %v21565_v6  ;;  %23594 = vst [vmem:[#allocation97_spill] sm:$0xff] %v21567_v13  ;;  %v17639_v56 = vld [vmem:[#allocation2 + $0x14cc] ss:$48 sps:$4 sm:$0xff]   ;;  %v17642_v6 = vld [vmem:[#allocation2 + $0x1524] ss:$48 sps:$4 sm:$0xff]  }
 0x4d5   : > { %11804 = vmatpush1.bf16.msra.mxu0 %v17622_v25  ;;  %v17645_v48 = vld [vmem:[#allocation2 + $0x152c] ss:$48 sps:$4 sm:$0xff]  }
 0x4d6   : > { %12143 = vmatpush1.bf16.msra.mxu1 %v17625_v50  ;;  %11805 = vmatprep.subr.bf16.mxu0 %v17630_v34  ;;  %v17634_v50 = vld [vmem:[#allocation2 + $0x14c0] ss:$48 sps:$4 sm:$0xff]  }
 0x4d7   : > { %11404 = vmatmul.mubr.bf16.gmra.mrb[140].mxu0 %v21367_v5  ;;  %12144 = vmatprep.subr.bf16.mxu1 %v17633_v54  ;;  %v17637_v54 = vld [vmem:[#allocation2 + $0x14c8] ss:$48 sps:$4 sm:$0xff]  }
 0x4d8   : > { %11743 = vmatmul.mubr.bf16.gmra.mrb[140].mxu1 %v21367_v5  ;;  %11413 = vmatprep.mubr.bf16.mxu0 %v21371_v1  ;;  %v21572_v36 = vpop.f32.mrb[100].mxu0  ;;  %v21574_v29 = vpop.f32.mrb[100].mxu1 }
 0x4d9   : > { %23595 = vst [vmem:[#allocation63_spill] sm:$0xff] %v21572_v36  ;;  %23596 = vst [vmem:[#allocation103_spill] sm:$0xff] %v21574_v29  ;;  %11752 = vmatprep.mubr.bf16.mxu1 %v21371_v1  ;;  %11806 = vmatpush1.bf16.msra.mxu0 %v17628_v43  ;;  %v21577_v25 = vpop.f32.mrb[101].mxu0  ;;  %v21579_v34 = vpop.f32.mrb[101].mxu1  ;;  %v17640_v43 = vld [vmem:[#allocation2 + $0x1520] ss:$48 sps:$4 sm:$0xff]  }
 0x4da   : > { %23597 = vst [vmem:[#allocation102_spill] sm:$0xff] %v21577_v25  ;;  %23598 = vst [vmem:[#allocation106_spill] sm:$0xff] %v21579_v34  ;;  %12145 = vmatpush1.bf16.msra.mxu1 %v17631_v45  ;;  %11807 = vmatprep.subr.bf16.mxu0 %v17636_v44  ;;  %v21581_v13 = vpop.f32.mrb[102].mxu0  ;;  %v21583_v47 = vpop.f32.mrb[102].mxu1  ;;  %v17643_v34 = vld [vmem:[#allocation2 + $0x1528] ss:$48 sps:$4 sm:$0xff]  }
 0x4db   : > { %23599 = vst [vmem:[#allocation72_spill] sm:$0xff] %v21581_v13  ;;  %23600 = vst [vmem:[#allocation112_spill] sm:$0xff] %v21583_v47  ;;  %12146 = vmatprep.subr.bf16.mxu1 %v17639_v56  ;;  %v21585_v36 = vpop.f32.mrb[103].mxu0  ;;  %v21587_v29 = vpop.f32.mrb[103].mxu1  ;;  %v17648_v25 = vld [vmem:[#allocation2 + $0x1584] ss:$48 sps:$4 sm:$0xff]  }
 0x4dc   : > { %23601 = vst [vmem:[#allocation111_spill] sm:$0xff] %v21585_v36  ;;  %23602 = vst [vmem:[#allocation117_spill] sm:$0xff] %v21587_v29  ;;  %v17651_v44 = vld [vmem:[#allocation2 + $0x158c] ss:$48 sps:$4 sm:$0xff]   ;;  %v17654_v36 = vld [vmem:[#allocation2 + $0x15e4] ss:$48 sps:$4 sm:$0xff]  }
 0x4dd   : > { %11808 = vmatpush1.bf16.msra.mxu0 %v17634_v50  ;;  %v17657_v13 = vld [vmem:[#allocation2 + $0x15ec] ss:$48 sps:$4 sm:$0xff]  }
 0x4de   : > { %12147 = vmatpush1.bf16.msra.mxu1 %v17637_v54  ;;  %11809 = vmatprep.subr.bf16.mxu0 %v17642_v6  ;;  %v17646_v54 = vld [vmem:[#allocation2 + $0x1580] ss:$48 sps:$4 sm:$0xff]  }
 0x4df   : > { %11414 = vmatmul.mubr.bf16.gmra.mrb[144].mxu0 %v21395_v51  ;;  %12148 = vmatprep.subr.bf16.mxu1 %v17645_v48  ;;  %v17649_v48 = vld [vmem:[#allocation2 + $0x1588] ss:$48 sps:$4 sm:$0xff]  }
 0x4e0   : > { %11753 = vmatmul.mubr.bf16.gmra.mrb[144].mxu1 %v21395_v51  ;;  %11423 = vmatprep.mubr.bf16.mxu0 %v21399_v26  ;;  %v21592_v45 = vpop.f32.mrb[104].mxu0  ;;  %v21594_v56 = vpop.f32.mrb[104].mxu1 }
 0x4e1   : > { %23603 = vst [vmem:[#allocation118_spill] sm:$0xff] %v21592_v45  ;;  %23604 = vst [vmem:[#allocation121_spill] sm:$0xff] %v21594_v56  ;;  %11762 = vmatprep.mubr.bf16.mxu1 %v21399_v26  ;;  %11810 = vmatpush1.bf16.msra.mxu0 %v17640_v43  ;;  %v21597_v50 = vpop.f32.mrb[105].mxu0  ;;  %v21599_v6 = vpop.f32.mrb[105].mxu1  ;;  %v17652_v43 = vld [vmem:[#allocation2 + $0x15e0] ss:$48 sps:$4 sm:$0xff]  }
 0x4e2   : > { %23605 = vst [vmem:[#allocation8_spill] sm:$0xff] %v21597_v50  ;;  %23606 = vst [vmem:[#allocation9_spill] sm:$0xff] %v21599_v6  ;;  %12149 = vmatpush1.bf16.msra.mxu1 %v17643_v34  ;;  %11811 = vmatprep.subr.bf16.mxu0 %v17648_v25  ;;  %v21601_v29 = vpop.f32.mrb[106].mxu0  ;;  %v21603_v47 = vpop.f32.mrb[106].mxu1  ;;  %v17655_v6 = vld [vmem:[#allocation2 + $0x15e8] ss:$48 sps:$4 sm:$0xff]  }
 0x4e3   : > { %23607 = vst [vmem:[#allocation18_spill] sm:$0xff] %v21601_v29  ;;  %23608 = vst [vmem:[#allocation22_spill] sm:$0xff] %v21603_v47  ;;  %12150 = vmatprep.subr.bf16.mxu1 %v17651_v44  ;;  %v21605_v45 = vpop.f32.mrb[107].mxu0  ;;  %v21607_v56 = vpop.f32.mrb[107].mxu1  ;;  %v17660_v50 = vld [vmem:[#allocation2 + $0x1644] ss:$48 sps:$4 sm:$0xff]  }
 0x4e4   : > { %23609 = vst [vmem:[#allocation10_spill] sm:$0xff] %v21605_v45  ;;  %23610 = vst [vmem:[#allocation32_spill] sm:$0xff] %v21607_v56  ;;  %v17663_v25 = vld [vmem:[#allocation2 + $0x164c] ss:$48 sps:$4 sm:$0xff]   ;;  %v17666_v45 = vld [vmem:[#allocation2 + $0x16a4] ss:$48 sps:$4 sm:$0xff]  }
 0x4e5   : > { %11812 = vmatpush1.bf16.msra.mxu0 %v17646_v54  ;;  %v17669_v29 = vld [vmem:[#allocation2 + $0x16ac] ss:$48 sps:$4 sm:$0xff]  }
 0x4e6   : > { %12151 = vmatpush1.bf16.msra.mxu1 %v17649_v48  ;;  %11813 = vmatprep.subr.bf16.mxu0 %v17654_v36  ;;  %v17658_v48 = vld [vmem:[#allocation2 + $0x1640] ss:$48 sps:$4 sm:$0xff]  }
 0x4e7   : > { %11424 = vmatmul.mubr.bf16.gmra.mrb[148].mxu0 %v21423_v35  ;;  %12152 = vmatprep.subr.bf16.mxu1 %v17657_v13  ;;  %v17661_v13 = vld [vmem:[#allocation2 + $0x1648] ss:$48 sps:$4 sm:$0xff]  }
 0x4e8   : > { %11763 = vmatmul.mubr.bf16.gmra.mrb[148].mxu1 %v21423_v35  ;;  %11433 = vmatprep.mubr.bf16.mxu0 %v21427_v21  ;;  %v21612_v34 = vpop.f32.mrb[108].mxu0  ;;  %v21614_v44 = vpop.f32.mrb[108].mxu1 }
 0x4e9   : > { %23611 = vst [vmem:[#allocation27_spill] sm:$0xff] %v21612_v34  ;;  %23612 = vst [vmem:[#allocation29_spill] sm:$0xff] %v21614_v44  ;;  %11772 = vmatprep.mubr.bf16.mxu1 %v21427_v21  ;;  %11814 = vmatpush1.bf16.msra.mxu0 %v17652_v43  ;;  %v21617_v54 = vpop.f32.mrb[109].mxu0  ;;  %v21619_v36 = vpop.f32.mrb[109].mxu1  ;;  %v17664_v43 = vld [vmem:[#allocation2 + $0x16a0] ss:$48 sps:$4 sm:$0xff]  }
 0x4ea   : > { %23613 = vst [vmem:[#allocation19_spill] sm:$0xff] %v21617_v54  ;;  %23614 = vst [vmem:[#allocation38_spill] sm:$0xff] %v21619_v36  ;;  %12153 = vmatpush1.bf16.msra.mxu1 %v17655_v6  ;;  %11815 = vmatprep.subr.bf16.mxu0 %v17660_v50  ;;  %v21621_v56 = vpop.f32.mrb[110].mxu0  ;;  %v21623_v47 = vpop.f32.mrb[110].mxu1  ;;  %v17667_v36 = vld [vmem:[#allocation2 + $0x16a8] ss:$48 sps:$4 sm:$0xff]  }
 0x4eb   : > { %23615 = vst [vmem:[#allocation138_spill] sm:$0xff] %v21621_v56  ;;  %23616 = vst [vmem:[#allocation139_spill] sm:$0xff] %v21623_v47  ;;  %12154 = vmatprep.subr.bf16.mxu1 %v17663_v25  ;;  %v21625_v34 = vpop.f32.mrb[111].mxu0  ;;  %v21627_v44 = vpop.f32.mrb[111].mxu1  ;;  %v17672_v54 = vld [vmem:[#allocation2 + $0x1704] ss:$48 sps:$4 sm:$0xff]  }
 0x4ec   : > { %23617 = vst [vmem:[#allocation140_spill] sm:$0xff] %v21625_v34  ;;  %23618 = vst [vmem:[#allocation141_spill] sm:$0xff] %v21627_v44  ;;  %v17675_v50 = vld [vmem:[#allocation2 + $0x170c] ss:$48 sps:$4 sm:$0xff]   ;;  %v17678_v34 = vld [vmem:[#allocation2 + $0x1764] ss:$48 sps:$4 sm:$0xff]  }
 0x4ed   : > { %11816 = vmatpush1.bf16.msra.mxu0 %v17658_v48  ;;  %v17681_v56 = vld [vmem:[#allocation2 + $0x176c] ss:$48 sps:$4 sm:$0xff]  }
 0x4ee   : > { %12155 = vmatpush1.bf16.msra.mxu1 %v17661_v13  ;;  %11817 = vmatprep.subr.bf16.mxu0 %v17666_v45  ;;  %v17670_v13 = vld [vmem:[#allocation2 + $0x1700] ss:$48 sps:$4 sm:$0xff]  }
 0x4ef   : > { %11434 = vmatmul.mubr.bf16.gmra.mrb[152].mxu0 %v21451_v39  ;;  %12156 = vmatprep.subr.bf16.mxu1 %v17669_v29  ;;  %v17673_v29 = vld [vmem:[#allocation2 + $0x1708] ss:$48 sps:$4 sm:$0xff]  }
 0x4f0   : > { %11773 = vmatmul.mubr.bf16.gmra.mrb[152].mxu1 %v21451_v39  ;;  %11443 = vmatprep.mubr.bf16.mxu0 %v21455_v38  ;;  %v21632_v6 = vpop.f32.mrb[112].mxu0  ;;  %v21634_v25 = vpop.f32.mrb[112].mxu1  ;;  %v17690_v39 = vld [vmem:[#allocation2 + $0x1824] ss:$48 sps:$4 sm:$0xff]  }
 0x4f1   : > { %23619 = vst [vmem:[#allocation142_spill] sm:$0xff] %v21632_v6  ;;  %23620 = vst [vmem:[#allocation143_spill] sm:$0xff] %v21634_v25  ;;  %11782 = vmatprep.mubr.bf16.mxu1 %v21455_v38  ;;  %11818 = vmatpush1.bf16.msra.mxu0 %v17664_v43  ;;  %v21637_v48 = vpop.f32.mrb[113].mxu0  ;;  %v21639_v45 = vpop.f32.mrb[113].mxu1  ;;  %v21649_v43 = vld [vmem:[#allocation4 + $0xc] sm:$0xff] }
 0x4f2   : > { %23621 = vst [vmem:[#allocation144_spill] sm:$0xff] %v21637_v48  ;;  %23622 = vst [vmem:[#allocation145_spill] sm:$0xff] %v21639_v45  ;;  %12157 = vmatpush1.bf16.msra.mxu1 %v17667_v36  ;;  %11819 = vmatprep.subr.bf16.mxu0 %v17672_v54  ;;  %v21641_v44 = vpop.f32.mrb[114].mxu0  ;;  %v21643_v47 = vpop.f32.mrb[114].mxu1  ;;  %v17676_v48 = vld [vmem:[#allocation2 + $0x1760] ss:$48 sps:$4 sm:$0xff]  }
 0x4f3   : > { %23623 = vst [vmem:[#allocation146_spill] sm:$0xff] %v21641_v44  ;;  %23624 = vst [vmem:[#allocation147_spill] sm:$0xff] %v21643_v47  ;;  %12158 = vmatprep.subr.bf16.mxu1 %v17675_v50  ;;  %v21645_v6 = vpop.f32.mrb[115].mxu0  ;;  %v21647_v25 = vpop.f32.mrb[115].mxu1  ;;  %v17679_v36 = vld [vmem:[#allocation2 + $0x1768] ss:$48 sps:$4 sm:$0xff]  }
 0x4f4   : > { %23625 = vst [vmem:[#allocation148_spill] sm:$0xff] %v21645_v6  ;;  %23626 = vst [vmem:[#allocation149_spill] sm:$0xff] %v21647_v25  ;;  %v17684_v54 = vld [vmem:[#allocation2 + $0x17c4] ss:$48 sps:$4 sm:$0xff]   ;;  %v23627_v45 = vld [vmem:[#allocation48_spill] sm:$0xff] }
 0x4f5   : > { %11820 = vmatpush1.bf16.msra.mxu0 %v17670_v13  ;;  %v21653_v44 = vrot.slane %v21649_v43, %v23627_v45  ;;  %v17687_v50 = vld [vmem:[#allocation2 + $0x17cc] ss:$48 sps:$4 sm:$0xff]   ;;  %v23628_v47 = vld [vmem:[#allocation53_spill] sm:$0xff] }
 0x4f6   : > { %12159 = vmatpush1.bf16.msra.mxu1 %v17673_v29  ;;  %11821 = vmatprep.subr.bf16.mxu0 %v17678_v34  ;;  %v21658_v25 = vrot.slane %v21649_v43, %v23628_v47  ;;  %v17682_v6 = vld [vmem:[#allocation2 + $0x17c0] ss:$48 sps:$4 sm:$0xff]  }
 0x4f7   : > { %11444 = vmatmul.mubr.bf16.gmra.mrb[156].mxu0 %v21471_v18  ;;  %12160 = vmatprep.subr.bf16.mxu1 %v17681_v56 }
 0x4f8   : > { %11783 = vmatmul.mubr.bf16.gmra.mrb[156].mxu1 %v21471_v18  ;;  %11825 = vmatprep.mubr.bf16.mxu0 %v23563_v24  ;;  %v21662_v13 = vpop.f32.mrb[116].mxu0  ;;  %v11086_v34 = vpop.f32.mrb[116].mxu1  ;;  %v17685_v18 = vld [vmem:[#allocation2 + $0x17c8] ss:$48 sps:$4 sm:$0xff]  }
 0x4f9   : > { %23629 = vst [vmem:[#allocation150_spill] sm:$0xff] %v21662_v13  ;;  %11822 = vmatpush1.bf16.msra.mxu0 %v17676_v48  ;;  %12164 = vmatprep.mubr.bf16.mxu1 %v23563_v24  ;;  %v21666_v29 = vadd.f32 %v11086_v34, %v21653_v44  ;;  %v21668_v45 = vpop.f32.mrb[117].mxu0  ;;  %v11088_v56 = vpop.f32.mrb[117].mxu1 }
 0x4fa   : > { %23631 = vst [vmem:[#allocation152_spill] sm:$0xff] %v21668_v45  ;;  %12161 = vmatpush1.bf16.msra.mxu1 %v17679_v36  ;;  %v21671_v47 = vadd.f32 %v11088_v56, %v21658_v25  ;;  %11823 = vmatprep.subr.bf16.mxu0 %v17684_v54  ;;  %v21673_v38 = vpop.f32.mrb[118].mxu0  ;;  %v11090_v13 = vpop.f32.mrb[118].mxu1  ;;  %v17688_v36 = vld [vmem:[#allocation2 + $0x1820] ss:$48 sps:$4 sm:$0xff]  }
 0x4fb   : > { %23630 = vst [vmem:[#allocation151_spill] sm:$0xff] %v21666_v29  ;;  %12162 = vmatprep.subr.bf16.mxu1 %v17687_v50  ;;  %v21676_v24 = vadd.f32 %v11090_v13, %v21653_v44  ;;  %v21678_v48 = vpop.f32.mrb[119].mxu0  ;;  %v11092_v34 = vpop.f32.mrb[119].mxu1  ;;  %v17693_v29 = vld [vmem:[#allocation2 + $0x182c] ss:$48 sps:$4 sm:$0xff]  }
 0x4fc   : > { %23632 = vst [vmem:[#allocation153_spill] sm:$0xff] %v21671_v47  ;;  %23634 = vst [vmem:[#allocation155_spill] sm:$0xff] %v21678_v48  ;;  %v21681_v45 = vadd.f32 %v11092_v34, %v21658_v25  ;;  %v17691_v54 = vld [vmem:[#allocation2 + $0x1828] ss:$48 sps:$4 sm:$0xff]   ;;  %v17696_v56 = vld [vmem:[#allocation2 + $0x1884] ss:$48 sps:$4 sm:$0xff]  }
 0x4fd   : > { %23633 = vst [vmem:[#allocation154_spill] sm:$0xff] %v21676_v24  ;;  %11824 = vmatpush1.bf16.msra.mxu0 %v17682_v6  ;;  %v17699_v24 = vld [vmem:[#allocation2 + $0x188c] ss:$48 sps:$4 sm:$0xff]  }
 0x4fe   : > { %23635 = vst [vmem:[#allocation156_spill] sm:$0xff] %v21681_v45  ;;  %12163 = vmatpush1.bf16.msra.mxu1 %v17685_v18  ;;  %11906 = vmatprep.subr.bf16.mxu0 %v17690_v39 }
 0x4ff   : > { %12245 = vmatprep.subr.bf16.mxu1 %v17693_v29  ;;  %v17694_v29 = vld [vmem:[#allocation2 + $0x1880] ss:$48 sps:$4 sm:$0xff]  }
 0x500   : > { %11826 = vmatmul.mubr.bf16.vlgmr.msra.gmra.mrb[160].mxu0 %v23564_v57  ;;  %v21684_v50 = vpop.f32.mrb[120].mxu0  ;;  %v11096_v13 = vpop.f32.mrb[120].mxu1 }
 0x501   : > { %23636 = vst [vmem:[#allocation157_spill] sm:$0xff] %v21684_v50  ;;  %12165 = vmatmul.mubr.bf16.vlgmr.msra.gmra.mrb[160].mxu1 %v23564_v57  ;;  %11835 = vmatprep.mubr.bf16.mxu0 %v23565_v3  ;;  %v21689_v34 = vadd.f32 %v11096_v13, %v21653_v44  ;;  %v21691_v6 = vpop.f32.mrb[121].mxu0  ;;  %v11098_v18 = vpop.f32.mrb[121].mxu1  ;;  %v17697_v57 = vld [vmem:[#allocation2 + $0x1888] ss:$48 sps:$4 sm:$0xff]  }
 0x502   : > { %23638 = vst [vmem:[#allocation159_spill] sm:$0xff] %v21691_v6  ;;  %11907 = vmatpush1.bf16.msra.mxu0 %v17688_v36  ;;  %12174 = vmatprep.mubr.bf16.mxu1 %v23565_v3  ;;  %v21695_v39 = vadd.f32 %v11098_v18, %v21658_v25  ;;  %v21697_v45 = vpop.f32.mrb[122].mxu0  ;;  %v11100_v47 = vpop.f32.mrb[122].mxu1  ;;  %v17702_v6 = vld [vmem:[#allocation2 + $0x18e4] ss:$48 sps:$4 sm:$0xff]  }
 0x503   : > { %23637 = vst [vmem:[#allocation158_spill] sm:$0xff] %v21689_v34  ;;  %23640 = vst [vmem:[#allocation161_spill] sm:$0xff] %v21697_v45  ;;  %12246 = vmatpush1.bf16.msra.mxu1 %v17691_v54  ;;  %11908 = vmatprep.subr.bf16.mxu0 %v17696_v56  ;;  %v21700_v50 = vadd.f32 %v11100_v47, %v21653_v44  ;;  %v21702_v13 = vpop.f32.mrb[123].mxu0  ;;  %v11102_v34 = vpop.f32.mrb[123].mxu1  ;;  %v17705_v36 = vld [vmem:[#allocation2 + $0x18ec] ss:$48 sps:$4 sm:$0xff]  }
 0x504   : > { %23639 = vst [vmem:[#allocation160_spill] sm:$0xff] %v21695_v39  ;;  %23642 = vst [vmem:[#allocation163_spill] sm:$0xff] %v21702_v13  ;;  %12247 = vmatprep.subr.bf16.mxu1 %v17699_v24  ;;  %v21705_v3 = vadd.f32 %v11102_v34, %v21658_v25  ;;  %v17700_v18 = vld [vmem:[#allocation2 + $0x18e0] ss:$48 sps:$4 sm:$0xff]   ;;  %v23644_v39 = vld [vmem:[#allocation64_spill] sm:$0xff] }
 0x505   : > { %23641 = vst [vmem:[#allocation162_spill] sm:$0xff] %v21700_v50  ;;  %v21709_v45 = vrot.slane %v21649_v43, %v23644_v39  ;;  %v17703_v54 = vld [vmem:[#allocation2 + $0x18e8] ss:$48 sps:$4 sm:$0xff]   ;;  %v17708_v47 = vld [vmem:[#allocation2 + $0x1944] ss:$48 sps:$4 sm:$0xff]  }
 0x506   : > { %23643 = vst [vmem:[#allocation164_spill] sm:$0xff] %v21705_v3  ;;  %11909 = vmatpush1.bf16.msra.mxu0 %v17694_v29  ;;  %v23645_v56 = vld [vmem:[#allocation68_spill] sm:$0xff] }
 0x507   : > { %12248 = vmatpush1.bf16.msra.mxu1 %v17697_v57  ;;  %11910 = vmatprep.subr.bf16.mxu0 %v17702_v6  ;;  %v21713_v50 = vrot.slane %v21649_v43, %v23645_v56  ;;  %v17711_v3 = vld [vmem:[#allocation2 + $0x194c] ss:$48 sps:$4 sm:$0xff]  }
 0x508   : > { %11836 = vmatmul.mubr.bf16.gmra.mrb[164].mxu0 %v23566_v15  ;;  %12249 = vmatprep.subr.bf16.mxu1 %v17705_v36  ;;  %v10767_v24 = vpop.f32.mrb[124].mxu0  ;;  %v11106_v34 = vpop.f32.mrb[124].mxu1 }
 0x509   : > { %12175 = vmatmul.mubr.bf16.gmra.mrb[164].mxu1 %v23566_v15  ;;  %11845 = vmatprep.mubr.bf16.mxu0 %v23567_v20  ;;  %v21719_v29 = vadd.f32 %v10767_v24, %v21709_v45  ;;  %v21722_v6 = vadd.f32 %v11106_v34, %v21653_v44  ;;  %v10769_v57 = vpop.f32.mrb[125].mxu0  ;;  %v11108_v39 = vpop.f32.mrb[125].mxu1  ;;  %v17706_v15 = vld [vmem:[#allocation2 + $0x1940] ss:$48 sps:$4 sm:$0xff]   ;;  %v17709_v24 = vld [vmem:[#allocation2 + $0x1948] ss:$48 sps:$4 sm:$0xff]  }
 0x50a   : > { %11911 = vmatpush1.bf16.msra.mxu0 %v17700_v18  ;;  %12184 = vmatprep.mubr.bf16.mxu1 %v23567_v20  ;;  %v21726_v36 = vadd.f32 %v10769_v57, %v21713_v50  ;;  %v21729_v56 = vadd.f32 %v11108_v39, %v21658_v25  ;;  %v10771_v13 = vpop.f32.mrb[126].mxu0  ;;  %v11110_v48 = vpop.f32.mrb[126].mxu1 }
 0x50b   : > { %23646 = vst [vmem:[#allocation165_spill] sm:$0xff] %v21719_v29  ;;  %23647 = vst [vmem:[#allocation166_spill] sm:$0xff] %v21722_v6  ;;  %12250 = vmatpush1.bf16.msra.mxu1 %v17703_v54  ;;  %11912 = vmatprep.subr.bf16.mxu0 %v17708_v47  ;;  %v21732_v34 = vadd.f32 %v10771_v13, %v21709_v45  ;;  %v21735_v6 = vadd.f32 %v11110_v48, %v21653_v44  ;;  %v10773_v18 = vpop.f32.mrb[127].mxu0  ;;  %v11112_v20 = vpop.f32.mrb[127].mxu1  ;;  %v17714_v29 = vld [vmem:[#allocation2 + $0x19a4] ss:$48 sps:$4 sm:$0xff]  }
 0x50c   : > { %23648 = vst [vmem:[#allocation167_spill] sm:$0xff] %v21729_v56  ;;  %12251 = vmatprep.subr.bf16.mxu1 %v17711_v3  ;;  %v21738_v57 = vadd.f32 %v10773_v18, %v21713_v50  ;;  %v21741_v39 = vadd.f32 %v11112_v20, %v21658_v25  ;;  %v17717_v56 = vld [vmem:[#allocation2 + $0x19ac] ss:$48 sps:$4 sm:$0xff]   ;;  %v17712_v54 = vld [vmem:[#allocation2 + $0x19a0] ss:$48 sps:$4 sm:$0xff]  }
 0x50d   : > { %23649 = vst [vmem:[#allocation168_spill] sm:$0xff] %v21735_v6  ;;  %v17715_v13 = vld [vmem:[#allocation2 + $0x19a8] ss:$48 sps:$4 sm:$0xff]   ;;  %v17720_v47 = vld [vmem:[#allocation2 + $0x1a04] ss:$48 sps:$4 sm:$0xff]  }
 0x50e   : > { %23650 = vst [vmem:[#allocation169_spill] sm:$0xff] %v21741_v39  ;;  %11913 = vmatpush1.bf16.msra.mxu0 %v17706_v15  ;;  %v17723_v48 = vld [vmem:[#allocation2 + $0x1a0c] ss:$48 sps:$4 sm:$0xff]   ;;  %v17718_v3 = vld [vmem:[#allocation2 + $0x1a00] ss:$48 sps:$4 sm:$0xff]  }
 0x50f   : > { %12252 = vmatpush1.bf16.msra.mxu1 %v17709_v24  ;;  %11914 = vmatprep.subr.bf16.mxu0 %v17714_v29  ;;  %v17721_v15 = vld [vmem:[#allocation2 + $0x1a08] ss:$48 sps:$4 sm:$0xff]   ;;  %v17726_v18 = vld [vmem:[#allocation2 + $0x1a64] ss:$48 sps:$4 sm:$0xff]   ;;  %v17729_v29 = vld [vmem:[#allocation2 + $0x1a6c] ss:$48 sps:$4 sm:$0xff]  }
 0x510   : > { %11846 = vmatmul.mubr.bf16.gmra.mrb[168].mxu0 %v23568_v0  ;;  %12253 = vmatprep.subr.bf16.mxu1 %v17717_v56  ;;  %v17724_v24 = vld [vmem:[#allocation2 + $0x1a60] ss:$48 sps:$4 sm:$0xff]   ;;  %v17727_v56 = vld [vmem:[#allocation2 + $0x1a68] ss:$48 sps:$4 sm:$0xff]   ;;  %v17732_v20 = vld [vmem:[#allocation2 + $0x1ac4] ss:$48 sps:$4 sm:$0xff]  }
 0x511   : > { %12185 = vmatmul.mubr.bf16.gmra.mrb[168].mxu1 %v23568_v0  ;;  %11855 = vmatprep.mubr.bf16.mxu0 %v23569_v23  ;;  %v17735_v0 = vld [vmem:[#allocation2 + $0x1acc] ss:$48 sps:$4 sm:$0xff]   ;;  %v23687_v6 = vld [vmem:[#allocation19_spill] sm:$0xff] }
 0x512   : > { %11915 = vmatpush1.bf16.msra.mxu0 %v17712_v54  ;;  %12194 = vmatprep.mubr.bf16.mxu1 %v23569_v23  ;;  %v17730_v23 = vld [vmem:[#allocation2 + $0x1ac0] ss:$48 sps:$4 sm:$0xff]   ;;  %v17733_v54 = vld [vmem:[#allocation2 + $0x1ac8] ss:$48 sps:$4 sm:$0xff]  }
 0x513   : > { %12254 = vmatpush1.bf16.msra.mxu1 %v17715_v13  ;;  %11916 = vmatprep.subr.bf16.mxu0 %v17720_v47  ;;  %v17738_v13 = vld [vmem:[#allocation2 + $0x1b24] ss:$48 sps:$4 sm:$0xff]   ;;  %v17741_v47 = vld [vmem:[#allocation2 + $0x1b2c] ss:$48 sps:$4 sm:$0xff]  }
 0x514   : > { %12255 = vmatprep.subr.bf16.mxu1 %v17723_v48  ;;  %v17736_v48 = vld [vmem:[#allocation2 + $0x1b20] ss:$48 sps:$4 sm:$0xff]  }
 0x516   : > { %11917 = vmatpush1.bf16.msra.mxu0 %v17718_v3  ;;  %v17739_v3 = vld [vmem:[#allocation2 + $0x1b28] ss:$48 sps:$4 sm:$0xff]  }
 0x517   : > { %12256 = vmatpush1.bf16.msra.mxu1 %v17721_v15  ;;  %11918 = vmatprep.subr.bf16.mxu0 %v17726_v18  ;;  %v17744_v15 = vld [vmem:[#allocation2 + $0x1b84] ss:$48 sps:$4 sm:$0xff]   ;;  %v17745_v18 = vld [vmem:[#allocation2 + $0x1b88] ss:$48 sps:$4 sm:$0xff]  }
 0x518   : > { %11856 = vmatmul.mubr.bf16.gmra.mrb[172].mxu0 %v23570_v46  ;;  %12257 = vmatprep.subr.bf16.mxu1 %v17729_v29  ;;  %v17750_v29 = vld [vmem:[#allocation2 + $0x1be4] ss:$48 sps:$4 sm:$0xff]  }
 0x519   : > { %12195 = vmatmul.mubr.bf16.gmra.mrb[172].mxu1 %v23570_v46  ;;  %11865 = vmatprep.mubr.bf16.mxu0 %v23571_v19  ;;  %v17747_v46 = vld [vmem:[#allocation2 + $0x1b8c] ss:$48 sps:$4 sm:$0xff]  }
 0x51a   : > { %11919 = vmatpush1.bf16.msra.mxu0 %v17724_v24  ;;  %12204 = vmatprep.mubr.bf16.mxu1 %v23571_v19  ;;  %v17742_v19 = vld [vmem:[#allocation2 + $0x1b80] ss:$48 sps:$4 sm:$0xff]   ;;  %v17753_v24 = vld [vmem:[#allocation2 + $0x1bec] ss:$48 sps:$4 sm:$0xff]  }
 0x51b   : > { %12258 = vmatpush1.bf16.msra.mxu1 %v17727_v56  ;;  %11920 = vmatprep.subr.bf16.mxu0 %v17732_v20  ;;  %v17748_v56 = vld [vmem:[#allocation2 + $0x1be0] ss:$48 sps:$4 sm:$0xff]   ;;  %v17751_v20 = vld [vmem:[#allocation2 + $0x1be8] ss:$48 sps:$4 sm:$0xff]  }
 0x51c   : > { %12259 = vmatprep.subr.bf16.mxu1 %v17735_v0  ;;  %v17756_v0 = vld [vmem:[#allocation2 + $0x1c44] ss:$48 sps:$4 sm:$0xff]  }
 0x51e   : > { %11921 = vmatpush1.bf16.msra.mxu0 %v17730_v23  ;;  %v17757_v23 = vld [vmem:[#allocation2 + $0x1c48] ss:$48 sps:$4 sm:$0xff]  }
 0x51f   : > { %12260 = vmatpush1.bf16.msra.mxu1 %v17733_v54  ;;  %11922 = vmatprep.subr.bf16.mxu0 %v17738_v13  ;;  %v17762_v54 = vld [vmem:[#allocation2 + $0x1ca4] ss:$48 sps:$4 sm:$0xff]   ;;  %v17765_v13 = vld [vmem:[#allocation2 + $0x1cac] ss:$48 sps:$4 sm:$0xff]  }
 0x520   : > { %11866 = vmatmul.mubr.bf16.gmra.mrb[176].mxu0 %v23572_v40  ;;  %12261 = vmatprep.subr.bf16.mxu1 %v17741_v47  ;;  %v17760_v47 = vld [vmem:[#allocation2 + $0x1ca0] ss:$48 sps:$4 sm:$0xff]  }
 0x521   : > { %12205 = vmatmul.mubr.bf16.gmra.mrb[176].mxu1 %v23572_v40  ;;  %11875 = vmatprep.mubr.bf16.mxu0 %v23573_v49  ;;  %v17759_v40 = vld [vmem:[#allocation2 + $0x1c4c] ss:$48 sps:$4 sm:$0xff]  }
 0x522   : > { %11923 = vmatpush1.bf16.msra.mxu0 %v17736_v48  ;;  %12214 = vmatprep.mubr.bf16.mxu1 %v23573_v49  ;;  %v17754_v49 = vld [vmem:[#allocation2 + $0x1c40] ss:$48 sps:$4 sm:$0xff]   ;;  %v17763_v48 = vld [vmem:[#allocation2 + $0x1ca8] ss:$48 sps:$4 sm:$0xff]  }
 0x523   : > { %12262 = vmatpush1.bf16.msra.mxu1 %v17739_v3  ;;  %11924 = vmatprep.subr.bf16.mxu0 %v17744_v15  ;;  %v17768_v3 = vld [vmem:[#allocation2 + $0x1d04] ss:$48 sps:$4 sm:$0xff]   ;;  %v17769_v15 = vld [vmem:[#allocation2 + $0x1d08] ss:$48 sps:$4 sm:$0xff]  }
 0x524   : > { %12263 = vmatprep.subr.bf16.mxu1 %v17747_v46  ;;  %v17774_v46 = vld [vmem:[#allocation2 + $0x1d64] ss:$48 sps:$4 sm:$0xff]  }
 0x526   : > { %11925 = vmatpush1.bf16.msra.mxu0 %v17742_v19  ;;  %v17777_v19 = vld [vmem:[#allocation2 + $0x1d6c] ss:$48 sps:$4 sm:$0xff]  }
 0x527   : > { %12264 = vmatpush1.bf16.msra.mxu1 %v17745_v18  ;;  %11926 = vmatprep.subr.bf16.mxu0 %v17750_v29  ;;  %v17772_v18 = vld [vmem:[#allocation2 + $0x1d60] ss:$48 sps:$4 sm:$0xff]   ;;  %v17775_v29 = vld [vmem:[#allocation2 + $0x1d68] ss:$48 sps:$4 sm:$0xff]  }
 0x528   : > { %11876 = vmatmul.mubr.bf16.gmra.mrb[180].mxu0 %v23574_v32  ;;  %12265 = vmatprep.subr.bf16.mxu1 %v17753_v24  ;;  %v17780_v24 = vld [vmem:[#allocation2 + $0x1dc4] ss:$48 sps:$4 sm:$0xff]  }
 0x529   : > { %12215 = vmatmul.mubr.bf16.gmra.mrb[180].mxu1 %v23574_v32  ;;  %11885 = vmatprep.mubr.bf16.mxu0 %v23575_v53  ;;  %v17771_v32 = vld [vmem:[#allocation2 + $0x1d0c] ss:$48 sps:$4 sm:$0xff]  }
 0x52a   : > { %11927 = vmatpush1.bf16.msra.mxu0 %v17748_v56  ;;  %12224 = vmatprep.mubr.bf16.mxu1 %v23575_v53  ;;  %v17766_v53 = vld [vmem:[#allocation2 + $0x1d00] ss:$48 sps:$4 sm:$0xff]   ;;  %v17781_v56 = vld [vmem:[#allocation2 + $0x1dc8] ss:$48 sps:$4 sm:$0xff]  }
 0x52b   : > { %12266 = vmatpush1.bf16.msra.mxu1 %v17751_v20  ;;  %11928 = vmatprep.subr.bf16.mxu0 %v17756_v0  ;;  %v17786_v20 = vld [vmem:[#allocation2 + $0x1e24] ss:$48 sps:$4 sm:$0xff]   ;;  %v17789_v0 = vld [vmem:[#allocation2 + $0x1e2c] ss:$48 sps:$4 sm:$0xff]  }
 0x52c   : > { %12267 = vmatprep.subr.bf16.mxu1 %v17759_v40  ;;  %v17784_v40 = vld [vmem:[#allocation2 + $0x1e20] ss:$48 sps:$4 sm:$0xff]  }
 0x52e   : > { %11929 = vmatpush1.bf16.msra.mxu0 %v17754_v49  ;;  %v17787_v49 = vld [vmem:[#allocation2 + $0x1e28] ss:$48 sps:$4 sm:$0xff]  }
 0x52f   : > { %12268 = vmatpush1.bf16.msra.mxu1 %v17757_v23  ;;  %11930 = vmatprep.subr.bf16.mxu0 %v17762_v54  ;;  %v17792_v23 = vld [vmem:[#allocation2 + $0x1e84] ss:$48 sps:$4 sm:$0xff]   ;;  %v17793_v54 = vld [vmem:[#allocation2 + $0x1e88] ss:$48 sps:$4 sm:$0xff]  }
 0x530   : > { %11886 = vmatmul.mubr.bf16.gmra.mrb[184].mxu0 %v23576_v55  ;;  %12269 = vmatprep.subr.bf16.mxu1 %v17765_v13  ;;  %v17798_v13 = vld [vmem:[#allocation2 + $0x1ee4] ss:$48 sps:$4 sm:$0xff]  }
 0x531   : > { %12225 = vmatmul.mubr.bf16.gmra.mrb[184].mxu1 %v23576_v55  ;;  %11895 = vmatprep.mubr.bf16.mxu0 %v23577_v27  ;;  %v17783_v55 = vld [vmem:[#allocation2 + $0x1dcc] ss:$48 sps:$4 sm:$0xff]  }
 0x532   : > { %11931 = vmatpush1.bf16.msra.mxu0 %v17760_v47  ;;  %12234 = vmatprep.mubr.bf16.mxu1 %v23577_v27  ;;  %v17778_v27 = vld [vmem:[#allocation2 + $0x1dc0] ss:$48 sps:$4 sm:$0xff]   ;;  %v17801_v47 = vld [vmem:[#allocation2 + $0x1eec] ss:$48 sps:$4 sm:$0xff]  }
 0x533   : > { %12270 = vmatpush1.bf16.msra.mxu1 %v17763_v48  ;;  %11932 = vmatprep.subr.bf16.mxu0 %v17768_v3  ;;  %v17796_v48 = vld [vmem:[#allocation2 + $0x1ee0] ss:$48 sps:$4 sm:$0xff]   ;;  %v17799_v3 = vld [vmem:[#allocation2 + $0x1ee8] ss:$48 sps:$4 sm:$0xff]  }
 0x534   : > { %12271 = vmatprep.subr.bf16.mxu1 %v17771_v32  ;;  %v17804_v32 = vld [vmem:[#allocation2 + $0x1f44] ss:$48 sps:$4 sm:$0xff]  }
 0x536   : > { %11933 = vmatpush1.bf16.msra.mxu0 %v17766_v53  ;;  %v17805_v53 = vld [vmem:[#allocation2 + $0x1f48] ss:$48 sps:$4 sm:$0xff]  }
 0x537   : > { %12272 = vmatpush1.bf16.msra.mxu1 %v17769_v15  ;;  %11934 = vmatprep.subr.bf16.mxu0 %v17774_v46  ;;  %v17810_v15 = vld [vmem:[#allocation2 + $0x1fa4] ss:$48 sps:$4 sm:$0xff]   ;;  %v17813_v46 = vld [vmem:[#allocation2 + $0x1fac] ss:$48 sps:$4 sm:$0xff]  }
 0x538   : > { %11896 = vmatmul.mubr.bf16.gmra.mrb[188].mxu0 %v23578_v33  ;;  %12273 = vmatprep.subr.bf16.mxu1 %v17777_v19  ;;  %v17808_v19 = vld [vmem:[#allocation2 + $0x1fa0] ss:$48 sps:$4 sm:$0xff]  }
 0x539   : > { %12235 = vmatmul.mubr.bf16.gmra.mrb[188].mxu1 %v23578_v33  ;;  %11938 = vmatprep.mubr.bf16.mxu0 %v23579_v2  ;;  %v17795_v33 = vld [vmem:[#allocation2 + $0x1e8c] ss:$48 sps:$4 sm:$0xff]  }
 0x53a   : > { %11935 = vmatpush1.bf16.msra.mxu0 %v17772_v18  ;;  %12277 = vmatprep.mubr.bf16.mxu1 %v23579_v2  ;;  %v17790_v2 = vld [vmem:[#allocation2 + $0x1e80] ss:$48 sps:$4 sm:$0xff]   ;;  %v17811_v18 = vld [vmem:[#allocation2 + $0x1fa8] ss:$48 sps:$4 sm:$0xff]  }
 0x53b   : > { %12274 = vmatpush1.bf16.msra.mxu1 %v17775_v29  ;;  %11936 = vmatprep.subr.bf16.mxu0 %v17780_v24  ;;  %v17816_v29 = vld [vmem:[#allocation2 + $0x2004] ss:$48 sps:$4 sm:$0xff]   ;;  %v17817_v24 = vld [vmem:[#allocation2 + $0x2008] ss:$48 sps:$4 sm:$0xff]  }
 0x53c   : > { %12275 = vmatprep.subr.bf16.mxu1 %v17783_v55  ;;  %v17822_v55 = vld [vmem:[#allocation2 + $0x2064] ss:$48 sps:$4 sm:$0xff]  }
 0x53e   : > { %11937 = vmatpush1.bf16.msra.mxu0 %v17778_v27  ;;  %v17825_v27 = vld [vmem:[#allocation2 + $0x206c] ss:$48 sps:$4 sm:$0xff]  }
 0x53f   : > { %12276 = vmatpush1.bf16.msra.mxu1 %v17781_v56  ;;  %12019 = vmatprep.subr.bf16.mxu0 %v17786_v20  ;;  %v17820_v56 = vld [vmem:[#allocation2 + $0x2060] ss:$48 sps:$4 sm:$0xff]   ;;  %v17823_v20 = vld [vmem:[#allocation2 + $0x2068] ss:$48 sps:$4 sm:$0xff]  }
 0x540   : > { %12358 = vmatprep.subr.bf16.mxu1 %v17789_v0  ;;  %v17828_v0 = vld [vmem:[#allocation2 + $0x20c4] ss:$48 sps:$4 sm:$0xff]  }
 0x541   : > { %11939 = vmatmul.mubr.bf16.vlgmr.msra.gmra.mrb[160].mxu0 %v23580_v37 }
 0x542   : > { %12278 = vmatmul.mubr.bf16.vlgmr.msra.gmra.mrb[160].mxu1 %v23580_v37  ;;  %11948 = vmatprep.mubr.bf16.mxu0 %v23581_v11  ;;  %v17807_v37 = vld [vmem:[#allocation2 + $0x1f4c] ss:$48 sps:$4 sm:$0xff]  }
 0x543   : > { %12020 = vmatpush1.bf16.msra.mxu0 %v17784_v40  ;;  %12287 = vmatprep.mubr.bf16.mxu1 %v23581_v11  ;;  %v17802_v11 = vld [vmem:[#allocation2 + $0x1f40] ss:$48 sps:$4 sm:$0xff]   ;;  %v17829_v40 = vld [vmem:[#allocation2 + $0x20c8] ss:$48 sps:$4 sm:$0xff]  }
 0x544   : > { %12359 = vmatpush1.bf16.msra.mxu1 %v17787_v49  ;;  %12021 = vmatprep.subr.bf16.mxu0 %v17792_v23  ;;  %v17834_v49 = vld [vmem:[#allocation2 + $0x2124] ss:$48 sps:$4 sm:$0xff]   ;;  %v17837_v23 = vld [vmem:[#allocation2 + $0x212c] ss:$48 sps:$4 sm:$0xff]  }
 0x545   : > { %12360 = vmatprep.subr.bf16.mxu1 %v17795_v33  ;;  %v17832_v33 = vld [vmem:[#allocation2 + $0x2120] ss:$48 sps:$4 sm:$0xff]  }
 0x547   : > { %12022 = vmatpush1.bf16.msra.mxu0 %v17790_v2  ;;  %v17835_v2 = vld [vmem:[#allocation2 + $0x2128] ss:$48 sps:$4 sm:$0xff]  }
 0x548   : > { %12361 = vmatpush1.bf16.msra.mxu1 %v17793_v54  ;;  %12023 = vmatprep.subr.bf16.mxu0 %v17798_v13  ;;  %v17840_v54 = vld [vmem:[#allocation2 + $0x2184] ss:$48 sps:$4 sm:$0xff]   ;;  %v17841_v13 = vld [vmem:[#allocation2 + $0x2188] ss:$48 sps:$4 sm:$0xff]  }
 0x549   : > { %11949 = vmatmul.mubr.bf16.gmra.mrb[164].mxu0 %v23582_v61  ;;  %12362 = vmatprep.subr.bf16.mxu1 %v17801_v47  ;;  %v17846_v47 = vld [vmem:[#allocation2 + $0x21e4] ss:$48 sps:$4 sm:$0xff]  }
 0x54a   : > { %12288 = vmatmul.mubr.bf16.gmra.mrb[164].mxu1 %v23582_v61  ;;  %11958 = vmatprep.mubr.bf16.mxu0 %v23583_v42  ;;  %v17819_v61 = vld [vmem:[#allocation2 + $0x200c] ss:$48 sps:$4 sm:$0xff]  }
 0x54b   : > { %12024 = vmatpush1.bf16.msra.mxu0 %v17796_v48  ;;  %12297 = vmatprep.mubr.bf16.mxu1 %v23583_v42  ;;  %v17814_v42 = vld [vmem:[#allocation2 + $0x2000] ss:$48 sps:$4 sm:$0xff]   ;;  %v17849_v48 = vld [vmem:[#allocation2 + $0x21ec] ss:$48 sps:$4 sm:$0xff]  }
 0x54c   : > { %12363 = vmatpush1.bf16.msra.mxu1 %v17799_v3  ;;  %12025 = vmatprep.subr.bf16.mxu0 %v17804_v32  ;;  %v17844_v3 = vld [vmem:[#allocation2 + $0x21e0] ss:$48 sps:$4 sm:$0xff]   ;;  %v17847_v32 = vld [vmem:[#allocation2 + $0x21e8] ss:$48 sps:$4 sm:$0xff]  }
 0x54d   : > { %12364 = vmatprep.subr.bf16.mxu1 %v17807_v37  ;;  %v17852_v37 = vld [vmem:[#allocation2 + $0x2244] ss:$48 sps:$4 sm:$0xff]  }
 0x54f   : > { %12026 = vmatpush1.bf16.msra.mxu0 %v17802_v11  ;;  %v17853_v11 = vld [vmem:[#allocation2 + $0x2248] ss:$48 sps:$4 sm:$0xff]  }
 0x550   : > { %12365 = vmatpush1.bf16.msra.mxu1 %v17805_v53  ;;  %12027 = vmatprep.subr.bf16.mxu0 %v17810_v15  ;;  %v17858_v53 = vld [vmem:[#allocation2 + $0x22a4] ss:$48 sps:$4 sm:$0xff]   ;;  %v17861_v15 = vld [vmem:[#allocation2 + $0x22ac] ss:$48 sps:$4 sm:$0xff]  }
 0x551   : > { %11959 = vmatmul.mubr.bf16.gmra.mrb[168].mxu0 %v23584_v14  ;;  %12366 = vmatprep.subr.bf16.mxu1 %v17813_v46  ;;  %v17856_v46 = vld [vmem:[#allocation2 + $0x22a0] ss:$48 sps:$4 sm:$0xff]  }
 0x552   : > { %12298 = vmatmul.mubr.bf16.gmra.mrb[168].mxu1 %v23584_v14  ;;  %11968 = vmatprep.mubr.bf16.mxu0 %v23585_v58  ;;  %v17831_v14 = vld [vmem:[#allocation2 + $0x20cc] ss:$48 sps:$4 sm:$0xff]  }
 0x553   : > { %12028 = vmatpush1.bf16.msra.mxu0 %v17808_v19  ;;  %12307 = vmatprep.mubr.bf16.mxu1 %v23585_v58  ;;  %v17826_v58 = vld [vmem:[#allocation2 + $0x20c0] ss:$48 sps:$4 sm:$0xff]   ;;  %v17859_v19 = vld [vmem:[#allocation2 + $0x22a8] ss:$48 sps:$4 sm:$0xff]  }
 0x554   : > { %12367 = vmatpush1.bf16.msra.mxu1 %v17811_v18  ;;  %12029 = vmatprep.subr.bf16.mxu0 %v17816_v29  ;;  %v17864_v18 = vld [vmem:[#allocation2 + $0x2304] ss:$48 sps:$4 sm:$0xff]   ;;  %v17865_v29 = vld [vmem:[#allocation2 + $0x2308] ss:$48 sps:$4 sm:$0xff]  }
 0x555   : > { %12368 = vmatprep.subr.bf16.mxu1 %v17819_v61  ;;  %v17870_v61 = vld [vmem:[#allocation2 + $0x2364] ss:$48 sps:$4 sm:$0xff]  }
 0x557   : > { %12030 = vmatpush1.bf16.msra.mxu0 %v17814_v42  ;;  %v17873_v42 = vld [vmem:[#allocation2 + $0x236c] ss:$48 sps:$4 sm:$0xff]  }
 0x558   : > { %12369 = vmatpush1.bf16.msra.mxu1 %v17817_v24  ;;  %12031 = vmatprep.subr.bf16.mxu0 %v17822_v55  ;;  %v17868_v24 = vld [vmem:[#allocation2 + $0x2360] ss:$48 sps:$4 sm:$0xff]   ;;  %v17871_v55 = vld [vmem:[#allocation2 + $0x2368] ss:$48 sps:$4 sm:$0xff]  }
 0x559   : > { %11969 = vmatmul.mubr.bf16.gmra.mrb[172].mxu0 %v23586_v8  ;;  %12370 = vmatprep.subr.bf16.mxu1 %v17825_v27  ;;  %v17876_v27 = vld [vmem:[#allocation2 + $0x23c4] ss:$48 sps:$4 sm:$0xff]  }
 0x55a   : > { %12308 = vmatmul.mubr.bf16.gmra.mrb[172].mxu1 %v23586_v8  ;;  %11978 = vmatprep.mubr.bf16.mxu0 %v23587_v22  ;;  %v17843_v8 = vld [vmem:[#allocation2 + $0x218c] ss:$48 sps:$4 sm:$0xff]  }
 0x55b   : > { %12032 = vmatpush1.bf16.msra.mxu0 %v17820_v56  ;;  %12317 = vmatprep.mubr.bf16.mxu1 %v23587_v22  ;;  %v17838_v22 = vld [vmem:[#allocation2 + $0x2180] ss:$48 sps:$4 sm:$0xff]   ;;  %v17877_v56 = vld [vmem:[#allocation2 + $0x23c8] ss:$48 sps:$4 sm:$0xff]  }
 0x55c   : > { %12371 = vmatpush1.bf16.msra.mxu1 %v17823_v20  ;;  %12033 = vmatprep.subr.bf16.mxu0 %v17828_v0 }
 0x55d   : > { %12372 = vmatprep.subr.bf16.mxu1 %v17831_v14 }
 0x55f   : > { %12034 = vmatpush1.bf16.msra.mxu0 %v17826_v58 }
 0x560   : > { %12373 = vmatpush1.bf16.msra.mxu1 %v17829_v40  ;;  %12035 = vmatprep.subr.bf16.mxu0 %v17834_v49 }
 0x561   : > { %11979 = vmatmul.mubr.bf16.gmra.mrb[176].mxu0 %v23588_v31  ;;  %12374 = vmatprep.subr.bf16.mxu1 %v17837_v23 }
 0x562   : > { %12318 = vmatmul.mubr.bf16.gmra.mrb[176].mxu1 %v23588_v31  ;;  %11988 = vmatprep.mubr.bf16.mxu0 %v21135_v28  ;;  %v17855_v31 = vld [vmem:[#allocation2 + $0x224c] ss:$48 sps:$4 sm:$0xff]  }
 0x563   : > { %12036 = vmatpush1.bf16.msra.mxu0 %v17832_v33  ;;  %12327 = vmatprep.mubr.bf16.mxu1 %v21135_v28  ;;  %v17850_v28 = vld [vmem:[#allocation2 + $0x2240] ss:$48 sps:$4 sm:$0xff]  }
 0x564   : > { %12375 = vmatpush1.bf16.msra.mxu1 %v17835_v2  ;;  %12037 = vmatprep.subr.bf16.mxu0 %v17840_v54 }
 0x565   : > { %12376 = vmatprep.subr.bf16.mxu1 %v17843_v8 }
 0x567   : > { %12038 = vmatpush1.bf16.msra.mxu0 %v17838_v22 }
 0x568   : > { %12377 = vmatpush1.bf16.msra.mxu1 %v17841_v13  ;;  %12039 = vmatprep.subr.bf16.mxu0 %v17846_v47 }
 0x569   : > { %11989 = vmatmul.mubr.bf16.gmra.mrb[180].mxu0 %v21141_v30  ;;  %12378 = vmatprep.subr.bf16.mxu1 %v17849_v48 }
 0x56a   : > { %12328 = vmatmul.mubr.bf16.gmra.mrb[180].mxu1 %v21141_v30  ;;  %11998 = vmatprep.mubr.bf16.mxu0 %v21206_v17  ;;  %v17867_v30 = vld [vmem:[#allocation2 + $0x230c] ss:$48 sps:$4 sm:$0xff]  }
 0x56b   : > { %12040 = vmatpush1.bf16.msra.mxu0 %v17844_v3  ;;  %12337 = vmatprep.mubr.bf16.mxu1 %v21206_v17  ;;  %v17862_v17 = vld [vmem:[#allocation2 + $0x2300] ss:$48 sps:$4 sm:$0xff]  }
 0x56c   : > { %12379 = vmatpush1.bf16.msra.mxu1 %v17847_v32  ;;  %12041 = vmatprep.subr.bf16.mxu0 %v17852_v37 }
 0x56d   : > { %12380 = vmatprep.subr.bf16.mxu1 %v17855_v31 }
 0x56f   : > { %12042 = vmatpush1.bf16.msra.mxu0 %v17850_v28 }
 0x570   : > { %12381 = vmatpush1.bf16.msra.mxu1 %v17853_v11  ;;  %12043 = vmatprep.subr.bf16.mxu0 %v17858_v53 }
 0x571   : > { %11999 = vmatmul.mubr.bf16.gmra.mrb[184].mxu0 %v21216_v10  ;;  %12382 = vmatprep.subr.bf16.mxu1 %v17861_v15 }
 0x572   : > { %12338 = vmatmul.mubr.bf16.gmra.mrb[184].mxu1 %v21216_v10  ;;  %12008 = vmatprep.mubr.bf16.mxu0 %v21249_v12  ;;  %v17879_v10 = vld [vmem:[#allocation2 + $0x23cc] ss:$48 sps:$4 sm:$0xff]  }
 0x573   : > { %12044 = vmatpush1.bf16.msra.mxu0 %v17856_v46  ;;  %12347 = vmatprep.mubr.bf16.mxu1 %v21249_v12  ;;  %v17874_v12 = vld [vmem:[#allocation2 + $0x23c0] ss:$48 sps:$4 sm:$0xff]  }
 0x574   : > { %12383 = vmatpush1.bf16.msra.mxu1 %v17859_v19  ;;  %12045 = vmatprep.subr.bf16.mxu0 %v17864_v18 }
 0x575   : > { %12384 = vmatprep.subr.bf16.mxu1 %v17867_v30 }
 0x577   : > { %12046 = vmatpush1.bf16.msra.mxu0 %v17862_v17 }
 0x578   : > { %12385 = vmatpush1.bf16.msra.mxu1 %v17865_v29  ;;  %12047 = vmatprep.subr.bf16.mxu0 %v17870_v61  ;;  %v15159_v29 = vadd.f32 %v21557_v16, %v21713_v50  ;;  %v23655_v16 = vld [vmem:[#allocation94_spill] sm:$0xff] }
 0x579   : > { %12009 = vmatmul.mubr.bf16.gmra.mrb[188].mxu0 %v21253_v62  ;;  %12386 = vmatprep.subr.bf16.mxu1 %v17873_v42 }
 0x57a   : > { %12348 = vmatmul.mubr.bf16.gmra.mrb[188].mxu1 %v21253_v62  ;;  %12051 = vmatprep.mubr.bf16.mxu0 %v21259_v41  ;;  %v23651_v62 = vld [vmem:[#allocation43_spill] sm:$0xff] }
 0x57b   : > { %12048 = vmatpush1.bf16.msra.mxu0 %v17868_v24  ;;  %12390 = vmatprep.mubr.bf16.mxu1 %v21259_v41  ;;  %v23652_v41 = vsub.s32 6, %v23651_v62  ;;  %v23653_v0 = vsub.s32 7, %v23651_v62  ;;  %v23654_v24 = vld [vmem:[#allocation46_spill] sm:$0xff] }
 0x57c   : > { %12387 = vmatpush1.bf16.msra.mxu1 %v17871_v55  ;;  %12049 = vmatprep.subr.bf16.mxu0 %v17876_v27  ;;  %v15160_v55 = vadd.f32 %v23654_v24, %v21709_v45  ;;  %v23660_v24 = vld [vmem:[#allocation102_spill] sm:$0xff] }
 0x57d   : > { %12388 = vmatprep.subr.bf16.mxu1 %v17879_v10  ;;  %v21810_v20 = vrot.slane %v21649_v43, %v23652_v41 }
 0x57f   : > { %12050 = vmatpush1.bf16.msra.mxu0 %v17874_v12 }
 0x580   : > { %12389 = vmatpush1.bf16.msra.mxu1 %v17877_v56  ;;  %v15161_v56 = vadd.f32 %v23655_v16, %v21713_v50 }
 0x582   : > { %12052 = vmatmul.mubr.bf16.vlgmr.msra.gmra.mrb[160].mxu0 %v21283_v60 }
 0x583   : > { %12391 = vmatmul.mubr.bf16.vlgmr.msra.gmra.mrb[160].mxu1 %v21283_v60  ;;  %12061 = vmatprep.mubr.bf16.mxu0 %v21287_v9  ;;  %v21815_v60 = vrot.slane %v21649_v43, %v23653_v0 }
 0x584   : > { %12400 = vmatprep.mubr.bf16.mxu1 %v21287_v9 }
 0x58a   : > { %12062 = vmatmul.mubr.bf16.gmra.mrb[164].mxu0 %v21311_v63 }
 0x58b   : > { %12401 = vmatmul.mubr.bf16.gmra.mrb[164].mxu1 %v21311_v63  ;;  %12071 = vmatprep.mubr.bf16.mxu0 %v21315_v4 }
 0x58c   : > { %12410 = vmatprep.mubr.bf16.mxu1 %v21315_v4 }
 0x592   : > { %12072 = vmatmul.mubr.bf16.gmra.mrb[168].mxu0 %v21339_v52  ;;  %v21818_v9 = vpop.f32.mrb[128].mxu0 }
 0x593   : > { %12411 = vmatmul.mubr.bf16.gmra.mrb[168].mxu1 %v21339_v52  ;;  %12081 = vmatprep.mubr.bf16.mxu0 %v21343_v59  ;;  %v11714_v63 = vpop.f32.mrb[128].mxu1  ;;  %v21822_v4 = vpop.f32.mrb[129].mxu0 }
 0x594   : > { %12420 = vmatprep.mubr.bf16.mxu1 %v21343_v59  ;;  %v15254_v14 = vadd.f32 %v11714_v63, %v21810_v20  ;;  %v11716_v58 = vpop.f32.mrb[129].mxu1  ;;  %v21826_v40 = vpop.f32.mrb[130].mxu0 }
 0x595   : > { %v15255_v43 = vadd.f32 %v11716_v58, %v21815_v60  ;;  %v11718_v49 = vpop.f32.mrb[130].mxu1  ;;  %v21829_v23 = vpop.f32.mrb[131].mxu0 }
 0x596   : > { %v14868_v33 = vmul.f32 -1.442695, %v15254_v14  ;;  %v15256_v52 = vadd.f32 %v11718_v49, %v21810_v20  ;;  %v11720_v2 = vpop.f32.mrb[131].mxu1 }
 0x597   : > { %v14869_v54 = vmul.f32 -1.442695, %v15255_v43  ;;  %v15257_v8 = vadd.f32 %v11720_v2, %v21815_v60  ;;  %v12472_v2 = vmax.f32 %v15159_v29, 0.0 }
 0x598   : > { %18264 = vpow2.f32 %v14868_v33  ;;  %v14874_v22 = vmul.f32 -1.442695, %v15256_v52 }
 0x599   : > { %18266 = vpow2.f32 %v14869_v54  ;;  %v14875_v59 = vmul.f32 -1.442695, %v15257_v8 }
 0x59a   : > { %18268 = vpow2.f32 %v14874_v22  ;;  %12082 = vmatmul.mubr.bf16.gmra.mrb[172].mxu0 %v21367_v5  ;;  %v21834_v13 = vpop.f32.mrb[132].mxu0 }
 0x59b   : > { %18270 = vpow2.f32 %v14875_v59  ;;  %12421 = vmatmul.mubr.bf16.gmra.mrb[172].mxu1 %v21367_v5  ;;  %12091 = vmatprep.mubr.bf16.mxu0 %v21371_v1  ;;  %v11724_v47 = vpop.f32.mrb[132].mxu1  ;;  %v21838_v48 = vpop.f32.mrb[133].mxu0  ;;  %v23656_v59 = vld [vmem:[#allocation63_spill] sm:$0xff] }
 0x59c   : > { %12430 = vmatprep.mubr.bf16.mxu1 %v21371_v1  ;;  %v15258_v3 = vadd.f32 %v11724_v47, %v21810_v20  ;;  %v11726_v32 = vpop.f32.mrb[133].mxu1  ;;  %v21842_v37 = vpop.f32.mrb[134].mxu0  ;;  %v15158_v1 = vadd.f32 %v21552_v7, %v21709_v45  ;;  %v15162_v47 = vadd.f32 %v23656_v59, %v21709_v45 }
 0x59d   : > { %v15259_v31 = vadd.f32 %v11726_v32, %v21815_v60  ;;  %v11728_v28 = vpop.f32.mrb[134].mxu1  ;;  %v21845_v11 = vpop.f32.mrb[135].mxu0  ;;  %v12478_v32 = vmax.f32 %v15161_v56, 0.0  ;;  %v23661_v56 = vld [vmem:[#allocation11_spill] sm:$0xff] }
 0x59e   : > { %v14880_v53 = vmul.f32 -1.442695, %v15258_v3  ;;  %v15260_v5 = vadd.f32 %v11728_v28, %v21810_v20  ;;  %v11730_v15 = vpop.f32.mrb[135].mxu1  ;;  %v12471_v43 = vmax.f32 %v15158_v1, 0.0 }
 0x59f   : > { %v14881_v46 = vmul.f32 -1.442695, %v15259_v31  ;;  %v15261_v19 = vadd.f32 %v11730_v15, %v21815_v60 }
 0x5a0   : > { %18272 = vpow2.f32 %v14880_v53  ;;  %v14886_v18 = vmul.f32 -1.442695, %v15260_v5  ;;  %v23657_v5 = vld [vmem:[#allocation85_spill] sm:$0xff] }
 0x5a1   : > { %18274 = vpow2.f32 %v14881_v46  ;;  %v14887_v30 = vmul.f32 -1.442695, %v15261_v19  ;;  %v13143_v15 = vsub.f32 %v12471_v43, %v23657_v5  ;;  %v23658_v46 = vld [vmem:[#allocation12_spill] sm:$0xff] }
 0x5a2   : > { %v18265_v17 = vpop.eup %18264  ;;  %18276 = vpow2.f32 %v14886_v18  ;;  %12092 = vmatmul.mubr.bf16.gmra.mrb[176].mxu0 %v21395_v51  ;;  %v21854_v61 = vpop.f32.mrb[136].mxu0  ;;  %v13144_v19 = vsub.f32 %v12472_v2, %v23658_v46 }
 0x5a3   : > { %v18267_v42 = vpop.eup %18266  ;;  %v12855_v27 = vadd.f32 1.0, %v18265_v17  ;;  %18278 = vpow2.f32 %v14887_v30  ;;  %12431 = vmatmul.mubr.bf16.gmra.mrb[176].mxu1 %v21395_v51  ;;  %12101 = vmatprep.mubr.bf16.mxu0 %v21399_v26  ;;  %v11734_v7 = vpop.f32.mrb[136].mxu1  ;;  %v23659_v17 = vld [vmem:[#allocation41_spill] sm:$0xff] }
 0x5a4   : > { %v21860_v10 = vpop.f32.mrb[137].mxu0  ;;  %v18269_v12 = vpop.eup %18268  ;;  %v12856_v41 = vadd.f32 1.0, %v18267_v42  ;;  %12440 = vmatprep.mubr.bf16.mxu1 %v21399_v26  ;;  %v15262_v0 = vadd.f32 %v11734_v7, %v21810_v20  ;;  %v12477_v26 = vmax.f32 %v15160_v55, 0.0  ;;  %v12483_v42 = vmax.f32 %v15162_v47, 0.0 }
 0x5a5   : > { %v11736_v63 = vpop.f32.mrb[137].mxu1  ;;  %v21866_v14 = vpop.f32.mrb[138].mxu0  ;;  %18280 = vrcp.f32 %v12855_v27  ;;  %v12861_v51 = vadd.f32 1.0, %v18269_v12  ;;  %v21883_v55 = vadd.f32 %v23660_v24, %v21713_v50 }
 0x5a6   : > { %v18271_v58 = vpop.eup %18270  ;;  %v15263_v49 = vadd.f32 %v11736_v63, %v21815_v60  ;;  %v11738_v33 = vpop.f32.mrb[138].mxu1  ;;  %18282 = vrcp.f32 %v12856_v41  ;;  %v14892_v8 = vmul.f32 -1.442695, %v15262_v0  ;;  %v13149_v29 = vsub.f32 %v12477_v26, %v23659_v17 }
 0x5a7   : > { %v21869_v52 = vpop.f32.mrb[139].mxu0  ;;  %v12862_v54 = vadd.f32 1.0, %v18271_v58  ;;  %v11740_v22 = vpop.f32.mrb[139].mxu1  ;;  %18284 = vrcp.f32 %v12861_v51  ;;  %v15264_v31 = vadd.f32 %v11738_v33, %v21810_v20  ;;  %v13150_v41 = vsub.f32 %v12478_v32, %v23661_v56 }
 0x5a8   : > { %v14893_v3 = vmul.f32 -1.442695, %v15263_v49  ;;  %v15265_v28 = vadd.f32 %v11740_v22, %v21815_v60 }
 0x5a9   : > { %18286 = vrcp.f32 %v12862_v54  ;;  %v14898_v18 = vmul.f32 -1.442695, %v15264_v31  ;;  %v12484_v31 = vmax.f32 %v21883_v55, 0.0 }
 0x5aa   : > { %18288 = vpow2.f32 %v14892_v8  ;;  %v18273_v53 = vpop.eup %18272  ;;  %12102 = vmatmul.mubr.bf16.gmra.mrb[180].mxu0 %v21423_v35  ;;  %v21878_v1 = vpop.f32.mrb[140].mxu0  ;;  %v14899_v2 = vmul.f32 -1.442695, %v15265_v28 }
 0x5ab   : > { %18290 = vpow2.f32 %v14893_v3  ;;  %v18275_v30 = vpop.eup %18274  ;;  %v12867_v27 = vadd.f32 1.0, %v18273_v53  ;;  %12441 = vmatmul.mubr.bf16.gmra.mrb[180].mxu1 %v21423_v35  ;;  %12111 = vmatprep.mubr.bf16.mxu0 %v21427_v21  ;;  %v11744_v7 = vpop.f32.mrb[140].mxu1  ;;  %v23662_v35 = vld [vmem:[#allocation72_spill] sm:$0xff]  ;;  %v23664_v3 = vld [vmem:[#allocation54_spill] sm:$0xff]  ;;  %v23665_v53 = vld [vmem:[#allocation111_spill] sm:$0xff] }
 0x5ac   : > { %v21887_v12 = vpop.f32.mrb[141].mxu0  ;;  %v18277_v16 = vpop.eup %18276  ;;  %v12868_v0 = vadd.f32 1.0, %v18275_v30  ;;  %18292 = vpow2.f32 %v14898_v18  ;;  %12450 = vmatprep.mubr.bf16.mxu1 %v21427_v21  ;;  %v15266_v63 = vadd.f32 %v11744_v7, %v21810_v20  ;;  %v15164_v49 = vadd.f32 %v23662_v35, %v21709_v45  ;;  %v23667_v35 = vld [vmem:[#allocation133_spill] sm:$0xff] }
 0x5ad   : > { %v11746_v58 = vpop.f32.mrb[141].mxu1  ;;  %v21892_v43 = vpop.f32.mrb[142].mxu0  ;;  %18294 = vrcp.f32 %v12867_v27  ;;  %v12873_v33 = vadd.f32 1.0, %v18277_v16  ;;  %v21900_v32 = vsub.f32 %v12483_v42, %v23664_v3  ;;  %v15165_v18 = vadd.f32 %v23665_v53, %v21713_v50 }
 0x5ae   : > { %v18279_v51 = vpop.eup %18278  ;;  %v11748_v54 = vpop.f32.mrb[142].mxu1  ;;  %18296 = vrcp.f32 %v12868_v0  ;;  %v14904_v26 = vmul.f32 -1.442695, %v15266_v63  ;;  %v15267_v21 = vadd.f32 %v11746_v58, %v21815_v60  ;;  %v12489_v16 = vmax.f32 %v15164_v49, 0.0  ;;  %v23666_v0 = vld [vmem:[#allocation118_spill] sm:$0xff] }
 0x5af   : > { %v21896_v8 = vpop.f32.mrb[143].mxu0  ;;  %v12874_v22 = vadd.f32 1.0, %v18279_v51  ;;  %v11750_v59 = vpop.f32.mrb[143].mxu1  ;;  %18298 = vrcp.f32 %v12873_v33  ;;  %v15268_v27 = vadd.f32 %v11748_v54, %v21810_v20  ;;  %v15166_v63 = vadd.f32 %v23666_v0, %v21709_v45 }
 0x5b0   : > { %23663 = vst [vmem:[#allocation43_spill] sm:$0xff] %v21896_v8  ;;  %v18281_v47 = vpop.eup %18280  ;;  %v14905_v24 = vmul.f32 -1.442695, %v15267_v21  ;;  %v12490_v54 = vmax.f32 %v15165_v18, 0.0 }
 0x5b1   : > { %v18283_v28 = vpop.eup %18282  ;;  %v13239_v30 = vmul.f32 %v18281_v47, %v13143_v15  ;;  %18300 = vrcp.f32 %v12874_v22  ;;  %v14910_v51 = vmul.f32 -1.442695, %v15268_v27 }
 0x5b2   : > { %v18285_v7 = vpop.eup %18284  ;;  %v13240_v42 = vmul.f32 %v18283_v28, %v13144_v19  ;;  %18302 = vpow2.f32 %v14899_v2  ;;  %12112 = vmatmul.mubr.bf16.gmra.mrb[184].mxu0 %v23667_v35  ;;  %v21917_v49 = vpop.f32.mrb[144].mxu0  ;;  %v23669_v19 = vld [vmem:[#allocation134_spill] sm:$0xff]  ;;  %v23673_v28 = vld [vmem:[#allocation44_spill] sm:$0xff] }
 0x5b3   : > { %v18287_v55 = vpop.eup %18286  ;;  %v13335_v15 = vadd.f32 %v13239_v30, %v23657_v5  ;;  %v13245_v58 = vmul.f32 %v18285_v7, %v13149_v29  ;;  %18304 = vpow2.f32 %v14904_v26  ;;  %23668 = vst [vmem:[#allocation46_spill] sm:$0xff] %v21917_v49  ;;  %12451 = vmatmul.mubr.bf16.gmra.mrb[184].mxu1 %v23667_v35  ;;  %12121 = vmatprep.mubr.bf16.mxu0 %v23669_v19  ;;  %v11754_v5 = vpop.f32.mrb[144].mxu1  ;;  %v23671_v26 = vld [vmem:[#allocation8_spill] sm:$0xff]  ;;  %v23817_v49 = vld [vmem:[#allocation71_spill] sm:$0xff] }
 0x5b4   : > { %v18289_v33 = vpop.eup %18288  ;;  %v13336_v22 = vadd.f32 %v13240_v42, %v23658_v46  ;;  %v13246_v21 = vmul.f32 %v18287_v55, %v13150_v41  ;;  %18306 = vpow2.f32 %v14905_v24  ;;  %v21922_v29 = vpop.f32.mrb[145].mxu0  ;;  %v21926_v47 = vadd.f32 %v23671_v26, %v21713_v50  ;;  %12460 = vmatprep.mubr.bf16.mxu1 %v23669_v19  ;;  %v23675_v55 = vld [vmem:[#allocation51_spill] sm:$0xff] }
 0x5b5   : > { %23670 = vst [vmem:[#allocation94_spill] sm:$0xff] %v21922_v29  ;;  %v18291_v2 = vpop.eup %18290  ;;  %13431 = vst [vmem:[%s21913_s26] sm:$0xff] %v13335_v15  ;;  %v13341_v53 = vadd.f32 %v13245_v58, %v23659_v17  ;;  %v12879_v46 = vadd.f32 1.0, %v18289_v33  ;;  %18308 = vpow2.f32 %v14910_v51  ;;  %v11756_v41 = vpop.f32.mrb[145].mxu1  ;;  %v13156_v30 = vsub.f32 %v12484_v31, %v23673_v28  ;;  %v23676_v33 = vld [vmem:[#allocation86_spill] sm:$0xff] }
 0x5b6   : > { %v21931_v18 = vpop.f32.mrb[146].mxu0  ;;  %13432 = vst [vmem:[%s21913_s26 + $0x8] sm:$0xff] %v13336_v22  ;;  %v13342_v24 = vadd.f32 %v13246_v21, %v23661_v56  ;;  %v12880_v27 = vadd.f32 1.0, %v18291_v2  ;;  %v15269_v7 = vadd.f32 %v11750_v59, %v21815_v60  ;;  %v11758_v0 = vpop.f32.mrb[146].mxu1  ;;  %v13161_v15 = vsub.f32 %v12489_v16, %v23675_v55  ;;  %v23677_v2 = vld [vmem:[#allocation18_spill] sm:$0xff] }
 0x5b7   : > { %23672 = vst [vmem:[#allocation63_spill] sm:$0xff] %v21931_v18  ;;  %v21937_v42 = vpop.f32.mrb[147].mxu0  ;;  %v18293_v17 = vpop.eup %18292  ;;  %v12495_v58 = vmax.f32 %v15166_v63, 0.0  ;;  %13437 = vst [vmem:[%s21913_s26 + $0x30] sm:$0xff] %v13341_v53  ;;  %18310 = vrcp.f32 %v12879_v46  ;;  %v15270_v51 = vadd.f32 %v11754_v5, %v21810_v20  ;;  %v13162_v22 = vsub.f32 %v12490_v54, %v23676_v33  ;;  %v23678_v5 = vld [vmem:[#allocation10_spill] sm:$0xff] }
 0x5b8   : > { %23674 = vst [vmem:[#allocation85_spill] sm:$0xff] %v21937_v42  ;;  %v11760_v35 = vpop.f32.mrb[147].mxu1  ;;  %v18295_v31 = vpop.eup %18294  ;;  %13438 = vst [vmem:[%s21913_s26 + $0x38] sm:$0xff] %v13342_v24  ;;  %18312 = vrcp.f32 %v12880_v27  ;;  %v12885_v56 = vadd.f32 1.0, %v18293_v17  ;;  %v14911_v21 = vmul.f32 -1.442695, %v15269_v7  ;;  %v15168_v26 = vadd.f32 %v23677_v2, %v21709_v45 }
 0x5b9   : > { %v18297_v59 = vpop.eup %18296  ;;  %v12496_v19 = vmax.f32 %v21926_v47, 0.0  ;;  %v13251_v16 = vmul.f32 %v18295_v31, %v21900_v32  ;;  %v14916_v63 = vmul.f32 -1.442695, %v15270_v51  ;;  %v21950_v46 = vadd.f32 %v23678_v5, %v21713_v50  ;;  %v23679_v27 = vld [vmem:[#allocation95_spill] sm:$0xff]  ;;  %v23680_v2 = vld [vmem:[#allocation137_spill] sm:$0xff] }
 0x5ba   : > { %v18299_v53 = vpop.eup %18298  ;;  %v13252_v39 = vmul.f32 %v18297_v59, %v13156_v30  ;;  %18314 = vrcp.f32 %v12885_v56  ;;  %v15271_v54 = vadd.f32 %v11756_v41, %v21815_v60  ;;  %v13167_v7 = vsub.f32 %v12495_v58, %v23679_v27  ;;  %12122 = vmatmul.mubr.bf16.gmra.mrb[188].mxu0 %v23680_v2  ;;  %v21956_v32 = vpop.f32.mrb[148].mxu0 }
 0x5bb   : > { %v18301_v24 = vpop.eup %18300  ;;  %v13347_v47 = vadd.f32 %v13251_v16, %v23664_v3  ;;  %v13257_v17 = vmul.f32 %v18299_v53, %v13161_v15  ;;  %18316 = vpow2.f32 %v14911_v21  ;;  %23681 = vst [vmem:[#allocation12_spill] sm:$0xff] %v21956_v32  ;;  %12461 = vmatmul.mubr.bf16.gmra.mrb[188].mxu1 %v23680_v2  ;;  %v11764_v41 = vpop.f32.mrb[148].mxu1  ;;  %v12501_v3 = vmax.f32 %v15168_v26, 0.0 }
 0x5bc   : > { %v18303_v51 = vpop.eup %18302  ;;  %v13348_v31 = vadd.f32 %v13252_v39, %v23673_v28  ;;  %v13258_v5 = vmul.f32 %v18301_v24, %v13162_v22  ;;  %18318 = vpow2.f32 %v14916_v63  ;;  %v14917_v30 = vmul.f32 -1.442695, %v15271_v54  ;;  %v21960_v58 = vpop.f32.mrb[149].mxu0  ;;  %v23684_v22 = vld [vmem:[#allocation27_spill] sm:$0xff] }
 0x5bd   : > { %23682 = vst [vmem:[#allocation41_spill] sm:$0xff] %v21960_v58  ;;  %v18305_v56 = vpop.eup %18304  ;;  %13443 = vst [vmem:[%s21913_s26 + $0x60] sm:$0xff] %v13347_v47  ;;  %v13353_v15 = vadd.f32 %v13257_v17, %v23675_v55  ;;  %v12886_v21 = vadd.f32 1.0, %v18303_v51  ;;  %v15272_v59 = vadd.f32 %v11758_v0, %v21810_v20  ;;  %v11766_v16 = vpop.f32.mrb[149].mxu1  ;;  %v21969_v63 = vadd.f32 %v23684_v22, %v21709_v45  ;;  %v23686_v47 = vld [vmem:[#allocation93_spill] sm:$0xff]  ;;  %v23699_v58 = vld [vmem:[#allocation99_spill] sm:$0xff] }
 0x5be   : > { %v21965_v39 = vpop.f32.mrb[150].mxu0  ;;  %v18307_v28 = vpop.eup %18306  ;;  %13444 = vst [vmem:[%s21913_s26 + $0x68] sm:$0xff] %v13348_v31  ;;  %v13354_v53 = vadd.f32 %v13258_v5, %v23676_v33  ;;  %v12891_v26 = vadd.f32 1.0, %v18305_v56  ;;  %18320 = vpow2.f32 %v14917_v30  ;;  %v13168_v0 = vsub.f32 %v12496_v19, %v23686_v47  ;;  %v23688_v30 = vld [vmem:[#allocation59_spill] sm:$0xff] }
 0x5bf   : > { %23683 = vst [vmem:[#allocation102_spill] sm:$0xff] %v21965_v39  ;;  %v11768_v54 = vpop.f32.mrb[150].mxu1  ;;  %v21973_v24 = vpop.f32.mrb[151].mxu0  ;;  %13449 = vst [vmem:[%s21913_s26 + $0x90] sm:$0xff] %v13353_v15  ;;  %18322 = vrcp.f32 %v12886_v21  ;;  %v12892_v17 = vadd.f32 1.0, %v18307_v28  ;;  %v15171_v22 = vadd.f32 %v23687_v6, %v21713_v50  ;;  %v15273_v33 = vadd.f32 %v11760_v35, %v21815_v60  ;;  %v23689_v6 = vld [vmem:[#allocation138_spill] sm:$0xff] }
 0x5c0   : > { %23685 = vst [vmem:[#allocation11_spill] sm:$0xff] %v21973_v24  ;;  %v18309_v55 = vpop.eup %18308  ;;  %v14922_v2 = vmul.f32 -1.442695, %v15272_v59  ;;  %v11770_v51 = vpop.f32.mrb[151].mxu1  ;;  %13450 = vst [vmem:[%s21913_s26 + $0x98] sm:$0xff] %v13354_v53  ;;  %18324 = vrcp.f32 %v12891_v26  ;;  %v13173_v56 = vsub.f32 %v12501_v3, %v23688_v30  ;;  %v12502_v24 = vmax.f32 %v21950_v46, 0.0 }
 0x5c1   : > { %v12897_v31 = vadd.f32 1.0, %v18309_v55  ;;  %v18311_v5 = vpop.eup %18310  ;;  %18326 = vrcp.f32 %v12892_v17  ;;  %v15274_v19 = vadd.f32 %v11764_v41, %v21810_v20  ;;  %v12507_v21 = vmax.f32 %v21969_v63, 0.0 }
 0x5c2   : > { %v18313_v15 = vpop.eup %18312  ;;  %v13263_v59 = vmul.f32 %v18311_v5, %v13167_v7  ;;  %v14923_v28 = vmul.f32 -1.442695, %v15273_v33  ;;  %v15172_v53 = vadd.f32 %v23689_v6, %v21709_v45  ;;  %v21987_v55 = vpop.f32.mrb[152].mxu0  ;;  %v12508_v46 = vmax.f32 %v15171_v22, 0.0  ;;  %v23692_v33 = vld [vmem:[#allocation140_spill] sm:$0xff] }
 0x5c3   : > { %18328 = vrcp.f32 %v12897_v31  ;;  %v13264_v26 = vmul.f32 %v18313_v15, %v13168_v0  ;;  %v14928_v35 = vmul.f32 -1.442695, %v15274_v19  ;;  %23690 = vst [vmem:[#allocation72_spill] sm:$0xff] %v21987_v55  ;;  %v15275_v41 = vadd.f32 %v11766_v16, %v21815_v60  ;;  %v11774_v63 = vpop.f32.mrb[152].mxu1  ;;  %v21991_v7 = vpop.f32.mrb[153].mxu0  ;;  %v23694_v15 = vld [vmem:[#allocation92_spill] sm:$0xff] }
 0x5c4   : > { %18330 = vpow2.f32 %v14922_v2  ;;  %v18315_v3 = vpop.eup %18314  ;;  %v13359_v17 = vadd.f32 %v13263_v59, %v23679_v27  ;;  %23691 = vst [vmem:[#allocation54_spill] sm:$0xff] %v21991_v7  ;;  %v21995_v0 = vadd.f32 %v23692_v33, %v21713_v50  ;;  %v21998_v19 = vpop.f32.mrb[153].mxu1  ;;  %v13174_v16 = vsub.f32 %v12502_v24, %v23694_v15 }
 0x5c5   : > { %18332 = vpow2.f32 %v14923_v28  ;;  %v18317_v31 = vpop.eup %18316  ;;  %v13360_v2 = vadd.f32 %v13264_v26, %v23686_v47  ;;  %v13269_v5 = vmul.f32 %v18315_v3, %v13173_v56  ;;  %v22000_v22 = vpop.f32.mrb[154].mxu0  ;;  %v14929_v28 = vmul.f32 -1.442695, %v15275_v41 }
 0x5c6   : > { %18334 = vpow2.f32 %v14928_v35  ;;  %23693 = vst [vmem:[#allocation111_spill] sm:$0xff] %v22000_v22  ;;  %v18319_v27 = vpop.eup %18318  ;;  %13455 = vst [vmem:[%s21913_s26 + $0xc0] sm:$0xff] %v13359_v17  ;;  %v12898_v59 = vadd.f32 1.0, %v18317_v31  ;;  %v22004_v6 = vpop.f32.mrb[154].mxu1  ;;  %v12513_v33 = vmax.f32 %v15172_v53, 0.0  ;;  %v15276_v26 = vadd.f32 %v11768_v54, %v21810_v20  ;;  %v23696_v22 = vld [vmem:[#allocation101_spill] sm:$0xff] }
 0x5c7   : > { %v22006_v7 = vpop.f32.mrb[155].mxu0  ;;  %13456 = vst [vmem:[%s21913_s26 + $0xc8] sm:$0xff] %v13360_v2  ;;  %v13365_v47 = vadd.f32 %v13269_v5, %v23688_v30  ;;  %v12903_v56 = vadd.f32 1.0, %v18319_v27  ;;  %v22011_v35 = vpop.f32.mrb[155].mxu1  ;;  %v13179_v24 = vsub.f32 %v12507_v21, %v23696_v22  ;;  %v23697_v17 = vld [vmem:[#allocation61_spill] sm:$0xff]  ;;  %v15277_v41 = vadd.f32 %v11770_v51, %v21815_v60  ;;  %v23698_v54 = vld [vmem:[#allocation142_spill] sm:$0xff] }
 0x5c8   : > { %23695 = vst [vmem:[#allocation118_spill] sm:$0xff] %v22006_v7  ;;  %v18321_v3 = vpop.eup %18320  ;;  %v13180_v31 = vsub.f32 %v12508_v46, %v23697_v17  ;;  %18336 = vrcp.f32 %v12898_v59  ;;  %v12514_v7 = vmax.f32 %v21995_v0, 0.0  ;;  %v14934_v30 = vmul.f32 -1.442695, %v15276_v26  ;;  %v23700_v59 = vld [vmem:[#allocation144_spill] sm:$0xff] }
 0x5c9   : > { %v18323_v55 = vpop.eup %18322  ;;  %13461 = vst [vmem:[%s21913_s26 + $0xf0] sm:$0xff] %v13365_v47  ;;  %18338 = vrcp.f32 %v12903_v56  ;;  %v12904_v53 = vadd.f32 1.0, %v18321_v3  ;;  %v15174_v5 = vadd.f32 %v23698_v54, %v21709_v45  ;;  %v14935_v39 = vmul.f32 -1.442695, %v15277_v41 }
 0x5ca   : > { %v18325_v2 = vpop.eup %18324  ;;  %v13270_v27 = vmul.f32 %v18323_v55, %v13174_v16  ;;  %18340 = vpow2.f32 %v14929_v28  ;;  %v13185_v46 = vsub.f32 %v12513_v33, %v23699_v58  ;;  %v15175_v51 = vadd.f32 %v23700_v59, %v21713_v50  ;;  %v22023_v0 = vpop.f32.mrb[156].mxu0 }
 0x5cb   : > { %v18327_v21 = vpop.eup %18326  ;;  %v13275_v32 = vmul.f32 %v18325_v2, %v13179_v24  ;;  %18342 = vrcp.f32 %v12904_v53  ;;  %23701 = vst [vmem:[#allocation133_spill] sm:$0xff] %v22023_v0  ;;  %v15278_v55 = vadd.f32 %v11774_v63, %v21810_v20  ;;  %v11784_v16 = vpop.f32.mrb[156].mxu1  ;;  %v12519_v54 = vmax.f32 %v15174_v5, 0.0  ;;  %v23766_v0 = vld [vmem:[#allocation23_spill] sm:$0xff] }
 0x5cc   : > { %v13366_v56 = vadd.f32 %v13270_v27, %v23694_v15  ;;  %v13276_v26 = vmul.f32 %v18327_v21, %v13180_v31  ;;  %18344 = vpow2.f32 %v14934_v30  ;;  %v22027_v28 = vpop.f32.mrb[157].mxu0  ;;  %v11786_v24 = vpop.f32.mrb[157].mxu1  ;;  %v23704_v15 = vld [vmem:[#allocation146_spill] sm:$0xff]  ;;  %v15279_v5 = vadd.f32 %v21998_v19, %v21815_v60 }
 0x5cd   : > { %v18329_v47 = vpop.eup %18328  ;;  %23702 = vst [vmem:[#allocation134_spill] sm:$0xff] %v22027_v28  ;;  %v13371_v3 = vadd.f32 %v13275_v32, %v23696_v22  ;;  %18346 = vpow2.f32 %v14935_v39  ;;  %v22030_v53 = vpop.f32.mrb[158].mxu0  ;;  %v15176_v31 = vadd.f32 %v23704_v15, %v21709_v45 }
 0x5ce   : > { %v18331_v33 = vpop.eup %18330  ;;  %v13281_v41 = vmul.f32 %v18329_v47, %v13185_v46  ;;  %23703 = vst [vmem:[#allocation8_spill] sm:$0xff] %v22030_v53  ;;  %13462 = vst [vmem:[%s21913_s26 + $0xf8] sm:$0xff] %v13366_v56  ;;  %v13372_v63 = vadd.f32 %v13276_v26, %v23697_v17  ;;  %v22036_v27 = vpop.f32.mrb[158].mxu1  ;;  %v14940_v46 = vmul.f32 -1.442695, %v15278_v55  ;;  %v23706_v47 = vld [vmem:[#allocation96_spill] sm:$0xff] }
 0x5cf   : > { %v18333_v2 = vpop.eup %18332  ;;  %v12909_v30 = vadd.f32 1.0, %v18331_v33  ;;  %v22038_v21 = vpop.f32.mrb[159].mxu0  ;;  %13467 = vst [vmem:[%s21913_s26 + $0x120] sm:$0xff] %v13371_v3  ;;  %v13186_v56 = vsub.f32 %v12514_v7, %v23706_v47  ;;  %v12520_v17 = vmax.f32 %v15175_v51, 0.0  ;;  %v23707_v33 = vld [vmem:[#allocation148_spill] sm:$0xff]  ;;  %v15281_v7 = vadd.f32 %v22011_v35, %v21815_v60 }
 0x5d0   : > { %23705 = vst [vmem:[#allocation44_spill] sm:$0xff] %v22038_v21  ;;  %v18335_v32 = vpop.eup %18334  ;;  %v13377_v39 = vadd.f32 %v13281_v41, %v23699_v58  ;;  %v12910_v22 = vadd.f32 1.0, %v18333_v2  ;;  %v22044_v59 = vpop.f32.mrb[159].mxu1  ;;  %13468 = vst [vmem:[%s21913_s26 + $0x128] sm:$0xff] %v13372_v63  ;;  %v15177_v15 = vadd.f32 %v23707_v33, %v21713_v50  ;;  %v14941_v3 = vmul.f32 -1.442695, %v15279_v5 }
 0x5d1   : > { %18348 = vrcp.f32 %v12909_v30  ;;  %v12915_v26 = vadd.f32 1.0, %v18335_v32  ;;  %v15280_v58 = vadd.f32 %v22004_v6, %v21810_v20  ;;  %v23708_v41 = vld [vmem:[#allocation70_spill] sm:$0xff]  ;;  %v12525_v2 = vmax.f32 %v15176_v31, 0.0  ;;  %v23710_v5 = vld [vmem:[#allocation100_spill] sm:$0xff] }
 0x5d2   : > { %13473 = vst [vmem:[%s21913_s26 + $0x150] sm:$0xff] %v13377_v39  ;;  %18350 = vrcp.f32 %v12910_v22  ;;  %v18337_v55 = vpop.eup %18336  ;;  %v13191_v19 = vsub.f32 %v12519_v54, %v23708_v41  ;;  %v23709_v63 = vld [vmem:[#allocation150_spill] sm:$0xff]  ;;  %v13192_v33 = vsub.f32 %v12520_v17, %v23710_v5  ;;  %v14947_v21 = vmul.f32 -1.442695, %v15281_v7 }
 0x5d3   : > { %18352 = vrcp.f32 %v12915_v26  ;;  %v18339_v51 = vpop.eup %18338  ;;  %v15178_v30 = vadd.f32 %v23709_v63, %v21709_v45  ;;  %v13282_v32 = vmul.f32 %v18337_v55, %v13186_v56  ;;  %v14946_v39 = vmul.f32 -1.442695, %v15280_v58  ;;  %v23711_v55 = vld [vmem:[#allocation152_spill] sm:$0xff] }
 0x5d4   : > { %18354 = vpow2.f32 %v14940_v46  ;;  %v18341_v22 = vpop.eup %18340  ;;  %v13287_v6 = vmul.f32 %v18339_v51, %v13191_v19  ;;  %v12526_v31 = vmax.f32 %v15177_v15, 0.0  ;;  %v15179_v15 = vadd.f32 %v23711_v55, %v21713_v50 }
 0x5d5   : > { %18356 = vpow2.f32 %v14941_v3  ;;  %v18343_v54 = vpop.eup %18342  ;;  %v13378_v26 = vadd.f32 %v13282_v32, %v23706_v47  ;;  %v12916_v35 = vadd.f32 1.0, %v18341_v22  ;;  %v12531_v58 = vmax.f32 %v15178_v30, 0.0 }
 0x5d6   : > { %18358 = vpow2.f32 %v14946_v39  ;;  %v18345_v53 = vpop.eup %18344  ;;  %v13383_v63 = vadd.f32 %v13287_v6, %v23708_v41  ;;  %v13288_v56 = vmul.f32 %v18343_v54, %v13192_v33  ;;  %v15282_v3 = vadd.f32 %v11784_v16, %v21810_v20  ;;  %v23712_v41 = vld [vmem:[#allocation104_spill] sm:$0xff]  ;;  %v23714_v33 = vld [vmem:[#allocation110_spill] sm:$0xff] }
 0x5d7   : > { %18360 = vpow2.f32 %v14947_v21  ;;  %v18347_v46 = vpop.eup %18346  ;;  %13474 = vst [vmem:[%s21913_s26 + $0x158] sm:$0xff] %v13378_v26  ;;  %v12921_v17 = vadd.f32 1.0, %v18345_v53  ;;  %v15283_v7 = vadd.f32 %v11786_v24, %v21815_v60  ;;  %v13197_v51 = vsub.f32 %v12525_v2, %v23712_v41  ;;  %v23713_v21 = vld [vmem:[#allocation98_spill] sm:$0xff]  ;;  %v23715_v24 = vld [vmem:[#allocation155_spill] sm:$0xff] }
 0x5d8   : > { %18362 = vrcp.f32 %v12916_v35  ;;  %13479 = vst [vmem:[%s21913_s26 + $0x180] sm:$0xff] %v13383_v63  ;;  %v13384_v47 = vadd.f32 %v13288_v56, %v23710_v5  ;;  %v12922_v19 = vadd.f32 1.0, %v18347_v46  ;;  %v13198_v32 = vsub.f32 %v12526_v31, %v23713_v21 }
 0x5d9   : > { %18364 = vrcp.f32 %v12921_v17  ;;  %v14952_v30 = vmul.f32 -1.442695, %v15282_v3  ;;  %v15180_v53 = vadd.f32 %v21673_v38, %v21709_v45  ;;  %v14953_v16 = vmul.f32 -1.442695, %v15283_v7 }
 0x5da   : > { %13480 = vst [vmem:[%s21913_s26 + $0x188] sm:$0xff] %v13384_v47  ;;  %18366 = vrcp.f32 %v12922_v19  ;;  %v15284_v22 = vadd.f32 %v22036_v27, %v21810_v20  ;;  %v13203_v6 = vsub.f32 %v12531_v58, %v23714_v33  ;;  %v15181_v2 = vadd.f32 %v23715_v24, %v21713_v50  ;;  %v23720_v24 = vld [vmem:[#allocation67_spill] sm:$0xff] }
 0x5db   : > { %v18349_v39 = vpop.eup %18348  ;;  %18368 = vpow2.f32 %v14952_v30  ;;  %v12532_v26 = vmax.f32 %v15179_v15, 0.0  ;;  %v15285_v20 = vadd.f32 %v22044_v59, %v21815_v60  ;;  %v12537_v58 = vmax.f32 %v15180_v53, 0.0  ;;  %v23717_v30 = vld [vmem:[#allocation157_spill] sm:$0xff]  ;;  %v23718_v53 = vld [vmem:[#allocation107_spill] sm:$0xff] }
 0x5dc   : > { %v18351_v5 = vpop.eup %18350  ;;  %v13293_v54 = vmul.f32 %v18349_v39, %v13197_v51  ;;  %18370 = vpow2.f32 %v14953_v16  ;;  %v14958_v38 = vmul.f32 -1.442695, %v15284_v22  ;;  %v12538_v15 = vmax.f32 %v15181_v2, 0.0  ;;  %v23716_v51 = vld [vmem:[#allocation105_spill] sm:$0xff]  ;;  %v23719_v22 = vld [vmem:[#allocation159_spill] sm:$0xff] }
 0x5dd   : > { %v18353_v31 = vpop.eup %18352  ;;  %v13294_v35 = vmul.f32 %v18351_v5, %v13198_v32  ;;  %v14959_v60 = vmul.f32 -1.442695, %v15285_v20  ;;  %v13209_v16 = vsub.f32 %v12537_v58, %v23718_v53  ;;  %v15183_v5 = vadd.f32 %v23719_v22, %v21713_v50  ;;  %v23726_v22 = vld [vmem:[#allocation109_spill] sm:$0xff] }
 0x5de   : > { %v18355_v63 = vpop.eup %18354  ;;  %v13389_v56 = vadd.f32 %v13293_v54, %v23712_v41  ;;  %v13299_v46 = vmul.f32 %v18353_v31, %v13203_v6  ;;  %18372 = vpow2.f32 %v14958_v38  ;;  %v13204_v41 = vsub.f32 %v12532_v26, %v23716_v51  ;;  %v23721_v54 = vld [vmem:[#allocation161_spill] sm:$0xff] }
 0x5df   : > { %v18357_v27 = vpop.eup %18356  ;;  %v13390_v17 = vadd.f32 %v13294_v35, %v23713_v21  ;;  %v12927_v3 = vadd.f32 1.0, %v18355_v63  ;;  %v15182_v21 = vadd.f32 %v23717_v30, %v21709_v45  ;;  %v13210_v2 = vsub.f32 %v12538_v15, %v23720_v24  ;;  %v23722_v35 = vld [vmem:[#allocation163_spill] sm:$0xff] }
 0x5e0   : > { %v18359_v55 = vpop.eup %18358  ;;  %13485 = vst [vmem:[%s21913_s26 + $0x1b0] sm:$0xff] %v13389_v56  ;;  %v13395_v47 = vadd.f32 %v13299_v46, %v23714_v33  ;;  %v12928_v19 = vadd.f32 1.0, %v18357_v27  ;;  %v15184_v31 = vadd.f32 %v23721_v54, %v21709_v45  ;;  %v15185_v38 = vadd.f32 %v23722_v35, %v21713_v50 }
 0x5e1   : > { %v18361_v7 = vpop.eup %18360  ;;  %13486 = vst [vmem:[%s21913_s26 + $0x1b8] sm:$0xff] %v13390_v17  ;;  %18374 = vrcp.f32 %v12927_v3  ;;  %v12933_v32 = vadd.f32 1.0, %v18359_v55  ;;  %v12543_v20 = vmax.f32 %v15182_v21, 0.0  ;;  %v12544_v17 = vmax.f32 %v15183_v5, 0.0  ;;  %v23725_v21 = vld [vmem:[#allocation113_spill] sm:$0xff] }
 0x5e2   : > { %v18363_v59 = vpop.eup %18362  ;;  %13491 = vst [vmem:[%s21913_s26 + $0x1e0] sm:$0xff] %v13395_v47  ;;  %18376 = vrcp.f32 %v12928_v19  ;;  %v12934_v39 = vadd.f32 1.0, %v18361_v7  ;;  %v12549_v55 = vmax.f32 %v15184_v31, 0.0  ;;  %v12550_v19 = vmax.f32 %v15185_v38, 0.0  ;;  %v23723_v7 = vld [vmem:[#allocation114_spill] sm:$0xff] }
 0x5e3   : > { %v13300_v33 = vmul.f32 %v18363_v59, %v13204_v41  ;;  %18378 = vrcp.f32 %v12933_v32  ;;  %v18365_v6 = vpop.eup %18364  ;;  %v12556_v35 = vmax.f32 %v21726_v36, 0.0  ;;  %v23729_v36 = vld [vmem:[#allocation115_spill] sm:$0xff] }
 0x5e4   : > { %18380 = vrcp.f32 %v12934_v39  ;;  %v18367_v26 = vpop.eup %18366  ;;  %v13305_v56 = vmul.f32 %v18365_v6, %v13209_v16  ;;  %v13221_v39 = vsub.f32 %v12549_v55, %v23725_v21  ;;  %v13222_v5 = vsub.f32 %v12550_v19, %v23726_v22 }
 0x5e5   : > { %v13396_v63 = vadd.f32 %v13300_v33, %v23716_v51  ;;  %18382 = vpow2.f32 %v14959_v60  ;;  %v18369_v46 = vpop.eup %18368  ;;  %v13306_v27 = vmul.f32 %v18367_v26, %v13210_v2  ;;  %v13215_v51 = vsub.f32 %v12543_v20, %v23723_v7  ;;  %v23724_v60 = vld [vmem:[#allocation108_spill] sm:$0xff] }
 0x5e6   : > { %v18371_v58 = vpop.eup %18370  ;;  %v13401_v3 = vadd.f32 %v13305_v56, %v23718_v53  ;;  %v12939_v45 = vadd.f32 1.0, %v18369_v46  ;;  %v13216_v59 = vsub.f32 %v12544_v17, %v23724_v60  ;;  %v12561_v20 = vmax.f32 %v21732_v34, 0.0 }
 0x5e7   : > { %13492 = vst [vmem:[%s21913_s26 + $0x1e8] sm:$0xff] %v13396_v63  ;;  %v13402_v15 = vadd.f32 %v13306_v27, %v23720_v24  ;;  %v12940_v47 = vadd.f32 1.0, %v18371_v58  ;;  %v23727_v24 = vld [vmem:[#allocation165_spill] sm:$0xff]  ;;  %v23728_v58 = vld [vmem:[#allocation120_spill] sm:$0xff] }
 0x5e8   : > { %v18373_v50 = vpop.eup %18372  ;;  %13497 = vst [vmem:[%s21913_s26 + $0x210] sm:$0xff] %v13401_v3  ;;  %18384 = vrcp.f32 %v12939_v45  ;;  %v12555_v2 = vmax.f32 %v23727_v24, 0.0  ;;  %v13228_v45 = vsub.f32 %v12556_v35, %v23729_v36  ;;  %v23735_v24 = vld [vmem:[#allocation97_spill] sm:$0xff]  ;;  %v23737_v35 = vld [vmem:[#allocation106_spill] sm:$0xff] }
 0x5e9   : > { %13498 = vst [vmem:[%s21913_s26 + $0x218] sm:$0xff] %v13402_v15  ;;  %18386 = vrcp.f32 %v12940_v47  ;;  %v12945_v41 = vadd.f32 1.0, %v18373_v50  ;;  %v23730_v47 = vld [vmem:[#allocation119_spill] sm:$0xff] }
 0x5ea   : > { %v13227_v17 = vsub.f32 %v12555_v2, %v23728_v58  ;;  %v13233_v50 = vsub.f32 %v12561_v20, %v23730_v47  ;;  %v15193_v2 = vadd.f32 %v23735_v24, %v21658_v25  ;;  %v23751_v24 = vld [vmem:[#allocation139_spill] sm:$0xff] }
 0x5eb   : > { %v18375_v32 = vpop.eup %18374  ;;  %18388 = vrcp.f32 %v12945_v41 }
 0x5ec   : > { %v18377_v30 = vpop.eup %18376  ;;  %v13311_v53 = vmul.f32 %v18375_v32, %v13215_v51  ;;  %v12562_v51 = vmax.f32 %v21738_v57, 0.0  ;;  %v23733_v57 = vld [vmem:[#allocation88_spill] sm:$0xff] }
 0x5ed   : > { %v18379_v16 = vpop.eup %18378  ;;  %v13312_v33 = vmul.f32 %v18377_v30, %v13216_v59  ;;  %v23731_v59 = vld [vmem:[#allocation116_spill] sm:$0xff] }
 0x5ee   : > { %v18381_v6 = vpop.eup %18380  ;;  %v13407_v54 = vadd.f32 %v13311_v53, %v23723_v7  ;;  %v13317_v31 = vmul.f32 %v18379_v16, %v13221_v39  ;;  %v13234_v30 = vsub.f32 %v12562_v51, %v23731_v59  ;;  %v23732_v16 = vld [vmem:[#allocation37_spill] sm:$0xff]  ;;  %v23744_v51 = vld [vmem:[#allocation32_spill] sm:$0xff] }
 0x5ef   : > { %v18383_v26 = vpop.eup %18382  ;;  %v13408_v38 = vadd.f32 %v13312_v33, %v23724_v60  ;;  %v13318_v63 = vmul.f32 %v18381_v6, %v13222_v5  ;;  %v15191_v5 = vadd.f32 %v23733_v57, %v21658_v25  ;;  %v23734_v33 = vld [vmem:[#allocation56_spill] sm:$0xff] }
 0x5f0   : > { %13503 = vst [vmem:[%s21913_s26 + $0x240] sm:$0xff] %v13407_v54  ;;  %v13413_v56 = vadd.f32 %v13317_v31, %v23725_v21  ;;  %v12946_v46 = vadd.f32 1.0, %v18383_v26  ;;  %v15192_v6 = vadd.f32 %v23734_v33, %v21653_v44  ;;  %v23736_v54 = vld [vmem:[#allocation103_spill] sm:$0xff] }
 0x5f1   : > { %13504 = vst [vmem:[%s21913_s26 + $0x248] sm:$0xff] %v13408_v38  ;;  %v13414_v27 = vadd.f32 %v13318_v63, %v23726_v22  ;;  %v15190_v22 = vadd.f32 %v23732_v16, %v21653_v44  ;;  %v15194_v31 = vadd.f32 %v23736_v54, %v21653_v44  ;;  %v15195_v38 = vadd.f32 %v23737_v35, %v21658_v25  ;;  %v23752_v35 = vld [vmem:[#allocation141_spill] sm:$0xff] }
 0x5f2   : > { %13509 = vst [vmem:[%s21913_s26 + $0x270] sm:$0xff] %v13413_v56  ;;  %18390 = vrcp.f32 %v12946_v46  ;;  %v18385_v3 = vpop.eup %18384  ;;  %v12474_v63 = vmax.f32 %v15191_v5, 0.0  ;;  %v12479_v56 = vmax.f32 %v15192_v6, 0.0  ;;  %v12480_v46 = vmax.f32 %v15193_v2, 0.0  ;;  %v23750_v5 = vld [vmem:[#allocation128_spill] sm:$0xff] }
 0x5f3   : > { %13510 = vst [vmem:[%s21913_s26 + $0x278] sm:$0xff] %v13414_v27  ;;  %v18387_v55 = vpop.eup %18386  ;;  %v13323_v15 = vmul.f32 %v18385_v3, %v13227_v17  ;;  %v12473_v26 = vmax.f32 %v15190_v22, 0.0  ;;  %v12485_v20 = vmax.f32 %v15194_v31, 0.0  ;;  %v23738_v27 = vld [vmem:[#allocation112_spill] sm:$0xff]  ;;  %v23739_v17 = vld [vmem:[#allocation117_spill] sm:$0xff]  ;;  %v15204_v2 = vadd.f32 %v23751_v24, %v21653_v44 }
 0x5f4   : > { %v13324_v34 = vmul.f32 %v18387_v55, %v13228_v45  ;;  %v15197_v3 = vadd.f32 %v23739_v17, %v21658_v25  ;;  %v23741_v55 = vld [vmem:[#allocation9_spill] sm:$0xff]  ;;  %v23749_v22 = vld [vmem:[#allocation80_spill] sm:$0xff] }
 0x5f5   : > { %v18389_v19 = vpop.eup %18388  ;;  %v13419_v7 = vadd.f32 %v13323_v15, %v23728_v58  ;;  %v15196_v58 = vadd.f32 %v23738_v27, %v21653_v44  ;;  %v15199_v15 = vadd.f32 %v23741_v55, %v21658_v25  ;;  %v22169_v57 = vsub.f32 %v12480_v46, %v23749_v22  ;;  %v23754_v46 = vld [vmem:[#allocation143_spill] sm:$0xff] }
 0x5f6   : > { %v13420_v41 = vadd.f32 %v13324_v34, %v23729_v36  ;;  %v13329_v32 = vmul.f32 %v18389_v19, %v13233_v50  ;;  %v23740_v36 = vld [vmem:[#allocation121_spill] sm:$0xff]  ;;  %v12486_v34 = vmax.f32 %v15195_v38, 0.0  ;;  %v23743_v19 = vld [vmem:[#allocation22_spill] sm:$0xff]  ;;  %v22172_v33 = vsub.f32 %v12485_v20, %v23750_v5 }
 0x5f7   : > { %13515 = vst [vmem:[%s21913_s26 + $0x2a0] sm:$0xff] %v13419_v7  ;;  %v15198_v45 = vadd.f32 %v23740_v36, %v21653_v44  ;;  %v15200_v7 = vadd.f32 %v23743_v19, %v21653_v44  ;;  %v12491_v6 = vmax.f32 %v15196_v58, 0.0  ;;  %v12492_v54 = vmax.f32 %v15197_v3, 0.0  ;;  %v23755_v58 = vld [vmem:[#allocation145_spill] sm:$0xff] }
 0x5f8   : > { %13516 = vst [vmem:[%s21913_s26 + $0x2a8] sm:$0xff] %v13420_v41  ;;  %v13425_v60 = vadd.f32 %v13329_v32, %v23730_v47  ;;  %v23742_v47 = vld [vmem:[#allocation17_spill] sm:$0xff]  ;;  %v15201_v41 = vadd.f32 %v23744_v51, %v21658_v25  ;;  %v23745_v32 = vld [vmem:[#allocation82_spill] sm:$0xff]  ;;  %v15205_v38 = vadd.f32 %v23752_v35, %v21658_v25  ;;  %v15206_v36 = vadd.f32 %v23754_v46, %v21653_v44 }
 0x5f9   : > { %v22152_v50 = vsub.f32 %v12473_v26, %v23742_v47  ;;  %v12497_v31 = vmax.f32 %v15198_v45, 0.0  ;;  %v12498_v26 = vmax.f32 %v15199_v15, 0.0  ;;  %v12503_v27 = vmax.f32 %v15200_v7, 0.0  ;;  %v18777_v51 = vld [vmem:[#allocation4 + $0xc] sm:$0xff]  ;;  %v23757_v15 = vld [vmem:[#allocation13_spill] sm:$0xff] }
 0x5fa   : > { %13521 = vst [vmem:[%s21913_s26 + $0x2d0] sm:$0xff] %v13425_v60  ;;  %v22159_v60 = vsub.f32 %v12474_v63, %v23745_v32  ;;  %v23753_v63 = vld [vmem:[#allocation129_spill] sm:$0xff]  ;;  %v12504_v17 = vmax.f32 %v15201_v41, 0.0  ;;  %v15207_v19 = vadd.f32 %v23755_v58, %v21658_v25  ;;  %v23756_v3 = vsub.s32 4, %v23651_v62  ;;  %v23758_v7 = vld [vmem:[#allocation147_spill] sm:$0xff]  ;;  %v23764_v58 = vld [vmem:[#allocation30_spill] sm:$0xff] }
 0x5fb   : > { %v15208_v41 = vadd.f32 %v23758_v7, %v21653_v44  ;;  %v23762_v35 = vld [vmem:[#allocation25_spill] sm:$0xff]  ;;  %v22203_v28 = vsub.f32 %v12498_v26, %v23764_v58  ;;  %v23770_v7 = vsub.s32 5, %v23651_v62 }
 0x5fc   : > { %v18391_v21 = vpop.eup %18390  ;;  %v22187_v45 = vrot.slane %v18777_v51, %v23756_v3  ;;  %v22200_v46 = vsub.f32 %v12497_v31, %v23762_v35  ;;  %v12516_v3 = vmax.f32 %v15205_v38, 0.0  ;;  %v23773_v31 = vld [vmem:[#allocation24_spill] sm:$0xff]  ;;  %v12522_v26 = vmax.f32 %v15207_v19, 0.0 }
 0x5fd   : > { %v13330_v39 = vmul.f32 %v18391_v21, %v13234_v30  ;;  %v23747_v21 = vld [vmem:[#allocation29_spill] sm:$0xff]  ;;  %23765 = vst [vmem:[#allocation18_spill] sm:$0xff] %v22203_v28  ;;  %v23809_v28 = vld [vmem:[#allocation52_spill] sm:$0xff] }
 0x5fe   : > { %23763 = vst [vmem:[#allocation86_spill] sm:$0xff] %v22200_v46  ;;  %v15222_v38 = vadd.f32 %v21818_v9, %v22187_v45  ;;  %v23785_v9 = vld [vmem:[#allocation158_spill] sm:$0xff]  ;;  %v23810_v46 = vld [vmem:[#allocation125_spill] sm:$0xff] }
 0x5ff   : > { %v13426_v53 = vadd.f32 %v13330_v39, %v23731_v59  ;;  %v23746_v59 = vld [vmem:[#allocation81_spill] sm:$0xff]  ;;  %v15202_v39 = vadd.f32 %v23747_v21, %v21653_v44  ;;  %v22190_v21 = vsub.f32 %v12491_v6, %v23757_v15  ;;  %v22206_v6 = vsub.f32 %v12503_v27, %v23766_v0  ;;  %v7446_v27 = vld [vmem:[#allocation4 + $0x14] sm:$0xf]  ;;  %v23775_v0 = vld [vmem:[#allocation28_spill] sm:$0xff] }
 0x600   : > { %v22162_v30 = vsub.f32 %v12479_v56, %v23746_v59  ;;  %v22179_v56 = vsub.f32 %v12486_v34, %v23753_v63  ;;  %v12515_v34 = vmax.f32 %v15204_v2, 0.0  ;;  %v23768_v2 = vld [vmem:[#allocation26_spill] sm:$0xff]  ;;  %v12521_v44 = vmax.f32 %v15206_v36, 0.0 }
 0x601   : > { %13522 = vst [vmem:[%s21913_s26 + $0x2d8] sm:$0xff] %v13426_v53  ;;  %v23748_v53 = vld [vmem:[#allocation38_spill] sm:$0xff]  ;;  %v12509_v20 = vmax.f32 %v15202_v39, 0.0  ;;  %23767 = vst [vmem:[#allocation10_spill] sm:$0xff] %v22206_v6  ;;  %v22209_v42 = vsub.f32 %v12504_v17, %v23768_v2  ;;  %v12527_v17 = vmax.f32 %v15208_v41, 0.0  ;;  %v23777_v2 = vld [vmem:[#allocation151_spill] sm:$0xff] }
 0x602   : > { %v15203_v16 = vadd.f32 %v23748_v53, %v21658_v25  ;;  %v23759_v53 = vld [vmem:[#allocation149_spill] sm:$0xff]  ;;  %v23760_v39 = vld [vmem:[#allocation14_spill] sm:$0xff]  ;;  %v22224_v6 = vsub.f32 %v12515_v34, %v23775_v0  ;;  %v12533_v62 = vmax.f32 %v23777_v2, 0.0  ;;  %v12545_v58 = vmax.f32 %v23785_v9, 0.0  ;;  %v23786_v41 = vld [vmem:[#allocation64_spill] sm:$0xff] }
 0x603   : > { %v15209_v24 = vadd.f32 %v23759_v53, %v21658_v25  ;;  %23769 = vst [vmem:[#allocation95_spill] sm:$0xff] %v22209_v42  ;;  %v22213_v25 = vrot.slane %v18777_v51, %v23770_v7  ;;  %v23778_v51 = vld [vmem:[#allocation20_spill] sm:$0xff]  ;;  %v23787_v2 = vld [vmem:[#allocation34_spill] sm:$0xff]  ;;  %v23793_v9 = vld [vmem:[#allocation15_spill] sm:$0xff] }
 0x604   : > { %v12510_v55 = vmax.f32 %v15203_v16, 0.0  ;;  %v22197_v16 = vsub.f32 %v12492_v54, %v23760_v39  ;;  %v23771_v54 = vld [vmem:[#allocation16_spill] sm:$0xff]  ;;  %23776 = vst [vmem:[#allocation93_spill] sm:$0xff] %v22224_v6  ;;  %v22228_v7 = vsub.f32 %v12516_v3, %v23778_v51  ;;  %v22243_v3 = vsub.f32 %v12522_v26, %v23787_v2 }
 0x605   : > { %v22216_v53 = vsub.f32 %v12509_v20, %v23771_v54  ;;  %v12528_v36 = vmax.f32 %v15209_v24, 0.0  ;;  %v23780_v20 = vld [vmem:[#allocation153_spill] sm:$0xff]  ;;  %v15223_v34 = vadd.f32 %v21822_v4, %v22213_v25  ;;  %v22240_v24 = vrot.slane %v7446_v27, %v23786_v41  ;;  %v23798_v26 = vld [vmem:[#allocation40_spill] sm:$0xff] }
 0x606   : > { %23761 = vst [vmem:[#allocation51_spill] sm:$0xff] %v22197_v16  ;;  %v22219_v35 = vsub.f32 %v12510_v55, %v23773_v31  ;;  %23779 = vst [vmem:[#allocation19_spill] sm:$0xff] %v22228_v7  ;;  %v12534_v54 = vmax.f32 %v23780_v20, 0.0  ;;  %v23782_v31 = vld [vmem:[#allocation156_spill] sm:$0xff]  ;;  %v12475_v51 = vmax.f32 %v15222_v38, 0.0  ;;  %v23795_v4 = vld [vmem:[#allocation65_spill] sm:$0xff] }
 0x607   : > { %23772 = vst [vmem:[#allocation137_spill] sm:$0xff] %v22216_v53  ;;  %v23781_v53 = vld [vmem:[#allocation154_spill] sm:$0xff]  ;;  %v12540_v19 = vmax.f32 %v23782_v31, 0.0  ;;  %23788 = vst [vmem:[#allocation138_spill] sm:$0xff] %v22243_v3  ;;  %v23789_v20 = vld [vmem:[#allocation48_spill] sm:$0xff]  ;;  %v22258_v0 = vsub.f32 %v12533_v62, %v23795_v4  ;;  %v12476_v62 = vmax.f32 %v15223_v34, 0.0 }
 0x608   : > { %23774 = vst [vmem:[#allocation27_spill] sm:$0xff] %v22219_v35  ;;  %v12539_v55 = vmax.f32 %v23781_v53, 0.0  ;;  %v23783_v35 = vld [vmem:[#allocation36_spill] sm:$0xff]  ;;  %v22246_v7 = vrot.slane %v7446_v27, %v23789_v20  ;;  %v23797_v41 = vld [vmem:[#allocation53_spill] sm:$0xff]  ;;  %v22264_v38 = vsub.f32 %v12534_v54, %v23798_v26 }
 0x609   : > { %v22234_v42 = vsub.f32 %v12521_v44, %v23783_v35  ;;  %v23790_v53 = vld [vmem:[#allocation68_spill] sm:$0xff]  ;;  %v23791_v44 = vld [vmem:[#allocation31_spill] sm:$0xff]  ;;  %23796 = vst [vmem:[#allocation101_spill] sm:$0xff] %v22258_v0  ;;  %v22261_v6 = vrot.slane %v7446_v27, %v23797_v41 }
 0x60a   : > { %v22249_v31 = vrot.slane %v7446_v27, %v23790_v53  ;;  %v22252_v35 = vsub.f32 %v12527_v17, %v23791_v44  ;;  %23799 = vst [vmem:[#allocation61_spill] sm:$0xff] %v22264_v38  ;;  %v23800_v20 = vld [vmem:[#allocation124_spill] sm:$0xff]  ;;  %v23802_v53 = vld [vmem:[#allocation42_spill] sm:$0xff]  ;;  %v22278_v27 = vadd.f32 %v21826_v40, %v22187_v45  ;;  %v22292_v40 = vadd.f32 %v21834_v13, %v22187_v45 }
 0x60b   : > { %23784 = vst [vmem:[#allocation59_spill] sm:$0xff] %v22234_v42  ;;  %v22255_v42 = vsub.f32 %v12528_v36, %v23793_v9  ;;  %v22267_v2 = vsub.f32 %v12539_v55, %v23800_v20  ;;  %v22270_v3 = vsub.f32 %v12540_v19, %v23802_v53  ;;  %v23805_v36 = vld [vmem:[#allocation47_spill] sm:$0xff]  ;;  %v23807_v55 = vld [vmem:[#allocation57_spill] sm:$0xff]  ;;  %v22286_v19 = vadd.f32 %v21829_v23, %v22213_v25  ;;  %v23808_v17 = vld [vmem:[#allocation50_spill] sm:$0xff] }
 0x60c   : > { %23792 = vst [vmem:[#allocation140_spill] sm:$0xff] %v22252_v35  ;;  %v22274_v9 = vsub.f32 %v12545_v58, %v23805_v36  ;;  %v22282_v20 = vsub.f32 %v12475_v51, %v23807_v55 }
 0x60d   : > { %23794 = vst [vmem:[#allocation92_spill] sm:$0xff] %v22255_v42  ;;  %23801 = vst [vmem:[#allocation142_spill] sm:$0xff] %v22267_v2 }
 0x60e   : > { %23803 = vst [vmem:[#allocation99_spill] sm:$0xff] %v22270_v3  ;;  %23806 = vst [vmem:[#allocation144_spill] sm:$0xff] %v22274_v9 }
 0x655   : > { %v12053_v35 = vpop.f32.mrb[160].mxu0 }
 0x656   : > { %v15286_v54 = vadd.f32 %v12053_v35, %v22240_v24  ;;  %v12392_v41 = vpop.f32.mrb[160].mxu1  ;;  %v12055_v26 = vpop.f32.mrb[161].mxu0 }
 0x657   : > { %v15318_v44 = vadd.f32 %v12392_v41, %v22246_v7  ;;  %v15287_v58 = vadd.f32 %v12055_v26, %v22249_v31  ;;  %v12394_v34 = vpop.f32.mrb[161].mxu1  ;;  %v12057_v36 = vpop.f32.mrb[162].mxu0 }
 0x658   : > { %v14870_v35 = vmul.f32 -1.442695, %v15286_v54  ;;  %v15319_v9 = vadd.f32 %v12394_v34, %v22261_v6  ;;  %v15288_v51 = vadd.f32 %v12057_v36, %v22240_v24  ;;  %v12396_v53 = vpop.f32.mrb[162].mxu1  ;;  %v12059_v3 = vpop.f32.mrb[163].mxu0  ;;  %v22300_v54 = vsub.f32 %v12476_v62, %v23808_v17 }
 0x659   : > { %v14872_v2 = vmul.f32 -1.442695, %v15318_v44  ;;  %v14871_v23 = vmul.f32 -1.442695, %v15287_v58  ;;  %v15320_v38 = vadd.f32 %v12396_v53, %v22246_v7  ;;  %v15289_v41 = vadd.f32 %v12059_v3, %v22249_v31  ;;  %v12398_v26 = vpop.f32.mrb[163].mxu1 }
 0x65a   : > { %18392 = vpow2.f32 %v14870_v35  ;;  %v14873_v4 = vmul.f32 -1.442695, %v15319_v9  ;;  %v14876_v0 = vmul.f32 -1.442695, %v15288_v51  ;;  %v15321_v13 = vadd.f32 %v12398_v26, %v22261_v6 }
 0x65b   : > { %v12481_v34 = vmax.f32 %v22278_v27, 0.0  ;;  %18394 = vpow2.f32 %v14872_v2  ;;  %v14878_v36 = vmul.f32 -1.442695, %v15320_v38  ;;  %v12482_v44 = vmax.f32 %v22286_v19, 0.0 }
 0x65c   : > { %v15227_v53 = vadd.f32 %v21838_v48, %v22213_v25  ;;  %18396 = vpow2.f32 %v14871_v23  ;;  %v14877_v3 = vmul.f32 -1.442695, %v15289_v41  ;;  %v12487_v58 = vmax.f32 %v22292_v40, 0.0 }
 0x65d   : > { %v15228_v9 = vadd.f32 %v21842_v37, %v22187_v45  ;;  %18398 = vpow2.f32 %v14873_v4  ;;  %v14879_v35 = vmul.f32 -1.442695, %v15321_v13  ;;  %v12063_v62 = vpop.f32.mrb[164].mxu0  ;;  %v15229_v27 = vadd.f32 %v21845_v11, %v22213_v25 }
 0x65e   : > { %v15230_v2 = vadd.f32 %v21854_v61, %v22187_v45  ;;  %18400 = vpow2.f32 %v14876_v0  ;;  %v15290_v38 = vadd.f32 %v12063_v62, %v22240_v24  ;;  %v12402_v48 = vpop.f32.mrb[164].mxu1  ;;  %v12065_v19 = vpop.f32.mrb[165].mxu0  ;;  %v15231_v40 = vadd.f32 %v21860_v10, %v22213_v25 }
 0x65f   : > { %18402 = vpow2.f32 %v14878_v36  ;;  %v15322_v37 = vadd.f32 %v12402_v48, %v22246_v7  ;;  %v15291_v4 = vadd.f32 %v12065_v19, %v22249_v31  ;;  %v12404_v51 = vpop.f32.mrb[165].mxu1  ;;  %v12067_v23 = vpop.f32.mrb[166].mxu0  ;;  %v15232_v13 = vadd.f32 %v21866_v14, %v22187_v45 }
 0x660   : > { %18404 = vpow2.f32 %v14877_v3  ;;  %v14882_v11 = vmul.f32 -1.442695, %v15290_v38  ;;  %v15323_v41 = vadd.f32 %v12404_v51, %v22261_v6  ;;  %v15292_v61 = vadd.f32 %v12067_v23, %v22240_v24  ;;  %v12406_v0 = vpop.f32.mrb[166].mxu1  ;;  %v12069_v26 = vpop.f32.mrb[167].mxu0 }
 0x661   : > { %18406 = vpow2.f32 %v14879_v35  ;;  %v14884_v10 = vmul.f32 -1.442695, %v15322_v37  ;;  %v14883_v36 = vmul.f32 -1.442695, %v15291_v4  ;;  %v12408_v62 = vpop.f32.mrb[167].mxu1  ;;  %v12488_v48 = vmax.f32 %v15227_v53, 0.0 }
 0x662   : > { %18408 = vpow2.f32 %v14882_v11  ;;  %v14885_v19 = vmul.f32 -1.442695, %v15323_v41  ;;  %v14888_v42 = vmul.f32 -1.442695, %v15292_v61  ;;  %v22323_v3 = vsub.f32 %v12481_v34, %v23809_v28  ;;  %v23812_v41 = vld [vmem:[#allocation58_spill] sm:$0xff] }
 0x663   : > { %v12493_v38 = vmax.f32 %v15228_v9, 0.0  ;;  %v12494_v51 = vmax.f32 %v15229_v27, 0.0  ;;  %18410 = vpow2.f32 %v14884_v10  ;;  %v22326_v39 = vsub.f32 %v12482_v44, %v23810_v46  ;;  %v23811_v9 = vld [vmem:[#allocation87_spill] sm:$0xff] }
 0x664   : > { %v18393_v23 = vpop.eup %18392  ;;  %v12499_v16 = vmax.f32 %v15230_v2, 0.0  ;;  %v12500_v14 = vmax.f32 %v15231_v40, 0.0  ;;  %18412 = vpow2.f32 %v14883_v36  ;;  %v12505_v37 = vmax.f32 %v15232_v13, 0.0  ;;  %v23813_v13 = vld [vmem:[#allocation84_spill] sm:$0xff] }
 0x665   : > { %v18395_v35 = vpop.eup %18394  ;;  %v22330_v53 = vadd.f32 %v21869_v52, %v22213_v25  ;;  %v12857_v4 = vadd.f32 1.0, %v18393_v23  ;;  %18414 = vpow2.f32 %v14885_v19  ;;  %v12073_v34 = vpop.f32.mrb[168].mxu0  ;;  %v22333_v27 = vsub.f32 %v12487_v58, %v23811_v9  ;;  %v23815_v52 = vld [vmem:[#allocation55_spill] sm:$0xff] }
 0x666   : > { %v18397_v11 = vpop.eup %18396  ;;  %v22336_v61 = vsub.f32 %v12488_v48, %v23812_v41  ;;  %v12859_v44 = vadd.f32 1.0, %v18395_v35  ;;  %18416 = vpow2.f32 %v14888_v42  ;;  %v12412_v2 = vpop.f32.mrb[168].mxu1  ;;  %v22339_v36 = vsub.f32 %v12493_v38, %v23813_v13  ;;  %v23819_v48 = vld [vmem:[#allocation49_spill] sm:$0xff] }
 0x667   : > { %v12075_v40 = vpop.f32.mrb[169].mxu0  ;;  %v18399_v10 = vpop.eup %18398  ;;  %v22342_v18 = vsub.f32 %v12494_v51, %v23815_v52  ;;  %18418 = vrcp.f32 %v12857_v4  ;;  %v12858_v19 = vadd.f32 1.0, %v18397_v11  ;;  %v22345_v15 = vsub.f32 %v12499_v16, %v23817_v49  ;;  %v23821_v13 = vld [vmem:[#allocation69_spill] sm:$0xff] }
 0x668   : > { %23814 = vst [vmem:[#allocation146_spill] sm:$0xff] %v22339_v36  ;;  %v12414_v23 = vpop.f32.mrb[169].mxu1  ;;  %v12077_v29 = vpop.f32.mrb[170].mxu0  ;;  %v22348_v35 = vsub.f32 %v12500_v14, %v23819_v48  ;;  %18420 = vrcp.f32 %v12859_v44  ;;  %v12860_v42 = vadd.f32 1.0, %v18399_v10  ;;  %v22353_v51 = vsub.f32 %v12505_v37, %v23821_v13 }
 0x669   : > { %23816 = vst [vmem:[#allocation96_spill] sm:$0xff] %v22342_v18  ;;  %v18401_v58 = vpop.eup %18400  ;;  %23818 = vst [vmem:[#allocation148_spill] sm:$0xff] %v22345_v15  ;;  %v12416_v8 = vpop.f32.mrb[170].mxu1  ;;  %18422 = vrcp.f32 %v12858_v19  ;;  %v22360_v14 = vadd.f32 %v21878_v1, %v22187_v45  ;;  %v15324_v10 = vadd.f32 %v12406_v0, %v22246_v7  ;;  %v22365_v37 = vadd.f32 %v21887_v12, %v22213_v25 }
 0x66a   : > { %23820 = vst [vmem:[#allocation70_spill] sm:$0xff] %v22348_v35  ;;  %v22350_v41 = vpop.f32.mrb[171].mxu0  ;;  %v18403_v38 = vpop.eup %18402  ;;  %23822 = vst [vmem:[#allocation150_spill] sm:$0xff] %v22353_v51  ;;  %v12863_v11 = vadd.f32 1.0, %v18401_v58  ;;  %18424 = vrcp.f32 %v12860_v42  ;;  %v15293_v19 = vadd.f32 %v12069_v26, %v22249_v31  ;;  %v22370_v13 = vadd.f32 %v21892_v43, %v22187_v45 }
 0x66b   : > { %v22356_v52 = vpop.f32.mrb[171].mxu1  ;;  %v18405_v16 = vpop.eup %18404  ;;  %v12865_v44 = vadd.f32 1.0, %v18403_v38  ;;  %v15325_v42 = vadd.f32 %v12408_v62, %v22261_v6  ;;  %v15294_v51 = vadd.f32 %v12073_v34, %v22240_v24  ;;  %v15326_v12 = vadd.f32 %v12412_v2, %v22246_v7 }
 0x66c   : > { %v18407_v48 = vpop.eup %18406  ;;  %18426 = vrcp.f32 %v12863_v11  ;;  %v12864_v4 = vadd.f32 1.0, %v18405_v16  ;;  %v14890_v35 = vmul.f32 -1.442695, %v15324_v10  ;;  %v15295_v49 = vadd.f32 %v12075_v40, %v22249_v31 }
 0x66d   : > { %v18409_v58 = vpop.eup %18408  ;;  %18428 = vrcp.f32 %v12865_v44  ;;  %v12866_v1 = vadd.f32 1.0, %v18407_v48  ;;  %v12083_v11 = vpop.f32.mrb[172].mxu0  ;;  %v14891_v10 = vmul.f32 -1.442695, %v15325_v42  ;;  %v15296_v40 = vadd.f32 %v12077_v29, %v22240_v24 }
 0x66e   : > { %v18411_v38 = vpop.eup %18410  ;;  %18430 = vrcp.f32 %v12864_v4  ;;  %v12869_v0 = vadd.f32 1.0, %v18409_v58  ;;  %v22376_v43 = vpop.f32.mrb[172].mxu1  ;;  %v14889_v4 = vmul.f32 -1.442695, %v15293_v19  ;;  %v15327_v58 = vadd.f32 %v12414_v23, %v22261_v6 }
 0x66f   : > { %v18413_v16 = vpop.eup %18412  ;;  %18432 = vrcp.f32 %v12866_v1  ;;  %v12871_v26 = vadd.f32 1.0, %v18411_v38  ;;  %v22378_v44 = vpop.f32.mrb[173].mxu0  ;;  %v14894_v19 = vmul.f32 -1.442695, %v15294_v51  ;;  %v15328_v42 = vadd.f32 %v12416_v8, %v22246_v7 }
 0x670   : > { %v18415_v48 = vpop.eup %18414  ;;  %18434 = vrcp.f32 %v12869_v0  ;;  %v12870_v62 = vadd.f32 1.0, %v18413_v16  ;;  %v22381_v34 = vpop.f32.mrb[173].mxu1  ;;  %v14896_v16 = vmul.f32 -1.442695, %v15326_v12 }
 0x671   : > { %23823 = vst [vmem:[#allocation100_spill] sm:$0xff] %v22381_v34  ;;  %v22383_v2 = vpop.f32.mrb[174].mxu0  ;;  %v18417_v15 = vpop.eup %18416  ;;  %18436 = vrcp.f32 %v12871_v26  ;;  %v12872_v1 = vadd.f32 1.0, %v18415_v48  ;;  %v14895_v26 = vmul.f32 -1.442695, %v15295_v49 }
 0x672   : > { %23824 = vst [vmem:[#allocation152_spill] sm:$0xff] %v22383_v2  ;;  %v22386_v38 = vpop.f32.mrb[174].mxu1  ;;  %v22388_v18 = vpop.f32.mrb[175].mxu0  ;;  %18438 = vrcp.f32 %v12870_v62  ;;  %v12875_v0 = vadd.f32 1.0, %v18417_v15  ;;  %v15297_v15 = vadd.f32 %v22350_v41, %v22249_v31 }
 0x673   : > { %23825 = vst [vmem:[#allocation104_spill] sm:$0xff] %v22388_v18  ;;  %v18419_v36 = vpop.eup %18418  ;;  %v22390_v23 = vpop.f32.mrb[175].mxu1  ;;  %18440 = vrcp.f32 %v12872_v1  ;;  %v14897_v18 = vmul.f32 -1.442695, %v15327_v58 }
 0x674   : > { %v18421_v34 = vpop.eup %18420  ;;  %v13241_v2 = vmul.f32 %v18419_v36, %v22152_v50  ;;  %18442 = vrcp.f32 %v12875_v0  ;;  %v14900_v50 = vmul.f32 -1.442695, %v15296_v40 }
 0x675   : > { %v18423_v48 = vpop.eup %18422  ;;  %v13243_v29 = vmul.f32 %v18421_v34, %v22282_v20  ;;  %18444 = vpow2.f32 %v14890_v35  ;;  %v15329_v20 = vadd.f32 %v22356_v52, %v22261_v6  ;;  %v22403_v58 = vpop.f32.mrb[176].mxu0  ;;  %v14902_v35 = vmul.f32 -1.442695, %v15328_v42 }
 0x676   : > { %v18425_v51 = vpop.eup %18424  ;;  %v13337_v12 = vadd.f32 %v13241_v2, %v23742_v47  ;;  %v13242_v62 = vmul.f32 %v18423_v48, %v22159_v60  ;;  %18446 = vpow2.f32 %v14889_v4  ;;  %v22408_v34 = vpop.f32.mrb[176].mxu1  ;;  %v15298_v2 = vadd.f32 %v12083_v11, %v22240_v24 }
 0x677   : > { %v18427_v49 = vpop.eup %18426  ;;  %v13339_v8 = vadd.f32 %v13243_v29, %v23807_v55  ;;  %v13244_v36 = vmul.f32 %v18425_v51, %v22300_v54  ;;  %18448 = vpow2.f32 %v14891_v10  ;;  %v22410_v55 = vpop.f32.mrb[177].mxu0  ;;  %v14903_v29 = vmul.f32 -1.442695, %v15329_v20  ;;  %v23826_v20 = vld [vmem:[#allocation58_spill] sm:$0xff] }
 0x678   : > { %v18429_v41 = vpop.eup %18428  ;;  %13433 = vst [vmem:[%s21913_s26 + $0x10] sm:$0xff] %v13337_v12  ;;  %v13338_v47 = vadd.f32 %v13242_v62, %v23745_v32  ;;  %v13247_v60 = vmul.f32 %v18427_v49, %v22162_v30  ;;  %18450 = vpow2.f32 %v14894_v19  ;;  %v22416_v1 = vpop.f32.mrb[177].mxu1  ;;  %v12511_v62 = vmax.f32 %v22360_v14, 0.0 }
 0x679   : > { %v18431_v54 = vpop.eup %18430  ;;  %13435 = vst [vmem:[%s21913_s26 + $0x20] sm:$0xff] %v13339_v8  ;;  %v13340_v52 = vadd.f32 %v13244_v36, %v23808_v17  ;;  %v13249_v4 = vmul.f32 %v18429_v41, %v22323_v3  ;;  %v22418_v32 = vpop.f32.mrb[178].mxu0  ;;  %18452 = vpow2.f32 %v14896_v16  ;;  %v15330_v17 = vadd.f32 %v22376_v43, %v22246_v7 }
 0x67a   : > { %v18433_v30 = vpop.eup %18432  ;;  %13434 = vst [vmem:[%s21913_s26 + $0x18] sm:$0xff] %v13338_v47  ;;  %v13343_v10 = vadd.f32 %v13247_v60, %v23746_v59  ;;  %v13248_v40 = vmul.f32 %v18431_v54, %v22169_v57  ;;  %v22425_v0 = vpop.f32.mrb[178].mxu1  ;;  %18454 = vpow2.f32 %v14895_v26  ;;  %v14901_v59 = vmul.f32 -1.442695, %v15297_v15  ;;  %v23828_v54 = vld [vmem:[#allocation13_spill] sm:$0xff] }
 0x67b   : > { %v22427_v3 = vpop.f32.mrb[179].mxu0  ;;  %v18435_v11 = vpop.eup %18434  ;;  %13436 = vst [vmem:[%s21913_s26 + $0x28] sm:$0xff] %v13340_v52  ;;  %v13345_v19 = vadd.f32 %v13249_v4, %v23809_v28  ;;  %v13250_v42 = vmul.f32 %v18433_v30, %v22326_v39  ;;  %18456 = vpow2.f32 %v14897_v18  ;;  %v14906_v26 = vmul.f32 -1.442695, %v15298_v2 }
 0x67c   : > { %v22432_v48 = vpop.f32.mrb[179].mxu1  ;;  %v18437_v57 = vpop.eup %18436  ;;  %13439 = vst [vmem:[%s21913_s26 + $0x40] sm:$0xff] %v13343_v10  ;;  %v13344_v43 = vadd.f32 %v13248_v40, %v23749_v22  ;;  %v13253_v16 = vmul.f32 %v18435_v11, %v22172_v33  ;;  %18458 = vpow2.f32 %v14900_v50  ;;  %v14908_v33 = vmul.f32 -1.442695, %v15330_v17  ;;  %v23829_v10 = vld [vmem:[#allocation66_spill] sm:$0xff] }
 0x67d   : > { %v18439_v51 = vpop.eup %18438  ;;  %13441 = vst [vmem:[%s21913_s26 + $0x50] sm:$0xff] %v13345_v19  ;;  %v13346_v28 = vadd.f32 %v13250_v42, %v23810_v46  ;;  %v13255_v39 = vmul.f32 %v18437_v57, %v22333_v27  ;;  %18460 = vpow2.f32 %v14902_v35  ;;  %v22447_v50 = vpop.f32.mrb[180].mxu0  ;;  %v12512_v8 = vmax.f32 %v22365_v37, 0.0  ;;  %v23831_v11 = vld [vmem:[#allocation46_spill] sm:$0xff] }
 0x67e   : > { %v18441_v15 = vpop.eup %18440  ;;  %13440 = vst [vmem:[%s21913_s26 + $0x48] sm:$0xff] %v13344_v43  ;;  %v13349_v12 = vadd.f32 %v13253_v16, %v23750_v5  ;;  %v13254_v22 = vmul.f32 %v18439_v51, %v22179_v56  ;;  %18462 = vpow2.f32 %v14901_v59  ;;  %v22453_v14 = vpop.f32.mrb[180].mxu1  ;;  %v23830_v40 = vmax.f32 %v22330_v53, 0.0  ;;  %v23832_v43 = vld [vmem:[#allocation74_spill] sm:$0xff] }
 0x67f   : > { %v18443_v18 = vpop.eup %18442  ;;  %13442 = vst [vmem:[%s21913_s26 + $0x58] sm:$0xff] %v13346_v28  ;;  %v13351_v46 = vadd.f32 %v13255_v39, %v23811_v9  ;;  %v13256_v27 = vmul.f32 %v18441_v15, %v22336_v61  ;;  %18464 = vpow2.f32 %v14903_v29  ;;  %v22455_v36 = vpop.f32.mrb[181].mxu0  ;;  %v12517_v61 = vmax.f32 %v22370_v13, 0.0  ;;  %v23833_v28 = vld [vmem:[#allocation73_spill] sm:$0xff] }
 0x680   : > { %v18445_v49 = vpop.eup %18444  ;;  %13445 = vst [vmem:[%s21913_s26 + $0x70] sm:$0xff] %v13349_v12  ;;  %v13350_v5 = vadd.f32 %v13254_v22, %v23753_v63  ;;  %v13259_v56 = vmul.f32 %v18443_v18, %v22190_v21  ;;  %18466 = vpow2.f32 %v14906_v26  ;;  %v22460_v37 = vpop.f32.mrb[181].mxu1  ;;  %v23827_v21 = vld [vmem:[#allocation43_spill] sm:$0xff]  ;;  %v22477_v17 = vsub.f32 %v23830_v40, %v23829_v10  ;;  %v23834_v26 = vld [vmem:[#allocation90_spill] sm:$0xff] }
 0x681   : > { %v18447_v9 = vpop.eup %18446  ;;  %13447 = vst [vmem:[%s21913_s26 + $0x80] sm:$0xff] %v13351_v46  ;;  %v13352_v41 = vadd.f32 %v13256_v27, %v23826_v20  ;;  %v12877_v47 = vadd.f32 1.0, %v18445_v49  ;;  %v22462_v60 = vpop.f32.mrb[182].mxu0  ;;  %v22466_v35 = vadd.f32 %v23827_v21, %v22213_v25  ;;  %18468 = vpow2.f32 %v14908_v33  ;;  %v23835_v18 = vld [vmem:[#allocation94_spill] sm:$0xff]  ;;  %v23836_v49 = vld [vmem:[#allocation63_spill] sm:$0xff] }
 0x682   : > { %v18449_v63 = vpop.eup %18448  ;;  %13446 = vst [vmem:[%s21913_s26 + $0x78] sm:$0xff] %v13350_v5  ;;  %v13355_v52 = vadd.f32 %v13259_v56, %v23828_v54  ;;  %v12876_v13 = vadd.f32 1.0, %v18447_v9  ;;  %v22470_v4 = vpop.f32.mrb[182].mxu1  ;;  %v22481_v19 = vadd.f32 %v23831_v11, %v22187_v45  ;;  %v22487_v16 = vsub.f32 %v12511_v62, %v23832_v43 }
 0x683   : > { %v22472_v2 = vpop.f32.mrb[183].mxu0  ;;  %v18451_v30 = vpop.eup %18450  ;;  %13448 = vst [vmem:[%s21913_s26 + $0x88] sm:$0xff] %v13352_v41  ;;  %18470 = vrcp.f32 %v12877_v47  ;;  %v12878_v42 = vadd.f32 1.0, %v18449_v63  ;;  %v15299_v53 = vadd.f32 %v22378_v44, %v22249_v31  ;;  %v22493_v39 = vsub.f32 %v12512_v8, %v23833_v28  ;;  %v23837_v41 = vld [vmem:[#allocation100_spill] sm:$0xff]  ;;  %v23844_v44 = vld [vmem:[#allocation146_spill] sm:$0xff] }
 0x684   : > { %v22484_v59 = vpop.f32.mrb[183].mxu1  ;;  %v18453_v57 = vpop.eup %18452  ;;  %13451 = vst [vmem:[%s21913_s26 + $0xa0] sm:$0xff] %v13355_v52  ;;  %18472 = vrcp.f32 %v12876_v13  ;;  %v12881_v29 = vadd.f32 1.0, %v18451_v30  ;;  %v22496_v15 = vsub.f32 %v12517_v61, %v23834_v26  ;;  %v22501_v62 = vadd.f32 %v23835_v18, %v22213_v25  ;;  %v23838_v13 = vld [vmem:[#allocation152_spill] sm:$0xff] }
 0x685   : > { %v18455_v51 = vpop.eup %18454  ;;  %18474 = vrcp.f32 %v12878_v42  ;;  %v12883_v12 = vadd.f32 1.0, %v18453_v57  ;;  %v22506_v8 = vadd.f32 %v23836_v49, %v22187_v45  ;;  %v22508_v56 = vpop.f32.mrb[184].mxu0  ;;  %v14907_v20 = vmul.f32 -1.442695, %v15299_v53  ;;  %v23840_v53 = vld [vmem:[#allocation104_spill] sm:$0xff] }
 0x686   : > { %v18457_v22 = vpop.eup %18456  ;;  %18476 = vrcp.f32 %v12881_v29  ;;  %v12882_v46 = vadd.f32 1.0, %v18455_v51  ;;  %v15331_v47 = vadd.f32 %v23837_v41, %v22261_v6  ;;  %v22512_v63 = vpop.f32.mrb[184].mxu1  ;;  %v15300_v30 = vadd.f32 %v23838_v13, %v22240_v24 }
 0x687   : > { %v18459_v27 = vpop.eup %18458  ;;  %18478 = vrcp.f32 %v12883_v12  ;;  %v12884_v5 = vadd.f32 1.0, %v18457_v22  ;;  %v22514_v21 = vpop.f32.mrb[185].mxu0  ;;  %v15332_v40 = vadd.f32 %v22386_v38, %v22246_v7  ;;  %v15301_v51 = vadd.f32 %v23840_v53, %v22249_v31 }
 0x688   : > { %v18461_v9 = vpop.eup %18460  ;;  %18480 = vrcp.f32 %v12882_v46  ;;  %v12887_v61 = vadd.f32 1.0, %v18459_v27  ;;  %v22520_v11 = vpop.f32.mrb[185].mxu1  ;;  %v15333_v12 = vadd.f32 %v22390_v23, %v22261_v6  ;;  %v15302_v27 = vadd.f32 %v22403_v58, %v22240_v24 }
 0x689   : > { %v18463_v54 = vpop.eup %18462  ;;  %18482 = vrcp.f32 %v12884_v5  ;;  %v12889_v52 = vadd.f32 1.0, %v18461_v9  ;;  %v22522_v42 = vpop.f32.mrb[186].mxu0  ;;  %v15334_v49 = vadd.f32 %v22408_v34, %v22246_v7  ;;  %v14909_v41 = vmul.f32 -1.442695, %v15331_v47 }
 0x68a   : > { %23839 = vst [vmem:[#allocation98_spill] sm:$0xff] %v22522_v42  ;;  %v18465_v57 = vpop.eup %18464  ;;  %18484 = vrcp.f32 %v12887_v61  ;;  %v12888_v29 = vadd.f32 1.0, %v18463_v54  ;;  %v22528_v22 = vpop.f32.mrb[186].mxu1  ;;  %v15303_v23 = vadd.f32 %v22410_v55, %v22249_v31  ;;  %v14913_v33 = vmul.f32 -1.442695, %v15301_v51 }
 0x68b   : > { %23841 = vst [vmem:[#allocation110_spill] sm:$0xff] %v22528_v22  ;;  %v22530_v18 = vpop.f32.mrb[187].mxu0  ;;  %v18467_v46 = vpop.eup %18466  ;;  %18486 = vrcp.f32 %v12889_v52  ;;  %v12890_v38 = vadd.f32 1.0, %v18465_v57  ;;  %v14912_v52 = vmul.f32 -1.442695, %v15300_v30  ;;  %v23847_v30 = vld [vmem:[#allocation96_spill] sm:$0xff] }
 0x68c   : > { %23842 = vst [vmem:[#allocation155_spill] sm:$0xff] %v22530_v18  ;;  %v22536_v5 = vpop.f32.mrb[187].mxu1  ;;  %v18469_v9 = vpop.eup %18468  ;;  %18488 = vrcp.f32 %v12888_v29  ;;  %v12893_v61 = vadd.f32 1.0, %v18467_v46  ;;  %v14914_v57 = vmul.f32 -1.442695, %v15332_v40 }
 0x68d   : > { %23843 = vst [vmem:[#allocation105_spill] sm:$0xff] %v22536_v5  ;;  %v18471_v54 = vpop.eup %18470  ;;  %18490 = vrcp.f32 %v12890_v38  ;;  %v12895_v13 = vadd.f32 1.0, %v18469_v9  ;;  %v14915_v34 = vmul.f32 -1.442695, %v15333_v12  ;;  %v23845_v5 = vld [vmem:[#allocation51_spill] sm:$0xff]  ;;  %v22542_v46 = vpop.f32.mrb[188].mxu0 }
 0x68e   : > { %v18473_v53 = vpop.eup %18472  ;;  %v13261_v58 = vmul.f32 %v18471_v54, %v23844_v44  ;;  %18492 = vrcp.f32 %v12893_v61  ;;  %v14918_v29 = vmul.f32 -1.442695, %v15302_v27  ;;  %v14920_v47 = vmul.f32 -1.442695, %v15334_v49  ;;  %v23846_v38 = vld [vmem:[#allocation84_spill] sm:$0xff]  ;;  %v22546_v44 = vpop.f32.mrb[188].mxu1 }
 0x68f   : > { %v18475_v18 = vpop.eup %18474  ;;  %v13260_v22 = vmul.f32 %v18473_v53, %v23845_v5  ;;  %18494 = vrcp.f32 %v12895_v13  ;;  %v14919_v42 = vmul.f32 -1.442695, %v15303_v23  ;;  %v22548_v51 = vpop.f32.mrb[189].mxu0  ;;  %v23848_v61 = vld [vmem:[#allocation14_spill] sm:$0xff]  ;;  %v15335_v54 = vadd.f32 %v22416_v1, %v22261_v6 }
 0x690   : > { %v18477_v55 = vpop.eup %18476  ;;  %v13357_v9 = vadd.f32 %v13261_v58, %v23846_v38  ;;  %v13262_v40 = vmul.f32 %v18475_v18, %v23847_v30  ;;  %18496 = vpow2.f32 %v14907_v20  ;;  %v23849_v27 = vld [vmem:[#allocation86_spill] sm:$0xff]  ;;  %v22554_v13 = vpop.f32.mrb[189].mxu1  ;;  %v23851_v18 = vld [vmem:[#allocation55_spill] sm:$0xff]  ;;  %v23852_v58 = vld [vmem:[#allocation148_spill] sm:$0xff] }
 0x691   : > { %v18479_v12 = vpop.eup %18478  ;;  %v13356_v5 = vadd.f32 %v13260_v22, %v23848_v61  ;;  %v13265_v49 = vmul.f32 %v18477_v55, %v23849_v27  ;;  %18498 = vpow2.f32 %v14909_v41  ;;  %v22556_v53 = vpop.f32.mrb[190].mxu0  ;;  %v15304_v22 = vadd.f32 %v22418_v32, %v22240_v24  ;;  %v23854_v30 = vld [vmem:[#allocation25_spill] sm:$0xff]  ;;  %v23855_v27 = vld [vmem:[#allocation18_spill] sm:$0xff]  ;;  %v23857_v32 = vld [vmem:[#allocation71_spill] sm:$0xff] }
 0x692   : > { %23850 = vst [vmem:[#allocation157_spill] sm:$0xff] %v22556_v53  ;;  %v18481_v20 = vpop.eup %18480  ;;  %13453 = vst [vmem:[%s21913_s26 + $0xb0] sm:$0xff] %v13357_v9  ;;  %v13358_v23 = vadd.f32 %v13262_v40, %v23851_v18  ;;  %v13267_v38 = vmul.f32 %v18479_v12, %v23852_v58  ;;  %18500 = vpow2.f32 %v14912_v52  ;;  %v22563_v55 = vpop.f32.mrb[190].mxu1  ;;  %v15336_v9 = vadd.f32 %v22425_v0, %v22246_v7  ;;  %v23858_v18 = vld [vmem:[#allocation70_spill] sm:$0xff] }
 0x693   : > { %v22565_v41 = vpop.f32.mrb[191].mxu0  ;;  %v18483_v1 = vpop.eup %18482  ;;  %13452 = vst [vmem:[%s21913_s26 + $0xa8] sm:$0xff] %v13356_v5  ;;  %v13361_v61 = vadd.f32 %v13265_v49, %v23854_v30  ;;  %v13266_v53 = vmul.f32 %v18481_v20, %v23855_v27  ;;  %18502 = vpow2.f32 %v14914_v57  ;;  %v15305_v5 = vadd.f32 %v22427_v3, %v22249_v31  ;;  %v23859_v57 = vld [vmem:[#allocation30_spill] sm:$0xff]  ;;  %v23863_v3 = vld [vmem:[#allocation23_spill] sm:$0xff] }
 0x694   : > { %23853 = vst [vmem:[#allocation107_spill] sm:$0xff] %v22565_v41  ;;  %v22572_v52 = vpop.f32.mrb[191].mxu1  ;;  %v18485_v40 = vpop.eup %18484  ;;  %13454 = vst [vmem:[%s21913_s26 + $0xb8] sm:$0xff] %v13358_v23  ;;  %v13363_v12 = vadd.f32 %v13267_v38, %v23857_v32  ;;  %v13268_v58 = vmul.f32 %v18483_v1, %v23858_v18  ;;  %18504 = vpow2.f32 %v14913_v33  ;;  %v23860_v30 = vld [vmem:[#allocation10_spill] sm:$0xff]  ;;  %v14921_v0 = vmul.f32 -1.442695, %v15335_v54 }
 0x695   : > { %23856 = vst [vmem:[#allocation159_spill] sm:$0xff] %v22572_v52  ;;  %v18487_v49 = vpop.eup %18486  ;;  %13457 = vst [vmem:[%s21913_s26 + $0xd0] sm:$0xff] %v13361_v61  ;;  %v13362_v20 = vadd.f32 %v13266_v53, %v23859_v57  ;;  %v13271_v27 = vmul.f32 %v18485_v40, %v23860_v30  ;;  %18506 = vpow2.f32 %v14915_v34  ;;  %v23861_v23 = vld [vmem:[#allocation49_spill] sm:$0xff]  ;;  %v23862_v32 = vld [vmem:[#allocation150_spill] sm:$0xff]  ;;  %v14924_v33 = vmul.f32 -1.442695, %v15304_v22 }
 0x696   : > { %v18489_v52 = vpop.eup %18488  ;;  %13459 = vst [vmem:[%s21913_s26 + $0xe0] sm:$0xff] %v13363_v12  ;;  %v13364_v38 = vadd.f32 %v13268_v58, %v23861_v23  ;;  %v13273_v1 = vmul.f32 %v18487_v49, %v23862_v32  ;;  %18508 = vpow2.f32 %v14918_v29  ;;  %v23864_v41 = vld [vmem:[#allocation95_spill] sm:$0xff]  ;;  %v14926_v40 = vmul.f32 -1.442695, %v15336_v9  ;;  %v23865_v54 = vld [vmem:[#allocation69_spill] sm:$0xff]  ;;  %v23866_v57 = vld [vmem:[#allocation26_spill] sm:$0xff] }
 0x697   : > { %v18491_v18 = vpop.eup %18490  ;;  %13458 = vst [vmem:[%s21913_s26 + $0xd8] sm:$0xff] %v13362_v20  ;;  %v13367_v61 = vadd.f32 %v13271_v27, %v23863_v3  ;;  %v13272_v53 = vmul.f32 %v18489_v52, %v23864_v41  ;;  %18510 = vpow2.f32 %v14920_v47  ;;  %v14925_v29 = vmul.f32 -1.442695, %v15305_v5  ;;  %v23867_v30 = vld [vmem:[#allocation137_spill] sm:$0xff]  ;;  %v23869_v27 = vld [vmem:[#allocation16_spill] sm:$0xff] }
 0x698   : > { %v18493_v34 = vpop.eup %18492  ;;  %13460 = vst [vmem:[%s21913_s26 + $0xe8] sm:$0xff] %v13364_v38  ;;  %v13369_v12 = vadd.f32 %v13273_v1, %v23865_v54  ;;  %v13274_v58 = vmul.f32 %v18491_v18, %v22477_v17  ;;  %18512 = vpow2.f32 %v14919_v42  ;;  %v12524_v22 = vmax.f32 %v22501_v62, 0.0  ;;  %v23868_v9 = vld [vmem:[#allocation85_spill] sm:$0xff]  ;;  %v23870_v32 = vld [vmem:[#allocation12_spill] sm:$0xff] }
 0x699   : > { %v18495_v49 = vpop.eup %18494  ;;  %13463 = vst [vmem:[%s21913_s26 + $0x100] sm:$0xff] %v13367_v61  ;;  %v13368_v20 = vadd.f32 %v13272_v53, %v23866_v57  ;;  %v13277_v41 = vmul.f32 %v18493_v34, %v23867_v30  ;;  %18514 = vpow2.f32 %v14921_v0  ;;  %v22597_v52 = vadd.f32 %v23868_v9, %v22213_v25  ;;  %v23871_v18 = vld [vmem:[#allocation89_spill] sm:$0xff]  ;;  %v23873_v61 = vld [vmem:[#allocation76_spill] sm:$0xff] }
 0x69a   : > { %v18497_v47 = vpop.eup %18496  ;;  %13465 = vst [vmem:[%s21913_s26 + $0x110] sm:$0xff] %v13369_v12  ;;  %v13370_v17 = vadd.f32 %v13274_v58, %v23829_v10  ;;  %v13279_v42 = vmul.f32 %v18495_v49, %v22487_v16  ;;  %18516 = vpow2.f32 %v14924_v33  ;;  %v12529_v5 = vmax.f32 %v22506_v8, 0.0  ;;  %v23875_v12 = vld [vmem:[#allocation75_spill] sm:$0xff]  ;;  %v23876_v49 = vld [vmem:[#allocation77_spill] sm:$0xff] }
 0x69b   : > { %v18499_v62 = vpop.eup %18498  ;;  %13464 = vst [vmem:[%s21913_s26 + $0x108] sm:$0xff] %v13368_v20  ;;  %v13373_v23 = vadd.f32 %v13277_v41, %v23869_v27  ;;  %v12894_v38 = vadd.f32 1.0, %v18497_v47  ;;  %18518 = vpow2.f32 %v14926_v40  ;;  %v22607_v1 = vadd.f32 %v23870_v32, %v22187_v45 }
 0x69c   : > { %v18501_v0 = vpop.eup %18500  ;;  %13466 = vst [vmem:[%s21913_s26 + $0x118] sm:$0xff] %v13370_v17  ;;  %v13375_v10 = vadd.f32 %v13279_v42, %v23832_v43  ;;  %v12896_v16 = vadd.f32 1.0, %v18499_v62  ;;  %18520 = vpow2.f32 %v14925_v29  ;;  %v23872_v8 = vmax.f32 %v22466_v35, 0.0  ;;  %v23878_v42 = vld [vmem:[#allocation102_spill] sm:$0xff] }
 0x69d   : > { %v18503_v33 = vpop.eup %18502  ;;  %v23874_v53 = vmax.f32 %v22481_v19, 0.0  ;;  %13469 = vst [vmem:[%s21913_s26 + $0x130] sm:$0xff] %v13373_v23  ;;  %18522 = vrcp.f32 %v12894_v38  ;;  %v12899_v34 = vadd.f32 1.0, %v18501_v0  ;;  %v22623_v58 = vsub.f32 %v12524_v22, %v23875_v12  ;;  %v23877_v22 = vld [vmem:[#allocation41_spill] sm:$0xff] }
 0x69e   : > { %v22614_v3 = vsub.f32 %v23872_v8, %v23871_v18  ;;  %v18505_v54 = vpop.eup %18504  ;;  %v12530_v43 = vmax.f32 %v22597_v52, 0.0  ;;  %13471 = vst [vmem:[%s21913_s26 + $0x140] sm:$0xff] %v13375_v10  ;;  %18524 = vrcp.f32 %v12896_v16  ;;  %v12901_v29 = vadd.f32 1.0, %v18503_v33 }
 0x69f   : > { %v22619_v40 = vsub.f32 %v23874_v53, %v23873_v61  ;;  %v18507_v35 = vpop.eup %18506  ;;  %v22628_v57 = vsub.f32 %v12529_v5, %v23876_v49  ;;  %18526 = vrcp.f32 %v12899_v34  ;;  %v12900_v19 = vadd.f32 1.0, %v18505_v54  ;;  %v23879_v5 = vld [vmem:[#allocation11_spill] sm:$0xff] }
 0x6a0   : > { %v15337_v20 = vadd.f32 %v22432_v48, %v22261_v6  ;;  %v18509_v30 = vpop.eup %18508  ;;  %v12535_v41 = vmax.f32 %v22607_v1, 0.0  ;;  %v22635_v47 = vadd.f32 %v23877_v22, %v22213_v25  ;;  %18528 = vrcp.f32 %v12901_v29 }
 0x6a1   : > { %v12902_v9 = vadd.f32 1.0, %v18507_v35  ;;  %v18511_v17 = vpop.eup %18510  ;;  %v22639_v62 = vadd.f32 %v23878_v42, %v22187_v45  ;;  %v22643_v27 = vadd.f32 %v23879_v5, %v22213_v25  ;;  %18530 = vrcp.f32 %v12900_v19  ;;  %v23880_v5 = vld [vmem:[#allocation27_spill] sm:$0xff] }
 0x6a2   : > { %v12905_v48 = vadd.f32 1.0, %v18509_v30  ;;  %v18513_v23 = vpop.eup %18512  ;;  %v12907_v38 = vadd.f32 1.0, %v18511_v17  ;;  %v15306_v0 = vadd.f32 %v22447_v50, %v22240_v24  ;;  %v15338_v32 = vadd.f32 %v22453_v14, %v22246_v7 }
 0x6a3   : > { %18532 = vrcp.f32 %v12902_v9  ;;  %v18515_v10 = vpop.eup %18514  ;;  %v12906_v16 = vadd.f32 1.0, %v18513_v23  ;;  %v14927_v33 = vmul.f32 -1.442695, %v15337_v20  ;;  %v15307_v8 = vadd.f32 %v22455_v36, %v22249_v31 }
 0x6a4   : > { %18534 = vrcp.f32 %v12905_v48  ;;  %v18517_v53 = vpop.eup %18516  ;;  %v12908_v34 = vadd.f32 1.0, %v18515_v10  ;;  %v15339_v54 = vadd.f32 %v22460_v37, %v22261_v6  ;;  %v15308_v29 = vadd.f32 %v22462_v60, %v22240_v24 }
 0x6a5   : > { %18536 = vrcp.f32 %v12907_v38  ;;  %v18519_v50 = vpop.eup %18518  ;;  %v12911_v35 = vadd.f32 1.0, %v18517_v53  ;;  %v15340_v14 = vadd.f32 %v22470_v4, %v22246_v7  ;;  %v15309_v19 = vadd.f32 %v22472_v2, %v22249_v31 }
 0x6a6   : > { %18538 = vrcp.f32 %v12906_v16  ;;  %v18521_v20 = vpop.eup %18520  ;;  %v12913_v36 = vadd.f32 1.0, %v18519_v50  ;;  %v14930_v30 = vmul.f32 -1.442695, %v15306_v0  ;;  %v14932_v22 = vmul.f32 -1.442695, %v15338_v32  ;;  %v23881_v16 = vld [vmem:[#allocation24_spill] sm:$0xff] }
 0x6a7   : > { %18540 = vrcp.f32 %v12908_v34  ;;  %v18523_v9 = vpop.eup %18522  ;;  %v12912_v37 = vadd.f32 1.0, %v18521_v20  ;;  %v14931_v17 = vmul.f32 -1.442695, %v15307_v8  ;;  %v15341_v60 = vadd.f32 %v22484_v59, %v22261_v6  ;;  %v23882_v8 = vld [vmem:[#allocation93_spill] sm:$0xff]  ;;  %v23884_v20 = vld [vmem:[#allocation19_spill] sm:$0xff] }
 0x6a8   : > { %18542 = vrcp.f32 %v12911_v35  ;;  %v18525_v42 = vpop.eup %18524  ;;  %v13278_v48 = vmul.f32 %v18523_v9, %v23880_v5  ;;  %v14933_v4 = vmul.f32 -1.442695, %v15339_v54  ;;  %v14936_v23 = vmul.f32 -1.442695, %v15308_v29 }
 0x6a9   : > { %18544 = vrcp.f32 %v12913_v36  ;;  %v18527_v38 = vpop.eup %18526  ;;  %v13280_v2 = vmul.f32 %v18525_v42, %v22493_v39  ;;  %v14938_v0 = vmul.f32 -1.442695, %v15340_v14  ;;  %v14937_v32 = vmul.f32 -1.442695, %v15309_v19  ;;  %v23883_v14 = vld [vmem:[#allocation28_spill] sm:$0xff]  ;;  %v23886_v42 = vld [vmem:[#allocation59_spill] sm:$0xff] }
 0x6aa   : > { %18546 = vrcp.f32 %v12912_v37  ;;  %v18529_v10 = vpop.eup %18528  ;;  %v13374_v53 = vadd.f32 %v13278_v48, %v23881_v16  ;;  %v13283_v34 = vmul.f32 %v18527_v38, %v23882_v8  ;;  %v15310_v59 = vadd.f32 %v22508_v56, %v22240_v24  ;;  %v23885_v37 = vld [vmem:[#allocation20_spill] sm:$0xff] }
 0x6ab   : > { %18548 = vpow2.f32 %v14927_v33  ;;  %v18531_v50 = vpop.eup %18530  ;;  %v13376_v54 = vadd.f32 %v13280_v2, %v23833_v28  ;;  %v13285_v29 = vmul.f32 %v18529_v10, %v22496_v15  ;;  %v14939_v39 = vmul.f32 -1.442695, %v15341_v60  ;;  %v23887_v48 = vld [vmem:[#allocation36_spill] sm:$0xff]  ;;  %v23888_v2 = vld [vmem:[#allocation138_spill] sm:$0xff] }
 0x6ac   : > { %18550 = vpow2.f32 %v14930_v30  ;;  %13470 = vst [vmem:[%s21913_s26 + $0x138] sm:$0xff] %v13374_v53  ;;  %v13379_v19 = vadd.f32 %v13283_v34, %v23883_v14  ;;  %v13284_v36 = vmul.f32 %v18531_v50, %v23884_v20  ;;  %v15342_v33 = vadd.f32 %v22512_v63, %v22246_v7  ;;  %v23889_v53 = vld [vmem:[#allocation34_spill] sm:$0xff]  ;;  %v23890_v34 = vld [vmem:[#allocation140_spill] sm:$0xff]  ;;  %v23892_v14 = vld [vmem:[#allocation31_spill] sm:$0xff] }
 0x6ad   : > { %v18533_v35 = vpop.eup %18532  ;;  %18552 = vpow2.f32 %v14932_v22  ;;  %13472 = vst [vmem:[%s21913_s26 + $0x148] sm:$0xff] %v13376_v54  ;;  %v13381_v28 = vadd.f32 %v13285_v29, %v23834_v26  ;;  %v15311_v30 = vadd.f32 %v22514_v21, %v22249_v31  ;;  %v15343_v63 = vadd.f32 %v22520_v11, %v22261_v6  ;;  %v23891_v54 = vld [vmem:[#allocation72_spill] sm:$0xff] }
 0x6ae   : > { %v18535_v56 = vpop.eup %18534  ;;  %v13286_v15 = vmul.f32 %v18533_v35, %v22614_v3  ;;  %18554 = vpow2.f32 %v14931_v17  ;;  %13475 = vst [vmem:[%s21913_s26 + $0x160] sm:$0xff] %v13379_v19  ;;  %v13380_v60 = vadd.f32 %v13284_v36, %v23885_v37  ;;  %v14942_v21 = vmul.f32 -1.442695, %v15310_v59 }
 0x6af   : > { %v18537_v9 = vpop.eup %18536  ;;  %v13289_v22 = vmul.f32 %v18535_v56, %v23886_v42  ;;  %18556 = vpow2.f32 %v14933_v4  ;;  %13477 = vst [vmem:[%s21913_s26 + $0x170] sm:$0xff] %v13381_v28  ;;  %v14944_v4 = vmul.f32 -1.442695, %v15342_v33  ;;  %v15246_v29 = vadd.f32 %v23891_v54, %v22187_v45  ;;  %v23906_v54 = vld [vmem:[#allocation110_spill] sm:$0xff] }
 0x6b0   : > { %v18539_v5 = vpop.eup %18538  ;;  %v13382_v26 = vadd.f32 %v13286_v15, %v23871_v18  ;;  %v13291_v3 = vmul.f32 %v18537_v9, %v22619_v40  ;;  %18558 = vpow2.f32 %v14936_v23  ;;  %13476 = vst [vmem:[%s21913_s26 + $0x168] sm:$0xff] %v13380_v60  ;;  %v14943_v40 = vmul.f32 -1.442695, %v15311_v30  ;;  %v23895_v60 = vld [vmem:[#allocation54_spill] sm:$0xff] }
 0x6b1   : > { %v18541_v17 = vpop.eup %18540  ;;  %v13385_v38 = vadd.f32 %v13289_v22, %v23887_v48  ;;  %v13290_v10 = vmul.f32 %v18539_v5, %v23888_v2  ;;  %18560 = vpow2.f32 %v14938_v0  ;;  %v14945_v0 = vmul.f32 -1.442695, %v15343_v63  ;;  %v23896_v22 = vld [vmem:[#allocation33_spill] sm:$0xff]  ;;  %v23897_v63 = vld [vmem:[#allocation160_spill] sm:$0xff] }
 0x6b2   : > { %v18543_v16 = vpop.eup %18542  ;;  %13478 = vst [vmem:[%s21913_s26 + $0x178] sm:$0xff] %v13382_v26  ;;  %v13387_v11 = vadd.f32 %v13291_v3, %v23873_v61  ;;  %v13292_v18 = vmul.f32 %v18541_v17, %v22623_v58  ;;  %18562 = vpow2.f32 %v14937_v32  ;;  %v12536_v35 = vmax.f32 %v22635_v47, 0.0  ;;  %v23894_v47 = vld [vmem:[#allocation15_spill] sm:$0xff]  ;;  %v23900_v48 = vld [vmem:[#allocation21_spill] sm:$0xff]  ;;  %v23901_v2 = vld [vmem:[#allocation60_spill] sm:$0xff] }
 0x6b3   : > { %v18545_v23 = vpop.eup %18544  ;;  %13481 = vst [vmem:[%s21913_s26 + $0x190] sm:$0xff] %v13385_v38  ;;  %v13386_v8 = vadd.f32 %v13290_v10, %v23889_v53  ;;  %v13295_v59 = vmul.f32 %v18543_v16, %v23890_v34  ;;  %18564 = vpow2.f32 %v14939_v39  ;;  %v23893_v39 = vld [vmem:[#allocation92_spill] sm:$0xff]  ;;  %v12541_v33 = vmax.f32 %v22639_v62, 0.0  ;;  %v23904_v53 = vld [vmem:[#allocation131_spill] sm:$0xff] }
 0x6b4   : > { %v18547_v50 = vpop.eup %18546  ;;  %13483 = vst [vmem:[%s21913_s26 + $0x1a0] sm:$0xff] %v13387_v11  ;;  %v13388_v61 = vadd.f32 %v13292_v18, %v23875_v12  ;;  %v13297_v58 = vmul.f32 %v18545_v23, %v22628_v57  ;;  %18566 = vpow2.f32 %v14942_v21  ;;  %v12542_v28 = vmax.f32 %v22643_v27, 0.0  ;;  %v23899_v27 = vld [vmem:[#allocation91_spill] sm:$0xff] }
 0x6b5   : > { %v18549_v32 = vpop.eup %18548  ;;  %13482 = vst [vmem:[%s21913_s26 + $0x198] sm:$0xff] %v13386_v8  ;;  %v13391_v19 = vadd.f32 %v13295_v59, %v23892_v14  ;;  %v13296_v20 = vmul.f32 %v18547_v50, %v23893_v39  ;;  %18568 = vpow2.f32 %v14944_v4  ;;  %v12547_v37 = vmax.f32 %v15246_v29, 0.0  ;;  %v23902_v11 = vld [vmem:[#allocation79_spill] sm:$0xff]  ;;  %v23908_v14 = vld [vmem:[#allocation105_spill] sm:$0xff] }
 0x6b6   : > { %v18551_v36 = vpop.eup %18550  ;;  %13484 = vst [vmem:[%s21913_s26 + $0x1a8] sm:$0xff] %v13388_v61  ;;  %v13393_v12 = vadd.f32 %v13297_v58, %v23876_v49  ;;  %v12914_v56 = vadd.f32 1.0, %v18549_v32  ;;  %18570 = vpow2.f32 %v14943_v40  ;;  %v22713_v42 = vadd.f32 %v23895_v60, %v22213_v25  ;;  %v23903_v40 = vld [vmem:[#allocation62_spill] sm:$0xff]  ;;  %v23907_v32 = vld [vmem:[#allocation155_spill] sm:$0xff] }
 0x6b7   : > { %v18553_v57 = vpop.eup %18552  ;;  %13487 = vst [vmem:[%s21913_s26 + $0x1c0] sm:$0xff] %v13391_v19  ;;  %v13392_v15 = vadd.f32 %v13296_v20, %v23894_v47  ;;  %v12917_v30 = vadd.f32 1.0, %v18551_v36  ;;  %18572 = vpow2.f32 %v14945_v0  ;;  %v23898_v5 = vmax.f32 %v23897_v63, 0.0  ;;  %v23905_v0 = vld [vmem:[#allocation98_spill] sm:$0xff] }
 0x6b8   : > { %v18555_v9 = vpop.eup %18554  ;;  %13489 = vst [vmem:[%s21913_s26 + $0x1d0] sm:$0xff] %v13393_v12  ;;  %18574 = vrcp.f32 %v12914_v56  ;;  %v12919_v49 = vadd.f32 1.0, %v18553_v57  ;;  %v13202_v3 = vsub.f32 %v12530_v43, %v23899_v27  ;;  %v13207_v38 = vsub.f32 %v12535_v41, %v23900_v48 }
 0x6b9   : > { %v18557_v62 = vpop.eup %18556  ;;  %v22719_v26 = vsub.f32 %v23898_v5, %v23896_v22  ;;  %13488 = vst [vmem:[%s21913_s26 + $0x1c8] sm:$0xff] %v13392_v15  ;;  %18576 = vrcp.f32 %v12917_v30  ;;  %v12918_v21 = vadd.f32 1.0, %v18555_v9  ;;  %v22729_v10 = vsub.f32 %v12536_v35, %v23901_v2 }
 0x6ba   : > { %v18559_v17 = vpop.eup %18558  ;;  %18578 = vrcp.f32 %v12919_v49  ;;  %v12920_v4 = vadd.f32 1.0, %v18557_v62  ;;  %v22732_v18 = vsub.f32 %v12541_v33, %v23902_v11  ;;  %v22735_v52 = vsub.f32 %v12542_v28, %v23903_v40 }
 0x6bb   : > { %v18561_v16 = vpop.eup %18560  ;;  %18580 = vrcp.f32 %v12918_v21  ;;  %v12923_v43 = vadd.f32 1.0, %v18559_v17  ;;  %v22738_v8 = vsub.f32 %v12547_v37, %v23904_v53  ;;  %v12548_v1 = vmax.f32 %v22713_v42, 0.0 }
 0x6bc   : > { %v18563_v23 = vpop.eup %18562  ;;  %18582 = vrcp.f32 %v12920_v4  ;;  %v12925_v41 = vadd.f32 1.0, %v18561_v16  ;;  %v15312_v50 = vadd.f32 %v23905_v0, %v22240_v24  ;;  %v15344_v29 = vadd.f32 %v23906_v54, %v22246_v7 }
 0x6bd   : > { %v18565_v34 = vpop.eup %18564  ;;  %18584 = vrcp.f32 %v12923_v43  ;;  %v12924_v59 = vadd.f32 1.0, %v18563_v23  ;;  %v15313_v35 = vadd.f32 %v23907_v32, %v22249_v31  ;;  %v15345_v19 = vadd.f32 %v23908_v14, %v22261_v6 }
 0x6be   : > { %v18567_v61 = vpop.eup %18566  ;;  %18586 = vrcp.f32 %v12925_v41  ;;  %v12926_v58 = vadd.f32 1.0, %v18565_v34  ;;  %v15314_v36 = vadd.f32 %v22542_v46, %v22240_v24  ;;  %v15346_v33 = vadd.f32 %v22546_v44, %v22246_v7  ;;  %v23910_v41 = vld [vmem:[#allocation157_spill] sm:$0xff] }
 0x6bf   : > { %v18569_v39 = vpop.eup %18568  ;;  %18588 = vrcp.f32 %v12924_v59  ;;  %v12929_v20 = vadd.f32 1.0, %v18567_v61  ;;  %v15315_v57 = vadd.f32 %v22548_v51, %v22249_v31  ;;  %v15347_v28 = vadd.f32 %v22554_v13, %v22261_v6  ;;  %v23909_v51 = vld [vmem:[#allocation101_spill] sm:$0xff] }
 0x6c0   : > { %v18571_v12 = vpop.eup %18570  ;;  %18590 = vrcp.f32 %v12926_v58  ;;  %v12931_v56 = vadd.f32 1.0, %v18569_v39  ;;  %v14948_v30 = vmul.f32 -1.442695, %v15312_v50  ;;  %v14950_v9 = vmul.f32 -1.442695, %v15344_v29  ;;  %v23911_v59 = vld [vmem:[#allocation65_spill] sm:$0xff] }
 0x6c1   : > { %v18573_v47 = vpop.eup %18572  ;;  %18592 = vrcp.f32 %v12929_v20  ;;  %v12930_v15 = vadd.f32 1.0, %v18571_v12  ;;  %v14949_v60 = vmul.f32 -1.442695, %v15313_v35  ;;  %v14951_v49 = vmul.f32 -1.442695, %v15345_v19  ;;  %v23912_v50 = vld [vmem:[#allocation61_spill] sm:$0xff] }
 0x6c2   : > { %v18575_v37 = vpop.eup %18574  ;;  %18594 = vrcp.f32 %v12931_v56  ;;  %v12932_v46 = vadd.f32 1.0, %v18573_v47  ;;  %v14954_v63 = vmul.f32 -1.442695, %v15314_v36  ;;  %v14956_v5 = vmul.f32 -1.442695, %v15346_v33  ;;  %v23914_v35 = vld [vmem:[#allocation40_spill] sm:$0xff] }
 0x6c3   : > { %v18577_v44 = vpop.eup %18576  ;;  %v13298_v62 = vmul.f32 %v18575_v37, %v13202_v3  ;;  %18596 = vrcp.f32 %v12930_v15  ;;  %v14955_v13 = vmul.f32 -1.442695, %v15315_v57  ;;  %v14957_v4 = vmul.f32 -1.442695, %v15347_v28  ;;  %v23915_v19 = vld [vmem:[#allocation142_spill] sm:$0xff]  ;;  %v23917_v33 = vld [vmem:[#allocation124_spill] sm:$0xff] }
 0x6c4   : > { %v18579_v21 = vpop.eup %18578  ;;  %v13301_v17 = vmul.f32 %v18577_v44, %v23909_v51  ;;  %18598 = vrcp.f32 %v12932_v46  ;;  %v15316_v34 = vadd.f32 %v23910_v41, %v22240_v24  ;;  %v15348_v29 = vadd.f32 %v22563_v55, %v22246_v7  ;;  %v23913_v24 = vld [vmem:[#allocation107_spill] sm:$0xff]  ;;  %v23920_v37 = vld [vmem:[#allocation144_spill] sm:$0xff] }
 0x6c5   : > { %v18581_v16 = vpop.eup %18580  ;;  %v13394_v43 = vadd.f32 %v13298_v62, %v23899_v27  ;;  %v13303_v23 = vmul.f32 %v18579_v21, %v13207_v38  ;;  %18600 = vpow2.f32 %v14948_v30  ;;  %v15317_v58 = vadd.f32 %v23913_v24, %v22249_v31  ;;  %v23916_v7 = vld [vmem:[#allocation159_spill] sm:$0xff]  ;;  %v23919_v30 = vld [vmem:[#allocation42_spill] sm:$0xff] }
 0x6c6   : > { %v18583_v3 = vpop.eup %18582  ;;  %v13397_v0 = vadd.f32 %v13301_v17, %v23911_v59  ;;  %v13302_v54 = vmul.f32 %v18581_v16, %v23912_v50  ;;  %18602 = vpow2.f32 %v14950_v9  ;;  %v15349_v55 = vadd.f32 %v23916_v7, %v22261_v6  ;;  %v23918_v56 = vld [vmem:[#allocation99_spill] sm:$0xff]  ;;  %v23925_v24 = vld [vmem:[#allocation162_spill] sm:$0xff] }
 0x6c7   : > { %v18585_v61 = vpop.eup %18584  ;;  %13490 = vst [vmem:[%s21913_s26 + $0x1d8] sm:$0xff] %v13394_v43  ;;  %v13399_v27 = vadd.f32 %v13303_v23, %v23900_v48  ;;  %v13304_v38 = vmul.f32 %v18583_v3, %v22729_v10  ;;  %18604 = vpow2.f32 %v14949_v60  ;;  %v14960_v31 = vmul.f32 -1.442695, %v15316_v34  ;;  %v23921_v44 = vld [vmem:[#allocation123_spill] sm:$0xff] }
 0x6c8   : > { %v18587_v32 = vpop.eup %18586  ;;  %13493 = vst [vmem:[%s21913_s26 + $0x1f0] sm:$0xff] %v13397_v0  ;;  %v13398_v14 = vadd.f32 %v13302_v54, %v23914_v35  ;;  %v13307_v39 = vmul.f32 %v18585_v61, %v23915_v19  ;;  %18606 = vpow2.f32 %v14951_v49  ;;  %v14962_v28 = vmul.f32 -1.442695, %v15348_v29  ;;  %v23923_v3 = vld [vmem:[#allocation111_spill] sm:$0xff]  ;;  %v23924_v29 = vld [vmem:[#allocation118_spill] sm:$0xff]  ;;  %v23926_v19 = vld [vmem:[#allocation133_spill] sm:$0xff] }
 0x6c9   : > { %v18589_v20 = vpop.eup %18588  ;;  %13495 = vst [vmem:[%s21913_s26 + $0x200] sm:$0xff] %v13399_v27  ;;  %v13400_v48 = vadd.f32 %v13304_v38, %v23901_v2  ;;  %v13309_v10 = vmul.f32 %v18587_v32, %v22732_v18  ;;  %18608 = vpow2.f32 %v14954_v63  ;;  %v14961_v18 = vmul.f32 -1.442695, %v15317_v58 }
 0x6ca   : > { %v18591_v36 = vpop.eup %18590  ;;  %13494 = vst [vmem:[%s21913_s26 + $0x1f8] sm:$0xff] %v13398_v14  ;;  %v13403_v12 = vadd.f32 %v13307_v39, %v23917_v33  ;;  %v13308_v57 = vmul.f32 %v18589_v20, %v23918_v56  ;;  %18610 = vpow2.f32 %v14956_v5  ;;  %v14963_v60 = vmul.f32 -1.442695, %v15349_v55  ;;  %v23922_v5 = vld [vmem:[#allocation47_spill] sm:$0xff]  ;;  %v23927_v20 = vld [vmem:[#allocation164_spill] sm:$0xff]  ;;  %v23928_v33 = vld [vmem:[#allocation134_spill] sm:$0xff] }
 0x6cb   : > { %v18593_v47 = vpop.eup %18592  ;;  %13496 = vst [vmem:[%s21913_s26 + $0x208] sm:$0xff] %v13400_v48  ;;  %v13405_v6 = vadd.f32 %v13309_v10, %v23902_v11  ;;  %v13310_v2 = vmul.f32 %v18591_v36, %v22735_v52  ;;  %18612 = vpow2.f32 %v14955_v13  ;;  %v13220_v62 = vsub.f32 %v12548_v1, %v23921_v44 }
 0x6cc   : > { %v18595_v15 = vpop.eup %18594  ;;  %13499 = vst [vmem:[%s21913_s26 + $0x220] sm:$0xff] %v13403_v12  ;;  %v13404_v9 = vadd.f32 %v13308_v57, %v23919_v30  ;;  %v13313_v46 = vmul.f32 %v18593_v47, %v23920_v37  ;;  %18614 = vpow2.f32 %v14957_v4  ;;  %v15248_v59 = vadd.f32 %v23923_v3, %v22187_v45  ;;  %v23929_v57 = vld [vmem:[#allocation45_spill] sm:$0xff]  ;;  %v23930_v47 = vld [vmem:[#allocation166_spill] sm:$0xff]  ;;  %v23932_v37 = vld [vmem:[#allocation8_spill] sm:$0xff] }
 0x6cd   : > { %v18597_v49 = vpop.eup %18596  ;;  %13501 = vst [vmem:[%s21913_s26 + $0x230] sm:$0xff] %v13405_v6  ;;  %v13406_v11 = vadd.f32 %v13310_v2, %v23903_v40  ;;  %v13315_v52 = vmul.f32 %v18595_v15, %v22738_v8  ;;  %18616 = vpow2.f32 %v14960_v31  ;;  %v15249_v61 = vadd.f32 %v23924_v29, %v22213_v25  ;;  %v23931_v15 = vld [vmem:[#allocation122_spill] sm:$0xff] }
 0x6ce   : > { %v18599_v63 = vpop.eup %18598  ;;  %13500 = vst [vmem:[%s21913_s26 + $0x228] sm:$0xff] %v13404_v9  ;;  %v13409_v21 = vadd.f32 %v13313_v46, %v23922_v5  ;;  %v13314_v51 = vmul.f32 %v18597_v49, %v22719_v26  ;;  %18618 = vpow2.f32 %v14962_v28  ;;  %v12551_v58 = vmax.f32 %v23925_v24, 0.0  ;;  %v23933_v49 = vld [vmem:[#allocation35_spill] sm:$0xff]  ;;  %v23935_v5 = vld [vmem:[#allocation78_spill] sm:$0xff] }
 0x6cf   : > { %v18601_v17 = vpop.eup %18600  ;;  %13502 = vst [vmem:[%s21913_s26 + $0x238] sm:$0xff] %v13406_v11  ;;  %v13411_v42 = vadd.f32 %v13315_v52, %v23904_v53  ;;  %v13316_v1 = vmul.f32 %v18599_v63, %v13220_v62  ;;  %18620 = vpow2.f32 %v14961_v18  ;;  %v12553_v14 = vmax.f32 %v15248_v59, 0.0  ;;  %v23934_v62 = vld [vmem:[#allocation167_spill] sm:$0xff] }
 0x6d0   : > { %v18603_v40 = vpop.eup %18602  ;;  %13505 = vst [vmem:[%s21913_s26 + $0x250] sm:$0xff] %v13409_v21  ;;  %v13410_v8 = vadd.f32 %v13314_v51, %v23896_v22  ;;  %v12935_v13 = vadd.f32 1.0, %v18601_v17  ;;  %18622 = vpow2.f32 %v14963_v60  ;;  %v15250_v39 = vadd.f32 %v23926_v19, %v22187_v45  ;;  %v23936_v17 = vld [vmem:[#allocation44_spill] sm:$0xff] }
 0x6d1   : > { %v18605_v4 = vpop.eup %18604  ;;  %13507 = vst [vmem:[%s21913_s26 + $0x260] sm:$0xff] %v13411_v42  ;;  %v13412_v16 = vadd.f32 %v13316_v1, %v23921_v44  ;;  %v12937_v26 = vadd.f32 1.0, %v18603_v40  ;;  %v12552_v48 = vmax.f32 %v23927_v20, 0.0  ;;  %v12554_v36 = vmax.f32 %v15249_v61, 0.0  ;;  %v23944_v20 = vld [vmem:[#allocation135_spill] sm:$0xff] }
 0x6d2   : > { %v18607_v43 = vpop.eup %18606  ;;  %13506 = vst [vmem:[%s21913_s26 + $0x258] sm:$0xff] %v13410_v8  ;;  %18624 = vrcp.f32 %v12935_v13  ;;  %v12936_v23 = vadd.f32 1.0, %v18605_v4  ;;  %v15251_v12 = vadd.f32 %v23928_v33, %v22213_v25  ;;  %v13223_v28 = vsub.f32 %v12551_v58, %v23929_v57  ;;  %v23937_v8 = vld [vmem:[#allocation83_spill] sm:$0xff]  ;;  %v23938_v13 = vld [vmem:[#allocation168_spill] sm:$0xff] }
 0x6d3   : > { %v18609_v41 = vpop.eup %18608  ;;  %13508 = vst [vmem:[%s21913_s26 + $0x268] sm:$0xff] %v13412_v16  ;;  %18626 = vrcp.f32 %v12937_v26  ;;  %v12938_v53 = vadd.f32 1.0, %v18607_v43  ;;  %v12557_v6 = vmax.f32 %v23930_v47, 0.0  ;;  %v13225_v30 = vsub.f32 %v12553_v14, %v23931_v15  ;;  %v23943_v14 = vld [vmem:[#allocation39_spill] sm:$0xff]  ;;  %v23946_v47 = vld [vmem:[#allocation130_spill] sm:$0xff] }
 0x6d4   : > { %v18611_v34 = vpop.eup %18610  ;;  %18628 = vrcp.f32 %v12936_v23  ;;  %v12941_v22 = vadd.f32 1.0, %v18609_v41  ;;  %v12559_v9 = vmax.f32 %v15250_v39, 0.0  ;;  %v15252_v46 = vadd.f32 %v23932_v37, %v22187_v45  ;;  %v23939_v23 = vld [vmem:[#allocation136_spill] sm:$0xff]  ;;  %v23945_v33 = vld [vmem:[#allocation127_spill] sm:$0xff] }
 0x6d5   : > { %v18613_v0 = vpop.eup %18612  ;;  %18630 = vrcp.f32 %v12938_v53  ;;  %v12943_v50 = vadd.f32 1.0, %v18611_v34  ;;  %v13224_v44 = vsub.f32 %v12552_v48, %v23933_v49  ;;  %v12558_v11 = vmax.f32 %v23934_v62, 0.0 }
 0x6d6   : > { %v18615_v54 = vpop.eup %18614  ;;  %18632 = vrcp.f32 %v12941_v22  ;;  %v12942_v27 = vadd.f32 1.0, %v18613_v0  ;;  %v13226_v21 = vsub.f32 %v12554_v36, %v23935_v5  ;;  %v12560_v51 = vmax.f32 %v15251_v12, 0.0  ;;  %v23941_v0 = vld [vmem:[#allocation169_spill] sm:$0xff] }
 0x6d7   : > { %v18617_v38 = vpop.eup %18616  ;;  %18634 = vrcp.f32 %v12943_v50  ;;  %v12944_v32 = vadd.f32 1.0, %v18615_v54  ;;  %v15253_v42 = vadd.f32 %v23936_v17, %v22213_v25  ;;  %v13229_v45 = vsub.f32 %v12557_v6, %v23937_v8  ;;  %v23940_v25 = vld [vmem:[#allocation126_spill] sm:$0xff] }
 0x6d8   : > { %v18619_v35 = vpop.eup %18618  ;;  %18636 = vrcp.f32 %v12942_v27  ;;  %v12947_v7 = vadd.f32 1.0, %v18617_v38  ;;  %v12563_v4 = vmax.f32 %v23938_v13, 0.0  ;;  %v13231_v41 = vsub.f32 %v12559_v9, %v23939_v23  ;;  %v23942_v27 = vld [vmem:[#allocation132_spill] sm:$0xff] }
 0x6d9   : > { %v18621_v55 = vpop.eup %18620  ;;  %18638 = vrcp.f32 %v12944_v32  ;;  %v12949_v10 = vadd.f32 1.0, %v18619_v35  ;;  %v12565_v53 = vmax.f32 %v15252_v46, 0.0  ;;  %v13230_v22 = vsub.f32 %v12558_v11, %v23940_v25 }
 0x6da   : > { %v18623_v31 = vpop.eup %18622  ;;  %18640 = vrcp.f32 %v12947_v7  ;;  %v12948_v56 = vadd.f32 1.0, %v18621_v55  ;;  %v12564_v50 = vmax.f32 %v23941_v0, 0.0  ;;  %v13232_v38 = vsub.f32 %v12560_v51, %v23942_v27 }
 0x6db   : > { %18642 = vrcp.f32 %v12949_v10  ;;  %v12950_v2 = vadd.f32 1.0, %v18623_v31  ;;  %v12566_v24 = vmax.f32 %v15253_v42, 0.0  ;;  %v13235_v19 = vsub.f32 %v12563_v4, %v23943_v14 }
 0x6dc   : > { %v18625_v18 = vpop.eup %18624  ;;  %18644 = vrcp.f32 %v12948_v56  ;;  %v13237_v48 = vsub.f32 %v12565_v53, %v23944_v20  ;;  %v13236_v12 = vsub.f32 %v12564_v50, %v23945_v33 }
 0x6dd   : > { %v18627_v60 = vpop.eup %18626  ;;  %v13319_v52 = vmul.f32 %v18625_v18, %v13223_v28  ;;  %18646 = vrcp.f32 %v12950_v2  ;;  %v13238_v6 = vsub.f32 %v12566_v24, %v23946_v47 }
 0x6de   : > { %v18629_v63 = vpop.eup %18628  ;;  %v13321_v1 = vmul.f32 %v18627_v60, %v13225_v30 }
 0x6df   : > { %v18631_v40 = vpop.eup %18630  ;;  %v13415_v16 = vadd.f32 %v13319_v52, %v23929_v57  ;;  %v13320_v26 = vmul.f32 %v18629_v63, %v13224_v44 }
 0x6e0   : > { %v18633_v43 = vpop.eup %18632  ;;  %v13417_v34 = vadd.f32 %v13321_v1, %v23931_v15  ;;  %v13322_v3 = vmul.f32 %v18631_v40, %v13226_v21 }
 0x6e1   : > { %v18635_v59 = vpop.eup %18634  ;;  %13511 = vst [vmem:[%s21913_s26 + $0x280] sm:$0xff] %v13415_v16  ;;  %v13416_v54 = vadd.f32 %v13320_v26, %v23933_v49  ;;  %v13325_v29 = vmul.f32 %v18633_v43, %v13229_v45 }
 0x6e2   : > { %v18637_v61 = vpop.eup %18636  ;;  %13513 = vst [vmem:[%s21913_s26 + $0x290] sm:$0xff] %v13417_v34  ;;  %v13418_v58 = vadd.f32 %v13322_v3, %v23935_v5  ;;  %v13327_v32 = vmul.f32 %v18635_v59, %v13231_v41 }
 0x6e3   : > { %v18639_v35 = vpop.eup %18638  ;;  %13512 = vst [vmem:[%s21913_s26 + $0x288] sm:$0xff] %v13416_v54  ;;  %v13421_v39 = vadd.f32 %v13325_v29, %v23937_v8  ;;  %v13326_v7 = vmul.f32 %v18637_v61, %v13230_v22 }
 0x6e4   : > { %v18641_v55 = vpop.eup %18640  ;;  %13514 = vst [vmem:[%s21913_s26 + $0x298] sm:$0xff] %v13418_v58  ;;  %v13423_v10 = vadd.f32 %v13327_v32, %v23939_v23  ;;  %v13328_v31 = vmul.f32 %v18639_v35, %v13232_v38 }
 0x6e5   : > { %v18643_v36 = vpop.eup %18642  ;;  %13517 = vst [vmem:[%s21913_s26 + $0x2b0] sm:$0xff] %v13421_v39  ;;  %v13422_v56 = vadd.f32 %v13326_v7, %v23940_v25  ;;  %v13331_v57 = vmul.f32 %v18641_v55, %v13235_v19 }
 0x6e6   : > { %v18645_v28 = vpop.eup %18644  ;;  %13519 = vst [vmem:[%s21913_s26 + $0x2c0] sm:$0xff] %v13423_v10  ;;  %v13424_v2 = vadd.f32 %v13328_v31, %v23942_v27  ;;  %v13333_v18 = vmul.f32 %v18643_v36, %v13237_v48 }
 0x6e7   : > { %v18647_v15 = vpop.eup %18646  ;;  %13518 = vst [vmem:[%s21913_s26 + $0x2b8] sm:$0xff] %v13422_v56  ;;  %v13427_v30 = vadd.f32 %v13331_v57, %v23943_v14  ;;  %v13332_v9 = vmul.f32 %v18645_v28, %v13236_v12 }
 0x6e8   : > { %13520 = vst [vmem:[%s21913_s26 + $0x2c8] sm:$0xff] %v13424_v2  ;;  %v13429_v37 = vadd.f32 %v13333_v18, %v23944_v20  ;;  %v13334_v46 = vmul.f32 %v18647_v15, %v13238_v6 }
 0x6e9   : > { %13523 = vst [vmem:[%s21913_s26 + $0x2e0] sm:$0xff] %v13427_v30  ;;  %v13428_v60 = vadd.f32 %v13332_v9, %v23945_v33 }
 0x6ea   : > { %13525 = vst [vmem:[%s21913_s26 + $0x2f0] sm:$0xff] %v13429_v37  ;;  %v13430_v49 = vadd.f32 %v13334_v46, %v23946_v47 }
 0x6eb   : > { %13524 = vst [vmem:[%s21913_s26 + $0x2e8] sm:$0xff] %v13428_v60 }
 0x6ec   : > { %13526 = vst [vmem:[%s21913_s26 + $0x2f8] sm:$0xff] %v13430_v49 }
 0x6ed PF: > { %s15_s12 = sadd.s32 1, %s18848_s12  }
 0x6ee   : > { %p12_p2 = scmp.ge.s32.totalorder %s15_s12, 4  }
 0x6f0   :  { %14 = sbr.rel (!%p12_p2) target bundleno = 2 (0x2), region = 73 }
 0x6f7   :  { %13551 = vsyncpa [#allocation3], 1 }
 0x6f8   :  { %13553 = vsyncpa [#allocation3 + $0x1], 1 }
 0x6f9   :  { %13554 = vsyncpa [#allocation5], 1 }

</bundles_post_ra>
